<compile_context>
chip_gen: v7x
topology: tpu7x:2x2x1
jax: 0.10.0
libtpu: 0.0.40
codegen_flags: <defaults>
</compile_context>

<pallas_src>
import functools

import jax
import jax.numpy as jnp
from jax.experimental import pallas as pl
from jax.experimental.pallas import tpu as pltpu

BN_EPS = 1e-5
VMEM_LIMIT = 32 * 1024 * 1024  # well above the <3 MiB working sets; valid on v5e/v6e/v7x


# ----------------------------------------------------------------------------
# Pallas kernels
# ----------------------------------------------------------------------------
def convblock_kernel(p_ref, w_ref, shift_ref, o_ref):
    """Fused conv (one dot over 4 interleaved pool offsets) + BN shift + ReLU + 2x2 max-pool.

    Shapes (per grid step):
      p_ref     : [K, 4*TN]  bf16  patches: [off0 | off1 | off2 | off3], TN lanes each
      w_ref     : [Cout, K]  bf16  conv weight with BN scale folded in (K = kh*kw*cin)
      shift_ref : [Cout, 1]  f32   folded conv-bias + BN shift
      o_ref     : [Cout, TN] bf16  pooled activations (lane-dense on M)
    """
    tn = o_ref.shape[1]
    acc = jnp.dot(w_ref[...], p_ref[...],
                  preferred_element_type=jnp.float32)          # [Cout, 4*TN] f32
    z = jnp.maximum(jnp.maximum(acc[:, 0 * tn:1 * tn], acc[:, 1 * tn:2 * tn]),
                    jnp.maximum(acc[:, 2 * tn:3 * tn], acc[:, 3 * tn:4 * tn]))
    # Shift once after the max (scale is already inside the matmul), then ReLU.
    o_ref[...] = jnp.maximum(z + shift_ref[...], 0.0).astype(o_ref.dtype)


def tail_kernel(p_ref, w3_ref, shift3_ref, w1_ref, b1_ref, w2_ref, b2_ref, o_ref):
    """layer3 conv+BN+ReLU+pool, NCHW flatten, fc1 -> ReLU -> fc2, all fused.

    Shapes:
      p_ref     : [4, S*B, K3] bf16  patches: (pool offset, row=(spatial s, batch b), K)
      w3_ref    : [K3, C3]     bf16  layer3 conv weight, BN scale folded into columns
      shift3_ref: [1, C3]      f32   folded bias + BN shift
      w1_ref    : [S, C3, H1]  f32   fc1 weight regrouped per spatial position
      b1_ref    : [1, H1]      f32
      w2_ref    : [H1, O]      f32
      b2_ref    : [1, O]       f32
      o_ref     : [B, O]       f32
    """
    w3 = w3_ref[...]
    z = None
    for o in range(p_ref.shape[0]):                               # unrolled (4 offsets)
        y = jnp.dot(p_ref[o], w3, preferred_element_type=jnp.float32)   # [S*B, C3]
        z = y if z is None else jnp.maximum(z, y)
    z = jnp.maximum(z + shift3_ref[...], 0.0)                     # shift once, then ReLU

    S = w1_ref.shape[0]
    B = o_ref.shape[0]
    H1 = w1_ref.shape[2]
    acc = jnp.zeros((B, H1), jnp.float32)
    for s in range(S):                                            # unrolled (S=9) fc1 accumulation
        acc = acc + jnp.dot(z[s * B:(s + 1) * B, :], w1_ref[s],
                            preferred_element_type=jnp.float32)
    h = jnp.maximum(acc + b1_ref[...], 0.0)                       # fc1 + ReLU
    # Dropout(0.5) is inference-identity (and unused in the reference forward).
    o_ref[...] = jnp.dot(h, w2_ref[...],
                         preferred_element_type=jnp.float32) + b2_ref[...]


# ----------------------------------------------------------------------------
# Wrappers (layout plumbing in plain JAX; all heavy math inside pallas_call)
# ----------------------------------------------------------------------------
def _bn_affine(b, gamma, beta, mean, var):
    """Fold conv bias + eval BatchNorm into per-channel (scale, shift)."""
    scale = gamma / jnp.sqrt(var + BN_EPS)
    shift = beta + (b - mean) * scale
    return scale.astype(jnp.float32), shift.astype(jnp.float32)


def conv_bn_relu_pool_block(a_cm, params, *, tn):
    """One Sequential(Conv2d(k3,s2), BN, ReLU, MaxPool2d(2)) block.

    a_cm   : [Cin, B, H, W] bf16 activations in channel-major layout.
    returns: [Cout, B, OH2, OW2] bf16
    """
    w, b, gamma, beta, mean, var = params
    Cout, Cin = w.shape[0], w.shape[1]
    _, B, H, W = a_cm.shape
    OH = (H - 3) // 2 + 1
    OW = (W - 3) // 2 + 1
    OH2, OW2 = OH // 2, OW // 2            # MaxPool2d(2), floor mode (matches PyTorch)
    Mq = B * OH2 * OW2
    K = 9 * Cin

    scale, shift = _bn_affine(b, gamma, beta, mean, var)
    # weight [Cout,Cin,3,3] -> [Cout,K], K-order (kh,kw,cin); BN scale folded in.
    w_mat = (jnp.transpose(w, (0, 2, 3, 1)).reshape(Cout, K)
             * scale[:, None]).astype(jnp.bfloat16)
    shift_col = shift.reshape(Cout, 1).astype(jnp.float32)

    # ONE fused patch tensor: for each pool offset, [K, Mq] with M ordered (b, i, j).
    def offset_patches(a, bb):
        taps = []
        for di in range(3):
            for dj in range(3):
                r0, c0 = 2 * a + di, 2 * bb + dj
                sl = a_cm[:, :, r0:r0 + 4 * OH2:4, c0:c0 + 4 * OW2:4]   # [Cin,B,OH2,OW2]
                taps.append(sl.reshape(Cin, Mq))
            # K-order within the concat: (kh, kw, cin) — matches w_mat.
        return jnp.concatenate(taps, axis=0)                            # [K, Mq]

    p4 = jnp.stack([offset_patches(a, bb) for a in (0, 1) for bb in (0, 1)],
                   axis=0).astype(jnp.bfloat16)                          # [4, K, Mq]

    tn = min(tn, pl.cdiv(Mq, 128) * 128)
    assert tn % 128 == 0
    n_blk = pl.cdiv(Mq, tn)
    Mp = n_blk * tn
    if Mp != Mq:
        p4 = jnp.pad(p4, ((0, 0), (0, 0), (0, Mp - Mq)))
    # Interleave per tile: P[k, i*4*tn + o*tn + t] = p4[o, k, i*tn + t]  -> [K, n_blk*4*tn]
    p = jnp.transpose(p4.reshape(4, K, n_blk, tn), (1, 2, 0, 3)).reshape(K, n_blk * 4 * tn)

    out = pl.pallas_call(
        convblock_kernel,
        out_shape=jax.ShapeDtypeStruct((Cout, Mp), jnp.bfloat16),
        grid_spec=pltpu.PrefetchScalarGridSpec(
            num_scalar_prefetch=0,
            grid=(n_blk,),
            in_specs=[
                pl.BlockSpec((K, 4 * tn), lambda i: (0, i)),
                pl.BlockSpec((Cout, K), lambda i: (0, 0)),
                pl.BlockSpec((Cout, 1), lambda i: (0, 0)),
            ],
            out_specs=pl.BlockSpec((Cout, tn), lambda i: (0, i)),
        ),
        compiler_params=pltpu.CompilerParams(
            dimension_semantics=("parallel",),
            vmem_limit_bytes=VMEM_LIMIT,
        ),
    )(p, w_mat, shift_col)

    # Drop padded columns (pooled only within themselves, never mixed into real outputs).
    return out[:, :Mq].reshape(Cout, B, OH2, OW2)


def tail_block(a_cm, conv_params, fc_params):
    """Fused layer3 (conv+BN+ReLU+pool) + flatten + fc1 + ReLU + fc2.

    a_cm: [Cin, B, H, W] bf16 (= [32, B, 13, 13] for the reference geometry).
    """
    w3, b3, gamma, beta, mean, var = conv_params
    w1, b1, w2, b2 = fc_params             # w1: [C3*S, H1] rows in torch (c, h, w) order
    Cin, B, H, W = a_cm.shape
    Cout = w3.shape[0]
    OH = (H - 3) // 2 + 1
    OW = (W - 3) // 2 + 1
    OH2, OW2 = OH // 2, OW // 2
    S = OH2 * OW2
    K = 9 * Cin

    scale, shift = _bn_affine(b3, gamma, beta, mean, var)
    w3_mat = (jnp.transpose(w3, (2, 3, 1, 0)).reshape(K, Cout)
              * scale[None, :]).astype(jnp.bfloat16)                     # [K, C3]
    shift3 = shift.reshape(1, Cout).astype(jnp.float32)

    # ONE fused patch tensor p[offset, row=(s,b), K]; K-order (kh,kw,cin) matches w3_mat.
    p_list = []
    for (a, bb) in ((0, 0), (0, 1), (1, 0), (1, 1)):
        taps = []
        for di in range(3):
            for dj in range(3):
                r0, c0 = 2 * a + di, 2 * bb + dj
                sl = a_cm[:, :, r0:r0 + 4 * OH2:4, c0:c0 + 4 * OW2:4]    # [Cin,B,OH2,OW2]
                taps.append(jnp.transpose(sl, (2, 3, 1, 0)))             # [OH2,OW2,B,Cin]
        tap = jnp.concatenate(taps, axis=-1)                             # [OH2,OW2,B,K]
        p_list.append(tap.reshape(S * B, K))                             # rows = s*B + b
    p = jnp.stack(p_list, axis=0).astype(jnp.bfloat16)                   # [4, S*B, K]

    # fc1 weight rows are in PyTorch flatten order (c, h, w): row = c*S + s.
    # Regroup per spatial position so the flatten never happens in-kernel.
    H1 = w1.shape[1]
    O = w2.shape[1]
    w1r = jnp.transpose(w1.reshape(Cout, S, H1), (1, 0, 2)).astype(jnp.float32)  # [S,C3,H1]
    b1r = b1.reshape(1, H1).astype(jnp.float32)
    w2m = w2.astype(jnp.float32)
    b2r = b2.reshape(1, O).astype(jnp.float32)

    return pl.pallas_call(
        tail_kernel,
        out_shape=jax.ShapeDtypeStruct((B, O), jnp.float32),
        grid_spec=pltpu.PrefetchScalarGridSpec(
            num_scalar_prefetch=0,
            grid=(1,),
            in_specs=[
                pl.BlockSpec(p.shape, lambda i: (0, 0, 0)),
                pl.BlockSpec(w3_mat.shape, lambda i: (0, 0)),
                pl.BlockSpec(shift3.shape, lambda i: (0, 0)),
                pl.BlockSpec(w1r.shape, lambda i: (0, 0, 0)),
                pl.BlockSpec(b1r.shape, lambda i: (0, 0)),
                pl.BlockSpec(w2m.shape, lambda i: (0, 0)),
                pl.BlockSpec(b2r.shape, lambda i: (0, 0)),
            ],
            out_specs=pl.BlockSpec((B, O), lambda i: (0, 0)),
        ),
        compiler_params=pltpu.CompilerParams(
            dimension_semantics=("arbitrary",),
            vmem_limit_bytes=VMEM_LIMIT,
        ),
    )(p, w3_mat, shift3, w1r, b1r, w2m, b2r)


# ----------------------------------------------------------------------------
# Full model forward
# ----------------------------------------------------------------------------
def _pick_layer1_tile():
    """Dual-TensorCore chips (v7x / v4 megacore): 2 parallel steps; single-TC: 1 step."""
    try:
        kind = jax.devices()[0].device_kind.lower()
    except Exception:
        kind = ""
    dual_tc = ("v7" in kind) or ("7x" in kind) or ("v4" in kind)
    return 3072 if dual_tc else 6144


@functools.partial(jax.jit, static_argnames=("tn1",))
def cnn_forward(x_nchw, params, tn1=3072):
    # NCHW -> channel-major [C, B, H, W] bf16 so per-tap patch slices are reshape-only.
    a = jnp.transpose(x_nchw, (1, 0, 2, 3)).astype(jnp.bfloat16)    # [3, B, 224, 224]
    a = conv_bn_relu_pool_block(a, params["layer1"], tn=tn1)        # [16, B, 55, 55]
    a = conv_bn_relu_pool_block(a, params["layer2"], tn=384)        # [32, B, 13, 13]
    return tail_block(a, params["layer3"], params["fc"])            # [B, 6] f32


def init_params(key):
    def conv_bn(k, cout, cin):
        kw, kb, kg, kbe, km, kv = jax.random.split(k, 6)
        w = 0.1 * jax.random.normal(kw, (cout, cin, 3, 3), jnp.float32)
        b = 0.1 * jax.random.normal(kb, (cout,), jnp.float32)
        gamma = 1.0 + 0.1 * jax.random.normal(kg, (cout,), jnp.float32)
        beta = 0.1 * jax.random.normal(kbe, (cout,), jnp.float32)
        mean = 0.05 * jax.random.normal(km, (cout,), jnp.float32)
        var = 0.5 + jax.random.uniform(kv, (cout,), jnp.float32)
        return (w, b, gamma, beta, mean, var)

    k1, k2, k3, k4, k5, k6, k7 = jax.random.split(key, 7)
    return {
        "layer1": conv_bn(k1, 16, 3),
        "layer2": conv_bn(k2, 32, 16),
        "layer3": conv_bn(k3, 64, 32),
        "fc": (
            # fc1 weight stored as [in=576, out=10] (== torch fc1.weight.T),
            # rows in PyTorch (c, h, w) flatten order; fc2 as [10, 6].
            0.05 * jax.random.normal(k4, (576, 10), jnp.float32),
            0.05 * jax.random.normal(k5, (10,), jnp.float32),
            0.05 * jax.random.normal(k6, (10, 6), jnp.float32),
            0.05 * jax.random.normal(k7, (6,), jnp.float32),
        ),
    }


if __name__ == "__main__":
    key = jax.random.PRNGKey(0)
    params = init_params(key)
    # fc1 expects 3*3*64 = 576 features, which pins the spatial input to 224x224;
    # batch is kept small (2).
    x = jax.random.normal(jax.random.fold_in(key, 999), (2, 3, 224, 224), jnp.float32)
    out = cnn_forward(x, params, tn1=_pick_layer1_tile())
    jax.block_until_ready(out)
    assert out.shape == (2, 6), out.shape
    print("KERNEL_OK")
</pallas_src>

<mosaic_0001>
module attributes {stable_mosaic.version = 11 : i64} {
  func.func @convblock_kernel(%arg0: i32, %arg1: memref<27x24576xbf16, #tpu.memory_space<vmem>>, %arg2: memref<16x27xbf16, #tpu.memory_space<vmem>>, %arg3: memref<16x1xf32, #tpu.memory_space<vmem>>, %arg4: memref<16x6144xbf16, #tpu.memory_space<vmem>>) attributes {dimension_semantics = [#tpu.dimension_semantics<parallel>], iteration_bounds = array<i64: 1>, scalar_prefetch = 0 : i64, scratch_operands = 0 : i64, tpu.core_type = #tpu.core_type<tc>, window_params = [{transform_indices = @transform_0, window_bounds = array<i64: 27, 24576>}, {pipeline_mode = #tpu.pipeline_mode<synchronous>, transform_indices = @transform_1, window_bounds = array<i64: 16, 27>}, {pipeline_mode = #tpu.pipeline_mode<synchronous>, transform_indices = @transform_2, window_bounds = array<i64: 16, 1>}, {transform_indices = @transform_3, window_bounds = array<i64: 16, 6144>}]} {
    %c0 = arith.constant 0 : index
    %c0_0 = arith.constant 0 : index
    %0 = vector.load %arg2[%c0, %c0_0] : memref<16x27xbf16, #tpu.memory_space<vmem>>, vector<16x27xbf16>
    %c0_1 = arith.constant 0 : index
    %c0_2 = arith.constant 0 : index
    %1 = vector.load %arg1[%c0_1, %c0_2] : memref<27x24576xbf16, #tpu.memory_space<vmem>>, vector<27x24576xbf16>
    %cst = arith.constant dense<0.000000e+00> : vector<16x24576xf32>
    %2 = tpu.matmul %0, %1, %cst {dimension_numbers = #tpu.dot_dimension_numbers<[1], [0], [0], [1], [0, 0, 1, 1], [], []>} : vector<16x27xbf16>, vector<27x24576xbf16>, vector<16x24576xf32> -> vector<16x24576xf32>
    %3 = vector.extract_strided_slice %2 {offsets = [0, 0], sizes = [16, 6144], strides = [1, 1]} : vector<16x24576xf32> to vector<16x6144xf32>
    %4 = vector.extract_strided_slice %2 {offsets = [0, 6144], sizes = [16, 6144], strides = [1, 1]} : vector<16x24576xf32> to vector<16x6144xf32>
    %5 = arith.maximumf %3, %4 : vector<16x6144xf32>
    %6 = vector.extract_strided_slice %2 {offsets = [0, 12288], sizes = [16, 6144], strides = [1, 1]} : vector<16x24576xf32> to vector<16x6144xf32>
    %7 = vector.extract_strided_slice %2 {offsets = [0, 18432], sizes = [16, 6144], strides = [1, 1]} : vector<16x24576xf32> to vector<16x6144xf32>
    %8 = arith.maximumf %6, %7 : vector<16x6144xf32>
    %9 = arith.maximumf %5, %8 : vector<16x6144xf32>
    %c0_3 = arith.constant 0 : index
    %c0_4 = arith.constant 0 : index
    %10 = vector.load %arg3[%c0_3, %c0_4] : memref<16x1xf32, #tpu.memory_space<vmem>>, vector<16x1xf32>
    %11 = vector.broadcast %10 : vector<16x1xf32> to vector<16x6144xf32>
    %12 = arith.addf %9, %11 : vector<16x6144xf32>
    %cst_5 = arith.constant 0.000000e+00 : f32
    %13 = vector.broadcast %cst_5 : f32 to vector<16x6144xf32>
    %14 = arith.maximumf %12, %13 : vector<16x6144xf32>
    %15 = arith.truncf %14 : vector<16x6144xf32> to vector<16x6144xbf16>
    %c0_6 = arith.constant 0 : index
    %c0_7 = arith.constant 0 : index
    %16 = vector.load %arg4[%c0_6, %c0_7] : memref<16x6144xbf16, #tpu.memory_space<vmem>>, vector<16x6144xbf16>
    tpu.vector_store %arg4[%c0_6, %c0_7], %15 {strides = array<i32>} : memref<16x6144xbf16, #tpu.memory_space<vmem>>, vector<16x6144xbf16>,
    return
  }
  func.func @transform_0(%arg0: i32) -> (i32, i32) {
    %c0_i32 = arith.constant 0 : i32
    %c0_i32_0 = arith.constant 0 : i32
    return %c0_i32, %arg0 : i32, i32
  }
  func.func @transform_1(%arg0: i32) -> (i32, i32) {
    %c0_i32 = arith.constant 0 : i32
    %c0_i32_0 = arith.constant 0 : i32
    %c0_i32_1 = arith.constant 0 : i32
    return %c0_i32, %c0_i32_0 : i32, i32
  }
  func.func @transform_2(%arg0: i32) -> (i32, i32) {
    %c0_i32 = arith.constant 0 : i32
    %c0_i32_0 = arith.constant 0 : i32
    %c0_i32_1 = arith.constant 0 : i32
    return %c0_i32, %c0_i32_0 : i32, i32
  }
  func.func @transform_3(%arg0: i32) -> (i32, i32) {
    %c0_i32 = arith.constant 0 : i32
    %c0_i32_0 = arith.constant 0 : i32
    return %c0_i32, %arg0 : i32, i32
  }
}

module attributes {stable_mosaic.version = 11 : i64} {
  func.func @convblock_kernel(%arg0: i32, %arg1: memref<144x1536xbf16, #tpu.memory_space<vmem>>, %arg2: memref<32x144xbf16, #tpu.memory_space<vmem>>, %arg3: memref<32x1xf32, #tpu.memory_space<vmem>>, %arg4: memref<32x384xbf16, #tpu.memory_space<vmem>>) attributes {dimension_semantics = [#tpu.dimension_semantics<parallel>], iteration_bounds = array<i64: 1>, scalar_prefetch = 0 : i64, scratch_operands = 0 : i64, tpu.core_type = #tpu.core_type<tc>, window_params = [{transform_indices = @transform_0, window_bounds = array<i64: 144, 1536>}, {pipeline_mode = #tpu.pipeline_mode<synchronous>, transform_indices = @transform_1, window_bounds = array<i64: 32, 144>}, {pipeline_mode = #tpu.pipeline_mode<synchronous>, transform_indices = @transform_2, window_bounds = array<i64: 32, 1>}, {transform_indices = @transform_3, window_bounds = array<i64: 32, 384>}]} {
    %c0 = arith.constant 0 : index
    %c0_0 = arith.constant 0 : index
    %0 = vector.load %arg2[%c0, %c0_0] : memref<32x144xbf16, #tpu.memory_space<vmem>>, vector<32x144xbf16>
    %c0_1 = arith.constant 0 : index
    %c0_2 = arith.constant 0 : index
    %1 = vector.load %arg1[%c0_1, %c0_2] : memref<144x1536xbf16, #tpu.memory_space<vmem>>, vector<144x1536xbf16>
    %cst = arith.constant dense<0.000000e+00> : vector<32x1536xf32>
    %2 = tpu.matmul %0, %1, %cst {dimension_numbers = #tpu.dot_dimension_numbers<[1], [0], [0], [1], [0, 0, 1, 1], [], []>} : vector<32x144xbf16>, vector<144x1536xbf16>, vector<32x1536xf32> -> vector<32x1536xf32>
    %3 = vector.extract_strided_slice %2 {offsets = [0, 0], sizes = [32, 384], strides = [1, 1]} : vector<32x1536xf32> to vector<32x384xf32>
    %4 = vector.extract_strided_slice %2 {offsets = [0, 384], sizes = [32, 384], strides = [1, 1]} : vector<32x1536xf32> to vector<32x384xf32>
    %5 = arith.maximumf %3, %4 : vector<32x384xf32>
    %6 = vector.extract_strided_slice %2 {offsets = [0, 768], sizes = [32, 384], strides = [1, 1]} : vector<32x1536xf32> to vector<32x384xf32>
    %7 = vector.extract_strided_slice %2 {offsets = [0, 1152], sizes = [32, 384], strides = [1, 1]} : vector<32x1536xf32> to vector<32x384xf32>
    %8 = arith.maximumf %6, %7 : vector<32x384xf32>
    %9 = arith.maximumf %5, %8 : vector<32x384xf32>
    %c0_3 = arith.constant 0 : index
    %c0_4 = arith.constant 0 : index
    %10 = vector.load %arg3[%c0_3, %c0_4] : memref<32x1xf32, #tpu.memory_space<vmem>>, vector<32x1xf32>
    %11 = vector.broadcast %10 : vector<32x1xf32> to vector<32x384xf32>
    %12 = arith.addf %9, %11 : vector<32x384xf32>
    %cst_5 = arith.constant 0.000000e+00 : f32
    %13 = vector.broadcast %cst_5 : f32 to vector<32x384xf32>
    %14 = arith.maximumf %12, %13 : vector<32x384xf32>
    %15 = arith.truncf %14 : vector<32x384xf32> to vector<32x384xbf16>
    %c0_6 = arith.constant 0 : index
    %c0_7 = arith.constant 0 : index
    %16 = vector.load %arg4[%c0_6, %c0_7] : memref<32x384xbf16, #tpu.memory_space<vmem>>, vector<32x384xbf16>
    tpu.vector_store %arg4[%c0_6, %c0_7], %15 {strides = array<i32>} : memref<32x384xbf16, #tpu.memory_space<vmem>>, vector<32x384xbf16>,
    return
  }
  func.func @transform_0(%arg0: i32) -> (i32, i32) {
    %c0_i32 = arith.constant 0 : i32
    %c0_i32_0 = arith.constant 0 : i32
    return %c0_i32, %arg0 : i32, i32
  }
  func.func @transform_1(%arg0: i32) -> (i32, i32) {
    %c0_i32 = arith.constant 0 : i32
    %c0_i32_0 = arith.constant 0 : i32
    %c0_i32_1 = arith.constant 0 : i32
    return %c0_i32, %c0_i32_0 : i32, i32
  }
  func.func @transform_2(%arg0: i32) -> (i32, i32) {
    %c0_i32 = arith.constant 0 : i32
    %c0_i32_0 = arith.constant 0 : i32
    %c0_i32_1 = arith.constant 0 : i32
    return %c0_i32, %c0_i32_0 : i32, i32
  }
  func.func @transform_3(%arg0: i32) -> (i32, i32) {
    %c0_i32 = arith.constant 0 : i32
    %c0_i32_0 = arith.constant 0 : i32
    return %c0_i32, %arg0 : i32, i32
  }
}

module attributes {stable_mosaic.version = 11 : i64} {
  func.func @tail_kernel(%arg0: i32, %arg1: memref<4x18x288xbf16, #tpu.memory_space<vmem>>, %arg2: memref<288x64xbf16, #tpu.memory_space<vmem>>, %arg3: memref<1x64xf32, #tpu.memory_space<vmem>>, %arg4: memref<9x64x10xf32, #tpu.memory_space<vmem>>, %arg5: memref<1x10xf32, #tpu.memory_space<vmem>>, %arg6: memref<10x6xf32, #tpu.memory_space<vmem>>, %arg7: memref<1x6xf32, #tpu.memory_space<vmem>>, %arg8: memref<2x6xf32, #tpu.memory_space<vmem>>) attributes {dimension_semantics = [#tpu.dimension_semantics<arbitrary>], iteration_bounds = array<i64: 1>, scalar_prefetch = 0 : i64, scratch_operands = 0 : i64, tpu.core_type = #tpu.core_type<tc>, window_params = [{pipeline_mode = #tpu.pipeline_mode<synchronous>, transform_indices = @transform_0, window_bounds = array<i64: 4, 18, 288>}, {pipeline_mode = #tpu.pipeline_mode<synchronous>, transform_indices = @transform_1, window_bounds = array<i64: 288, 64>}, {pipeline_mode = #tpu.pipeline_mode<synchronous>, transform_indices = @transform_2, window_bounds = array<i64: 1, 64>}, {pipeline_mode = #tpu.pipeline_mode<synchronous>, transform_indices = @transform_3, window_bounds = array<i64: 9, 64, 10>}, {pipeline_mode = #tpu.pipeline_mode<synchronous>, transform_indices = @transform_4, window_bounds = array<i64: 1, 10>}, {pipeline_mode = #tpu.pipeline_mode<synchronous>, transform_indices = @transform_5, window_bounds = array<i64: 10, 6>}, {pipeline_mode = #tpu.pipeline_mode<synchronous>, transform_indices = @transform_6, window_bounds = array<i64: 1, 6>}, {pipeline_mode = #tpu.pipeline_mode<synchronous>, transform_indices = @transform_7, window_bounds = array<i64: 2, 6>}]} {
    %c0 = arith.constant 0 : index
    %c0_0 = arith.constant 0 : index
    %0 = vector.load %arg2[%c0, %c0_0] : memref<288x64xbf16, #tpu.memory_space<vmem>>, vector<288x64xbf16>
    %c0_1 = arith.constant 0 : index
    %c0_2 = arith.constant 0 : index
    %c0_3 = arith.constant 0 : index
    %1 = vector.load %arg1[%c0_1, %c0_2, %c0_3] : memref<4x18x288xbf16, #tpu.memory_space<vmem>>, vector<1x18x288xbf16>
    %2 = vector.shape_cast %1 : vector<1x18x288xbf16> to vector<18x288xbf16>
    %cst = arith.constant dense<0.000000e+00> : vector<18x64xf32>
    %3 = tpu.matmul %2, %0, %cst {dimension_numbers = #tpu.dot_dimension_numbers<[1], [0], [0], [1], [0, 0, 1, 1], [], []>} : vector<18x288xbf16>, vector<288x64xbf16>, vector<18x64xf32> -> vector<18x64xf32>
    %c1 = arith.constant 1 : index
    %c0_4 = arith.constant 0 : index
    %c0_5 = arith.constant 0 : index
    %4 = vector.load %arg1[%c1, %c0_4, %c0_5] : memref<4x18x288xbf16, #tpu.memory_space<vmem>>, vector<1x18x288xbf16>
    %5 = vector.shape_cast %4 : vector<1x18x288xbf16> to vector<18x288xbf16>
    %cst_6 = arith.constant dense<0.000000e+00> : vector<18x64xf32>
    %6 = tpu.matmul %5, %0, %cst_6 {dimension_numbers = #tpu.dot_dimension_numbers<[1], [0], [0], [1], [0, 0, 1, 1], [], []>} : vector<18x288xbf16>, vector<288x64xbf16>, vector<18x64xf32> -> vector<18x64xf32>
    %7 = arith.maximumf %3, %6 : vector<18x64xf32>
    %c2 = arith.constant 2 : index
    %c0_7 = arith.constant 0 : index
    %c0_8 = arith.constant 0 : index
    %8 = vector.load %arg1[%c2, %c0_7, %c0_8] : memref<4x18x288xbf16, #tpu.memory_space<vmem>>, vector<1x18x288xbf16>
    %9 = vector.shape_cast %8 : vector<1x18x288xbf16> to vector<18x288xbf16>
    %cst_9 = arith.constant dense<0.000000e+00> : vector<18x64xf32>
    %10 = tpu.matmul %9, %0, %cst_9 {dimension_numbers = #tpu.dot_dimension_numbers<[1], [0], [0], [1], [0, 0, 1, 1], [], []>} : vector<18x288xbf16>, vector<288x64xbf16>, vector<18x64xf32> -> vector<18x64xf32>
    %11 = arith.maximumf %7, %10 : vector<18x64xf32>
    %c3 = arith.constant 3 : index
    %c0_10 = arith.constant 0 : index
    %c0_11 = arith.constant 0 : index
    %12 = vector.load %arg1[%c3, %c0_10, %c0_11] : memref<4x18x288xbf16, #tpu.memory_space<vmem>>, vector<1x18x288xbf16>
    %13 = vector.shape_cast %12 : vector<1x18x288xbf16> to vector<18x288xbf16>
    %cst_12 = arith.constant dense<0.000000e+00> : vector<18x64xf32>
    %14 = tpu.matmul %13, %0, %cst_12 {dimension_numbers = #tpu.dot_dimension_numbers<[1], [0], [0], [1], [0, 0, 1, 1], [], []>} : vector<18x288xbf16>, vector<288x64xbf16>, vector<18x64xf32> -> vector<18x64xf32>
    %15 = arith.maximumf %11, %14 : vector<18x64xf32>
    %c0_13 = arith.constant 0 : index
    %c0_14 = arith.constant 0 : index
    %16 = vector.load %arg3[%c0_13, %c0_14] : memref<1x64xf32, #tpu.memory_space<vmem>>, vector<1x64xf32>
    %17 = vector.broadcast %16 : vector<1x64xf32> to vector<18x64xf32>
    %18 = arith.addf %15, %17 : vector<18x64xf32>
    %cst_15 = arith.constant 0.000000e+00 : f32
    %19 = vector.broadcast %cst_15 : f32 to vector<18x64xf32>
    %20 = arith.maximumf %18, %19 : vector<18x64xf32>
    %cst_16 = arith.constant 0.000000e+00 : f32
    %21 = vector.broadcast %cst_16 : f32 to vector<2x10xf32>
    %22 = vector.extract_strided_slice %20 {offsets = [0, 0], sizes = [2, 64], strides = [1, 1]} : vector<18x64xf32> to vector<2x64xf32>
    %c0_17 = arith.constant 0 : index
    %c0_18 = arith.constant 0 : index
    %c0_19 = arith.constant 0 : index
    %23 = vector.load %arg4[%c0_17, %c0_18, %c0_19] : memref<9x64x10xf32, #tpu.memory_space<vmem>>, vector<1x64x10xf32>
    %24 = vector.shape_cast %23 : vector<1x64x10xf32> to vector<64x10xf32>
    %cst_20 = arith.constant dense<0.000000e+00> : vector<2x10xf32>
    %25 = tpu.matmul %22, %24, %cst_20 {dimension_numbers = #tpu.dot_dimension_numbers<[1], [0], [0], [1], [0, 0, 1, 1], [], []>} : vector<2x64xf32>, vector<64x10xf32>, vector<2x10xf32> -> vector<2x10xf32>
    %26 = arith.addf %21, %25 : vector<2x10xf32>
    %27 = vector.extract_strided_slice %20 {offsets = [2, 0], sizes = [2, 64], strides = [1, 1]} : vector<18x64xf32> to vector<2x64xf32>
    %c1_21 = arith.constant 1 : index
    %c0_22 = arith.constant 0 : index
    %c0_23 = arith.constant 0 : index
    %28 = vector.load %arg4[%c1_21, %c0_22, %c0_23] : memref<9x64x10xf32, #tpu.memory_space<vmem>>, vector<1x64x10xf32>
    %29 = vector.shape_cast %28 : vector<1x64x10xf32> to vector<64x10xf32>
    %cst_24 = arith.constant dense<0.000000e+00> : vector<2x10xf32>
    %30 = tpu.matmul %27, %29, %cst_24 {dimension_numbers = #tpu.dot_dimension_numbers<[1], [0], [0], [1], [0, 0, 1, 1], [], []>} : vector<2x64xf32>, vector<64x10xf32>, vector<2x10xf32> -> vector<2x10xf32>
    %31 = arith.addf %26, %30 : vector<2x10xf32>
    %32 = vector.extract_strided_slice %20 {offsets = [4, 0], sizes = [2, 64], strides = [1, 1]} : vector<18x64xf32> to vector<2x64xf32>
    %c2_25 = arith.constant 2 : index
    %c0_26 = arith.constant 0 : index
    %c0_27 = arith.constant 0 : index
    %33 = vector.load %arg4[%c2_25, %c0_26, %c0_27] : memref<9x64x10xf32, #tpu.memory_space<vmem>>, vector<1x64x10xf32>
    %34 = vector.shape_cast %33 : vector<1x64x10xf32> to vector<64x10xf32>
    %cst_28 = arith.constant dense<0.000000e+00> : vector<2x10xf32>
    %35 = tpu.matmul %32, %34, %cst_28 {dimension_numbers = #tpu.dot_dimension_numbers<[1], [0], [0], [1], [0, 0, 1, 1], [], []>} : vector<2x64xf32>, vector<64x10xf32>, vector<2x10xf32> -> vector<2x10xf32>
    %36 = arith.addf %31, %35 : vector<2x10xf32>
    %37 = vector.extract_strided_slice %20 {offsets = [6, 0], sizes = [2, 64], strides = [1, 1]} : vector<18x64xf32> to vector<2x64xf32>
    %c3_29 = arith.constant 3 : index
    %c0_30 = arith.constant 0 : index
    %c0_31 = arith.constant 0 : index
    %38 = vector.load %arg4[%c3_29, %c0_30, %c0_31] : memref<9x64x10xf32, #tpu.memory_space<vmem>>, vector<1x64x10xf32>
    %39 = vector.shape_cast %38 : vector<1x64x10xf32> to vector<64x10xf32>
    %cst_32 = arith.constant dense<0.000000e+00> : vector<2x10xf32>
    %40 = tpu.matmul %37, %39, %cst_32 {dimension_numbers = #tpu.dot_dimension_numbers<[1], [0], [0], [1], [0, 0, 1, 1], [], []>} : vector<2x64xf32>, vector<64x10xf32>, vector<2x10xf32> -> vector<2x10xf32>
    %41 = arith.addf %36, %40 : vector<2x10xf32>
    %42 = vector.extract_strided_slice %20 {offsets = [8, 0], sizes = [2, 64], strides = [1, 1]} : vector<18x64xf32> to vector<2x64xf32>
    %c4 = arith.constant 4 : index
    %c0_33 = arith.constant 0 : index
    %c0_34 = arith.constant 0 : index
    %43 = vector.load %arg4[%c4, %c0_33, %c0_34] : memref<9x64x10xf32, #tpu.memory_space<vmem>>, vector<1x64x10xf32>
    %44 = vector.shape_cast %43 : vector<1x64x10xf32> to vector<64x10xf32>
    %cst_35 = arith.constant dense<0.000000e+00> : vector<2x10xf32>
    %45 = tpu.matmul %42, %44, %cst_35 {dimension_numbers = #tpu.dot_dimension_numbers<[1], [0], [0], [1], [0, 0, 1, 1], [], []>} : vector<2x64xf32>, vector<64x10xf32>, vector<2x10xf32> -> vector<2x10xf32>
    %46 = arith.addf %41, %45 : vector<2x10xf32>
    %47 = vector.extract_strided_slice %20 {offsets = [10, 0], sizes = [2, 64], strides = [1, 1]} : vector<18x64xf32> to vector<2x64xf32>
    %c5 = arith.constant 5 : index
    %c0_36 = arith.constant 0 : index
    %c0_37 = arith.constant 0 : index
    %48 = vector.load %arg4[%c5, %c0_36, %c0_37] : memref<9x64x10xf32, #tpu.memory_space<vmem>>, vector<1x64x10xf32>
    %49 = vector.shape_cast %48 : vector<1x64x10xf32> to vector<64x10xf32>
    %cst_38 = arith.constant dense<0.000000e+00> : vector<2x10xf32>
    %50 = tpu.matmul %47, %49, %cst_38 {dimension_numbers = #tpu.dot_dimension_numbers<[1], [0], [0], [1], [0, 0, 1, 1], [], []>} : vector<2x64xf32>, vector<64x10xf32>, vector<2x10xf32> -> vector<2x10xf32>
    %51 = arith.addf %46, %50 : vector<2x10xf32>
    %52 = vector.extract_strided_slice %20 {offsets = [12, 0], sizes = [2, 64], strides = [1, 1]} : vector<18x64xf32> to vector<2x64xf32>
    %c6 = arith.constant 6 : index
    %c0_39 = arith.constant 0 : index
    %c0_40 = arith.constant 0 : index
    %53 = vector.load %arg4[%c6, %c0_39, %c0_40] : memref<9x64x10xf32, #tpu.memory_space<vmem>>, vector<1x64x10xf32>
    %54 = vector.shape_cast %53 : vector<1x64x10xf32> to vector<64x10xf32>
    %cst_41 = arith.constant dense<0.000000e+00> : vector<2x10xf32>
    %55 = tpu.matmul %52, %54, %cst_41 {dimension_numbers = #tpu.dot_dimension_numbers<[1], [0], [0], [1], [0, 0, 1, 1], [], []>} : vector<2x64xf32>, vector<64x10xf32>, vector<2x10xf32> -> vector<2x10xf32>
    %56 = arith.addf %51, %55 : vector<2x10xf32>
    %57 = vector.extract_strided_slice %20 {offsets = [14, 0], sizes = [2, 64], strides = [1, 1]} : vector<18x64xf32> to vector<2x64xf32>
    %c7 = arith.constant 7 : index
    %c0_42 = arith.constant 0 : index
    %c0_43 = arith.constant 0 : index
    %58 = vector.load %arg4[%c7, %c0_42, %c0_43] : memref<9x64x10xf32, #tpu.memory_space<vmem>>, vector<1x64x10xf32>
    %59 = vector.shape_cast %58 : vector<1x64x10xf32> to vector<64x10xf32>
    %cst_44 = arith.constant dense<0.000000e+00> : vector<2x10xf32>
    %60 = tpu.matmul %57, %59, %cst_44 {dimension_numbers = #tpu.dot_dimension_numbers<[1], [0], [0], [1], [0, 0, 1, 1], [], []>} : vector<2x64xf32>, vector<64x10xf32>, vector<2x10xf32> -> vector<2x10xf32>
    %61 = arith.addf %56, %60 : vector<2x10xf32>
    %62 = vector.extract_strided_slice %20 {offsets = [16, 0], sizes = [2, 64], strides = [1, 1]} : vector<18x64xf32> to vector<2x64xf32>
    %c8 = arith.constant 8 : index
    %c0_45 = arith.constant 0 : index
    %c0_46 = arith.constant 0 : index
    %63 = vector.load %arg4[%c8, %c0_45, %c0_46] : memref<9x64x10xf32, #tpu.memory_space<vmem>>, vector<1x64x10xf32>
    %64 = vector.shape_cast %63 : vector<1x64x10xf32> to vector<64x10xf32>
    %cst_47 = arith.constant dense<0.000000e+00> : vector<2x10xf32>
    %65 = tpu.matmul %62, %64, %cst_47 {dimension_numbers = #tpu.dot_dimension_numbers<[1], [0], [0], [1], [0, 0, 1, 1], [], []>} : vector<2x64xf32>, vector<64x10xf32>, vector<2x10xf32> -> vector<2x10xf32>
    %66 = arith.addf %61, %65 : vector<2x10xf32>
    %c0_48 = arith.constant 0 : index
    %c0_49 = arith.constant 0 : index
    %67 = vector.load %arg5[%c0_48, %c0_49] : memref<1x10xf32, #tpu.memory_space<vmem>>, vector<1x10xf32>
    %68 = vector.broadcast %67 : vector<1x10xf32> to vector<2x10xf32>
    %69 = arith.addf %66, %68 : vector<2x10xf32>
    %cst_50 = arith.constant 0.000000e+00 : f32
    %70 = vector.broadcast %cst_50 : f32 to vector<2x10xf32>
    %71 = arith.maximumf %69, %70 : vector<2x10xf32>
    %c0_51 = arith.constant 0 : index
    %c0_52 = arith.constant 0 : index
    %72 = vector.load %arg6[%c0_51, %c0_52] : memref<10x6xf32, #tpu.memory_space<vmem>>, vector<10x6xf32>
    %cst_53 = arith.constant dense<0.000000e+00> : vector<2x6xf32>
    %73 = tpu.matmul %71, %72, %cst_53 {dimension_numbers = #tpu.dot_dimension_numbers<[1], [0], [0], [1], [0, 0, 1, 1], [], []>} : vector<2x10xf32>, vector<10x6xf32>, vector<2x6xf32> -> vector<2x6xf32>
    %c0_54 = arith.constant 0 : index
    %c0_55 = arith.constant 0 : index
    %74 = vector.load %arg7[%c0_54, %c0_55] : memref<1x6xf32, #tpu.memory_space<vmem>>, vector<1x6xf32>
    %75 = vector.broadcast %74 : vector<1x6xf32> to vector<2x6xf32>
    %76 = arith.addf %73, %75 : vector<2x6xf32>
    %c0_56 = arith.constant 0 : index
    %c0_57 = arith.constant 0 : index
    %77 = vector.load %arg8[%c0_56, %c0_57] : memref<2x6xf32, #tpu.memory_space<vmem>>, vector<2x6xf32>
    tpu.vector_store %arg8[%c0_56, %c0_57], %76 {strides = array<i32>} : memref<2x6xf32, #tpu.memory_space<vmem>>, vector<2x6xf32>,
    return
  }
  func.func @transform_0(%arg0: i32) -> (i32, i32, i32) {
    %c0_i32 = arith.constant 0 : i32
    %c0_i32_0 = arith.constant 0 : i32
    %c0_i32_1 = arith.constant 0 : i32
    %c0_i32_2 = arith.constant 0 : i32
    return %c0_i32, %c0_i32_0, %c0_i32_1 : i32, i32, i32
  }
  func.func @transform_1(%arg0: i32) -> (i32, i32) {
    %c0_i32 = arith.constant 0 : i32
    %c0_i32_0 = arith.constant 0 : i32
    %c0_i32_1 = arith.constant 0 : i32
    return %c0_i32, %c0_i32_0 : i32, i32
  }
  func.func @transform_2(%arg0: i32) -> (i32, i32) {
    %c0_i32 = arith.constant 0 : i32
    %c0_i32_0 = arith.constant 0 : i32
    %c0_i32_1 = arith.constant 0 : i32
    return %c0_i32, %c0_i32_0 : i32, i32
  }
  func.func @transform_3(%arg0: i32) -> (i32, i32, i32) {
    %c0_i32 = arith.constant 0 : i32
    %c0_i32_0 = arith.constant 0 : i32
    %c0_i32_1 = arith.constant 0 : i32
    %c0_i32_2 = arith.constant 0 : i32
    return %c0_i32, %c0_i32_0, %c0_i32_1 : i32, i32, i32
  }
  func.func @transform_4(%arg0: i32) -> (i32, i32) {
    %c0_i32 = arith.constant 0 : i32
    %c0_i32_0 = arith.constant 0 : i32
    %c0_i32_1 = arith.constant 0 : i32
    return %c0_i32, %c0_i32_0 : i32, i32
  }
  func.func @transform_5(%arg0: i32) -> (i32, i32) {
    %c0_i32 = arith.constant 0 : i32
    %c0_i32_0 = arith.constant 0 : i32
    %c0_i32_1 = arith.constant 0 : i32
    return %c0_i32, %c0_i32_0 : i32, i32
  }
  func.func @transform_6(%arg0: i32) -> (i32, i32) {
    %c0_i32 = arith.constant 0 : i32
    %c0_i32_0 = arith.constant 0 : i32
    %c0_i32_1 = arith.constant 0 : i32
    return %c0_i32, %c0_i32_0 : i32, i32
  }
  func.func @transform_7(%arg0: i32) -> (i32, i32) {
    %c0_i32 = arith.constant 0 : i32
    %c0_i32_0 = arith.constant 0 : i32
    %c0_i32_1 = arith.constant 0 : i32
    return %c0_i32, %c0_i32_0 : i32, i32
  }
}

</mosaic_0001>

<bundles_post_ra>
// kernel: cnn_forward.3
= control target key start
LH: loop header
LB: loop body
LE: loop exit
PB: predicated region body
PF: predicated region fallthrough
CT: control target
= control target key end

     0   :  { %vm2138_vm0 = vcmask 1044480   ;;  %vm2139_vm1 = vcmask 1045504   ;;  %v8262_v3 = vmov 65535   ;;  %v11469_v5 = vmov 0   ;;  %s11452_s0 = inlined_call_operand.vmem [shape: bf16[27,24576], index: 0, kind: input, shape index: {}]   ;;  %s11453_s1 = inlined_call_operand.vmem [shape: bf16[16,27], index: 1, kind: input, shape index: {}]   ;;  %s11454_s2 = inlined_call_operand.vmem [shape: f32[16,1], index: 2, kind: input, shape index: {}]   ;;  %s11455_s3 = inlined_call_operand.vmem [shape: bf16[16,6144], index: 3, kind: output, shape index: {}]  }
   0x1   :  { %v17_v0 = vld [vmem:[%s11452_s0] sm:$0xff]  ;;  %v18_v2 = vld [vmem:[%s11452_s0 + $0x8] sm:$0xff]  ;;  %v2140_v4 = vsel %vm2138_vm0, 4294967295, %v8262_v3  ;;  %2750 = vmatprep.mubr.bf16.mxu0 %v11469_v5  ;;  %2793 = vmatprep.mubr.bf16.mxu1 %v11469_v5  ;;  %v19_v20 = vld [vmem:[%s11452_s0 + $0x10] sm:$0xff]  ;;  %vm2134_vm2 = vcmask 220160  }
   0x2   :  { %v113_v1 = vld [vmem:[%s11452_s0 + $0x300] sm:$0xff]  ;;  %v114_v7 = vld [vmem:[%s11452_s0 + $0x308] sm:$0xff]  ;;  %v8304_v11 = vsel %vm2139_vm1, %v2140_v4, 0  ;;  %8257 = vset.pattern.permute.xlu0 %v11469_v5  ;;  %v115_v23 = vld [vmem:[%s11452_s0 + $0x310] sm:$0xff] }
   0x3   :  { %v7680_v6 = vcombine.high %v17_v0, %v113_v1  ;;  %v7679_v8 = vcombine.low %v17_v0, %v113_v1  ;;  %v209_v9 = vld [vmem:[%s11452_s0 + $0x600] sm:$0xff]  ;;  %v7682_v12 = vcombine.high %v18_v2, %v114_v7  ;;  %v7681_v13 = vcombine.low %v18_v2, %v114_v7  ;;  %v210_v15 = vld [vmem:[%s11452_s0 + $0x608] sm:$0xff]  ;;  %v20_v24 = vld [vmem:[%s11452_s0 + $0x18] sm:$0xff] }
   0x4   :  { %v305_v10 = vld [vmem:[%s11452_s0 + $0x900] sm:$0x33]  ;;  %v306_v16 = vld [vmem:[%s11452_s0 + $0x908] sm:$0x33]  ;;  %v116_v25 = vld [vmem:[%s11452_s0 + $0x318] sm:$0xff]  ;;  %v7684_v28 = vcombine.high %v19_v20, %v115_v23  ;;  %v7683_v37 = vcombine.low %v19_v20, %v115_v23 }
   0x5   :  { %v7872_v14 = vcombine.high %v209_v9, %v305_v10  ;;  %v7871_v17 = vcombine.low %v209_v9, %v305_v10  ;;  %2718 = vmatprep.subr.bf16.mxu0 %v7680_v6  ;;  %v7874_v18 = vcombine.high %v210_v15, %v306_v16  ;;  %v7873_v19 = vcombine.low %v210_v15, %v306_v16  ;;  %v211_v29 = vld [vmem:[%s11452_s0 + $0x610] sm:$0xff]  ;;  %v212_v31 = vld [vmem:[%s11452_s0 + $0x618] sm:$0xff]  ;;  %v8344_v35 = vld [vmem:[%s11453_s1] sm:$0xff]  }
   0x6   :  { %2761 = vmatprep.subr.bf16.mxu1 %v7682_v12  ;;  %2719 = vmatpush1.bf16.msra.mxu0 %v7679_v8  ;;  %v307_v30 = vld [vmem:[%s11452_s0 + $0x910] sm:$0x33]  ;;  %v7686_v32 = vcombine.high %v20_v24, %v116_v25  ;;  %v308_v34 = vld [vmem:[%s11452_s0 + $0x918] sm:$0x33]  ;;  %v7685_v39 = vcombine.low %v20_v24, %v116_v25  ;;  %v21_v42 = vld [vmem:[%s11452_s0 + $0x20] sm:$0xff] }
   0x7   :  { %v2146_v21 = vand.u32 %v7872_v14, %v8304_v11  ;;  %v2143_v22 = vand.u32 %v7871_v17, %v8304_v11  ;;  %2762 = vmatpush1.bf16.msra.mxu1 %v7681_v13  ;;  %v2152_v26 = vand.u32 %v7874_v18, %v8304_v11  ;;  %v2149_v27 = vand.u32 %v7873_v19, %v8304_v11  ;;  %v117_v43 = vld [vmem:[%s11452_s0 + $0x320] sm:$0xff]  ;;  %v22_v45 = vld [vmem:[%s11452_s0 + $0x28] sm:$0xff]  ;;  %v23_v62 = vld [vmem:[%s11452_s0 + $0x30] sm:$0xff] }
   0x8   :  { %v7876_v33 = vcombine.high %v211_v29, %v307_v30  ;;  %v7878_v36 = vcombine.high %v212_v31, %v308_v34  ;;  %v7875_v38 = vcombine.low %v211_v29, %v307_v30  ;;  %v7877_v41 = vcombine.low %v212_v31, %v308_v34  ;;  %v213_v46 = vld [vmem:[%s11452_s0 + $0x620] sm:$0xff]  ;;  %v118_v48 = vld [vmem:[%s11452_s0 + $0x328] sm:$0xff]  ;;  %v119_v63 = vld [vmem:[%s11452_s0 + $0x330] sm:$0xff] }
   0x9   :  { %2720 = vmatprep.subr.bf16.mxu0 %v2146_v21  ;;  %2763 = vmatprep.subr.bf16.mxu1 %v2152_v26  ;;  %v309_v47 = vld [vmem:[%s11452_s0 + $0x920] sm:$0x33]  ;;  %v214_v49 = vld [vmem:[%s11452_s0 + $0x628] sm:$0xff]  ;;  %v7688_v53 = vcombine.high %v21_v42, %v117_v43  ;;  %v7690_v55 = vcombine.high %v22_v45, %v118_v48  ;;  %v7687_v57 = vcombine.low %v21_v42, %v117_v43  ;;  %v24_v1 = vld [vmem:[%s11452_s0 + $0x38] sm:$0xff] }
   0xa   :  { %2721 = vmatpush1.bf16.msra.mxu0 %v2143_v22  ;;  %v2158_v40 = vand.u32 %v7876_v33, %v8304_v11  ;;  %v2164_v44 = vand.u32 %v7878_v36, %v8304_v11  ;;  %v310_v50 = vld [vmem:[%s11452_s0 + $0x928] sm:$0x33]  ;;  %v2155_v51 = vand.u32 %v7875_v38, %v8304_v11  ;;  %v2161_v52 = vand.u32 %v7877_v41, %v8304_v11  ;;  %v215_v2 = vld [vmem:[%s11452_s0 + $0x630] sm:$0xff]  ;;  %v120_v4 = vld [vmem:[%s11452_s0 + $0x338] sm:$0xff] }
   0xb   :  { %2764 = vmatpush1.bf16.msra.mxu1 %v2149_v27  ;;  %2804 = vmatprep.subr.bf16.mxu0 %v7684_v28  ;;  %v7880_v54 = vcombine.high %v213_v46, %v309_v47  ;;  %v7882_v56 = vcombine.high %v214_v49, %v310_v50  ;;  %v7879_v58 = vcombine.low %v213_v46, %v309_v47  ;;  %v311_v3 = vld [vmem:[%s11452_s0 + $0x930] sm:$0x33]  ;;  %v216_v6 = vld [vmem:[%s11452_s0 + $0x638] sm:$0xff]  ;;  %v25_v20 = vld [vmem:[%s11452_s0 + $0x40] sm:$0xff] }
   0xc   :  { %2847 = vmatprep.subr.bf16.mxu1 %v7686_v32  ;;  %v7689_v59 = vcombine.low %v22_v45, %v118_v48  ;;  %v7881_v61 = vcombine.low %v214_v49, %v310_v50  ;;  %v312_v7 = vld [vmem:[%s11452_s0 + $0x938] sm:$0x33]  ;;  %v7692_v10 = vcombine.high %v23_v62, %v119_v63  ;;  %v7884_v12 = vcombine.high %v215_v2, %v311_v3  ;;  %v121_v21 = vld [vmem:[%s11452_s0 + $0x340] sm:$0xff]  ;;  %v26_v23 = vld [vmem:[%s11452_s0 + $0x48] sm:$0xff] }
   0xd   :  { %8063 = vmatmul.mubr.msk.bf16.vlgmr.msra.gmra.mrb[0].mxu0 %vm2134_vm2, %v8344_v35  ;;  %v2170_v60 = vand.u32 %v7880_v54, %v8304_v11  ;;  %v2176_v0 = vand.u32 %v7882_v56, %v8304_v11  ;;  %v2167_v8 = vand.u32 %v7879_v58, %v8304_v11  ;;  %v7694_v13 = vcombine.high %v24_v1, %v120_v4  ;;  %v217_v24 = vld [vmem:[%s11452_s0 + $0x640] sm:$0xff]  ;;  %v122_v26 = vld [vmem:[%s11452_s0 + $0x348] sm:$0xff]  ;;  %v27_v41 = vld [vmem:[%s11452_s0 + $0x50] sm:$0xff] }
   0xe   :  { %8064 = vmatmul.mubr.msk.bf16.vlgmr.msra.gmra.mrb[0].mxu1 %vm2134_vm2, %v8344_v35  ;;  %2805 = vmatpush1.bf16.msra.mxu0 %v7683_v37  ;;  %v2173_v9 = vand.u32 %v7881_v61, %v8304_v11  ;;  %v7886_v14 = vcombine.high %v216_v6, %v312_v7  ;;  %v7691_v15 = vcombine.low %v23_v62, %v119_v63  ;;  %v313_v25 = vld [vmem:[%s11452_s0 + $0x940] sm:$0x33]  ;;  %v218_v27 = vld [vmem:[%s11452_s0 + $0x648] sm:$0xff]  ;;  %v123_v42 = vld [vmem:[%s11452_s0 + $0x350] sm:$0xff] }
   0xf   :  { %2848 = vmatpush1.bf16.msra.mxu1 %v7685_v39  ;;  %2806 = vmatprep.subr.bf16.mxu0 %v2158_v40  ;;  %v7883_v16 = vcombine.low %v215_v2, %v311_v3  ;;  %v7693_v17 = vcombine.low %v24_v1, %v120_v4  ;;  %v2182_v18 = vand.u32 %v7884_v12, %v8304_v11  ;;  %v314_v28 = vld [vmem:[%s11452_s0 + $0x948] sm:$0x33]  ;;  %v219_v45 = vld [vmem:[%s11452_s0 + $0x650] sm:$0xff]  ;;  %v124_v47 = vld [vmem:[%s11452_s0 + $0x358] sm:$0xff] }
  0x10   :  { %2849 = vmatprep.subr.bf16.mxu1 %v2164_v44  ;;  %2836 = vmatprep.mubr.bf16.mxu0 %v11469_v5  ;;  %v7885_v19 = vcombine.low %v216_v6, %v312_v7  ;;  %v2188_v22 = vand.u32 %v7886_v14, %v8304_v11  ;;  %v7696_v31 = vcombine.high %v25_v20, %v121_v21  ;;  %v28_v44 = vld [vmem:[%s11452_s0 + $0x58] sm:$0xff]  ;;  %v315_v46 = vld [vmem:[%s11452_s0 + $0x950] sm:$0x33]  ;;  %v29_v61 = vld [vmem:[%s11452_s0 + $0x60] sm:$0xff] }
  0x11   :  { %2879 = vmatprep.mubr.bf16.mxu1 %v11469_v5  ;;  %v2179_v29 = vand.u32 %v7883_v16, %v8304_v11  ;;  %v7888_v32 = vcombine.high %v217_v24, %v313_v25  ;;  %v7698_v33 = vcombine.high %v26_v23, %v122_v26  ;;  %v7890_v34 = vcombine.high %v218_v27, %v314_v28  ;;  %v220_v48 = vld [vmem:[%s11452_s0 + $0x658] sm:$0xff]  ;;  %v125_v62 = vld [vmem:[%s11452_s0 + $0x360] sm:$0xff]  ;;  %v126_v3 = vld [vmem:[%s11452_s0 + $0x368] sm:$0xff] }
  0x12   :  { %2807 = vmatpush1.bf16.msra.mxu0 %v2155_v51  ;;  %v2185_v30 = vand.u32 %v7885_v19, %v8304_v11  ;;  %v7695_v36 = vcombine.low %v25_v20, %v121_v21  ;;  %v7887_v37 = vcombine.low %v217_v24, %v313_v25  ;;  %v7697_v38 = vcombine.low %v26_v23, %v122_v26  ;;  %v316_v49 = vld [vmem:[%s11452_s0 + $0x958] sm:$0x33]  ;;  %v221_v1 = vld [vmem:[%s11452_s0 + $0x660] sm:$0xff]  ;;  %v222_v4 = vld [vmem:[%s11452_s0 + $0x668] sm:$0xff] }
  0x13   :  { %2850 = vmatpush1.bf16.msra.mxu1 %v2161_v52  ;;  %2890 = vmatprep.subr.bf16.mxu0 %v7688_v53  ;;  %v2194_v39 = vand.u32 %v7888_v32, %v8304_v11  ;;  %v7889_v40 = vcombine.low %v218_v27, %v314_v28  ;;  %v2200_v43 = vand.u32 %v7890_v34, %v8304_v11  ;;  %v317_v2 = vld [vmem:[%s11452_s0 + $0x960] sm:$0x33]  ;;  %v318_v6 = vld [vmem:[%s11452_s0 + $0x968] sm:$0x33]  ;;  %v31_v19 = vld [vmem:[%s11452_s0 + $0x70] sm:$0xff] }
  0x14   :  { %2933 = vmatprep.subr.bf16.mxu1 %v7690_v55  ;;  %v2191_v50 = vand.u32 %v7887_v37, %v8304_v11  ;;  %v7700_v52 = vcombine.high %v27_v41, %v123_v42  ;;  %v7892_v53 = vcombine.high %v219_v45, %v315_v46  ;;  %v7702_v54 = vcombine.high %v28_v44, %v124_v47  ;;  %v127_v20 = vld [vmem:[%s11452_s0 + $0x370] sm:$0xff]  ;;  %v128_v25 = vld [vmem:[%s11452_s0 + $0x378] sm:$0xff] }
  0x15   :  { %8065 = vmatmul.mubr.msk.bf16.vlgmr.msra.gmra.mrb[4].mxu0 %vm2134_vm2, %v8344_v35  ;;  %v2197_v51 = vand.u32 %v7889_v40, %v8304_v11  ;;  %v7894_v55 = vcombine.high %v220_v48, %v316_v49  ;;  %v7699_v56 = vcombine.low %v27_v41, %v123_v42  ;;  %v7701_v58 = vcombine.low %v28_v44, %v124_v47  ;;  %v223_v23 = vld [vmem:[%s11452_s0 + $0x670] sm:$0xff]  ;;  %v224_v26 = vld [vmem:[%s11452_s0 + $0x678] sm:$0xff]  ;;  %v33_v40 = vld [vmem:[%s11452_s0 + $0x80] sm:$0xff] }
  0x16   :  { %8066 = vmatmul.mubr.msk.bf16.vlgmr.msra.gmra.mrb[4].mxu1 %vm2134_vm2, %v8344_v35  ;;  %2891 = vmatpush1.bf16.msra.mxu0 %v7687_v57  ;;  %v7891_v57 = vcombine.low %v219_v45, %v315_v46  ;;  %v7703_v14 = vcombine.low %v29_v61, %v125_v62  ;;  %v319_v24 = vld [vmem:[%s11452_s0 + $0x970] sm:$0x33]  ;;  %v320_v27 = vld [vmem:[%s11452_s0 + $0x978] sm:$0x33]  ;;  %v7707_v34 = vcombine.low %v31_v19, %v127_v20  ;;  %v129_v41 = vld [vmem:[%s11452_s0 + $0x380] sm:$0xff] }
  0x17   :  { %2934 = vmatpush1.bf16.msra.mxu1 %v7689_v59  ;;  %2892 = vmatprep.subr.bf16.mxu0 %v2170_v60  ;;  %v2206_v59 = vand.u32 %v7892_v53, %v8304_v11  ;;  %v7893_v60 = vcombine.low %v220_v48, %v316_v49  ;;  %v2212_v63 = vand.u32 %v7894_v55, %v8304_v11  ;;  %v225_v44 = vld [vmem:[%s11452_s0 + $0x680] sm:$0xff]  ;;  %v130_v46 = vld [vmem:[%s11452_s0 + $0x388] sm:$0xff] }
  0x18   :  { %2935 = vmatprep.subr.bf16.mxu1 %v2176_v0  ;;  %2922 = vmatprep.mubr.bf16.mxu0 %v11469_v5  ;;  %v30_v0 = vld [vmem:[%s11452_s0 + $0x68] sm:$0xff]  ;;  %v2203_v7 = vand.u32 %v7891_v57, %v8304_v11  ;;  %v321_v45 = vld [vmem:[%s11452_s0 + $0x980] sm:$0x33]  ;;  %v7711_v55 = vcombine.low %v33_v40, %v129_v41 }
  0x19   :  { %2965 = vmatprep.mubr.bf16.mxu1 %v11469_v5  ;;  %v7706_v12 = vcombine.high %v30_v0, %v126_v3  ;;  %v7705_v16 = vcombine.low %v30_v0, %v126_v3  ;;  %v226_v47 = vld [vmem:[%s11452_s0 + $0x688] sm:$0xff]  ;;  %v227_v0 = vld [vmem:[%s11452_s0 + $0x690] sm:$0xff]  ;;  %v228_v3 = vld [vmem:[%s11452_s0 + $0x698] sm:$0xff] }
  0x1a   :  { %2893 = vmatpush1.bf16.msra.mxu0 %v2167_v8  ;;  %v2209_v8 = vand.u32 %v7893_v60, %v8304_v11  ;;  %v322_v48 = vld [vmem:[%s11452_s0 + $0x988] sm:$0x33]  ;;  %v35_v60 = vld [vmem:[%s11452_s0 + $0x90] sm:$0xff] }
  0x1b   :  { %2936 = vmatpush1.bf16.msra.mxu1 %v2173_v9  ;;  %2976 = vmatprep.subr.bf16.mxu0 %v7692_v10  ;;  %v7704_v9 = vcombine.high %v29_v61, %v125_v62  ;;  %v7896_v10 = vcombine.high %v221_v1, %v317_v2  ;;  %v131_v61 = vld [vmem:[%s11452_s0 + $0x390] sm:$0xff] }
  0x1c   :  { %3019 = vmatprep.subr.bf16.mxu1 %v7694_v13  ;;  %v7898_v13 = vcombine.high %v222_v4, %v318_v6 }
  0x1d   :  { %8067 = vmatmul.mubr.msk.bf16.vlgmr.msra.gmra.mrb[8].mxu0 %vm2134_vm2, %v8344_v35 }
  0x1e   :  { %8068 = vmatmul.mubr.msk.bf16.vlgmr.msra.gmra.mrb[8].mxu1 %vm2134_vm2, %v8344_v35  ;;  %2977 = vmatpush1.bf16.msra.mxu0 %v7691_v15  ;;  %v7895_v15 = vcombine.low %v221_v1, %v317_v2  ;;  %v2224_v21 = vand.u32 %v7898_v13, %v8304_v11  ;;  %v323_v1 = vld [vmem:[%s11452_s0 + $0x990] sm:$0x33]  ;;  %v132_v2 = vld [vmem:[%s11452_s0 + $0x398] sm:$0xff]  ;;  %v7715_v13 = vcombine.low %v35_v60, %v131_v61 }
  0x1f   :  { %3020 = vmatpush1.bf16.msra.mxu1 %v7693_v17  ;;  %2978 = vmatprep.subr.bf16.mxu0 %v2182_v18  ;;  %v2218_v17 = vand.u32 %v7896_v10, %v8304_v11  ;;  %v7897_v18 = vcombine.low %v222_v4, %v318_v6  ;;  %v324_v4 = vld [vmem:[%s11452_s0 + $0x998] sm:$0x33] }
  0x20   :  { %3021 = vmatprep.subr.bf16.mxu1 %v2188_v22  ;;  %3008 = vmatprep.mubr.bf16.mxu0 %v11469_v5  ;;  %v32_v22 = vld [vmem:[%s11452_s0 + $0x78] sm:$0xff]  ;;  %v2215_v28 = vand.u32 %v7895_v15, %v8304_v11 }
  0x21   :  { %3051 = vmatprep.mubr.bf16.mxu1 %v11469_v5  ;;  %v7710_v32 = vcombine.high %v32_v22, %v128_v25  ;;  %v7709_v37 = vcombine.low %v32_v22, %v128_v25  ;;  %v229_v22 = vld [vmem:[%s11452_s0 + $0x6a0] sm:$0xff]  ;;  %v230_v25 = vld [vmem:[%s11452_s0 + $0x6a8] sm:$0xff] }
  0x22   :  { %2979 = vmatpush1.bf16.msra.mxu0 %v2179_v29  ;;  %v2221_v29 = vand.u32 %v7897_v18, %v8304_v11  ;;  %v37_v18 = vld [vmem:[%s11452_s0 + $0xa0] sm:$0xff] }
  0x23   :  { %3022 = vmatpush1.bf16.msra.mxu1 %v2185_v30  ;;  %3062 = vmatprep.subr.bf16.mxu0 %v7696_v31  ;;  %v7708_v30 = vcombine.high %v31_v19, %v127_v20  ;;  %v7900_v31 = vcombine.high %v223_v23, %v319_v24  ;;  %v133_v19 = vld [vmem:[%s11452_s0 + $0x3a0] sm:$0xff] }
  0x24   :  { %3105 = vmatprep.subr.bf16.mxu1 %v7698_v33  ;;  %v7902_v33 = vcombine.high %v224_v26, %v320_v27 }
  0x25   :  { %8069 = vmatmul.mubr.msk.bf16.vlgmr.msra.gmra.mrb[12].mxu0 %vm2134_vm2, %v8344_v35 }
  0x26   :  { %8070 = vmatmul.mubr.msk.bf16.vlgmr.msra.gmra.mrb[12].mxu1 %vm2134_vm2, %v8344_v35  ;;  %3063 = vmatpush1.bf16.msra.mxu0 %v7695_v36  ;;  %v7899_v36 = vcombine.low %v223_v23, %v319_v24  ;;  %v2236_v42 = vand.u32 %v7902_v33, %v8304_v11  ;;  %v325_v23 = vld [vmem:[%s11452_s0 + $0x9a0] sm:$0x33]  ;;  %v134_v24 = vld [vmem:[%s11452_s0 + $0x3a8] sm:$0xff]  ;;  %v7719_v33 = vcombine.low %v37_v18, %v133_v19 }
  0x27   :  { %3106 = vmatpush1.bf16.msra.mxu1 %v7697_v38  ;;  %3064 = vmatprep.subr.bf16.mxu0 %v2194_v39  ;;  %v2230_v38 = vand.u32 %v7900_v31, %v8304_v11  ;;  %v7901_v39 = vcombine.low %v224_v26, %v320_v27  ;;  %v326_v26 = vld [vmem:[%s11452_s0 + $0x9a8] sm:$0x33] }
  0x28   :  { %3107 = vmatprep.subr.bf16.mxu1 %v2200_v43  ;;  %3094 = vmatprep.mubr.bf16.mxu0 %v11469_v5  ;;  %v34_v43 = vld [vmem:[%s11452_s0 + $0x88] sm:$0xff]  ;;  %v2227_v49 = vand.u32 %v7899_v36, %v8304_v11 }
  0x29   :  { %3137 = vmatprep.mubr.bf16.mxu1 %v11469_v5  ;;  %v7714_v53 = vcombine.high %v34_v43, %v130_v46  ;;  %v7713_v57 = vcombine.low %v34_v43, %v130_v46  ;;  %v231_v43 = vld [vmem:[%s11452_s0 + $0x6b0] sm:$0xff]  ;;  %v232_v46 = vld [vmem:[%s11452_s0 + $0x6b8] sm:$0xff] }
  0x2a   :  { %3065 = vmatpush1.bf16.msra.mxu0 %v2191_v50  ;;  %v2233_v50 = vand.u32 %v7901_v39, %v8304_v11  ;;  %v39_v39 = vld [vmem:[%s11452_s0 + $0xb0] sm:$0xff] }
  0x2b   :  { %3108 = vmatpush1.bf16.msra.mxu1 %v2197_v51  ;;  %3148 = vmatprep.subr.bf16.mxu0 %v7700_v52  ;;  %v7712_v51 = vcombine.high %v33_v40, %v129_v41  ;;  %v7904_v52 = vcombine.high %v225_v44, %v321_v45  ;;  %v135_v40 = vld [vmem:[%s11452_s0 + $0x3b0] sm:$0xff] }
  0x2c   :  { %3191 = vmatprep.subr.bf16.mxu1 %v7702_v54  ;;  %v7906_v54 = vcombine.high %v226_v47, %v322_v48 }
  0x2d   :  { %8071 = vmatmul.mubr.msk.bf16.vlgmr.msra.gmra.mrb[16].mxu0 %vm2134_vm2, %v8344_v35 }
  0x2e   :  { %8072 = vmatmul.mubr.msk.bf16.vlgmr.msra.gmra.mrb[16].mxu1 %vm2134_vm2, %v8344_v35  ;;  %3149 = vmatpush1.bf16.msra.mxu0 %v7699_v56  ;;  %v7903_v56 = vcombine.low %v225_v44, %v321_v45  ;;  %v2248_v62 = vand.u32 %v7906_v54, %v8304_v11  ;;  %v327_v44 = vld [vmem:[%s11452_s0 + $0x9b0] sm:$0x33]  ;;  %v136_v45 = vld [vmem:[%s11452_s0 + $0x3b8] sm:$0xff]  ;;  %v7723_v54 = vcombine.low %v39_v39, %v135_v40 }
  0x2f   :  { %3192 = vmatpush1.bf16.msra.mxu1 %v7701_v58  ;;  %3150 = vmatprep.subr.bf16.mxu0 %v2206_v59  ;;  %v2242_v58 = vand.u32 %v7904_v52, %v8304_v11  ;;  %v7905_v59 = vcombine.low %v226_v47, %v322_v48  ;;  %v328_v47 = vld [vmem:[%s11452_s0 + $0x9b8] sm:$0x33] }
  0x30   :  { %3193 = vmatprep.subr.bf16.mxu1 %v2212_v63  ;;  %3180 = vmatprep.mubr.bf16.mxu0 %v11469_v5  ;;  %v36_v63 = vld [vmem:[%s11452_s0 + $0x98] sm:$0xff]  ;;  %v2239_v6 = vand.u32 %v7903_v56, %v8304_v11 }
  0x31   :  { %3223 = vmatprep.mubr.bf16.mxu1 %v11469_v5  ;;  %v7718_v10 = vcombine.high %v36_v63, %v132_v2  ;;  %v7717_v15 = vcombine.low %v36_v63, %v132_v2  ;;  %v233_v63 = vld [vmem:[%s11452_s0 + $0x6c0] sm:$0xff]  ;;  %v234_v2 = vld [vmem:[%s11452_s0 + $0x6c8] sm:$0xff] }
  0x32   :  { %3151 = vmatpush1.bf16.msra.mxu0 %v2203_v7  ;;  %v2245_v7 = vand.u32 %v7905_v59, %v8304_v11  ;;  %v41_v59 = vld [vmem:[%s11452_s0 + $0xc0] sm:$0xff] }
  0x33   :  { %3194 = vmatpush1.bf16.msra.mxu1 %v2209_v8  ;;  %3234 = vmatprep.subr.bf16.mxu0 %v7704_v9  ;;  %v7716_v8 = vcombine.high %v35_v60, %v131_v61  ;;  %v7908_v9 = vcombine.high %v227_v0, %v323_v1  ;;  %v137_v60 = vld [vmem:[%s11452_s0 + $0x3c0] sm:$0xff] }
  0x34   :  { %3277 = vmatprep.subr.bf16.mxu1 %v7706_v12  ;;  %v7910_v12 = vcombine.high %v228_v3, %v324_v4 }
  0x35   :  { %8073 = vmatmul.mubr.msk.bf16.vlgmr.msra.gmra.mrb[20].mxu0 %vm2134_vm2, %v8344_v35 }
  0x36   :  { %8074 = vmatmul.mubr.msk.bf16.vlgmr.msra.gmra.mrb[20].mxu1 %vm2134_vm2, %v8344_v35  ;;  %3235 = vmatpush1.bf16.msra.mxu0 %v7703_v14  ;;  %v7907_v14 = vcombine.low %v227_v0, %v323_v1  ;;  %v2260_v20 = vand.u32 %v7910_v12, %v8304_v11  ;;  %v329_v0 = vld [vmem:[%s11452_s0 + $0x9c0] sm:$0x33]  ;;  %v138_v1 = vld [vmem:[%s11452_s0 + $0x3c8] sm:$0xff]  ;;  %v7727_v12 = vcombine.low %v41_v59, %v137_v60 }
  0x37   :  { %3278 = vmatpush1.bf16.msra.mxu1 %v7705_v16  ;;  %3236 = vmatprep.subr.bf16.mxu0 %v2218_v17  ;;  %v2254_v16 = vand.u32 %v7908_v9, %v8304_v11  ;;  %v7909_v17 = vcombine.low %v228_v3, %v324_v4  ;;  %v330_v3 = vld [vmem:[%s11452_s0 + $0x9c8] sm:$0x33] }
  0x38   :  { %3279 = vmatprep.subr.bf16.mxu1 %v2224_v21  ;;  %3266 = vmatprep.mubr.bf16.mxu0 %v11469_v5  ;;  %v38_v21 = vld [vmem:[%s11452_s0 + $0xa8] sm:$0xff]  ;;  %v2251_v27 = vand.u32 %v7907_v14, %v8304_v11 }
  0x39   :  { %3309 = vmatprep.mubr.bf16.mxu1 %v11469_v5  ;;  %v7722_v31 = vcombine.high %v38_v21, %v134_v24  ;;  %v7721_v36 = vcombine.low %v38_v21, %v134_v24  ;;  %v235_v21 = vld [vmem:[%s11452_s0 + $0x6d0] sm:$0xff]  ;;  %v236_v24 = vld [vmem:[%s11452_s0 + $0x6d8] sm:$0xff] }
  0x3a   :  { %3237 = vmatpush1.bf16.msra.mxu0 %v2215_v28  ;;  %v2257_v28 = vand.u32 %v7909_v17, %v8304_v11  ;;  %v43_v17 = vld [vmem:[%s11452_s0 + $0xd0] sm:$0xff] }
  0x3b   :  { %3280 = vmatpush1.bf16.msra.mxu1 %v2221_v29  ;;  %3320 = vmatprep.subr.bf16.mxu0 %v7708_v30  ;;  %v7720_v29 = vcombine.high %v37_v18, %v133_v19  ;;  %v7912_v30 = vcombine.high %v229_v22, %v325_v23  ;;  %v139_v18 = vld [vmem:[%s11452_s0 + $0x3d0] sm:$0xff] }
  0x3c   :  { %3363 = vmatprep.subr.bf16.mxu1 %v7710_v32  ;;  %v7914_v32 = vcombine.high %v230_v25, %v326_v26 }
  0x3d   :  { %8075 = vmatmul.mubr.msk.bf16.vlgmr.msra.gmra.mrb[24].mxu0 %vm2134_vm2, %v8344_v35 }
  0x3e   :  { %8076 = vmatmul.mubr.msk.bf16.vlgmr.msra.gmra.mrb[24].mxu1 %vm2134_vm2, %v8344_v35  ;;  %3321 = vmatpush1.bf16.msra.mxu0 %v7707_v34  ;;  %v7911_v34 = vcombine.low %v229_v22, %v325_v23  ;;  %v2272_v41 = vand.u32 %v7914_v32, %v8304_v11  ;;  %v331_v22 = vld [vmem:[%s11452_s0 + $0x9d0] sm:$0x33]  ;;  %v140_v23 = vld [vmem:[%s11452_s0 + $0x3d8] sm:$0xff]  ;;  %v7731_v32 = vcombine.low %v43_v17, %v139_v18 }
  0x3f   :  { %3364 = vmatpush1.bf16.msra.mxu1 %v7709_v37  ;;  %3322 = vmatprep.subr.bf16.mxu0 %v2230_v38  ;;  %v2266_v37 = vand.u32 %v7912_v30, %v8304_v11  ;;  %v7913_v38 = vcombine.low %v230_v25, %v326_v26  ;;  %v332_v25 = vld [vmem:[%s11452_s0 + $0x9d8] sm:$0x33] }
  0x40   :  { %3365 = vmatprep.subr.bf16.mxu1 %v2236_v42  ;;  %3352 = vmatprep.mubr.bf16.mxu0 %v11469_v5  ;;  %v40_v42 = vld [vmem:[%s11452_s0 + $0xb8] sm:$0xff]  ;;  %v2263_v48 = vand.u32 %v7911_v34, %v8304_v11 }
  0x41   :  { %3395 = vmatprep.mubr.bf16.mxu1 %v11469_v5  ;;  %v7726_v52 = vcombine.high %v40_v42, %v136_v45  ;;  %v7725_v56 = vcombine.low %v40_v42, %v136_v45  ;;  %v237_v42 = vld [vmem:[%s11452_s0 + $0x6e0] sm:$0xff]  ;;  %v238_v45 = vld [vmem:[%s11452_s0 + $0x6e8] sm:$0xff] }
  0x42   :  { %3323 = vmatpush1.bf16.msra.mxu0 %v2227_v49  ;;  %v2269_v49 = vand.u32 %v7913_v38, %v8304_v11  ;;  %v45_v38 = vld [vmem:[%s11452_s0 + $0xe0] sm:$0xff] }
  0x43   :  { %3366 = vmatpush1.bf16.msra.mxu1 %v2233_v50  ;;  %3406 = vmatprep.subr.bf16.mxu0 %v7712_v51  ;;  %v7724_v50 = vcombine.high %v39_v39, %v135_v40  ;;  %v7916_v51 = vcombine.high %v231_v43, %v327_v44  ;;  %v141_v39 = vld [vmem:[%s11452_s0 + $0x3e0] sm:$0xff] }
  0x44   :  { %3449 = vmatprep.subr.bf16.mxu1 %v7714_v53  ;;  %v7918_v53 = vcombine.high %v232_v46, %v328_v47 }
  0x45   :  { %8077 = vmatmul.mubr.msk.bf16.vlgmr.msra.gmra.mrb[28].mxu0 %vm2134_vm2, %v8344_v35 }
  0x46   :  { %8078 = vmatmul.mubr.msk.bf16.vlgmr.msra.gmra.mrb[28].mxu1 %vm2134_vm2, %v8344_v35  ;;  %3407 = vmatpush1.bf16.msra.mxu0 %v7711_v55  ;;  %v7915_v55 = vcombine.low %v231_v43, %v327_v44  ;;  %v2284_v61 = vand.u32 %v7918_v53, %v8304_v11  ;;  %v333_v43 = vld [vmem:[%s11452_s0 + $0x9e0] sm:$0x33]  ;;  %v142_v44 = vld [vmem:[%s11452_s0 + $0x3e8] sm:$0xff]  ;;  %v7735_v53 = vcombine.low %v45_v38, %v141_v39 }
  0x47   :  { %3450 = vmatpush1.bf16.msra.mxu1 %v7713_v57  ;;  %3408 = vmatprep.subr.bf16.mxu0 %v2242_v58  ;;  %v2278_v57 = vand.u32 %v7916_v51, %v8304_v11  ;;  %v7917_v58 = vcombine.low %v232_v46, %v328_v47  ;;  %v334_v46 = vld [vmem:[%s11452_s0 + $0x9e8] sm:$0x33] }
  0x48   :  { %3451 = vmatprep.subr.bf16.mxu1 %v2248_v62  ;;  %3438 = vmatprep.mubr.bf16.mxu0 %v11469_v5  ;;  %v42_v62 = vld [vmem:[%s11452_s0 + $0xc8] sm:$0xff]  ;;  %v2275_v4 = vand.u32 %v7915_v55, %v8304_v11 }
  0x49   :  { %3481 = vmatprep.mubr.bf16.mxu1 %v11469_v5  ;;  %v7730_v9 = vcombine.high %v42_v62, %v138_v1  ;;  %v7729_v14 = vcombine.low %v42_v62, %v138_v1  ;;  %v239_v62 = vld [vmem:[%s11452_s0 + $0x6f0] sm:$0xff]  ;;  %v240_v1 = vld [vmem:[%s11452_s0 + $0x6f8] sm:$0xff] }
  0x4a   :  { %3409 = vmatpush1.bf16.msra.mxu0 %v2239_v6  ;;  %v2281_v6 = vand.u32 %v7917_v58, %v8304_v11  ;;  %v47_v58 = vld [vmem:[%s11452_s0 + $0xf0] sm:$0xff] }
  0x4b   :  { %3452 = vmatpush1.bf16.msra.mxu1 %v2245_v7  ;;  %3492 = vmatprep.subr.bf16.mxu0 %v7716_v8  ;;  %v7728_v7 = vcombine.high %v41_v59, %v137_v60  ;;  %v7920_v8 = vcombine.high %v233_v63, %v329_v0  ;;  %v143_v59 = vld [vmem:[%s11452_s0 + $0x3f0] sm:$0xff] }
  0x4c   :  { %3535 = vmatprep.subr.bf16.mxu1 %v7718_v10  ;;  %v7922_v10 = vcombine.high %v234_v2, %v330_v3 }
  0x4d   :  { %8079 = vmatmul.mubr.msk.bf16.vlgmr.msra.gmra.mrb[32].mxu0 %vm2134_vm2, %v8344_v35 }
  0x4e   :  { %8080 = vmatmul.mubr.msk.bf16.vlgmr.msra.gmra.mrb[32].mxu1 %vm2134_vm2, %v8344_v35  ;;  %3493 = vmatpush1.bf16.msra.mxu0 %v7715_v13  ;;  %v7919_v13 = vcombine.low %v233_v63, %v329_v0  ;;  %v2296_v19 = vand.u32 %v7922_v10, %v8304_v11  ;;  %v335_v63 = vld [vmem:[%s11452_s0 + $0x9f0] sm:$0x33]  ;;  %v144_v0 = vld [vmem:[%s11452_s0 + $0x3f8] sm:$0xff]  ;;  %v7739_v10 = vcombine.low %v47_v58, %v143_v59 }
  0x4f   :  { %3536 = vmatpush1.bf16.msra.mxu1 %v7717_v15  ;;  %3494 = vmatprep.subr.bf16.mxu0 %v2254_v16  ;;  %v2290_v15 = vand.u32 %v7920_v8, %v8304_v11  ;;  %v7921_v16 = vcombine.low %v234_v2, %v330_v3  ;;  %v336_v2 = vld [vmem:[%s11452_s0 + $0x9f8] sm:$0x33] }
  0x50   :  { %3537 = vmatprep.subr.bf16.mxu1 %v2260_v20  ;;  %3524 = vmatprep.mubr.bf16.mxu0 %v11469_v5  ;;  %v44_v20 = vld [vmem:[%s11452_s0 + $0xd8] sm:$0xff]  ;;  %v2287_v26 = vand.u32 %v7919_v13, %v8304_v11 }
  0x51   :  { %3567 = vmatprep.mubr.bf16.mxu1 %v11469_v5  ;;  %v7734_v30 = vcombine.high %v44_v20, %v140_v23  ;;  %v7733_v34 = vcombine.low %v44_v20, %v140_v23  ;;  %v241_v20 = vld [vmem:[%s11452_s0 + $0x700] sm:$0xff]  ;;  %v242_v23 = vld [vmem:[%s11452_s0 + $0x708] sm:$0xff] }
  0x52   :  { %3495 = vmatpush1.bf16.msra.mxu0 %v2251_v27  ;;  %v2293_v27 = vand.u32 %v7921_v16, %v8304_v11  ;;  %v49_v16 = vld [vmem:[%s11452_s0 + $0x100] sm:$0xff] }
  0x53   :  { %3538 = vmatpush1.bf16.msra.mxu1 %v2257_v28  ;;  %3578 = vmatprep.subr.bf16.mxu0 %v7720_v29  ;;  %v7732_v28 = vcombine.high %v43_v17, %v139_v18  ;;  %v7924_v29 = vcombine.high %v235_v21, %v331_v22  ;;  %v145_v17 = vld [vmem:[%s11452_s0 + $0x400] sm:$0xff] }
  0x54   :  { %3621 = vmatprep.subr.bf16.mxu1 %v7722_v31  ;;  %v7926_v31 = vcombine.high %v236_v24, %v332_v25 }
  0x55   :  { %8081 = vmatmul.mubr.msk.bf16.vlgmr.msra.gmra.mrb[36].mxu0 %vm2134_vm2, %v8344_v35 }
  0x56   :  { %8082 = vmatmul.mubr.msk.bf16.vlgmr.msra.gmra.mrb[36].mxu1 %vm2134_vm2, %v8344_v35  ;;  %3579 = vmatpush1.bf16.msra.mxu0 %v7719_v33  ;;  %v7923_v33 = vcombine.low %v235_v21, %v331_v22  ;;  %v2308_v40 = vand.u32 %v7926_v31, %v8304_v11  ;;  %v337_v21 = vld [vmem:[%s11452_s0 + $0xa00] sm:$0x33]  ;;  %v146_v22 = vld [vmem:[%s11452_s0 + $0x408] sm:$0xff]  ;;  %v7743_v31 = vcombine.low %v49_v16, %v145_v17 }
  0x57   :  { %3622 = vmatpush1.bf16.msra.mxu1 %v7721_v36  ;;  %3580 = vmatprep.subr.bf16.mxu0 %v2266_v37  ;;  %v2302_v36 = vand.u32 %v7924_v29, %v8304_v11  ;;  %v7925_v37 = vcombine.low %v236_v24, %v332_v25  ;;  %v338_v24 = vld [vmem:[%s11452_s0 + $0xa08] sm:$0x33] }
  0x58   :  { %3623 = vmatprep.subr.bf16.mxu1 %v2272_v41  ;;  %3610 = vmatprep.mubr.bf16.mxu0 %v11469_v5  ;;  %v46_v41 = vld [vmem:[%s11452_s0 + $0xe8] sm:$0xff]  ;;  %v2299_v47 = vand.u32 %v7923_v33, %v8304_v11 }
  0x59   :  { %3653 = vmatprep.mubr.bf16.mxu1 %v11469_v5  ;;  %v7738_v51 = vcombine.high %v46_v41, %v142_v44  ;;  %v7737_v55 = vcombine.low %v46_v41, %v142_v44  ;;  %v243_v41 = vld [vmem:[%s11452_s0 + $0x710] sm:$0xff]  ;;  %v244_v44 = vld [vmem:[%s11452_s0 + $0x718] sm:$0xff] }
  0x5a   :  { %3581 = vmatpush1.bf16.msra.mxu0 %v2263_v48  ;;  %v2305_v48 = vand.u32 %v7925_v37, %v8304_v11  ;;  %v51_v37 = vld [vmem:[%s11452_s0 + $0x110] sm:$0xff] }
  0x5b   :  { %3624 = vmatpush1.bf16.msra.mxu1 %v2269_v49  ;;  %3664 = vmatprep.subr.bf16.mxu0 %v7724_v50  ;;  %v7736_v49 = vcombine.high %v45_v38, %v141_v39  ;;  %v7928_v50 = vcombine.high %v237_v42, %v333_v43  ;;  %v147_v38 = vld [vmem:[%s11452_s0 + $0x410] sm:$0xff] }
  0x5c   :  { %3707 = vmatprep.subr.bf16.mxu1 %v7726_v52  ;;  %v7930_v52 = vcombine.high %v238_v45, %v334_v46 }
  0x5d   :  { %8083 = vmatmul.mubr.msk.bf16.vlgmr.msra.gmra.mrb[40].mxu0 %vm2134_vm2, %v8344_v35 }
  0x5e   :  { %8084 = vmatmul.mubr.msk.bf16.vlgmr.msra.gmra.mrb[40].mxu1 %vm2134_vm2, %v8344_v35  ;;  %3665 = vmatpush1.bf16.msra.mxu0 %v7723_v54  ;;  %v7927_v54 = vcombine.low %v237_v42, %v333_v43  ;;  %v2320_v60 = vand.u32 %v7930_v52, %v8304_v11  ;;  %v339_v42 = vld [vmem:[%s11452_s0 + $0xa10] sm:$0x33]  ;;  %v148_v43 = vld [vmem:[%s11452_s0 + $0x418] sm:$0xff]  ;;  %v7747_v52 = vcombine.low %v51_v37, %v147_v38 }
  0x5f   :  { %3708 = vmatpush1.bf16.msra.mxu1 %v7725_v56  ;;  %3666 = vmatprep.subr.bf16.mxu0 %v2278_v57  ;;  %v2314_v56 = vand.u32 %v7928_v50, %v8304_v11  ;;  %v7929_v57 = vcombine.low %v238_v45, %v334_v46  ;;  %v340_v45 = vld [vmem:[%s11452_s0 + $0xa18] sm:$0x33] }
  0x60   :  { %3709 = vmatprep.subr.bf16.mxu1 %v2284_v61  ;;  %3696 = vmatprep.mubr.bf16.mxu0 %v11469_v5  ;;  %v48_v61 = vld [vmem:[%s11452_s0 + $0xf8] sm:$0xff]  ;;  %v2311_v3 = vand.u32 %v7927_v54, %v8304_v11 }
  0x61   :  { %3739 = vmatprep.mubr.bf16.mxu1 %v11469_v5  ;;  %v7742_v8 = vcombine.high %v48_v61, %v144_v0  ;;  %v7741_v13 = vcombine.low %v48_v61, %v144_v0  ;;  %v341_v61 = vld [vmem:[%s11452_s0 + $0xa20] sm:$0x33]  ;;  %v246_v0 = vld [vmem:[%s11452_s0 + $0x728] sm:$0xff] }
  0x62   :  { %3667 = vmatpush1.bf16.msra.mxu0 %v2275_v4  ;;  %v2317_v4 = vand.u32 %v7929_v57, %v8304_v11  ;;  %v149_v57 = vld [vmem:[%s11452_s0 + $0x420] sm:$0xff] }
  0x63   :  { %3710 = vmatpush1.bf16.msra.mxu1 %v2281_v6  ;;  %3750 = vmatprep.subr.bf16.mxu0 %v7728_v7  ;;  %v7740_v6 = vcombine.high %v47_v58, %v143_v59  ;;  %v7932_v7 = vcombine.high %v239_v62, %v335_v63  ;;  %v54_v59 = vld [vmem:[%s11452_s0 + $0x128] sm:$0xff] }
  0x64   :  { %3793 = vmatprep.subr.bf16.mxu1 %v7730_v9  ;;  %v7934_v9 = vcombine.high %v240_v1, %v336_v2 }
  0x65   :  { %8085 = vmatmul.mubr.msk.bf16.vlgmr.msra.gmra.mrb[44].mxu0 %vm2134_vm2, %v8344_v35 }
  0x66   :  { %8086 = vmatmul.mubr.msk.bf16.vlgmr.msra.gmra.mrb[44].mxu1 %vm2134_vm2, %v8344_v35  ;;  %3751 = vmatpush1.bf16.msra.mxu0 %v7727_v12  ;;  %v7931_v12 = vcombine.low %v239_v62, %v335_v63  ;;  %v2332_v18 = vand.u32 %v7934_v9, %v8304_v11  ;;  %v8910_v62 = vld [vmem:[%s11453_s1] sm:$0xff]   ;;  %v150_v63 = vld [vmem:[%s11452_s0 + $0x428] sm:$0xff] }
  0x67   :  { %3794 = vmatpush1.bf16.msra.mxu1 %v7729_v14  ;;  %3752 = vmatprep.subr.bf16.mxu0 %v2290_v15  ;;  %v2326_v14 = vand.u32 %v7932_v7, %v8304_v11  ;;  %v7933_v15 = vcombine.low %v240_v1, %v336_v2  ;;  %v342_v1 = vld [vmem:[%s11452_s0 + $0xa28] sm:$0x33]  ;;  %v7754_v7 = vcombine.high %v54_v59, %v150_v63 }
  0x68   :  { %3795 = vmatprep.subr.bf16.mxu1 %v2296_v19  ;;  %3782 = vmatprep.mubr.bf16.mxu0 %v11469_v5  ;;  %v50_v19 = vld [vmem:[%s11452_s0 + $0x108] sm:$0xff]  ;;  %v2323_v25 = vand.u32 %v7931_v12, %v8304_v11  ;;  %v7753_v12 = vcombine.low %v54_v59, %v150_v63  ;;  %v251_v59 = vld [vmem:[%s11452_s0 + $0x750] sm:$0xff]  ;;  %v252_v63 = vld [vmem:[%s11452_s0 + $0x758] sm:$0xff] }
  0x69   :  { %3825 = vmatprep.mubr.bf16.mxu1 %v11469_v5  ;;  %v7746_v29 = vcombine.high %v50_v19, %v146_v22  ;;  %v7745_v33 = vcombine.low %v50_v19, %v146_v22  ;;  %v247_v19 = vld [vmem:[%s11452_s0 + $0x730] sm:$0xff]  ;;  %v248_v22 = vld [vmem:[%s11452_s0 + $0x738] sm:$0xff] }
  0x6a   :  { %3753 = vmatpush1.bf16.msra.mxu0 %v2287_v26  ;;  %v2329_v26 = vand.u32 %v7933_v15, %v8304_v11  ;;  %v55_v15 = vld [vmem:[%s11452_s0 + $0x130] sm:$0xff] }
  0x6b   :  { %3796 = vmatpush1.bf16.msra.mxu1 %v2293_v27  ;;  %3836 = vmatprep.subr.bf16.mxu0 %v7732_v28  ;;  %v7744_v27 = vcombine.high %v49_v16, %v145_v17  ;;  %v7936_v28 = vcombine.high %v241_v20, %v337_v21  ;;  %v151_v16 = vld [vmem:[%s11452_s0 + $0x430] sm:$0xff] }
  0x6c   :  { %3879 = vmatprep.subr.bf16.mxu1 %v7734_v30  ;;  %v7938_v30 = vcombine.high %v242_v23, %v338_v24 }
  0x6d   :  { %8087 = vmatmul.mubr.msk.bf16.vlgmr.msra.gmra.mrb[48].mxu0 %vm2134_vm2, %v8344_v35 }
  0x6e   :  { %8088 = vmatmul.mubr.msk.bf16.vlgmr.msra.gmra.mrb[48].mxu1 %vm2134_vm2, %v8344_v35  ;;  %3837 = vmatpush1.bf16.msra.mxu0 %v7731_v32  ;;  %v7935_v32 = vcombine.low %v241_v20, %v337_v21  ;;  %v2344_v39 = vand.u32 %v7938_v30, %v8304_v11  ;;  %v343_v20 = vld [vmem:[%s11452_s0 + $0xa30] sm:$0x33]  ;;  %v152_v21 = vld [vmem:[%s11452_s0 + $0x438] sm:$0xff]  ;;  %v7755_v30 = vcombine.low %v55_v15, %v151_v16 }
  0x6f   :  { %3880 = vmatpush1.bf16.msra.mxu1 %v7733_v34  ;;  %3838 = vmatprep.subr.bf16.mxu0 %v2302_v36  ;;  %v2338_v34 = vand.u32 %v7936_v28, %v8304_v11  ;;  %v7937_v36 = vcombine.low %v242_v23, %v338_v24  ;;  %v344_v23 = vld [vmem:[%s11452_s0 + $0xa38] sm:$0x33] }
  0x70   :  { %3881 = vmatprep.subr.bf16.mxu1 %v2308_v40  ;;  %3868 = vmatprep.mubr.bf16.mxu0 %v11469_v5  ;;  %v52_v40 = vld [vmem:[%s11452_s0 + $0x118] sm:$0xff]  ;;  %v2335_v46 = vand.u32 %v7935_v32, %v8304_v11 }
  0x71   :  { %3911 = vmatprep.mubr.bf16.mxu1 %v11469_v5  ;;  %v7750_v50 = vcombine.high %v52_v40, %v148_v43 }
  0x72   :  { %3839 = vmatpush1.bf16.msra.mxu0 %v2299_v47  ;;  %v2341_v47 = vand.u32 %v7937_v36, %v8304_v11  ;;  %v57_v36 = vld [vmem:[%s11452_s0 + $0x140] sm:$0xff] }
  0x73   :  { %3882 = vmatpush1.bf16.msra.mxu1 %v2305_v48  ;;  %3922 = vmatprep.subr.bf16.mxu0 %v7736_v49  ;;  %v7748_v48 = vcombine.high %v51_v37, %v147_v38  ;;  %v7940_v49 = vcombine.high %v243_v41, %v339_v42  ;;  %v153_v37 = vld [vmem:[%s11452_s0 + $0x440] sm:$0xff] }
  0x74   :  { %3965 = vmatprep.subr.bf16.mxu1 %v7738_v51  ;;  %v7942_v51 = vcombine.high %v244_v44, %v340_v45 }
  0x75   :  { %8089 = vmatmul.mubr.msk.bf16.vlgmr.msra.gmra.mrb[52].mxu0 %vm2134_vm2, %v8344_v35  ;;  %v2350_v54 = vand.u32 %v7940_v49, %v8304_v11 }
  0x76   :  { %8090 = vmatmul.mubr.msk.bf16.vlgmr.msra.gmra.mrb[52].mxu1 %vm2134_vm2, %v8344_v35  ;;  %3923 = vmatpush1.bf16.msra.mxu0 %v7735_v53  ;;  %v7939_v53 = vcombine.low %v243_v41, %v339_v42  ;;  %v2356_v58 = vand.u32 %v7942_v51, %v8304_v11  ;;  %v345_v41 = vld [vmem:[%s11452_s0 + $0xa40] sm:$0x33]  ;;  %v154_v42 = vld [vmem:[%s11452_s0 + $0x448] sm:$0xff]  ;;  %v7759_v51 = vcombine.low %v57_v36, %v153_v37 }
  0x77   :  { %3966 = vmatpush1.bf16.msra.mxu1 %v7737_v55  ;;  %3924 = vmatprep.subr.bf16.mxu0 %v2314_v56  ;;  %v7941_v55 = vcombine.low %v244_v44, %v340_v45  ;;  %v53_v56 = vld [vmem:[%s11452_s0 + $0x120] sm:$0xff]  ;;  %v346_v44 = vld [vmem:[%s11452_s0 + $0xa48] sm:$0x33] }
  0x78   :  { %3967 = vmatprep.subr.bf16.mxu1 %v2320_v60  ;;  %3954 = vmatprep.mubr.bf16.mxu0 %v11469_v5  ;;  %v245_v60 = vld [vmem:[%s11452_s0 + $0x720] sm:$0xff]  ;;  %v2347_v2 = vand.u32 %v7939_v53, %v8304_v11  ;;  %v7751_v9 = vcombine.low %v53_v56, %v149_v57 }
  0x79   :  { %3997 = vmatprep.mubr.bf16.mxu1 %v11469_v5 }
  0x7a   :  { %3925 = vmatpush1.bf16.msra.mxu0 %v2311_v3  ;;  %v2353_v3 = vand.u32 %v7941_v55, %v8304_v11  ;;  %v59_v55 = vld [vmem:[%s11452_s0 + $0x150] sm:$0xff] }
  0x7b   :  { %3968 = vmatpush1.bf16.msra.mxu1 %v2317_v4  ;;  %4008 = vmatprep.subr.bf16.mxu0 %v7740_v6  ;;  %v7752_v4 = vcombine.high %v53_v56, %v149_v57  ;;  %v7944_v6 = vcombine.high %v245_v60, %v341_v61  ;;  %v155_v56 = vld [vmem:[%s11452_s0 + $0x450] sm:$0xff] }
  0x7c   :  { %4051 = vmatprep.subr.bf16.mxu1 %v7742_v8  ;;  %v7946_v8 = vcombine.high %v246_v0, %v342_v1 }
  0x7d   :  { %8091 = vmatmul.mubr.msk.bf16.vlgmr.msra.gmra.mrb[56].mxu0 %vm2134_vm2, %v8344_v35 }
  0x7e   :  { %8092 = vmatmul.mubr.msk.bf16.vlgmr.msra.gmra.mrb[56].mxu1 %vm2134_vm2, %v8344_v35  ;;  %4009 = vmatpush1.bf16.msra.mxu0 %v7739_v10  ;;  %v7943_v10 = vcombine.low %v245_v60, %v341_v61  ;;  %v2368_v17 = vand.u32 %v7946_v8, %v8304_v11  ;;  %v347_v60 = vld [vmem:[%s11452_s0 + $0xa50] sm:$0x33]  ;;  %v156_v61 = vld [vmem:[%s11452_s0 + $0x458] sm:$0xff]  ;;  %v7763_v8 = vcombine.low %v59_v55, %v155_v56 }
  0x7f   :  { %4052 = vmatpush1.bf16.msra.mxu1 %v7741_v13  ;;  %4010 = vmatprep.subr.bf16.mxu0 %v2326_v14  ;;  %v2362_v13 = vand.u32 %v7944_v6, %v8304_v11  ;;  %v7945_v14 = vcombine.low %v246_v0, %v342_v1  ;;  %v348_v0 = vld [vmem:[%s11452_s0 + $0xa58] sm:$0x33] }
  0x80   :  { %4053 = vmatprep.subr.bf16.mxu1 %v2332_v18  ;;  %4040 = vmatprep.mubr.bf16.mxu0 %v11469_v5  ;;  %v56_v18 = vld [vmem:[%s11452_s0 + $0x138] sm:$0xff]  ;;  %v2359_v24 = vand.u32 %v7943_v10, %v8304_v11 }
  0x81   :  { %4083 = vmatprep.mubr.bf16.mxu1 %v11469_v5  ;;  %v7758_v28 = vcombine.high %v56_v18, %v152_v21  ;;  %v7757_v32 = vcombine.low %v56_v18, %v152_v21  ;;  %v253_v18 = vld [vmem:[%s11452_s0 + $0x760] sm:$0xff]  ;;  %v254_v21 = vld [vmem:[%s11452_s0 + $0x768] sm:$0xff] }
  0x82   :  { %4011 = vmatpush1.bf16.msra.mxu0 %v2323_v25  ;;  %v2365_v25 = vand.u32 %v7945_v14, %v8304_v11  ;;  %v61_v14 = vld [vmem:[%s11452_s0 + $0x160] sm:$0xff] }
  0x83   :  { %4054 = vmatpush1.bf16.msra.mxu1 %v2329_v26  ;;  %4094 = vmatprep.subr.bf16.mxu0 %v7744_v27  ;;  %v7756_v26 = vcombine.high %v55_v15, %v151_v16  ;;  %v7948_v27 = vcombine.high %v247_v19, %v343_v20  ;;  %v157_v15 = vld [vmem:[%s11452_s0 + $0x460] sm:$0xff] }
  0x84   :  { %4137 = vmatprep.subr.bf16.mxu1 %v7746_v29  ;;  %v7950_v29 = vcombine.high %v248_v22, %v344_v23 }
  0x85   :  { %8093 = vmatmul.mubr.msk.bf16.vlgmr.msra.gmra.mrb[60].mxu0 %vm2134_vm2, %v8344_v35 }
  0x86   :  { %8094 = vmatmul.mubr.msk.bf16.vlgmr.msra.gmra.mrb[60].mxu1 %vm2134_vm2, %v8344_v35  ;;  %4095 = vmatpush1.bf16.msra.mxu0 %v7743_v31  ;;  %v7749_v35 = vcombine.low %v52_v40, %v148_v43  ;;  %v7947_v31 = vcombine.low %v247_v19, %v343_v20  ;;  %v2380_v38 = vand.u32 %v7950_v29, %v8304_v11  ;;  %v249_v40 = vld [vmem:[%s11452_s0 + $0x740] sm:$0xff]  ;;  %v250_v43 = vld [vmem:[%s11452_s0 + $0x748] sm:$0xff] }
  0x87   :  { %4138 = vmatpush1.bf16.msra.mxu1 %v7745_v33  ;;  %4096 = vmatprep.subr.bf16.mxu0 %v2338_v34  ;;  %v2374_v33 = vand.u32 %v7948_v27, %v8304_v11  ;;  %v7949_v34 = vcombine.low %v248_v22, %v344_v23  ;;  %v349_v19 = vld [vmem:[%s11452_s0 + $0xa60] sm:$0x33]  ;;  %v158_v20 = vld [vmem:[%s11452_s0 + $0x468] sm:$0xff]  ;;  %v7767_v29 = vcombine.low %v61_v14, %v157_v15 }
  0x88   :  { %4139 = vmatprep.subr.bf16.mxu1 %v2344_v39  ;;  %4126 = vmatprep.mubr.bf16.mxu0 %v11469_v5  ;;  %v58_v39 = vld [vmem:[%s11452_s0 + $0x148] sm:$0xff]  ;;  %v2371_v45 = vand.u32 %v7947_v31, %v8304_v11 }
  0x89   :  { %4169 = vmatprep.mubr.bf16.mxu1 %v11469_v5  ;;  %v7762_v49 = vcombine.high %v58_v39, %v154_v42  ;;  %v7761_v53 = vcombine.low %v58_v39, %v154_v42  ;;  %v350_v22 = vld [vmem:[%s11452_s0 + $0xa68] sm:$0x33]  ;;  %v255_v39 = vld [vmem:[%s11452_s0 + $0x770] sm:$0xff]  ;;  %v256_v42 = vld [vmem:[%s11452_s0 + $0x778] sm:$0xff] }
  0x8a   :  { %4097 = vmatpush1.bf16.msra.mxu0 %v2335_v46  ;;  %v2377_v46 = vand.u32 %v7949_v34, %v8304_v11  ;;  %v63_v34 = vld [vmem:[%s11452_s0 + $0x170] sm:$0xff] }
  0x8b   :  { %4140 = vmatpush1.bf16.msra.mxu1 %v2341_v47  ;;  %4180 = vmatprep.subr.bf16.mxu0 %v7748_v48  ;;  %v7760_v47 = vcombine.high %v57_v36, %v153_v37  ;;  %v7952_v48 = vcombine.high %v249_v40, %v345_v41  ;;  %v159_v36 = vld [vmem:[%s11452_s0 + $0x470] sm:$0xff] }
  0x8c   :  { %4223 = vmatprep.subr.bf16.mxu1 %v7750_v50  ;;  %v7954_v50 = vcombine.high %v250_v43, %v346_v44 }
  0x8d   :  { %8095 = vmatmul.mubr.msk.bf16.vlgmr.msra.gmra.mrb[64].mxu0 %vm2134_vm2, %v8910_v62 }
  0x8e   :  { %8096 = vmatmul.mubr.msk.bf16.vlgmr.msra.gmra.mrb[64].mxu1 %vm2134_vm2, %v8910_v62  ;;  %4181 = vmatpush1.bf16.msra.mxu0 %v7747_v52  ;;  %v7951_v52 = vcombine.low %v249_v40, %v345_v41  ;;  %v2392_v57 = vand.u32 %v7954_v50, %v8304_v11  ;;  %v351_v40 = vld [vmem:[%s11452_s0 + $0xa70] sm:$0x33]  ;;  %v160_v41 = vld [vmem:[%s11452_s0 + $0x478] sm:$0xff]  ;;  %v7771_v50 = vcombine.low %v63_v34, %v159_v36 }
  0x8f   :  { %4224 = vmatpush1.bf16.msra.mxu1 %v7749_v35  ;;  %4182 = vmatprep.subr.bf16.mxu0 %v2350_v54  ;;  %v2386_v35 = vand.u32 %v7952_v48, %v8304_v11  ;;  %v7953_v54 = vcombine.low %v250_v43, %v346_v44  ;;  %v352_v43 = vld [vmem:[%s11452_s0 + $0xa78] sm:$0x33] }
  0x90   :  { %4225 = vmatprep.subr.bf16.mxu1 %v2356_v58  ;;  %4212 = vmatprep.mubr.bf16.mxu0 %v11469_v5  ;;  %v60_v58 = vld [vmem:[%s11452_s0 + $0x158] sm:$0xff]  ;;  %v2383_v1 = vand.u32 %v7951_v52, %v8304_v11 }
  0x91   :  { %4255 = vmatprep.mubr.bf16.mxu1 %v11469_v5  ;;  %v7766_v6 = vcombine.high %v60_v58, %v156_v61  ;;  %v7765_v10 = vcombine.low %v60_v58, %v156_v61  ;;  %v257_v58 = vld [vmem:[%s11452_s0 + $0x780] sm:$0xff]  ;;  %v258_v61 = vld [vmem:[%s11452_s0 + $0x788] sm:$0xff] }
  0x92   :  { %4183 = vmatpush1.bf16.msra.mxu0 %v2347_v2  ;;  %v2389_v2 = vand.u32 %v7953_v54, %v8304_v11  ;;  %v65_v54 = vld [vmem:[%s11452_s0 + $0x180] sm:$0xff] }
  0x93   :  { %4226 = vmatpush1.bf16.msra.mxu1 %v2353_v3  ;;  %4266 = vmatprep.subr.bf16.mxu0 %v7752_v4  ;;  %v7764_v3 = vcombine.high %v59_v55, %v155_v56  ;;  %v7956_v4 = vcombine.high %v251_v59, %v347_v60  ;;  %v161_v55 = vld [vmem:[%s11452_s0 + $0x480] sm:$0xff] }
  0x94   :  { %4309 = vmatprep.subr.bf16.mxu1 %v7754_v7  ;;  %v7958_v7 = vcombine.high %v252_v63, %v348_v0 }
  0x95   :  { %8097 = vmatmul.mubr.msk.bf16.vlgmr.msra.gmra.mrb[68].mxu0 %vm2134_vm2, %v8910_v62 }
  0x96   :  { %8098 = vmatmul.mubr.msk.bf16.vlgmr.msra.gmra.mrb[68].mxu1 %vm2134_vm2, %v8910_v62  ;;  %4267 = vmatpush1.bf16.msra.mxu0 %v7751_v9  ;;  %v7955_v9 = vcombine.low %v251_v59, %v347_v60  ;;  %v2404_v16 = vand.u32 %v7958_v7, %v8304_v11  ;;  %v353_v59 = vld [vmem:[%s11452_s0 + $0xa80] sm:$0x33]  ;;  %v162_v60 = vld [vmem:[%s11452_s0 + $0x488] sm:$0xff]  ;;  %v7775_v7 = vcombine.low %v65_v54, %v161_v55 }
  0x97   :  { %4310 = vmatpush1.bf16.msra.mxu1 %v7753_v12  ;;  %4268 = vmatprep.subr.bf16.mxu0 %v2362_v13  ;;  %v2398_v12 = vand.u32 %v7956_v4, %v8304_v11  ;;  %v7957_v13 = vcombine.low %v252_v63, %v348_v0  ;;  %v354_v63 = vld [vmem:[%s11452_s0 + $0xa88] sm:$0x33] }
  0x98   :  { %4311 = vmatprep.subr.bf16.mxu1 %v2368_v17  ;;  %4298 = vmatprep.mubr.bf16.mxu0 %v11469_v5  ;;  %v62_v17 = vld [vmem:[%s11452_s0 + $0x168] sm:$0xff]  ;;  %v2395_v23 = vand.u32 %v7955_v9, %v8304_v11 }
  0x99   :  { %4341 = vmatprep.mubr.bf16.mxu1 %v11469_v5  ;;  %v7770_v27 = vcombine.high %v62_v17, %v158_v20  ;;  %v7769_v31 = vcombine.low %v62_v17, %v158_v20  ;;  %v259_v17 = vld [vmem:[%s11452_s0 + $0x790] sm:$0xff]  ;;  %v260_v20 = vld [vmem:[%s11452_s0 + $0x798] sm:$0xff] }
  0x9a   :  { %4269 = vmatpush1.bf16.msra.mxu0 %v2359_v24  ;;  %v2401_v24 = vand.u32 %v7957_v13, %v8304_v11  ;;  %v67_v13 = vld [vmem:[%s11452_s0 + $0x190] sm:$0xff] }
  0x9b   :  { %4312 = vmatpush1.bf16.msra.mxu1 %v2365_v25  ;;  %4352 = vmatprep.subr.bf16.mxu0 %v7756_v26  ;;  %v7768_v25 = vcombine.high %v61_v14, %v157_v15  ;;  %v7960_v26 = vcombine.high %v253_v18, %v349_v19  ;;  %v163_v14 = vld [vmem:[%s11452_s0 + $0x490] sm:$0xff] }
  0x9c   :  { %4395 = vmatprep.subr.bf16.mxu1 %v7758_v28  ;;  %v7962_v28 = vcombine.high %v254_v21, %v350_v22 }
  0x9d   :  { %8099 = vmatmul.mubr.msk.bf16.vlgmr.msra.gmra.mrb[72].mxu0 %vm2134_vm2, %v8910_v62 }
  0x9e   :  { %8100 = vmatmul.mubr.msk.bf16.vlgmr.msra.gmra.mrb[72].mxu1 %vm2134_vm2, %v8910_v62  ;;  %4353 = vmatpush1.bf16.msra.mxu0 %v7755_v30  ;;  %v7959_v30 = vcombine.low %v253_v18, %v349_v19  ;;  %v2416_v37 = vand.u32 %v7962_v28, %v8304_v11  ;;  %v355_v18 = vld [vmem:[%s11452_s0 + $0xa90] sm:$0x33]  ;;  %v164_v19 = vld [vmem:[%s11452_s0 + $0x498] sm:$0xff]  ;;  %v7779_v28 = vcombine.low %v67_v13, %v163_v14 }
  0x9f   :  { %4396 = vmatpush1.bf16.msra.mxu1 %v7757_v32  ;;  %4354 = vmatprep.subr.bf16.mxu0 %v2374_v33  ;;  %v2410_v32 = vand.u32 %v7960_v26, %v8304_v11  ;;  %v7961_v33 = vcombine.low %v254_v21, %v350_v22  ;;  %v356_v21 = vld [vmem:[%s11452_s0 + $0xa98] sm:$0x33] }
  0xa0   :  { %4397 = vmatprep.subr.bf16.mxu1 %v2380_v38  ;;  %4384 = vmatprep.mubr.bf16.mxu0 %v11469_v5  ;;  %v64_v38 = vld [vmem:[%s11452_s0 + $0x178] sm:$0xff]  ;;  %v2407_v44 = vand.u32 %v7959_v30, %v8304_v11 }
  0xa1   :  { %4427 = vmatprep.mubr.bf16.mxu1 %v11469_v5  ;;  %v7774_v48 = vcombine.high %v64_v38, %v160_v41  ;;  %v7773_v52 = vcombine.low %v64_v38, %v160_v41  ;;  %v261_v38 = vld [vmem:[%s11452_s0 + $0x7a0] sm:$0xff]  ;;  %v262_v41 = vld [vmem:[%s11452_s0 + $0x7a8] sm:$0xff] }
  0xa2   :  { %4355 = vmatpush1.bf16.msra.mxu0 %v2371_v45  ;;  %v2413_v45 = vand.u32 %v7961_v33, %v8304_v11  ;;  %v69_v33 = vld [vmem:[%s11452_s0 + $0x1a0] sm:$0xff] }
  0xa3   :  { %4398 = vmatpush1.bf16.msra.mxu1 %v2377_v46  ;;  %4438 = vmatprep.subr.bf16.mxu0 %v7760_v47  ;;  %v7772_v46 = vcombine.high %v63_v34, %v159_v36  ;;  %v7964_v47 = vcombine.high %v255_v39, %v351_v40  ;;  %v165_v34 = vld [vmem:[%s11452_s0 + $0x4a0] sm:$0xff] }
  0xa4   :  { %4481 = vmatprep.subr.bf16.mxu1 %v7762_v49  ;;  %v7966_v49 = vcombine.high %v256_v42, %v352_v43 }
  0xa5   :  { %8101 = vmatmul.mubr.msk.bf16.vlgmr.msra.gmra.mrb[76].mxu0 %vm2134_vm2, %v8910_v62 }
  0xa6   :  { %8102 = vmatmul.mubr.msk.bf16.vlgmr.msra.gmra.mrb[76].mxu1 %vm2134_vm2, %v8910_v62  ;;  %4439 = vmatpush1.bf16.msra.mxu0 %v7759_v51  ;;  %v7963_v51 = vcombine.low %v255_v39, %v351_v40  ;;  %v2428_v56 = vand.u32 %v7966_v49, %v8304_v11  ;;  %v357_v39 = vld [vmem:[%s11452_s0 + $0xaa0] sm:$0x33]  ;;  %v166_v40 = vld [vmem:[%s11452_s0 + $0x4a8] sm:$0xff]  ;;  %v7783_v49 = vcombine.low %v69_v33, %v165_v34 }
  0xa7   :  { %4482 = vmatpush1.bf16.msra.mxu1 %v7761_v53  ;;  %4440 = vmatprep.subr.bf16.mxu0 %v2386_v35  ;;  %v2422_v53 = vand.u32 %v7964_v47, %v8304_v11  ;;  %v7965_v35 = vcombine.low %v256_v42, %v352_v43  ;;  %v358_v42 = vld [vmem:[%s11452_s0 + $0xaa8] sm:$0x33] }
  0xa8   :  { %4483 = vmatprep.subr.bf16.mxu1 %v2392_v57  ;;  %4470 = vmatprep.mubr.bf16.mxu0 %v11469_v5  ;;  %v66_v57 = vld [vmem:[%s11452_s0 + $0x188] sm:$0xff]  ;;  %v2419_v0 = vand.u32 %v7963_v51, %v8304_v11 }
  0xa9   :  { %4513 = vmatprep.mubr.bf16.mxu1 %v11469_v5  ;;  %v7778_v4 = vcombine.high %v66_v57, %v162_v60  ;;  %v7777_v9 = vcombine.low %v66_v57, %v162_v60  ;;  %v263_v57 = vld [vmem:[%s11452_s0 + $0x7b0] sm:$0xff]  ;;  %v264_v60 = vld [vmem:[%s11452_s0 + $0x7b8] sm:$0xff] }
  0xaa   :  { %4441 = vmatpush1.bf16.msra.mxu0 %v2383_v1  ;;  %v2425_v1 = vand.u32 %v7965_v35, %v8304_v11  ;;  %v71_v35 = vld [vmem:[%s11452_s0 + $0x1b0] sm:$0xff] }
  0xab   :  { %4484 = vmatpush1.bf16.msra.mxu1 %v2389_v2  ;;  %4524 = vmatprep.subr.bf16.mxu0 %v7764_v3  ;;  %v7776_v2 = vcombine.high %v65_v54, %v161_v55  ;;  %v7968_v3 = vcombine.high %v257_v58, %v353_v59  ;;  %v167_v54 = vld [vmem:[%s11452_s0 + $0x4b0] sm:$0xff] }
  0xac   :  { %4567 = vmatprep.subr.bf16.mxu1 %v7766_v6  ;;  %v7970_v6 = vcombine.high %v258_v61, %v354_v63 }
  0xad   :  { %8103 = vmatmul.mubr.msk.bf16.vlgmr.msra.gmra.mrb[80].mxu0 %vm2134_vm2, %v8910_v62 }
  0xae   :  { %8104 = vmatmul.mubr.msk.bf16.vlgmr.msra.gmra.mrb[80].mxu1 %vm2134_vm2, %v8910_v62  ;;  %4525 = vmatpush1.bf16.msra.mxu0 %v7763_v8  ;;  %v7967_v8 = vcombine.low %v257_v58, %v353_v59  ;;  %v2440_v15 = vand.u32 %v7970_v6, %v8304_v11  ;;  %v359_v58 = vld [vmem:[%s11452_s0 + $0xab0] sm:$0x33]  ;;  %v168_v59 = vld [vmem:[%s11452_s0 + $0x4b8] sm:$0xff]  ;;  %v7787_v6 = vcombine.low %v71_v35, %v167_v54 }
  0xaf   :  { %4568 = vmatpush1.bf16.msra.mxu1 %v7765_v10  ;;  %4526 = vmatprep.subr.bf16.mxu0 %v2398_v12  ;;  %v2434_v10 = vand.u32 %v7968_v3, %v8304_v11  ;;  %v7969_v12 = vcombine.low %v258_v61, %v354_v63  ;;  %v360_v61 = vld [vmem:[%s11452_s0 + $0xab8] sm:$0x33] }
  0xb0   :  { %4569 = vmatprep.subr.bf16.mxu1 %v2404_v16  ;;  %4556 = vmatprep.mubr.bf16.mxu0 %v11469_v5  ;;  %v68_v16 = vld [vmem:[%s11452_s0 + $0x198] sm:$0xff]  ;;  %v2431_v22 = vand.u32 %v7967_v8, %v8304_v11 }
  0xb1   :  { %4599 = vmatprep.mubr.bf16.mxu1 %v11469_v5  ;;  %v7782_v26 = vcombine.high %v68_v16, %v164_v19  ;;  %v7781_v30 = vcombine.low %v68_v16, %v164_v19  ;;  %v265_v16 = vld [vmem:[%s11452_s0 + $0x7c0] sm:$0xff]  ;;  %v266_v19 = vld [vmem:[%s11452_s0 + $0x7c8] sm:$0xff] }
  0xb2   :  { %4527 = vmatpush1.bf16.msra.mxu0 %v2395_v23  ;;  %v2437_v23 = vand.u32 %v7969_v12, %v8304_v11  ;;  %v73_v12 = vld [vmem:[%s11452_s0 + $0x1c0] sm:$0xff] }
  0xb3   :  { %4570 = vmatpush1.bf16.msra.mxu1 %v2401_v24  ;;  %4610 = vmatprep.subr.bf16.mxu0 %v7768_v25  ;;  %v7780_v24 = vcombine.high %v67_v13, %v163_v14  ;;  %v7972_v25 = vcombine.high %v259_v17, %v355_v18  ;;  %v169_v13 = vld [vmem:[%s11452_s0 + $0x4c0] sm:$0xff] }
  0xb4   :  { %4653 = vmatprep.subr.bf16.mxu1 %v7770_v27  ;;  %v7974_v27 = vcombine.high %v260_v20, %v356_v21 }
  0xb5   :  { %8105 = vmatmul.mubr.msk.bf16.vlgmr.msra.gmra.mrb[84].mxu0 %vm2134_vm2, %v8910_v62 }
  0xb6   :  { %8106 = vmatmul.mubr.msk.bf16.vlgmr.msra.gmra.mrb[84].mxu1 %vm2134_vm2, %v8910_v62  ;;  %4611 = vmatpush1.bf16.msra.mxu0 %v7767_v29  ;;  %v7971_v29 = vcombine.low %v259_v17, %v355_v18  ;;  %v2452_v36 = vand.u32 %v7974_v27, %v8304_v11  ;;  %v361_v17 = vld [vmem:[%s11452_s0 + $0xac0] sm:$0x33]  ;;  %v170_v18 = vld [vmem:[%s11452_s0 + $0x4c8] sm:$0xff] }
  0xb7   :  { %4654 = vmatpush1.bf16.msra.mxu1 %v7769_v31  ;;  %4612 = vmatprep.subr.bf16.mxu0 %v2410_v32  ;;  %v2446_v31 = vand.u32 %v7972_v25, %v8304_v11  ;;  %v7973_v32 = vcombine.low %v260_v20, %v356_v21  ;;  %v362_v20 = vld [vmem:[%s11452_s0 + $0xac8] sm:$0x33] }
  0xb8   :  { %4655 = vmatprep.subr.bf16.mxu1 %v2416_v37  ;;  %4642 = vmatprep.mubr.bf16.mxu0 %v11469_v5  ;;  %v70_v37 = vld [vmem:[%s11452_s0 + $0x1a8] sm:$0xff]  ;;  %v2443_v43 = vand.u32 %v7971_v29, %v8304_v11  ;;  %v7986_v27 = vcombine.high %v266_v19, %v362_v20 }
  0xb9   :  { %4685 = vmatprep.mubr.bf16.mxu1 %v11469_v5  ;;  %v7786_v47 = vcombine.high %v70_v37, %v166_v40  ;;  %v7785_v51 = vcombine.low %v70_v37, %v166_v40  ;;  %v75_v40 = vld [vmem:[%s11452_s0 + $0x1d0] sm:$0xff] }
  0xba   :  { %4613 = vmatpush1.bf16.msra.mxu0 %v2407_v44  ;;  %v2449_v44 = vand.u32 %v7973_v32, %v8304_v11  ;;  %v7791_v32 = vcombine.low %v73_v12, %v169_v13 }
  0xbb   :  { %4656 = vmatpush1.bf16.msra.mxu1 %v2413_v45  ;;  %4696 = vmatprep.subr.bf16.mxu0 %v7772_v46  ;;  %v7784_v45 = vcombine.high %v69_v33, %v165_v34  ;;  %v7976_v46 = vcombine.high %v261_v38, %v357_v39  ;;  %v7983_v33 = vcombine.low %v265_v16, %v361_v17 }
  0xbc   :  { %4739 = vmatprep.subr.bf16.mxu1 %v7774_v48  ;;  %v7978_v48 = vcombine.high %v262_v41, %v358_v42 }
  0xbd   :  { %8107 = vmatmul.mubr.msk.bf16.vlgmr.msra.gmra.mrb[88].mxu0 %vm2134_vm2, %v8910_v62 }
  0xbe   :  { %8108 = vmatmul.mubr.msk.bf16.vlgmr.msra.gmra.mrb[88].mxu1 %vm2134_vm2, %v8910_v62  ;;  %4697 = vmatpush1.bf16.msra.mxu0 %v7771_v50  ;;  %v7975_v50 = vcombine.low %v261_v38, %v357_v39  ;;  %v2464_v55 = vand.u32 %v7978_v48, %v8304_v11  ;;  %v7985_v39 = vcombine.low %v266_v19, %v362_v20  ;;  %v268_v48 = vld [vmem:[%s11452_s0 + $0x7d8] sm:$0xff] }
  0xbf   :  { %4740 = vmatpush1.bf16.msra.mxu1 %v7773_v52  ;;  %4698 = vmatprep.subr.bf16.mxu0 %v2422_v53  ;;  %v2458_v52 = vand.u32 %v7976_v46, %v8304_v11  ;;  %v7977_v53 = vcombine.low %v262_v41, %v358_v42  ;;  %v171_v41 = vld [vmem:[%s11452_s0 + $0x4d0] sm:$0xff] }
  0xc0   :  { %4741 = vmatprep.subr.bf16.mxu1 %v2428_v56  ;;  %4728 = vmatprep.mubr.bf16.mxu0 %v11469_v5  ;;  %v72_v56 = vld [vmem:[%s11452_s0 + $0x1b8] sm:$0xff]  ;;  %v2455_v63 = vand.u32 %v7975_v50, %v8304_v11  ;;  %v363_v46 = vld [vmem:[%s11452_s0 + $0xad0] sm:$0x33]  ;;  %v2479_v50 = vand.u32 %v7983_v33, %v8304_v11 }
  0xc1   :  { %4771 = vmatprep.mubr.bf16.mxu1 %v11469_v5  ;;  %v7790_v3 = vcombine.high %v72_v56, %v168_v59  ;;  %v7789_v8 = vcombine.low %v72_v56, %v168_v59 }
  0xc2   :  { %4699 = vmatpush1.bf16.msra.mxu0 %v2419_v0  ;;  %v2461_v0 = vand.u32 %v7977_v53, %v8304_v11 }
  0xc3   :  { %4742 = vmatpush1.bf16.msra.mxu1 %v2425_v1  ;;  %4782 = vmatprep.subr.bf16.mxu0 %v7776_v2  ;;  %v7788_v1 = vcombine.high %v71_v35, %v167_v54  ;;  %v7980_v2 = vcombine.high %v263_v57, %v359_v58 }
  0xc4   :  { %4825 = vmatprep.subr.bf16.mxu1 %v7778_v4  ;;  %v7982_v4 = vcombine.high %v264_v60, %v360_v61 }
  0xc5   :  { %8109 = vmatmul.mubr.msk.bf16.vlgmr.msra.gmra.mrb[92].mxu0 %vm2134_vm2, %v8910_v62 }
  0xc6   :  { %8110 = vmatmul.mubr.msk.bf16.vlgmr.msra.gmra.mrb[92].mxu1 %vm2134_vm2, %v8910_v62  ;;  %4783 = vmatpush1.bf16.msra.mxu0 %v7775_v7  ;;  %v7979_v7 = vcombine.low %v263_v57, %v359_v58  ;;  %v2476_v14 = vand.u32 %v7982_v4, %v8304_v11  ;;  %v77_v4 = vld [vmem:[%s11452_s0 + $0x1e0] sm:$0xff] }
  0xc7   :  { %4826 = vmatpush1.bf16.msra.mxu1 %v7777_v9  ;;  %4784 = vmatprep.subr.bf16.mxu0 %v2434_v10  ;;  %v2470_v9 = vand.u32 %v7980_v2, %v8304_v11  ;;  %v7981_v10 = vcombine.low %v264_v60, %v360_v61  ;;  %v7795_v60 = vcombine.low %v75_v40, %v171_v41 }
  0xc8   :  { %4827 = vmatprep.subr.bf16.mxu1 %v2440_v15  ;;  %4814 = vmatprep.mubr.bf16.mxu0 %v11469_v5  ;;  %v74_v15 = vld [vmem:[%s11452_s0 + $0x1c8] sm:$0xff]  ;;  %v2467_v21 = vand.u32 %v7979_v7, %v8304_v11 }
  0xc9   :  { %4857 = vmatprep.mubr.bf16.mxu1 %v11469_v5  ;;  %v7793_v37 = vcombine.low %v74_v15, %v170_v18 }
  0xca   :  { %4785 = vmatpush1.bf16.msra.mxu0 %v2431_v22  ;;  %v2473_v22 = vand.u32 %v7981_v10, %v8304_v11  ;;  %v269_v10 = vld [vmem:[%s11452_s0 + $0x7e0] sm:$0xff] }
  0xcb   :  { %4828 = vmatpush1.bf16.msra.mxu1 %v2437_v23  ;;  %4868 = vmatprep.subr.bf16.mxu0 %v7780_v24  ;;  %v7792_v23 = vcombine.high %v73_v12, %v169_v13  ;;  %v7984_v24 = vcombine.high %v265_v16, %v361_v17  ;;  %v365_v12 = vld [vmem:[%s11452_s0 + $0xae0] sm:$0x33]  ;;  %v174_v13 = vld [vmem:[%s11452_s0 + $0x4e8] sm:$0xff] }
  0xcc   :  { %4911 = vmatprep.subr.bf16.mxu1 %v7782_v26  ;;  %v7794_v26 = vcombine.high %v74_v15, %v170_v18  ;;  %v366_v15 = vld [vmem:[%s11452_s0 + $0xae8] sm:$0x33]  ;;  %v7992_v19 = vcombine.high %v269_v10, %v365_v12  ;;  %v7991_v33 = vcombine.low %v269_v10, %v365_v12 }
  0xcd   :  { %8111 = vmatmul.mubr.msk.bf16.vlgmr.msra.gmra.mrb[96].mxu0 %vm2134_vm2, %v8910_v62  ;;  %v2482_v38 = vand.u32 %v7984_v24, %v8304_v11 }
  0xce   :  { %8112 = vmatmul.mubr.msk.bf16.vlgmr.msra.gmra.mrb[96].mxu1 %vm2134_vm2, %v8910_v62  ;;  %4869 = vmatpush1.bf16.msra.mxu0 %v7779_v28 }
  0xcf   :  { %4912 = vmatpush1.bf16.msra.mxu1 %v7781_v30  ;;  %4870 = vmatprep.subr.bf16.mxu0 %v2446_v31 }
  0xd0   :  { %4913 = vmatprep.subr.bf16.mxu1 %v2452_v36  ;;  %4900 = vmatprep.mubr.bf16.mxu0 %v11469_v5 }
  0xd1   :  { %4943 = vmatprep.mubr.bf16.mxu1 %v11469_v5 }
  0xd2   :  { %4871 = vmatpush1.bf16.msra.mxu0 %v2443_v43  ;;  %v2488_v43 = vand.u32 %v7986_v27, %v8304_v11 }
  0xd3   :  { %4914 = vmatpush1.bf16.msra.mxu1 %v2449_v44  ;;  %4954 = vmatprep.subr.bf16.mxu0 %v7784_v45  ;;  %v76_v44 = vld [vmem:[%s11452_s0 + $0x1d8] sm:$0xff]  ;;  %v267_v45 = vld [vmem:[%s11452_s0 + $0x7d0] sm:$0xff] }
  0xd4   :  { %4997 = vmatprep.subr.bf16.mxu1 %v7786_v47  ;;  %v172_v47 = vld [vmem:[%s11452_s0 + $0x4d8] sm:$0xff]  ;;  %v7988_v53 = vcombine.high %v267_v45, %v363_v46  ;;  %v7987_v61 = vcombine.low %v267_v45, %v363_v46 }
  0xd5   :  { %8113 = vmatmul.mubr.msk.bf16.vlgmr.msra.gmra.mrb[100].mxu0 %vm2134_vm2, %v8910_v62  ;;  %v7798_v54 = vcombine.high %v76_v44, %v172_v47 }
  0xd6   :  { %8114 = vmatmul.mubr.msk.bf16.vlgmr.msra.gmra.mrb[100].mxu1 %vm2134_vm2, %v8910_v62  ;;  %4955 = vmatpush1.bf16.msra.mxu0 %v7783_v49  ;;  %v364_v49 = vld [vmem:[%s11452_s0 + $0xad8] sm:$0x33]  ;;  %v2494_v2 = vand.u32 %v7988_v53, %v8304_v11  ;;  %v2491_v16 = vand.u32 %v7987_v61, %v8304_v11  ;;  %v2503_v53 = vand.u32 %v7991_v33, %v8304_v11  ;;  %v369_v33 = vld [vmem:[%s11452_s0 + $0xb00] sm:$0x33] }
  0xd7   :  { %4998 = vmatpush1.bf16.msra.mxu1 %v7785_v51  ;;  %4956 = vmatprep.subr.bf16.mxu0 %v2458_v52  ;;  %v2485_v51 = vand.u32 %v7985_v39, %v8304_v11  ;;  %v7796_v52 = vcombine.high %v75_v40, %v171_v41  ;;  %v2506_v40 = vand.u32 %v7992_v19, %v8304_v11 }
  0xd8   :  { %4999 = vmatprep.subr.bf16.mxu1 %v2464_v55  ;;  %4986 = vmatprep.mubr.bf16.mxu0 %v11469_v5  ;;  %v7990_v55 = vcombine.high %v268_v48, %v364_v49 }
  0xd9   :  { %5029 = vmatprep.mubr.bf16.mxu1 %v11469_v5 }
  0xda   :  { %4957 = vmatpush1.bf16.msra.mxu0 %v2455_v63 }
  0xdb   :  { %5000 = vmatpush1.bf16.msra.mxu1 %v2461_v0  ;;  %5040 = vmatprep.subr.bf16.mxu0 %v7788_v1  ;;  %v7797_v1 = vcombine.low %v76_v44, %v172_v47  ;;  %v175_v44 = vld [vmem:[%s11452_s0 + $0x4f0] sm:$0xff]  ;;  %v80_v47 = vld [vmem:[%s11452_s0 + $0x1f8] sm:$0xff] }
  0xdc   :  { %5083 = vmatprep.subr.bf16.mxu1 %v7790_v3  ;;  %v7989_v3 = vcombine.low %v268_v48, %v364_v49  ;;  %v271_v48 = vld [vmem:[%s11452_s0 + $0x7f0] sm:$0xff] }
  0xdd   :  { %8115 = vmatmul.mubr.msk.bf16.vlgmr.msra.gmra.mrb[104].mxu0 %vm2134_vm2, %v8910_v62  ;;  %v367_v49 = vld [vmem:[%s11452_s0 + $0xaf0] sm:$0x33] }
  0xde   :  { %8116 = vmatmul.mubr.msk.bf16.vlgmr.msra.gmra.mrb[104].mxu1 %vm2134_vm2, %v8910_v62  ;;  %5041 = vmatpush1.bf16.msra.mxu0 %v7787_v6  ;;  %v173_v6 = vld [vmem:[%s11452_s0 + $0x4e0] sm:$0xff]  ;;  %v2497_v17 = vand.u32 %v7989_v3, %v8304_v11  ;;  %v7995_v10 = vcombine.low %v271_v48, %v367_v49 }
  0xdf   :  { %5084 = vmatpush1.bf16.msra.mxu1 %v7789_v8  ;;  %5042 = vmatprep.subr.bf16.mxu0 %v2470_v9  ;;  %v2500_v8 = vand.u32 %v7990_v55, %v8304_v11  ;;  %v78_v9 = vld [vmem:[%s11452_s0 + $0x1e8] sm:$0xff]  ;;  %v7800_v18 = vcombine.high %v77_v4, %v173_v6 }
  0xe0   :  { %v9267_v25 = vpop.f32.mrb[0].mxu0  ;;  %5085 = vmatprep.subr.bf16.mxu1 %v2476_v14  ;;  %5072 = vmatprep.mubr.bf16.mxu0 %v11469_v5  ;;  %v270_v14 = vld [vmem:[%s11452_s0 + $0x7e8] sm:$0xff]  ;;  %v7801_v39 = vcombine.low %v78_v9, %v174_v13 }
  0xe1   :  { %11626 = vst [vmem:[#allocation2_spill] sm:$0xff] %v9267_v25  ;;  %v9270_v28 = vpop.f32.mrb[0].mxu1  ;;  %v9272_v29 = vpop.f32.mrb[1].mxu0  ;;  %5115 = vmatprep.mubr.bf16.mxu1 %v11469_v5  ;;  %v7993_v41 = vcombine.low %v270_v14, %v366_v15 }
  0xe2   :  { %v9275_v30 = vpop.f32.mrb[1].mxu1  ;;  %v9277_v31 = vpop.f32.mrb[2].mxu0  ;;  %5043 = vmatpush1.bf16.msra.mxu0 %v2467_v21  ;;  %v7802_v21 = vcombine.high %v78_v9, %v174_v13 }
  0xe3   :  { %v9279_v34 = vpop.f32.mrb[2].mxu1  ;;  %5086 = vmatpush1.bf16.msra.mxu1 %v2473_v22  ;;  %v9281_v36 = vpop.f32.mrb[3].mxu0  ;;  %5126 = vmatprep.subr.bf16.mxu0 %v7792_v23  ;;  %v7994_v22 = vcombine.high %v270_v14, %v366_v15 }
  0xe4   :  { %11627 = vst [vmem:[#allocation3_spill] sm:$0xff] %v9279_v34  ;;  %11628 = vst [vmem:[#allocation4_spill] sm:$0xff] %v9281_v36  ;;  %v9290_v42 = vpop.f32.mrb[3].mxu1  ;;  %5169 = vmatprep.subr.bf16.mxu1 %v7794_v26 }
  0xe5   :  { %11629 = vst [vmem:[#allocation5_spill] sm:$0xff] %v9290_v42  ;;  %8117 = vmatmul.mubr.msk.bf16.vlgmr.msra.gmra.mrb[108].mxu0 %vm2134_vm2, %v8910_v62  ;;  %v2512_v46 = vand.u32 %v7994_v22, %v8304_v11  ;;  %v82_v22 = vld [vmem:[%s11452_s0 + $0x208] sm:$0xff] }
  0xe6   :  { %8118 = vmatmul.mubr.msk.bf16.vlgmr.msra.gmra.mrb[108].mxu1 %vm2134_vm2, %v8910_v62  ;;  %5127 = vmatpush1.bf16.msra.mxu0 %v7791_v32  ;;  %v7799_v32 = vcombine.low %v77_v4, %v173_v6 }
  0xe7   :  { %5170 = vmatpush1.bf16.msra.mxu1 %v7793_v37  ;;  %5128 = vmatprep.subr.bf16.mxu0 %v2482_v38 }
  0xe8   :  { %v9317_v35 = vpop.f32.mrb[4].mxu0  ;;  %5171 = vmatprep.subr.bf16.mxu1 %v2488_v43  ;;  %5158 = vmatprep.mubr.bf16.mxu0 %v11469_v5  ;;  %v79_v43 = vld [vmem:[%s11452_s0 + $0x1f0] sm:$0xff] }
  0xe9   :  { %11630 = vst [vmem:[#allocation6_spill] sm:$0xff] %v9317_v35  ;;  %v9320_v56 = vpop.f32.mrb[4].mxu1  ;;  %v9322_v57 = vpop.f32.mrb[5].mxu0  ;;  %5201 = vmatprep.mubr.bf16.mxu1 %v11469_v5  ;;  %v7804_v55 = vcombine.high %v79_v43, %v175_v44  ;;  %v7803_v9 = vcombine.low %v79_v43, %v175_v44  ;;  %v2515_v43 = vand.u32 %v7995_v10, %v8304_v11 }
  0xea   :  { %v9325_v58 = vpop.f32.mrb[5].mxu1  ;;  %v9327_v59 = vpop.f32.mrb[6].mxu0  ;;  %5129 = vmatpush1.bf16.msra.mxu0 %v2479_v50  ;;  %v176_v50 = vld [vmem:[%s11452_s0 + $0x4f8] sm:$0xff] }
  0xeb   :  { %v9329_v63 = vpop.f32.mrb[6].mxu1  ;;  %5172 = vmatpush1.bf16.msra.mxu1 %v2485_v51  ;;  %v9331_v0 = vpop.f32.mrb[7].mxu0  ;;  %5212 = vmatprep.subr.bf16.mxu0 %v7796_v52  ;;  %v272_v51 = vld [vmem:[%s11452_s0 + $0x7f8] sm:$0xff]  ;;  %v7805_v14 = vcombine.low %v80_v47, %v176_v50 }
  0xec   :  { %11631 = vst [vmem:[#allocation7_spill] sm:$0xff] %v9329_v63  ;;  %11632 = vst [vmem:[#allocation8_spill] sm:$0xff] %v9331_v0  ;;  %v9340_v7 = vpop.f32.mrb[7].mxu1  ;;  %5255 = vmatprep.subr.bf16.mxu1 %v7798_v54  ;;  %v368_v52 = vld [vmem:[%s11452_s0 + $0xaf8] sm:$0x33]  ;;  %v2509_v54 = vand.u32 %v7993_v41, %v8304_v11 }
  0xed   :  { %11633 = vst [vmem:[#allocation9_spill] sm:$0xff] %v9340_v7  ;;  %8119 = vmatmul.mubr.msk.bf16.vlgmr.msra.gmra.mrb[112].mxu0 %vm2134_vm2, %v8910_v62  ;;  %v370_v41 = vld [vmem:[%s11452_s0 + $0xb08] sm:$0x33] }
  0xee   :  { %8120 = vmatmul.mubr.msk.bf16.vlgmr.msra.gmra.mrb[112].mxu1 %vm2134_vm2, %v8910_v62  ;;  %5213 = vmatpush1.bf16.msra.mxu0 %v7795_v60  ;;  %v7996_v60 = vcombine.high %v271_v48, %v367_v49 }
  0xef   :  { %5256 = vmatpush1.bf16.msra.mxu1 %v7797_v1  ;;  %5214 = vmatprep.subr.bf16.mxu0 %v2494_v2  ;;  %v7806_v1 = vcombine.high %v80_v47, %v176_v50  ;;  %v7998_v2 = vcombine.high %v272_v51, %v368_v52 }
  0xf0   :  { %v9367_v20 = vpop.f32.mrb[8].mxu0  ;;  %5257 = vmatprep.subr.bf16.mxu1 %v2500_v8  ;;  %5244 = vmatprep.mubr.bf16.mxu0 %v11469_v5  ;;  %v2518_v15 = vand.u32 %v7996_v60, %v8304_v11 }
  0xf1   :  { %11634 = vst [vmem:[#allocation10_spill] sm:$0xff] %v9367_v20  ;;  %v9370_v23 = vpop.f32.mrb[8].mxu1  ;;  %v9372_v24 = vpop.f32.mrb[9].mxu0  ;;  %5287 = vmatprep.mubr.bf16.mxu1 %v11469_v5 }
  0xf2   :  { %v9375_v26 = vpop.f32.mrb[9].mxu1  ;;  %v9377_v27 = vpop.f32.mrb[10].mxu0  ;;  %5215 = vmatpush1.bf16.msra.mxu0 %v2491_v16  ;;  %v7997_v16 = vcombine.low %v272_v51, %v368_v52 }
  0xf3   :  { %v9379_v37 = vpop.f32.mrb[10].mxu1  ;;  %5258 = vmatpush1.bf16.msra.mxu1 %v2497_v17  ;;  %v9381_v38 = vpop.f32.mrb[11].mxu0  ;;  %5298 = vmatprep.subr.bf16.mxu0 %v7800_v18  ;;  %v81_v17 = vld [vmem:[%s11452_s0 + $0x200] sm:$0xff] }
  0xf4   :  { %11635 = vst [vmem:[#allocation11_spill] sm:$0xff] %v9379_v37  ;;  %11636 = vst [vmem:[#allocation12_spill] sm:$0xff] %v9381_v38  ;;  %v9390_v45 = vpop.f32.mrb[11].mxu1  ;;  %5341 = vmatprep.subr.bf16.mxu1 %v7802_v21  ;;  %v177_v18 = vld [vmem:[%s11452_s0 + $0x500] sm:$0xff]  ;;  %v2524_v21 = vand.u32 %v7998_v2, %v8304_v11  ;;  %v2521_v44 = vand.u32 %v7997_v16, %v8304_v11 }
  0xf5   :  { %11637 = vst [vmem:[#allocation13_spill] sm:$0xff] %v9390_v45  ;;  %8121 = vmatmul.mubr.msk.bf16.vlgmr.msra.gmra.mrb[116].mxu0 %vm2134_vm2, %v8910_v62  ;;  %v7134_v16 = vld [vmem:[%s11454_s2] sm:$0xff] }
  0xf6   :  { %8122 = vmatmul.mubr.msk.bf16.vlgmr.msra.gmra.mrb[116].mxu1 %vm2134_vm2, %v8910_v62  ;;  %5299 = vmatpush1.bf16.msra.mxu0 %v7799_v32  ;;  %v273_v32 = vld [vmem:[%s11452_s0 + $0x800] sm:$0xff] }
  0xf7   :  { %5342 = vmatpush1.bf16.msra.mxu1 %v7801_v39  ;;  %5300 = vmatprep.subr.bf16.mxu0 %v2506_v40  ;;  %v178_v39 = vld [vmem:[%s11452_s0 + $0x508] sm:$0xff]  ;;  %v8000_v47 = vcombine.high %v273_v32, %v369_v33 }
  0xf8   :  { %v9417_v61 = vpop.f32.mrb[12].mxu0  ;;  %5343 = vmatprep.subr.bf16.mxu1 %v2512_v46  ;;  %5330 = vmatprep.mubr.bf16.mxu0 %v11469_v5  ;;  %v274_v40 = vld [vmem:[%s11452_s0 + $0x808] sm:$0xff]  ;;  %v7808_v46 = vcombine.high %v81_v17, %v177_v18  ;;  %v7810_v49 = vcombine.high %v82_v22, %v178_v39  ;;  %v7809_v2 = vcombine.low %v82_v22, %v178_v39  ;;  %v275_v22 = vld [vmem:[%s11452_s0 + $0x810] sm:$0xff]  ;;  %v180_v39 = vld [vmem:[%s11452_s0 + $0x518] sm:$0xff] }
  0xf9   :  { %11638 = vst [vmem:[#allocation14_spill] sm:$0xff] %v9417_v61  ;;  %v9420_v3 = vpop.f32.mrb[12].mxu1  ;;  %v9422_v4 = vpop.f32.mrb[13].mxu0  ;;  %5373 = vmatprep.mubr.bf16.mxu1 %v11469_v5  ;;  %v8002_v50 = vcombine.high %v274_v40, %v370_v41  ;;  %v8001_v10 = vcombine.low %v274_v40, %v370_v41  ;;  %7138 = vperm.xlu0 %8257, %v7134_v16   ;;  %v276_v40 = vld [vmem:[%s11452_s0 + $0x818] sm:$0xff] }
  0xfa   :  { %11639 = vst [vmem:[#allocation15_spill] sm:$0xff] %v9420_v3  ;;  %11640 = vst [vmem:[#allocation16_spill] sm:$0xff] %v9422_v4  ;;  %v9425_v6 = vpop.f32.mrb[13].mxu1  ;;  %v9427_v8 = vpop.f32.mrb[14].mxu0  ;;  %5301 = vmatpush1.bf16.msra.mxu0 %v2503_v53  ;;  %v372_v41 = vld [vmem:[%s11452_s0 + $0xb18] sm:$0x33] }
  0xfb   :  { %11641 = vst [vmem:[#allocation17_spill] sm:$0xff] %v9425_v6  ;;  %11642 = vst [vmem:[#allocation18_spill] sm:$0xff] %v9427_v8  ;;  %v9429_v12 = vpop.f32.mrb[14].mxu1  ;;  %5344 = vmatpush1.bf16.msra.mxu1 %v2509_v54  ;;  %v9431_v13 = vpop.f32.mrb[15].mxu0  ;;  %5384 = vmatprep.subr.bf16.mxu0 %v7804_v55  ;;  %v7807_v54 = vcombine.low %v81_v17, %v177_v18  ;;  %v7999_v55 = vcombine.low %v273_v32, %v369_v33  ;;  %v371_v32 = vld [vmem:[%s11452_s0 + $0xb10] sm:$0x33] }
  0xfc   :  { %11643 = vst [vmem:[#allocation19_spill] sm:$0xff] %v9429_v12  ;;  %11644 = vst [vmem:[#allocation20_spill] sm:$0xff] %v9431_v13  ;;  %v9440_v19 = vpop.f32.mrb[15].mxu1  ;;  %5427 = vmatprep.subr.bf16.mxu1 %v7806_v1  ;;  %v2536_v18 = vand.u32 %v8002_v50, %v8304_v11  ;;  %v9508_v33 = vld [vmem:[%s11453_s1] sm:$0xff]  }
  0xfd   :  { %11645 = vst [vmem:[#allocation21_spill] sm:$0xff] %v9440_v19  ;;  %8123 = vmatmul.mubr.msk.bf16.vlgmr.msra.gmra.mrb[120].mxu0 %vm2134_vm2, %v8910_v62 }
  0xfe   :  { %8124 = vmatmul.mubr.msk.bf16.vlgmr.msra.gmra.mrb[120].mxu1 %vm2134_vm2, %v8910_v62  ;;  %5385 = vmatpush1.bf16.msra.mxu0 %v7803_v9  ;;  %v2530_v9 = vand.u32 %v8000_v47, %v8304_v11 }
  0xff   :  { %5428 = vmatpush1.bf16.msra.mxu1 %v7805_v14  ;;  %5386 = vmatprep.subr.bf16.mxu0 %v2518_v15  ;;  %v83_v14 = vld [vmem:[%s11452_s0 + $0x210] sm:$0xff] }
 0x100   :  { %v9467_v48 = vpop.f32.mrb[16].mxu0  ;;  %5429 = vmatprep.subr.bf16.mxu1 %v2524_v21  ;;  %5416 = vmatprep.mubr.bf16.mxu0 %v11469_v5  ;;  %v179_v15 = vld [vmem:[%s11452_s0 + $0x510] sm:$0xff]  ;;  %v84_v21 = vld [vmem:[%s11452_s0 + $0x218] sm:$0xff] }
 0x101   :  { %11646 = vst [vmem:[#allocation22_spill] sm:$0xff] %v9467_v48  ;;  %v9470_v51 = vpop.f32.mrb[16].mxu1  ;;  %v9472_v52 = vpop.f32.mrb[17].mxu0  ;;  %5459 = vmatprep.mubr.bf16.mxu1 %v11469_v5  ;;  %v7812_v47 = vcombine.high %v83_v14, %v179_v15  ;;  %v7814_v16 = vcombine.high %v84_v21, %v180_v39  ;;  %v299_v48 = vld [vmem:[%s11452_s0 + $0x8d0] sm:$0xff] }
 0x102   :  { %11647 = vst [vmem:[#allocation23_spill] sm:$0xff] %v9470_v51  ;;  %11648 = vst [vmem:[#allocation24_spill] sm:$0xff] %v9472_v52  ;;  %v9475_v62 = vpop.f32.mrb[17].mxu1  ;;  %v9477_v53 = vpop.f32.mrb[18].mxu0  ;;  %5387 = vmatpush1.bf16.msra.mxu0 %v2515_v43  ;;  %v2527_v43 = vand.u32 %v7999_v55, %v8304_v11  ;;  %v301_v51 = vld [vmem:[%s11452_s0 + $0x8e0] sm:$0xff] }
 0x103   :  { %11649 = vst [vmem:[#allocation25_spill] sm:$0xff] %v9475_v62  ;;  %11650 = vst [vmem:[#allocation26_spill] sm:$0xff] %v9477_v53  ;;  %v9479_v60 = vpop.f32.mrb[18].mxu1  ;;  %5430 = vmatpush1.bf16.msra.mxu1 %v2521_v44  ;;  %v9481_v1 = vpop.f32.mrb[19].mxu0  ;;  %5470 = vmatprep.subr.bf16.mxu0 %v7808_v46  ;;  %v7135_v44 = vld [vmem:[%s11454_s2 + $0x8] sm:$0xff]  ;;  %v2533_v46 = vand.u32 %v8001_v10, %v8304_v11  ;;  %v7811_v10 = vcombine.low %v83_v14, %v179_v15 }
 0x104   :  { %11651 = vst [vmem:[#allocation27_spill] sm:$0xff] %v9479_v60  ;;  %11652 = vst [vmem:[#allocation28_spill] sm:$0xff] %v9481_v1  ;;  %v9493_v17 = vpop.f32.mrb[19].mxu1  ;;  %5513 = vmatprep.subr.bf16.mxu1 %v7810_v49  ;;  %v8004_v49 = vcombine.high %v275_v22, %v371_v32  ;;  %7143 = vperm.xlu0 %8257, %v7135_v44   ;;  %v8003_v1 = vcombine.low %v275_v22, %v371_v32  ;;  %v85_v44 = vld [vmem:[%s11452_s0 + $0x220] sm:$0xff] }
 0x105   :  { %11653 = vst [vmem:[#allocation29_spill] sm:$0xff] %v9493_v17  ;;  %8125 = vmatmul.mubr.msk.bf16.vlgmr.msra.gmra.mrb[124].mxu0 %vm2134_vm2, %v9508_v33  ;;  %v8006_v17 = vcombine.high %v276_v40, %v372_v41  ;;  %v7813_v60 = vcombine.low %v84_v21, %v180_v39  ;;  %v86_v21 = vld [vmem:[%s11452_s0 + $0x228] sm:$0xff]  ;;  %v277_v22 = vld [vmem:[%s11452_s0 + $0x820] sm:$0xff] }
 0x106   :  { %8126 = vmatmul.mubr.msk.bf16.vlgmr.msra.gmra.mrb[124].mxu1 %vm2134_vm2, %v9508_v33  ;;  %5471 = vmatpush1.bf16.msra.mxu0 %v7807_v54  ;;  %v373_v32 = vld [vmem:[%s11452_s0 + $0xb20] sm:$0x33]  ;;  %v182_v39 = vld [vmem:[%s11452_s0 + $0x528] sm:$0xff] }
 0x107   :  { %5514 = vmatpush1.bf16.msra.mxu1 %v7809_v2  ;;  %5472 = vmatprep.subr.bf16.mxu0 %v2530_v9  ;;  %v2548_v15 = vand.u32 %v8006_v17, %v8304_v11  ;;  %v278_v17 = vld [vmem:[%s11452_s0 + $0x828] sm:$0xff] }
 0x108   :  { %v9528_v50 = vpop.f32.mrb[20].mxu0  ;;  %5515 = vmatprep.subr.bf16.mxu1 %v2536_v18  ;;  %5502 = vmatprep.mubr.bf16.mxu0 %v11469_v5 }
 0x109   :  { %11654 = vst [vmem:[#allocation30_spill] sm:$0xff] %v9528_v50  ;;  %v9531_v54 = vpop.f32.mrb[20].mxu1  ;;  %v9533_v55 = vpop.f32.mrb[21].mxu0  ;;  %5545 = vmatprep.mubr.bf16.mxu1 %v11469_v5 }
 0x10a   :  { %11655 = vst [vmem:[#allocation31_spill] sm:$0xff] %v9531_v54  ;;  %11656 = vst [vmem:[#allocation32_spill] sm:$0xff] %v9533_v55  ;;  %v9536_v2 = vpop.f32.mrb[21].mxu1  ;;  %v9538_v9 = vpop.f32.mrb[22].mxu0  ;;  %5473 = vmatpush1.bf16.msra.mxu0 %v2527_v43  ;;  %v2542_v54 = vand.u32 %v8004_v49, %v8304_v11  ;;  %v8005_v55 = vcombine.low %v276_v40, %v372_v41  ;;  %v181_v43 = vld [vmem:[%s11452_s0 + $0x520] sm:$0xff]  ;;  %v2539_v41 = vand.u32 %v8003_v1, %v8304_v11 }
 0x10b   :  { %11657 = vst [vmem:[#allocation33_spill] sm:$0xff] %v9536_v2  ;;  %11658 = vst [vmem:[#allocation34_spill] sm:$0xff] %v9538_v9  ;;  %v9540_v50 = vpop.f32.mrb[22].mxu1  ;;  %5516 = vmatpush1.bf16.msra.mxu1 %v2533_v46  ;;  %v9542_v18 = vpop.f32.mrb[23].mxu0  ;;  %5556 = vmatprep.subr.bf16.mxu0 %v7812_v47  ;;  %v374_v40 = vld [vmem:[%s11452_s0 + $0xb28] sm:$0x33]  ;;  %v7816_v47 = vcombine.high %v85_v44, %v181_v43  ;;  %v8008_v49 = vcombine.high %v277_v22, %v373_v32 }
 0x10c   :  { %11659 = vst [vmem:[#allocation35_spill] sm:$0xff] %v9540_v50  ;;  %11660 = vst [vmem:[#allocation36_spill] sm:$0xff] %v9542_v18  ;;  %v9551_v14 = vpop.f32.mrb[23].mxu1  ;;  %5599 = vmatprep.subr.bf16.mxu1 %v7814_v16  ;;  %v2545_v46 = vand.u32 %v8005_v55, %v8304_v11  ;;  %v8010_v18 = vcombine.high %v278_v17, %v374_v40  ;;  %v8007_v55 = vcombine.low %v277_v22, %v373_v32  ;;  %v279_v22 = vld [vmem:[%s11452_s0 + $0x830] sm:$0xff] }
 0x10d   :  { %11661 = vst [vmem:[#allocation37_spill] sm:$0xff] %v9551_v14  ;;  %8127 = vmatmul.mubr.msk.bf16.vlgmr.msra.gmra.mrb[128].mxu0 %vm2134_vm2, %v9508_v33  ;;  %v7818_v14 = vcombine.high %v86_v21, %v182_v39  ;;  %v8009_v2 = vcombine.low %v278_v17, %v374_v40  ;;  %v375_v32 = vld [vmem:[%s11452_s0 + $0xb30] sm:$0x33] }
 0x10e   :  { %8128 = vmatmul.mubr.msk.bf16.vlgmr.msra.gmra.mrb[128].mxu1 %vm2134_vm2, %v9508_v33  ;;  %5557 = vmatpush1.bf16.msra.mxu0 %v7811_v10  ;;  %v2551_v17 = vand.u32 %v8007_v55, %v8304_v11 }
 0x10f   :  { %5600 = vmatpush1.bf16.msra.mxu1 %v7813_v60  ;;  %5558 = vmatprep.subr.bf16.mxu0 %v2542_v54  ;;  %v7815_v54 = vcombine.low %v85_v44, %v181_v43  ;;  %v2560_v43 = vand.u32 %v8010_v18, %v8304_v11  ;;  %v280_v18 = vld [vmem:[%s11452_s0 + $0x838] sm:$0xff]  ;;  %v2557_v40 = vand.u32 %v8009_v2, %v8304_v11 }
 0x110   :  { %v9578_v16 = vpop.f32.mrb[24].mxu0  ;;  %5601 = vmatprep.subr.bf16.mxu1 %v2548_v15  ;;  %5588 = vmatprep.mubr.bf16.mxu0 %v11469_v5 }
 0x111   :  { %11662 = vst [vmem:[#allocation38_spill] sm:$0xff] %v9578_v16  ;;  %v9581_v50 = vpop.f32.mrb[24].mxu1  ;;  %v9583_v9 = vpop.f32.mrb[25].mxu0  ;;  %5631 = vmatprep.mubr.bf16.mxu1 %v11469_v5  ;;  %v7817_v16 = vcombine.low %v86_v21, %v182_v39  ;;  %v87_v5 = vld [vmem:[%s11452_s0 + $0x230] sm:$0xff]  ;;  %v88_v21 = vld [vmem:[%s11452_s0 + $0x238] sm:$0xff] }
 0x112   :  { %11663 = vst [vmem:[#allocation39_spill] sm:$0xff] %v9581_v50  ;;  %11664 = vst [vmem:[#allocation40_spill] sm:$0xff] %v9583_v9  ;;  %v9586_v1 = vpop.f32.mrb[25].mxu1  ;;  %v9588_v60 = vpop.f32.mrb[26].mxu0  ;;  %5559 = vmatpush1.bf16.msra.mxu0 %v2539_v41  ;;  %v2554_v50 = vand.u32 %v8008_v49, %v8304_v11  ;;  %v183_v41 = vld [vmem:[%s11452_s0 + $0x530] sm:$0xff] }
 0x113   :  { %11665 = vst [vmem:[#allocation41_spill] sm:$0xff] %v9586_v1  ;;  %11666 = vst [vmem:[#allocation42_spill] sm:$0xff] %v9588_v60  ;;  %v9590_v10 = vpop.f32.mrb[26].mxu1  ;;  %5602 = vmatpush1.bf16.msra.mxu1 %v2545_v46  ;;  %v9592_v15 = vpop.f32.mrb[27].mxu0  ;;  %5642 = vmatprep.subr.bf16.mxu0 %v7816_v47  ;;  %v376_v39 = vld [vmem:[%s11452_s0 + $0xb38] sm:$0x33]  ;;  %v7820_v46 = vcombine.high %v87_v5, %v183_v41  ;;  %v8012_v47 = vcombine.high %v279_v22, %v375_v32 }
 0x114   :  { %11667 = vst [vmem:[#allocation43_spill] sm:$0xff] %v9590_v10  ;;  %11668 = vst [vmem:[#allocation44_spill] sm:$0xff] %v9592_v15  ;;  %v9601_v44 = vpop.f32.mrb[27].mxu1  ;;  %5685 = vmatprep.subr.bf16.mxu1 %v7818_v14  ;;  %v184_v14 = vld [vmem:[%s11452_s0 + $0x538] sm:$0xff]  ;;  %v8014_v10 = vcombine.high %v280_v18, %v376_v39  ;;  %v7819_v2 = vcombine.low %v87_v5, %v183_v41  ;;  %v8013_v9 = vcombine.low %v280_v18, %v376_v39 }
 0x115   :  { %11669 = vst [vmem:[#allocation45_spill] sm:$0xff] %v9601_v44  ;;  %8129 = vmatmul.mubr.msk.bf16.vlgmr.msra.gmra.mrb[132].mxu0 %vm2134_vm2, %v9508_v33  ;;  %v11671_v44 = vmov 0   ;;  %v7822_v15 = vcombine.high %v88_v21, %v184_v14 }
 0x116   :  { %8130 = vmatmul.mubr.msk.bf16.vlgmr.msra.gmra.mrb[132].mxu1 %vm2134_vm2, %v9508_v33  ;;  %5643 = vmatpush1.bf16.msra.mxu0 %v7815_v54  ;;  %v2572_v41 = vand.u32 %v8014_v10, %v8304_v11  ;;  %v282_v10 = vld [vmem:[%s11452_s0 + $0x848] sm:$0xff]  ;;  %v2569_v39 = vand.u32 %v8013_v9, %v8304_v11 }
 0x117   :  { %5686 = vmatpush1.bf16.msra.mxu1 %v7817_v16  ;;  %5644 = vmatprep.subr.bf16.mxu0 %v2554_v50  ;;  %v8011_v16 = vcombine.low %v279_v22, %v375_v32  ;;  %v281_v22 = vld [vmem:[%s11452_s0 + $0x840] sm:$0xff] }
 0x118   :  { %v9628_v49 = vpop.f32.mrb[28].mxu0  ;;  %5687 = vmatprep.subr.bf16.mxu1 %v2560_v43  ;;  %5674 = vmatprep.mubr.bf16.mxu0 %v11671_v44  ;;  %v377_v32 = vld [vmem:[%s11452_s0 + $0xb40] sm:$0x33] }
 0x119   :  { %11670 = vst [vmem:[#allocation46_spill] sm:$0xff] %v9628_v49  ;;  %v9631_v60 = vpop.f32.mrb[28].mxu1  ;;  %v9633_v1 = vpop.f32.mrb[29].mxu0  ;;  %5717 = vmatprep.mubr.bf16.mxu1 %v11671_v44  ;;  %v7821_v49 = vcombine.low %v88_v21, %v184_v14  ;;  %v90_v21 = vld [vmem:[%s11452_s0 + $0x248] sm:$0xff]  ;;  %v2563_v18 = vand.u32 %v8011_v16, %v8304_v11 }
 0x11a   :  { %11672 = vst [vmem:[#allocation47_spill] sm:$0xff] %v9631_v60  ;;  %11673 = vst [vmem:[#allocation48_spill] sm:$0xff] %v9633_v1  ;;  %v9636_v54 = vpop.f32.mrb[29].mxu1  ;;  %v9638_v50 = vpop.f32.mrb[30].mxu0  ;;  %5645 = vmatpush1.bf16.msra.mxu0 %v2551_v17  ;;  %v2566_v60 = vand.u32 %v8012_v47, %v8304_v11  ;;  %v89_v1 = vld [vmem:[%s11452_s0 + $0x240] sm:$0xff] }
 0x11b   :  { %11674 = vst [vmem:[#allocation49_spill] sm:$0xff] %v9636_v54  ;;  %11675 = vst [vmem:[#allocation50_spill] sm:$0xff] %v9638_v50  ;;  %v9640_v55 = vpop.f32.mrb[30].mxu1  ;;  %5688 = vmatpush1.bf16.msra.mxu1 %v2557_v40  ;;  %v9642_v43 = vpop.f32.mrb[31].mxu0  ;;  %5728 = vmatprep.subr.bf16.mxu0 %v7820_v46  ;;  %v185_v17 = vld [vmem:[%s11452_s0 + $0x540] sm:$0xff]  ;;  %v8016_v46 = vcombine.high %v281_v22, %v377_v32 }
 0x11c   :  { %11676 = vst [vmem:[#allocation51_spill] sm:$0xff] %v9640_v55  ;;  %11677 = vst [vmem:[#allocation52_spill] sm:$0xff] %v9642_v43  ;;  %v9651_v5 = vpop.f32.mrb[31].mxu1  ;;  %5771 = vmatprep.subr.bf16.mxu1 %v7822_v15  ;;  %v186_v15 = vld [vmem:[%s11452_s0 + $0x548] sm:$0xff]  ;;  %v7824_v40 = vcombine.high %v89_v1, %v185_v17  ;;  %v7823_v9 = vcombine.low %v89_v1, %v185_v17 }
 0x11d   :  { %11678 = vst [vmem:[#allocation53_spill] sm:$0xff] %v9651_v5  ;;  %8131 = vmatmul.mubr.msk.bf16.vlgmr.msra.gmra.mrb[136].mxu0 %vm2134_vm2, %v9508_v33  ;;  %v378_v14 = vld [vmem:[%s11452_s0 + $0xb48] sm:$0x33]  ;;  %v7826_v5 = vcombine.high %v90_v21, %v186_v15 }
 0x11e   :  { %8132 = vmatmul.mubr.msk.bf16.vlgmr.msra.gmra.mrb[136].mxu1 %vm2134_vm2, %v9508_v33  ;;  %5729 = vmatpush1.bf16.msra.mxu0 %v7819_v2  ;;  %v8018_v43 = vcombine.high %v282_v10, %v378_v14  ;;  %v8017_v54 = vcombine.low %v282_v10, %v378_v14 }
 0x11f   :  { %5772 = vmatpush1.bf16.msra.mxu1 %v7821_v49  ;;  %5730 = vmatprep.subr.bf16.mxu0 %v2566_v60  ;;  %v8015_v49 = vcombine.low %v281_v22, %v377_v32  ;;  %v283_v22 = vld [vmem:[%s11452_s0 + $0x850] sm:$0xff] }
 0x120   :  { %v9678_v47 = vpop.f32.mrb[32].mxu0  ;;  %5773 = vmatprep.subr.bf16.mxu1 %v2572_v41  ;;  %5760 = vmatprep.mubr.bf16.mxu0 %v11671_v44  ;;  %v2584_v17 = vand.u32 %v8018_v43, %v8304_v11  ;;  %v379_v32 = vld [vmem:[%s11452_s0 + $0xb50] sm:$0x33]  ;;  %v284_v43 = vld [vmem:[%s11452_s0 + $0x858] sm:$0xff]  ;;  %v2581_v14 = vand.u32 %v8017_v54, %v8304_v11 }
 0x121   :  { %11679 = vst [vmem:[#allocation54_spill] sm:$0xff] %v9678_v47  ;;  %v9681_v55 = vpop.f32.mrb[32].mxu1  ;;  %v9683_v50 = vpop.f32.mrb[33].mxu0  ;;  %5803 = vmatprep.mubr.bf16.mxu1 %v11671_v44  ;;  %v7825_v47 = vcombine.low %v90_v21, %v186_v15  ;;  %v92_v21 = vld [vmem:[%s11452_s0 + $0x258] sm:$0xff]  ;;  %v2575_v10 = vand.u32 %v8015_v49, %v8304_v11 }
 0x122   :  { %11680 = vst [vmem:[#allocation55_spill] sm:$0xff] %v9681_v55  ;;  %11681 = vst [vmem:[#allocation56_spill] sm:$0xff] %v9683_v50  ;;  %v9686_v2 = vpop.f32.mrb[33].mxu1  ;;  %v9688_v60 = vpop.f32.mrb[34].mxu0  ;;  %5731 = vmatpush1.bf16.msra.mxu0 %v2563_v18  ;;  %v2578_v55 = vand.u32 %v8016_v46, %v8304_v11  ;;  %v91_v50 = vld [vmem:[%s11452_s0 + $0x250] sm:$0xff] }
 0x123   :  { %11682 = vst [vmem:[#allocation57_spill] sm:$0xff] %v9686_v2  ;;  %11683 = vst [vmem:[#allocation58_spill] sm:$0xff] %v9688_v60  ;;  %v9690_v16 = vpop.f32.mrb[34].mxu1  ;;  %5774 = vmatpush1.bf16.msra.mxu1 %v2569_v39  ;;  %v9692_v41 = vpop.f32.mrb[35].mxu0  ;;  %5814 = vmatprep.subr.bf16.mxu0 %v7824_v40  ;;  %v187_v18 = vld [vmem:[%s11452_s0 + $0x550] sm:$0xff]  ;;  %v8020_v40 = vcombine.high %v283_v22, %v379_v32 }
 0x124   :  { %11684 = vst [vmem:[#allocation59_spill] sm:$0xff] %v9690_v16  ;;  %11685 = vst [vmem:[#allocation60_spill] sm:$0xff] %v9692_v41  ;;  %v9701_v1 = vpop.f32.mrb[35].mxu1  ;;  %5857 = vmatprep.subr.bf16.mxu1 %v7826_v5  ;;  %v188_v5 = vld [vmem:[%s11452_s0 + $0x558] sm:$0xff]  ;;  %v7828_v39 = vcombine.high %v91_v50, %v187_v18  ;;  %v7827_v54 = vcombine.low %v91_v50, %v187_v18 }
 0x125   :  { %11686 = vst [vmem:[#allocation61_spill] sm:$0xff] %v9701_v1  ;;  %8133 = vmatmul.mubr.msk.bf16.vlgmr.msra.gmra.mrb[140].mxu0 %vm2134_vm2, %v9508_v33  ;;  %v380_v15 = vld [vmem:[%s11452_s0 + $0xb58] sm:$0x33]  ;;  %v7830_v1 = vcombine.high %v92_v21, %v188_v5 }
 0x126   :  { %8134 = vmatmul.mubr.msk.bf16.vlgmr.msra.gmra.mrb[140].mxu1 %vm2134_vm2, %v9508_v33  ;;  %5815 = vmatpush1.bf16.msra.mxu0 %v7823_v9  ;;  %v8022_v41 = vcombine.high %v284_v43, %v380_v15  ;;  %v8021_v2 = vcombine.low %v284_v43, %v380_v15 }
 0x127   :  { %5858 = vmatpush1.bf16.msra.mxu1 %v7825_v47  ;;  %5816 = vmatprep.subr.bf16.mxu0 %v2578_v55  ;;  %v8019_v47 = vcombine.low %v283_v22, %v379_v32  ;;  %v285_v22 = vld [vmem:[%s11452_s0 + $0x860] sm:$0xff] }
 0x128   :  { %v9728_v46 = vpop.f32.mrb[36].mxu0  ;;  %5859 = vmatprep.subr.bf16.mxu1 %v2584_v17  ;;  %5846 = vmatprep.mubr.bf16.mxu0 %v11671_v44  ;;  %v2596_v18 = vand.u32 %v8022_v41, %v8304_v11  ;;  %v381_v32 = vld [vmem:[%s11452_s0 + $0xb60] sm:$0x33]  ;;  %v286_v41 = vld [vmem:[%s11452_s0 + $0x868] sm:$0xff]  ;;  %v2593_v15 = vand.u32 %v8021_v2, %v8304_v11 }
 0x129   :  { %11687 = vst [vmem:[#allocation62_spill] sm:$0xff] %v9728_v46  ;;  %v9731_v16 = vpop.f32.mrb[36].mxu1  ;;  %v9733_v60 = vpop.f32.mrb[37].mxu0  ;;  %5889 = vmatprep.mubr.bf16.mxu1 %v11671_v44  ;;  %v7829_v46 = vcombine.low %v92_v21, %v188_v5  ;;  %v94_v21 = vld [vmem:[%s11452_s0 + $0x268] sm:$0xff]  ;;  %v2587_v43 = vand.u32 %v8019_v47, %v8304_v11 }
 0x12a   :  { %11688 = vst [vmem:[#allocation63_spill] sm:$0xff] %v9731_v16  ;;  %11689 = vst [vmem:[#allocation64_spill] sm:$0xff] %v9733_v60  ;;  %v9736_v9 = vpop.f32.mrb[37].mxu1  ;;  %v9738_v55 = vpop.f32.mrb[38].mxu0  ;;  %5817 = vmatpush1.bf16.msra.mxu0 %v2575_v10  ;;  %v2590_v16 = vand.u32 %v8020_v40, %v8304_v11  ;;  %v93_v60 = vld [vmem:[%s11452_s0 + $0x260] sm:$0xff] }
 0x12b   :  { %11690 = vst [vmem:[#allocation65_spill] sm:$0xff] %v9736_v9  ;;  %11691 = vst [vmem:[#allocation66_spill] sm:$0xff] %v9738_v55  ;;  %v9740_v49 = vpop.f32.mrb[38].mxu1  ;;  %5860 = vmatpush1.bf16.msra.mxu1 %v2581_v14  ;;  %v9742_v17 = vpop.f32.mrb[39].mxu0  ;;  %5900 = vmatprep.subr.bf16.mxu0 %v7828_v39  ;;  %v189_v10 = vld [vmem:[%s11452_s0 + $0x560] sm:$0xff]  ;;  %v8024_v39 = vcombine.high %v285_v22, %v381_v32 }
 0x12c   :  { %11692 = vst [vmem:[#allocation67_spill] sm:$0xff] %v9740_v49  ;;  %11693 = vst [vmem:[#allocation68_spill] sm:$0xff] %v9742_v17  ;;  %v9751_v50 = vpop.f32.mrb[39].mxu1  ;;  %5943 = vmatprep.subr.bf16.mxu1 %v7830_v1  ;;  %v190_v1 = vld [vmem:[%s11452_s0 + $0x568] sm:$0xff]  ;;  %v7832_v14 = vcombine.high %v93_v60, %v189_v10  ;;  %v7831_v2 = vcombine.low %v93_v60, %v189_v10 }
 0x12d   :  { %11694 = vst [vmem:[#allocation69_spill] sm:$0xff] %v9751_v50  ;;  %8135 = vmatmul.mubr.msk.bf16.vlgmr.msra.gmra.mrb[144].mxu0 %vm2134_vm2, %v9508_v33  ;;  %v382_v5 = vld [vmem:[%s11452_s0 + $0xb68] sm:$0x33]  ;;  %v7834_v50 = vcombine.high %v94_v21, %v190_v1 }
 0x12e   :  { %8136 = vmatmul.mubr.msk.bf16.vlgmr.msra.gmra.mrb[144].mxu1 %vm2134_vm2, %v9508_v33  ;;  %5901 = vmatpush1.bf16.msra.mxu0 %v7827_v54  ;;  %v8026_v17 = vcombine.high %v286_v41, %v382_v5  ;;  %v8025_v9 = vcombine.low %v286_v41, %v382_v5 }
 0x12f   :  { %5944 = vmatpush1.bf16.msra.mxu1 %v7829_v46  ;;  %5902 = vmatprep.subr.bf16.mxu0 %v2590_v16  ;;  %v8023_v46 = vcombine.low %v285_v22, %v381_v32  ;;  %v287_v22 = vld [vmem:[%s11452_s0 + $0x870] sm:$0xff] }
 0x130   :  { %v9778_v40 = vpop.f32.mrb[40].mxu0  ;;  %5945 = vmatprep.subr.bf16.mxu1 %v2596_v18  ;;  %5932 = vmatprep.mubr.bf16.mxu0 %v11671_v44  ;;  %v2608_v10 = vand.u32 %v8026_v17, %v8304_v11  ;;  %v383_v32 = vld [vmem:[%s11452_s0 + $0xb70] sm:$0x33]  ;;  %v288_v17 = vld [vmem:[%s11452_s0 + $0x878] sm:$0xff]  ;;  %v2605_v5 = vand.u32 %v8025_v9, %v8304_v11 }
 0x131   :  { %11695 = vst [vmem:[#allocation70_spill] sm:$0xff] %v9778_v40  ;;  %v9781_v49 = vpop.f32.mrb[40].mxu1  ;;  %v9783_v55 = vpop.f32.mrb[41].mxu0  ;;  %5975 = vmatprep.mubr.bf16.mxu1 %v11671_v44  ;;  %v7833_v40 = vcombine.low %v94_v21, %v190_v1  ;;  %v96_v21 = vld [vmem:[%s11452_s0 + $0x278] sm:$0xff]  ;;  %v2599_v41 = vand.u32 %v8023_v46, %v8304_v11 }
 0x132   :  { %11696 = vst [vmem:[#allocation71_spill] sm:$0xff] %v9781_v49  ;;  %11697 = vst [vmem:[#allocation72_spill] sm:$0xff] %v9783_v55  ;;  %v9786_v54 = vpop.f32.mrb[41].mxu1  ;;  %v9788_v16 = vpop.f32.mrb[42].mxu0  ;;  %5903 = vmatpush1.bf16.msra.mxu0 %v2587_v43  ;;  %v2602_v49 = vand.u32 %v8024_v39, %v8304_v11  ;;  %v95_v55 = vld [vmem:[%s11452_s0 + $0x270] sm:$0xff] }
 0x133   :  { %11698 = vst [vmem:[#allocation73_spill] sm:$0xff] %v9786_v54  ;;  %11699 = vst [vmem:[#allocation74_spill] sm:$0xff] %v9788_v16  ;;  %v9790_v47 = vpop.f32.mrb[42].mxu1  ;;  %5946 = vmatpush1.bf16.msra.mxu1 %v2593_v15  ;;  %v9792_v18 = vpop.f32.mrb[43].mxu0  ;;  %5986 = vmatprep.subr.bf16.mxu0 %v7832_v14  ;;  %v191_v43 = vld [vmem:[%s11452_s0 + $0x570] sm:$0xff]  ;;  %v8028_v14 = vcombine.high %v287_v22, %v383_v32 }
 0x134   :  { %11700 = vst [vmem:[#allocation75_spill] sm:$0xff] %v9790_v47  ;;  %11701 = vst [vmem:[#allocation76_spill] sm:$0xff] %v9792_v18  ;;  %v9801_v60 = vpop.f32.mrb[43].mxu1  ;;  %6029 = vmatprep.subr.bf16.mxu1 %v7834_v50  ;;  %v192_v50 = vld [vmem:[%s11452_s0 + $0x578] sm:$0xff]  ;;  %v7836_v15 = vcombine.high %v95_v55, %v191_v43  ;;  %v7835_v9 = vcombine.low %v95_v55, %v191_v43 }
 0x135   :  { %11702 = vst [vmem:[#allocation77_spill] sm:$0xff] %v9801_v60  ;;  %8137 = vmatmul.mubr.msk.bf16.vlgmr.msra.gmra.mrb[148].mxu0 %vm2134_vm2, %v9508_v33  ;;  %v384_v1 = vld [vmem:[%s11452_s0 + $0xb78] sm:$0x33]  ;;  %v7838_v60 = vcombine.high %v96_v21, %v192_v50 }
 0x136   :  { %8138 = vmatmul.mubr.msk.bf16.vlgmr.msra.gmra.mrb[148].mxu1 %vm2134_vm2, %v9508_v33  ;;  %5987 = vmatpush1.bf16.msra.mxu0 %v7831_v2  ;;  %v8030_v18 = vcombine.high %v288_v17, %v384_v1  ;;  %v8029_v54 = vcombine.low %v288_v17, %v384_v1 }
 0x137   :  { %6030 = vmatpush1.bf16.msra.mxu1 %v7833_v40  ;;  %5988 = vmatprep.subr.bf16.mxu0 %v2602_v49  ;;  %v8027_v40 = vcombine.low %v287_v22, %v383_v32  ;;  %v289_v22 = vld [vmem:[%s11452_s0 + $0x880] sm:$0xff] }
 0x138   :  { %v9828_v39 = vpop.f32.mrb[44].mxu0  ;;  %6031 = vmatprep.subr.bf16.mxu1 %v2608_v10  ;;  %6018 = vmatprep.mubr.bf16.mxu0 %v11671_v44  ;;  %v2620_v43 = vand.u32 %v8030_v18, %v8304_v11  ;;  %v385_v32 = vld [vmem:[%s11452_s0 + $0xb80] sm:$0x33]  ;;  %v290_v18 = vld [vmem:[%s11452_s0 + $0x888] sm:$0xff]  ;;  %v2617_v1 = vand.u32 %v8029_v54, %v8304_v11 }
 0x139   :  { %11703 = vst [vmem:[#allocation78_spill] sm:$0xff] %v9828_v39  ;;  %v9831_v47 = vpop.f32.mrb[44].mxu1  ;;  %v9833_v16 = vpop.f32.mrb[45].mxu0  ;;  %6061 = vmatprep.mubr.bf16.mxu1 %v11671_v44  ;;  %v7837_v39 = vcombine.low %v96_v21, %v192_v50  ;;  %v98_v21 = vld [vmem:[%s11452_s0 + $0x288] sm:$0xff]  ;;  %v2611_v17 = vand.u32 %v8027_v40, %v8304_v11 }
 0x13a   :  { %11704 = vst [vmem:[#allocation79_spill] sm:$0xff] %v9831_v47  ;;  %11705 = vst [vmem:[#allocation80_spill] sm:$0xff] %v9833_v16  ;;  %v9836_v2 = vpop.f32.mrb[45].mxu1  ;;  %v9838_v49 = vpop.f32.mrb[46].mxu0  ;;  %5989 = vmatpush1.bf16.msra.mxu0 %v2599_v41  ;;  %v2614_v47 = vand.u32 %v8028_v14, %v8304_v11  ;;  %v97_v16 = vld [vmem:[%s11452_s0 + $0x280] sm:$0xff] }
 0x13b   :  { %11706 = vst [vmem:[#allocation81_spill] sm:$0xff] %v9836_v2  ;;  %11707 = vst [vmem:[#allocation82_spill] sm:$0xff] %v9838_v49  ;;  %v9840_v46 = vpop.f32.mrb[46].mxu1  ;;  %6032 = vmatpush1.bf16.msra.mxu1 %v2605_v5  ;;  %v9842_v10 = vpop.f32.mrb[47].mxu0  ;;  %6072 = vmatprep.subr.bf16.mxu0 %v7836_v15  ;;  %v193_v41 = vld [vmem:[%s11452_s0 + $0x580] sm:$0xff]  ;;  %v8032_v15 = vcombine.high %v289_v22, %v385_v32 }
 0x13c   :  { %11708 = vst [vmem:[#allocation83_spill] sm:$0xff] %v9840_v46  ;;  %11709 = vst [vmem:[#allocation84_spill] sm:$0xff] %v9842_v10  ;;  %v9851_v55 = vpop.f32.mrb[47].mxu1  ;;  %6115 = vmatprep.subr.bf16.mxu1 %v7838_v60  ;;  %v194_v60 = vld [vmem:[%s11452_s0 + $0x588] sm:$0xff]  ;;  %v7840_v5 = vcombine.high %v97_v16, %v193_v41  ;;  %v8031_v46 = vcombine.low %v289_v22, %v385_v32  ;;  %v9913_v22 = vld [vmem:[%s11452_s0 + $0x590] sm:$0xff] }
 0x13d   :  { %11710 = vst [vmem:[#allocation85_spill] sm:$0xff] %v9851_v55  ;;  %8139 = vmatmul.mubr.msk.bf16.vlgmr.msra.gmra.mrb[152].mxu0 %vm2134_vm2, %v9508_v33  ;;  %v386_v50 = vld [vmem:[%s11452_s0 + $0xb88] sm:$0x33]  ;;  %v7842_v55 = vcombine.high %v98_v21, %v194_v60  ;;  %v7841_v54 = vcombine.low %v98_v21, %v194_v60  ;;  %v2626_v60 = vand.u32 %v8032_v15, %v8304_v11  ;;  %v291_v15 = vld [vmem:[%s11452_s0 + $0x890] sm:$0xff] }
 0x13e   :  { %8140 = vmatmul.mubr.msk.bf16.vlgmr.msra.gmra.mrb[152].mxu1 %vm2134_vm2, %v9508_v33  ;;  %6073 = vmatpush1.bf16.msra.mxu0 %v7835_v9  ;;  %v8034_v10 = vcombine.high %v290_v18, %v386_v50  ;;  %v387_v32 = vld [vmem:[%s11452_s0 + $0xb90] sm:$0x33] }
 0x13f   :  { %6116 = vmatpush1.bf16.msra.mxu1 %v7837_v39  ;;  %6074 = vmatprep.subr.bf16.mxu0 %v2614_v47  ;;  %v7839_v47 = vcombine.low %v97_v16, %v193_v41  ;;  %v388_v16 = vld [vmem:[%s11452_s0 + $0xb98] sm:$0x33]  ;;  %v8036_v39 = vcombine.high %v291_v15, %v387_v32 }
 0x140   :  { %v9878_v14 = vpop.f32.mrb[48].mxu0  ;;  %6117 = vmatprep.subr.bf16.mxu1 %v2620_v43  ;;  %6104 = vmatprep.mubr.bf16.mxu0 %v11671_v44 }
 0x141   :  { %11711 = vst [vmem:[#allocation86_spill] sm:$0xff] %v9878_v14  ;;  %v9883_v49 = vpop.f32.mrb[48].mxu1  ;;  %v9885_v9 = vpop.f32.mrb[49].mxu0  ;;  %6147 = vmatprep.mubr.bf16.mxu1 %v11671_v44  ;;  %v8033_v14 = vcombine.low %v290_v18, %v386_v50  ;;  %v2623_v18 = vand.u32 %v8031_v46, %v8304_v11 }
 0x142   :  { %v9892_v43 = vpop.f32.mrb[49].mxu1  ;;  %v9894_v2 = vpop.f32.mrb[50].mxu0  ;;  %6075 = vmatpush1.bf16.msra.mxu0 %v2611_v17  ;;  %v9908_v17 = vld [vmem:[%s11452_s0 + $0x290] sm:$0xff] }
 0x143   :  { %v9900_v41 = vpop.f32.mrb[50].mxu1  ;;  %6118 = vmatpush1.bf16.msra.mxu1 %v2617_v1  ;;  %v9902_v21 = vpop.f32.mrb[51].mxu0  ;;  %6158 = vmatprep.subr.bf16.mxu0 %v7840_v5  ;;  %v2632_v1 = vand.u32 %v8034_v10, %v8304_v11  ;;  %v100_v5 = vld [vmem:[%s11452_s0 + $0x298] sm:$0xff]  ;;  %v2629_v25 = vand.u32 %v8033_v14, %v8304_v11  ;;  %v7844_v40 = vcombine.high %v9908_v17, %v9913_v22 }
 0x144   :  { %11712 = vst [vmem:[#allocation87_spill] sm:$0xff] %v9900_v41  ;;  %11713 = vst [vmem:[#allocation88_spill] sm:$0xff] %v9902_v21  ;;  %v9919_v50 = vpop.f32.mrb[51].mxu1  ;;  %6201 = vmatprep.subr.bf16.mxu1 %v7842_v55  ;;  %v196_v10 = vld [vmem:[%s11452_s0 + $0x598] sm:$0xff]  ;;  %v7843_v14 = vcombine.low %v9908_v17, %v9913_v22  ;;  %v390_v17 = vld [vmem:[%s11452_s0 + $0xba8] sm:$0x33] }
 0x145   :  { %11714 = vst [vmem:[#allocation89_spill] sm:$0xff] %v9919_v50  ;;  %8141 = vmatmul.mubr.msk.bf16.vlgmr.msra.gmra.mrb[156].mxu0 %vm2134_vm2, %v9508_v33  ;;  %v292_v55 = vld [vmem:[%s11452_s0 + $0x898] sm:$0xff]  ;;  %v7846_v42 = vcombine.high %v100_v5, %v196_v10 }
 0x146   :  { %8142 = vmatmul.mubr.msk.bf16.vlgmr.msra.gmra.mrb[156].mxu1 %vm2134_vm2, %v9508_v33  ;;  %6159 = vmatpush1.bf16.msra.mxu0 %v7839_v47  ;;  %v8038_v21 = vcombine.high %v292_v55, %v388_v16  ;;  %v8035_v47 = vcombine.low %v291_v15, %v387_v32  ;;  %v389_v32 = vld [vmem:[%s11452_s0 + $0xba0] sm:$0x33] }
 0x147   :  { %6202 = vmatpush1.bf16.msra.mxu1 %v7841_v54  ;;  %6160 = vmatprep.subr.bf16.mxu0 %v2626_v60  ;;  %v7845_v54 = vcombine.low %v100_v5, %v196_v10  ;;  %v2638_v10 = vand.u32 %v8036_v39, %v8304_v11 }
 0x148   :  { %v9950_v50 = vpop.f32.mrb[52].mxu0  ;;  %6203 = vmatprep.subr.bf16.mxu1 %v2632_v1  ;;  %6190 = vmatprep.mubr.bf16.mxu0 %v11671_v44  ;;  %v2644_v39 = vand.u32 %v8038_v21, %v8304_v11  ;;  %v294_v21 = vld [vmem:[%s11452_s0 + $0x8a8] sm:$0xff]  ;;  %v11928_v3 = vld [vmem:[#allocation86_spill] sm:$0xff] }
 0x149   :  { %11715 = vst [vmem:[#allocation90_spill] sm:$0xff] %v9950_v50  ;;  %v9955_v36 = vpop.f32.mrb[52].mxu1  ;;  %v9957_v46 = vpop.f32.mrb[53].mxu0  ;;  %6233 = vmatprep.mubr.bf16.mxu1 %v11671_v44  ;;  %v8037_v50 = vcombine.low %v292_v55, %v388_v16  ;;  %v9987_v16 = vld [vmem:[%s11452_s0 + $0x5a0] sm:$0xff] }
 0x14a   :  { %v9966_v41 = vpop.f32.mrb[53].mxu1  ;;  %v9968_v34 = vpop.f32.mrb[54].mxu0  ;;  %6161 = vmatpush1.bf16.msra.mxu0 %v2623_v18  ;;  %v9982_v18 = vld [vmem:[%s11452_s0 + $0x2a0] sm:$0xff] }
 0x14b   :  { %v9974_v22 = vpop.f32.mrb[54].mxu1  ;;  %6204 = vmatpush1.bf16.msra.mxu1 %v2629_v25  ;;  %v9976_v5 = vpop.f32.mrb[55].mxu0  ;;  %6244 = vmatprep.subr.bf16.mxu0 %v7844_v40  ;;  %v102_v40 = vld [vmem:[%s11452_s0 + $0x2a8] sm:$0xff]  ;;  %v293_v55 = vld [vmem:[%s11452_s0 + $0x8a0] sm:$0xff]  ;;  %v2635_v25 = vand.u32 %v8035_v47, %v8304_v11  ;;  %v2641_v35 = vand.u32 %v8037_v50, %v8304_v11  ;;  %v7848_v1 = vcombine.high %v9982_v18, %v9987_v16 }
 0x14c   :  { %11716 = vst [vmem:[#allocation91_spill] sm:$0xff] %v9974_v22  ;;  %11717 = vst [vmem:[#allocation92_spill] sm:$0xff] %v9976_v5  ;;  %v9993_v15 = vpop.f32.mrb[55].mxu1  ;;  %6287 = vmatprep.subr.bf16.mxu1 %v7846_v42  ;;  %v198_v42 = vld [vmem:[%s11452_s0 + $0x5a8] sm:$0xff]  ;;  %v8040_v60 = vcombine.high %v293_v55, %v389_v32  ;;  %v8042_v5 = vcombine.high %v294_v21, %v390_v17  ;;  %v7847_v50 = vcombine.low %v9982_v18, %v9987_v16  ;;  %v392_v18 = vld [vmem:[%s11452_s0 + $0xbb8] sm:$0x33] }
 0x14d   :  { %11718 = vst [vmem:[#allocation93_spill] sm:$0xff] %v9993_v15  ;;  %8143 = vmatmul.mubr.msk.bf16.vlgmr.msra.gmra.mrb[160].mxu0 %vm2134_vm2, %v9508_v33  ;;  %v7850_v7 = vcombine.high %v102_v40, %v198_v42 }
 0x14e   :  { %8144 = vmatmul.mubr.msk.bf16.vlgmr.msra.gmra.mrb[160].mxu1 %vm2134_vm2, %v9508_v33  ;;  %6245 = vmatpush1.bf16.msra.mxu0 %v7843_v14  ;;  %v8039_v14 = vcombine.low %v293_v55, %v389_v32  ;;  %v391_v32 = vld [vmem:[%s11452_s0 + $0xbb0] sm:$0x33] }
 0x14f   :  { %6288 = vmatpush1.bf16.msra.mxu1 %v7845_v54  ;;  %6246 = vmatprep.subr.bf16.mxu0 %v2638_v10  ;;  %v7849_v54 = vcombine.low %v102_v40, %v198_v42  ;;  %v2650_v42 = vand.u32 %v8040_v60, %v8304_v11  ;;  %v2656_v60 = vand.u32 %v8042_v5, %v8304_v11  ;;  %v296_v5 = vld [vmem:[%s11452_s0 + $0x8b8] sm:$0xff] }
 0x150   :  { %v10024_v15 = vpop.f32.mrb[56].mxu0  ;;  %6289 = vmatprep.subr.bf16.mxu1 %v2644_v39  ;;  %6276 = vmatprep.mubr.bf16.mxu0 %v11671_v44 }
 0x151   :  { %11719 = vst [vmem:[#allocation94_spill] sm:$0xff] %v10024_v15  ;;  %v10029_v0 = vpop.f32.mrb[56].mxu1  ;;  %v10031_v47 = vpop.f32.mrb[57].mxu0  ;;  %6319 = vmatprep.mubr.bf16.mxu1 %v11671_v44  ;;  %v8041_v15 = vcombine.low %v294_v21, %v390_v17  ;;  %v10061_v17 = vld [vmem:[%s11452_s0 + $0x5b0] sm:$0xff] }
 0x152   :  { %v10040_v22 = vpop.f32.mrb[57].mxu1  ;;  %v10042_v63 = vpop.f32.mrb[58].mxu0  ;;  %6247 = vmatpush1.bf16.msra.mxu0 %v2635_v25  ;;  %v10056_v25 = vld [vmem:[%s11452_s0 + $0x2b0] sm:$0xff] }
 0x153   :  { %v10048_v16 = vpop.f32.mrb[58].mxu1  ;;  %6290 = vmatpush1.bf16.msra.mxu1 %v2641_v35  ;;  %v10050_v40 = vpop.f32.mrb[59].mxu0  ;;  %6330 = vmatprep.subr.bf16.mxu0 %v7848_v1  ;;  %v104_v1 = vld [vmem:[%s11452_s0 + $0x2b8] sm:$0xff]  ;;  %v295_v21 = vld [vmem:[%s11452_s0 + $0x8b0] sm:$0xff]  ;;  %v2647_v35 = vand.u32 %v8039_v14, %v8304_v11  ;;  %v2653_v20 = vand.u32 %v8041_v15, %v8304_v11  ;;  %v7852_v39 = vcombine.high %v10056_v25, %v10061_v17 }
 0x154   :  { %11720 = vst [vmem:[#allocation95_spill] sm:$0xff] %v10048_v16  ;;  %11721 = vst [vmem:[#allocation96_spill] sm:$0xff] %v10050_v40  ;;  %v10067_v55 = vpop.f32.mrb[59].mxu1  ;;  %6373 = vmatprep.subr.bf16.mxu1 %v7850_v7  ;;  %v200_v7 = vld [vmem:[%s11452_s0 + $0x5b8] sm:$0xff]  ;;  %v8044_v10 = vcombine.high %v295_v21, %v391_v32  ;;  %v8046_v40 = vcombine.high %v296_v5, %v392_v18  ;;  %v7851_v15 = vcombine.low %v10056_v25, %v10061_v17  ;;  %v394_v25 = vld [vmem:[%s11452_s0 + $0xbc8] sm:$0x33] }
 0x155   :  { %11722 = vst [vmem:[#allocation97_spill] sm:$0xff] %v10067_v55  ;;  %8145 = vmatmul.mubr.msk.bf16.vlgmr.msra.gmra.mrb[164].mxu0 %vm2134_vm2, %v9508_v33  ;;  %v7854_v45 = vcombine.high %v104_v1, %v200_v7 }
 0x156   :  { %8146 = vmatmul.mubr.msk.bf16.vlgmr.msra.gmra.mrb[164].mxu1 %vm2134_vm2, %v9508_v33  ;;  %6331 = vmatpush1.bf16.msra.mxu0 %v7847_v50  ;;  %v8043_v50 = vcombine.low %v295_v21, %v391_v32  ;;  %v393_v32 = vld [vmem:[%s11452_s0 + $0xbc0] sm:$0x33] }
 0x157   :  { %6374 = vmatpush1.bf16.msra.mxu1 %v7849_v54  ;;  %6332 = vmatprep.subr.bf16.mxu0 %v2650_v42  ;;  %v7853_v54 = vcombine.low %v104_v1, %v200_v7  ;;  %v2662_v7 = vand.u32 %v8044_v10, %v8304_v11  ;;  %v2668_v10 = vand.u32 %v8046_v40, %v8304_v11  ;;  %v298_v40 = vld [vmem:[%s11452_s0 + $0x8c8] sm:$0xff] }
 0x158   :  { %v10098_v55 = vpop.f32.mrb[60].mxu0  ;;  %6375 = vmatprep.subr.bf16.mxu1 %v2656_v60  ;;  %6362 = vmatprep.mubr.bf16.mxu0 %v11671_v44 }
 0x159   :  { %11723 = vst [vmem:[#allocation98_spill] sm:$0xff] %v10098_v55  ;;  %v10103_v38 = vpop.f32.mrb[60].mxu1  ;;  %v10105_v14 = vpop.f32.mrb[61].mxu0  ;;  %6405 = vmatprep.mubr.bf16.mxu1 %v11671_v44  ;;  %v8045_v55 = vcombine.low %v296_v5, %v392_v18  ;;  %v10135_v18 = vld [vmem:[%s11452_s0 + $0x5c0] sm:$0xff] }
 0x15a   :  { %11724 = vst [vmem:[#allocation99_spill] sm:$0xff] %v10103_v38  ;;  %11725 = vst [vmem:[#allocation100_spill] sm:$0xff] %v10105_v14  ;;  %v10114_v16 = vpop.f32.mrb[61].mxu1  ;;  %v10116_v37 = vpop.f32.mrb[62].mxu0  ;;  %6333 = vmatpush1.bf16.msra.mxu0 %v2647_v35  ;;  %v10130_v35 = vld [vmem:[%s11452_s0 + $0x2c0] sm:$0xff] }
 0x15b   :  { %11726 = vst [vmem:[#allocation101_spill] sm:$0xff] %v10114_v16  ;;  %11727 = vst [vmem:[#allocation102_spill] sm:$0xff] %v10116_v37  ;;  %v10122_v17 = vpop.f32.mrb[62].mxu1  ;;  %6376 = vmatpush1.bf16.msra.mxu1 %v2653_v20  ;;  %v10124_v1 = vpop.f32.mrb[63].mxu0  ;;  %6416 = vmatprep.subr.bf16.mxu0 %v7852_v39  ;;  %v106_v39 = vld [vmem:[%s11452_s0 + $0x2c8] sm:$0xff]  ;;  %v297_v5 = vld [vmem:[%s11452_s0 + $0x8c0] sm:$0xff]  ;;  %v2659_v20 = vand.u32 %v8043_v50, %v8304_v11  ;;  %v2665_v61 = vand.u32 %v8045_v55, %v8304_v11 }
 0x15c   :  { %11728 = vst [vmem:[#allocation103_spill] sm:$0xff] %v10122_v17  ;;  %11729 = vst [vmem:[#allocation104_spill] sm:$0xff] %v10124_v1  ;;  %v10141_v21 = vpop.f32.mrb[63].mxu1  ;;  %6459 = vmatprep.subr.bf16.mxu1 %v7854_v45  ;;  %v202_v45 = vld [vmem:[%s11452_s0 + $0x5c8] sm:$0xff]  ;;  %v7856_v60 = vcombine.high %v10130_v35, %v10135_v18  ;;  %v8048_v42 = vcombine.high %v297_v5, %v393_v32  ;;  %v8050_v1 = vcombine.high %v298_v40, %v394_v25 }
 0x15d   :  { %11730 = vst [vmem:[#allocation105_spill] sm:$0xff] %v10141_v21  ;;  %8147 = vmatmul.mubr.msk.bf16.vlgmr.msra.gmra.mrb[168].mxu0 %vm2134_vm2, %v9508_v33  ;;  %v7858_v19 = vcombine.high %v106_v39, %v202_v45  ;;  %v7855_v55 = vcombine.low %v10130_v35, %v10135_v18 }
 0x15e   :  { %8148 = vmatmul.mubr.msk.bf16.vlgmr.msra.gmra.mrb[168].mxu1 %vm2134_vm2, %v9508_v33  ;;  %6417 = vmatpush1.bf16.msra.mxu0 %v7851_v15  ;;  %v8047_v33 = vcombine.low %v297_v5, %v393_v32  ;;  %v395_v5 = vld [vmem:[%s11452_s0 + $0xbd0] sm:$0x33] }
 0x15f   :  { %6460 = vmatpush1.bf16.msra.mxu1 %v7853_v54  ;;  %6418 = vmatprep.subr.bf16.mxu0 %v2662_v7  ;;  %v7857_v54 = vcombine.low %v106_v39, %v202_v45  ;;  %v2674_v45 = vand.u32 %v8048_v42, %v8304_v11  ;;  %v2680_v42 = vand.u32 %v8050_v1, %v8304_v11  ;;  %v204_v1 = vld [vmem:[%s11452_s0 + $0x5d8] sm:$0xff] }
 0x160   :  { %v10172_v21 = vpop.f32.mrb[64].mxu0  ;;  %6461 = vmatprep.subr.bf16.mxu1 %v2668_v10  ;;  %6448 = vmatprep.mubr.bf16.mxu0 %v11671_v44  ;;  %v300_v7 = vld [vmem:[%s11452_s0 + $0x8d8] sm:$0xff] }
 0x161   :  { %11731 = vst [vmem:[#allocation106_spill] sm:$0xff] %v10172_v21  ;;  %v10177_v15 = vpop.f32.mrb[64].mxu1  ;;  %v10179_v50 = vpop.f32.mrb[65].mxu0  ;;  %6491 = vmatprep.mubr.bf16.mxu1 %v11671_v44  ;;  %v8049_v21 = vcombine.low %v298_v40, %v394_v25  ;;  %v10209_v25 = vld [vmem:[%s11452_s0 + $0x5d0] sm:$0xff]  ;;  %v396_v40 = vld [vmem:[%s11452_s0 + $0xbd8] sm:$0x33] }
 0x162   :  { %11732 = vst [vmem:[#allocation107_spill] sm:$0xff] %v10177_v15  ;;  %11733 = vst [vmem:[#allocation108_spill] sm:$0xff] %v10179_v50  ;;  %v10188_v13 = vpop.f32.mrb[65].mxu1  ;;  %v10190_v17 = vpop.f32.mrb[66].mxu0  ;;  %6419 = vmatpush1.bf16.msra.mxu0 %v2659_v20  ;;  %v10204_v20 = vld [vmem:[%s11452_s0 + $0x2d0] sm:$0xff] }
 0x163   :  { %11734 = vst [vmem:[#allocation109_spill] sm:$0xff] %v10188_v13  ;;  %11735 = vst [vmem:[#allocation110_spill] sm:$0xff] %v10190_v17  ;;  %v10196_v18 = vpop.f32.mrb[66].mxu1  ;;  %6462 = vmatpush1.bf16.msra.mxu1 %v2665_v61  ;;  %v10198_v39 = vpop.f32.mrb[67].mxu0  ;;  %6502 = vmatprep.subr.bf16.mxu0 %v7856_v60  ;;  %v108_v60 = vld [vmem:[%s11452_s0 + $0x2d8] sm:$0xff]  ;;  %v2677_v10 = vand.u32 %v8049_v21, %v8304_v11  ;;  %v8052_v61 = vcombine.high %v299_v48, %v395_v5 }
 0x164   :  { %11736 = vst [vmem:[#allocation111_spill] sm:$0xff] %v10196_v18  ;;  %11737 = vst [vmem:[#allocation112_spill] sm:$0xff] %v10198_v39  ;;  %v10215_v35 = vpop.f32.mrb[67].mxu1  ;;  %6545 = vmatprep.subr.bf16.mxu1 %v7858_v19  ;;  %v10232_v19 = vld [vmem:[%s11453_s1] sm:$0xff]   ;;  %v7860_v39 = vcombine.high %v10204_v20, %v10209_v25  ;;  %v7862_v32 = vcombine.high %v108_v60, %v204_v1  ;;  %v8054_v17 = vcombine.high %v300_v7, %v396_v40 }
 0x165   :  { %11740 = vst [vmem:[#allocation113_spill] sm:$0xff] %v10215_v35  ;;  %8149 = vmatmul.mubr.msk.bf16.vlgmr.msra.gmra.mrb[172].mxu0 %vm2134_vm2, %v10232_v19  ;;  %v2671_v35 = vand.u32 %v8047_v33, %v8304_v11  ;;  %v7859_v21 = vcombine.low %v10204_v20, %v10209_v25 }
 0x166   :  { %8150 = vmatmul.mubr.msk.bf16.vlgmr.msra.gmra.mrb[172].mxu1 %vm2134_vm2, %v10232_v19  ;;  %6503 = vmatpush1.bf16.msra.mxu0 %v7855_v55  ;;  %v8051_v55 = vcombine.low %v299_v48, %v395_v5  ;;  %v10288_v48 = vld [vmem:[%s11452_s0 + $0x5e0] sm:$0xff] }
 0x167   :  { %6546 = vmatpush1.bf16.msra.mxu1 %v7857_v54  ;;  %6504 = vmatprep.subr.bf16.mxu0 %v2674_v45  ;;  %v7861_v54 = vcombine.low %v108_v60, %v204_v1  ;;  %v2686_v1 = vand.u32 %v8052_v61, %v8304_v11  ;;  %v110_v61 = vld [vmem:[%s11452_s0 + $0x2e8] sm:$0xff]  ;;  %v397_v5 = vld [vmem:[%s11452_s0 + $0xbe0] sm:$0x33] }
 0x168   :  { %v10251_v18 = vpop.f32.mrb[68].mxu0  ;;  %6547 = vmatprep.subr.bf16.mxu1 %v2680_v42  ;;  %6534 = vmatprep.mubr.bf16.mxu0 %v11671_v44  ;;  %v398_v42 = vld [vmem:[%s11452_s0 + $0xbe8] sm:$0x33] }
 0x169   :  { %11742 = vst [vmem:[#allocation114_spill] sm:$0xff] %v10251_v18  ;;  %v10256_v13 = vpop.f32.mrb[68].mxu1  ;;  %v10258_v33 = vpop.f32.mrb[69].mxu0  ;;  %6577 = vmatprep.mubr.bf16.mxu1 %v11671_v44  ;;  %v8053_v18 = vcombine.low %v300_v7, %v396_v40  ;;  %v2683_v40 = vand.u32 %v8051_v55, %v8304_v11 }
 0x16a   :  { %11744 = vst [vmem:[#allocation115_spill] sm:$0xff] %v10256_v13  ;;  %11745 = vst [vmem:[#allocation116_spill] sm:$0xff] %v10258_v33  ;;  %v10267_v52 = vpop.f32.mrb[69].mxu1  ;;  %v10269_v15 = vpop.f32.mrb[70].mxu0  ;;  %6505 = vmatpush1.bf16.msra.mxu0 %v2671_v35  ;;  %v10283_v35 = vld [vmem:[%s11452_s0 + $0x2e0] sm:$0xff]  ;;  %v303_v13 = vld [vmem:[%s11452_s0 + $0x8f0] sm:$0xff] }
 0x16b   :  { %11748 = vst [vmem:[#allocation117_spill] sm:$0xff] %v10267_v52  ;;  %11749 = vst [vmem:[#allocation118_spill] sm:$0xff] %v10269_v15  ;;  %v10275_v25 = vpop.f32.mrb[70].mxu1  ;;  %6548 = vmatpush1.bf16.msra.mxu1 %v2677_v10  ;;  %v10277_v60 = vpop.f32.mrb[71].mxu0  ;;  %6588 = vmatprep.subr.bf16.mxu0 %v7860_v39  ;;  %v2692_v39 = vand.u32 %v8054_v17, %v8304_v11  ;;  %v206_v17 = vld [vmem:[%s11452_s0 + $0x5e8] sm:$0xff]  ;;  %v7864_v50 = vcombine.high %v10283_v35, %v10288_v48 }
 0x16c   :  { %11752 = vst [vmem:[#allocation119_spill] sm:$0xff] %v10275_v25  ;;  %11753 = vst [vmem:[#allocation120_spill] sm:$0xff] %v10277_v60  ;;  %v10294_v20 = vpop.f32.mrb[71].mxu1  ;;  %6631 = vmatprep.subr.bf16.mxu1 %v7862_v32  ;;  %v302_v32 = vld [vmem:[%s11452_s0 + $0x8e8] sm:$0xff]  ;;  %v8056_v60 = vcombine.high %v301_v51, %v397_v5  ;;  %v7866_v25 = vcombine.high %v110_v61, %v206_v17 }
 0x16d   :  { %11756 = vst [vmem:[#allocation121_spill] sm:$0xff] %v10294_v20  ;;  %8151 = vmatmul.mubr.msk.bf16.vlgmr.msra.gmra.mrb[176].mxu0 %vm2134_vm2, %v10232_v19  ;;  %v2689_v20 = vand.u32 %v8053_v18, %v8304_v11  ;;  %v8058_v7 = vcombine.high %v302_v32, %v398_v42  ;;  %v7863_v18 = vcombine.low %v10283_v35, %v10288_v48 }
 0x16e   :  { %8152 = vmatmul.mubr.msk.bf16.vlgmr.msra.gmra.mrb[176].mxu1 %vm2134_vm2, %v10232_v19  ;;  %6589 = vmatpush1.bf16.msra.mxu0 %v7859_v21  ;;  %v8055_v21 = vcombine.low %v301_v51, %v397_v5  ;;  %v207_v51 = vld [vmem:[%s11452_s0 + $0x5f0] sm:$0xff] }
 0x16f   :  { %6632 = vmatpush1.bf16.msra.mxu1 %v7861_v54  ;;  %6590 = vmatprep.subr.bf16.mxu0 %v2686_v1  ;;  %v7865_v54 = vcombine.low %v110_v61, %v206_v17  ;;  %v2698_v17 = vand.u32 %v8056_v60, %v8304_v11  ;;  %v112_v60 = vld [vmem:[%s11452_s0 + $0x2f8] sm:$0xff]  ;;  %v399_v5 = vld [vmem:[%s11452_s0 + $0xbf0] sm:$0x33] }
 0x170   :  { %v10325_v10 = vpop.f32.mrb[72].mxu0  ;;  %6633 = vmatprep.subr.bf16.mxu1 %v2692_v39  ;;  %6620 = vmatprep.mubr.bf16.mxu0 %v11671_v44  ;;  %v400_v39 = vld [vmem:[%s11452_s0 + $0xbf8] sm:$0x33]  ;;  %v2695_v35 = vand.u32 %v8055_v21, %v8304_v11  ;;  %v8059_v45 = vcombine.low %v303_v13, %v399_v5 }
 0x171   :  { %11758 = vst [vmem:[#allocation122_spill] sm:$0xff] %v10325_v10  ;;  %v10330_v12 = vpop.f32.mrb[72].mxu1  ;;  %v10332_v55 = vpop.f32.mrb[73].mxu0  ;;  %6663 = vmatprep.mubr.bf16.mxu1 %v11671_v44  ;;  %v8057_v10 = vcombine.low %v302_v32, %v398_v42 }
 0x172   :  { %11760 = vst [vmem:[#allocation123_spill] sm:$0xff] %v10330_v12  ;;  %11761 = vst [vmem:[#allocation124_spill] sm:$0xff] %v10332_v55  ;;  %v10341_v33 = vpop.f32.mrb[73].mxu1  ;;  %v10343_v62 = vpop.f32.mrb[74].mxu0  ;;  %6591 = vmatpush1.bf16.msra.mxu0 %v2683_v40  ;;  %v111_v40 = vld [vmem:[%s11452_s0 + $0x2f0] sm:$0xff] }
 0x173   :  { %11764 = vst [vmem:[#allocation125_spill] sm:$0xff] %v10341_v33  ;;  %11765 = vst [vmem:[#allocation126_spill] sm:$0xff] %v10343_v62  ;;  %v10349_v48 = vpop.f32.mrb[74].mxu1  ;;  %6634 = vmatpush1.bf16.msra.mxu1 %v2689_v20  ;;  %v10351_v61 = vpop.f32.mrb[75].mxu0  ;;  %6674 = vmatprep.subr.bf16.mxu0 %v7864_v50  ;;  %v2704_v50 = vand.u32 %v8058_v7, %v8304_v11  ;;  %v304_v7 = vld [vmem:[%s11452_s0 + $0x8f8] sm:$0xff]  ;;  %v7868_v53 = vcombine.high %v111_v40, %v207_v51 }
 0x174   :  { %11768 = vst [vmem:[#allocation127_spill] sm:$0xff] %v10349_v48  ;;  %11769 = vst [vmem:[#allocation128_spill] sm:$0xff] %v10351_v61  ;;  %v10364_v20 = vpop.f32.mrb[75].mxu1  ;;  %6717 = vmatprep.subr.bf16.mxu1 %v7866_v25  ;;  %v208_v25 = vld [vmem:[%s11452_s0 + $0x5f8] sm:$0xff]  ;;  %v8060_v61 = vcombine.high %v303_v13, %v399_v5  ;;  %v8062_v42 = vcombine.high %v304_v7, %v400_v39  ;;  %v7867_v21 = vcombine.low %v111_v40, %v207_v51 }
 0x175   :  { %11772 = vst [vmem:[#allocation129_spill] sm:$0xff] %v10364_v20  ;;  %8153 = vmatmul.mubr.msk.bf16.vlgmr.msra.gmra.mrb[180].mxu0 %vm2134_vm2, %v10232_v19  ;;  %v2701_v20 = vand.u32 %v8057_v10, %v8304_v11  ;;  %v7870_v48 = vcombine.high %v112_v60, %v208_v25  ;;  %v7869_v10 = vcombine.low %v112_v60, %v208_v25 }
 0x176   :  { %8154 = vmatmul.mubr.msk.bf16.vlgmr.msra.gmra.mrb[180].mxu1 %vm2134_vm2, %v10232_v19  ;;  %6675 = vmatpush1.bf16.msra.mxu0 %v7863_v18  ;;  %v2710_v25 = vand.u32 %v8060_v61, %v8304_v11  ;;  %v2716_v5 = vand.u32 %v8062_v42, %v8304_v11 }
 0x177   :  { %6718 = vmatpush1.bf16.msra.mxu1 %v7865_v54  ;;  %6676 = vmatprep.subr.bf16.mxu0 %v2698_v17 }
 0x178   :  { %v10393_v32 = vpop.f32.mrb[76].mxu0  ;;  %6719 = vmatprep.subr.bf16.mxu1 %v2704_v50  ;;  %6706 = vmatprep.mubr.bf16.mxu0 %v11671_v44 }
 0x179   :  { %11774 = vst [vmem:[#allocation130_spill] sm:$0xff] %v10393_v32  ;;  %v10398_v33 = vpop.f32.mrb[76].mxu1  ;;  %v10400_v18 = vpop.f32.mrb[77].mxu0  ;;  %6749 = vmatprep.mubr.bf16.mxu1 %v11671_v44  ;;  %v8061_v32 = vcombine.low %v304_v7, %v400_v39 }
 0x17a   :  { %11776 = vst [vmem:[#allocation131_spill] sm:$0xff] %v10398_v33  ;;  %11777 = vst [vmem:[#allocation132_spill] sm:$0xff] %v10400_v18  ;;  %v10407_v55 = vpop.f32.mrb[77].mxu1  ;;  %v10409_v52 = vpop.f32.mrb[78].mxu0  ;;  %6677 = vmatpush1.bf16.msra.mxu0 %v2695_v35 }
 0x17b   :  { %11780 = vst [vmem:[#allocation133_spill] sm:$0xff] %v10407_v55  ;;  %11781 = vst [vmem:[#allocation134_spill] sm:$0xff] %v10409_v52  ;;  %v10415_v51 = vpop.f32.mrb[78].mxu1  ;;  %6720 = vmatpush1.bf16.msra.mxu1 %v2701_v20  ;;  %v10417_v60 = vpop.f32.mrb[79].mxu0  ;;  %6760 = vmatprep.subr.bf16.mxu0 %v7868_v53  ;;  %v2707_v53 = vand.u32 %v8059_v45, %v8304_v11  ;;  %v2713_v61 = vand.u32 %v8061_v32, %v8304_v11 }
 0x17c   :  { %11784 = vst [vmem:[#allocation135_spill] sm:$0xff] %v10415_v51  ;;  %11785 = vst [vmem:[#allocation136_spill] sm:$0xff] %v10417_v60  ;;  %v10424_v35 = vpop.f32.mrb[79].mxu1  ;;  %6803 = vmatprep.subr.bf16.mxu1 %v7870_v48 }
 0x17d   :  { %11788 = vst [vmem:[#allocation137_spill] sm:$0xff] %v10424_v35  ;;  %8155 = vmatmul.mubr.msk.bf16.vlgmr.msra.gmra.mrb[184].mxu0 %vm2134_vm2, %v10232_v19 }
 0x17e   :  { %8156 = vmatmul.mubr.msk.bf16.vlgmr.msra.gmra.mrb[184].mxu1 %vm2134_vm2, %v10232_v19  ;;  %6761 = vmatpush1.bf16.msra.mxu0 %v7867_v21 }
 0x17f   :  { %6804 = vmatpush1.bf16.msra.mxu1 %v7869_v10  ;;  %6762 = vmatprep.subr.bf16.mxu0 %v2710_v25 }
 0x180   :  { %v10435_v20 = vpop.f32.mrb[80].mxu0  ;;  %6805 = vmatprep.subr.bf16.mxu1 %v2716_v5  ;;  %6792 = vmatprep.mubr.bf16.mxu0 %v11671_v44 }
 0x181   :  { %11790 = vst [vmem:[#allocation138_spill] sm:$0xff] %v10435_v20  ;;  %v10440_v40 = vpop.f32.mrb[80].mxu1  ;;  %v10442_v39 = vpop.f32.mrb[81].mxu0  ;;  %6835 = vmatprep.mubr.bf16.mxu1 %v11671_v44 }
 0x182   :  { %11792 = vst [vmem:[#allocation139_spill] sm:$0xff] %v10440_v40  ;;  %11793 = vst [vmem:[#allocation140_spill] sm:$0xff] %v10442_v39  ;;  %v10449_v32 = vpop.f32.mrb[81].mxu1  ;;  %v10451_v25 = vpop.f32.mrb[82].mxu0  ;;  %6763 = vmatpush1.bf16.msra.mxu0 %v2707_v53 }
 0x183   :  { %11796 = vst [vmem:[#allocation141_spill] sm:$0xff] %v10449_v32  ;;  %11797 = vst [vmem:[#allocation142_spill] sm:$0xff] %v10451_v25  ;;  %v10457_v20 = vpop.f32.mrb[82].mxu1  ;;  %6806 = vmatpush1.bf16.msra.mxu1 %v2713_v61  ;;  %v10459_v44 = vpop.f32.mrb[83].mxu0 }
 0x184   :  { %11800 = vst [vmem:[#allocation143_spill] sm:$0xff] %v10457_v20  ;;  %11801 = vst [vmem:[#allocation144_spill] sm:$0xff] %v10459_v44  ;;  %v10465_v10 = vpop.f32.mrb[83].mxu1 }
 0x185   :  { %11804 = vst [vmem:[#allocation145_spill] sm:$0xff] %v10465_v10  ;;  %8157 = vmatmul.mubr.msk.bf16.vlgmr.msra.gmra.mrb[188].mxu0 %vm2134_vm2, %v10232_v19 }
 0x186   :  { %8158 = vmatmul.mubr.msk.bf16.vlgmr.msra.gmra.mrb[188].mxu1 %vm2134_vm2, %v10232_v19 }
 0x188   :  { %v10473_v61 = vpop.f32.mrb[84].mxu0 }
 0x189   :  { %11806 = vst [vmem:[#allocation146_spill] sm:$0xff] %v10473_v61  ;;  %v10477_v40 = vpop.f32.mrb[84].mxu1  ;;  %v10479_v20 = vpop.f32.mrb[85].mxu0 }
 0x18a   :  { %11808 = vst [vmem:[#allocation147_spill] sm:$0xff] %v10477_v40  ;;  %11809 = vst [vmem:[#allocation148_spill] sm:$0xff] %v10479_v20  ;;  %v10485_v53 = vpop.f32.mrb[85].mxu1  ;;  %v10487_v11 = vpop.f32.mrb[86].mxu0 }
 0x18b   :  { %11812 = vst [vmem:[#allocation149_spill] sm:$0xff] %v10485_v53  ;;  %11813 = vst [vmem:[#allocation150_spill] sm:$0xff] %v10487_v11  ;;  %v10493_v61 = vpop.f32.mrb[86].mxu1  ;;  %v10495_v12 = vpop.f32.mrb[87].mxu0 }
 0x18c   :  { %11816 = vst [vmem:[#allocation151_spill] sm:$0xff] %v10493_v61  ;;  %11817 = vst [vmem:[#allocation152_spill] sm:$0xff] %v10495_v12  ;;  %v10501_v20 = vpop.f32.mrb[87].mxu1 }
 0x18d   :  { %11820 = vst [vmem:[#allocation153_spill] sm:$0xff] %v10501_v20 }
 0x190   :  { %v10505_v32 = vpop.f32.mrb[88].mxu0 }
 0x191   :  { %11822 = vst [vmem:[#allocation154_spill] sm:$0xff] %v10505_v32  ;;  %v10509_v11 = vpop.f32.mrb[88].mxu1  ;;  %v10511_v25 = vpop.f32.mrb[89].mxu0 }
 0x192   :  { %11824 = vst [vmem:[#allocation155_spill] sm:$0xff] %v10509_v11  ;;  %11825 = vst [vmem:[#allocation156_spill] sm:$0xff] %v10511_v25  ;;  %v10517_v12 = vpop.f32.mrb[89].mxu1  ;;  %v10519_v40 = vpop.f32.mrb[90].mxu0 }
 0x193   :  { %11828 = vst [vmem:[#allocation157_spill] sm:$0xff] %v10517_v12  ;;  %11829 = vst [vmem:[#allocation158_spill] sm:$0xff] %v10519_v40  ;;  %v10525_v32 = vpop.f32.mrb[90].mxu1  ;;  %v10527_v21 = vpop.f32.mrb[91].mxu0 }
 0x194   :  { %11832 = vst [vmem:[#allocation159_spill] sm:$0xff] %v10525_v32  ;;  %11833 = vst [vmem:[#allocation160_spill] sm:$0xff] %v10527_v21  ;;  %v10533_v25 = vpop.f32.mrb[91].mxu1 }
 0x195   :  { %11836 = vst [vmem:[#allocation161_spill] sm:$0xff] %v10533_v25 }
 0x198   :  { %v10537_v19 = vpop.f32.mrb[92].mxu0 }
 0x199   :  { %11838 = vst [vmem:[#allocation162_spill] sm:$0xff] %v10537_v19  ;;  %v10541_v40 = vpop.f32.mrb[92].mxu1  ;;  %v10543_v45 = vpop.f32.mrb[93].mxu0 }
 0x19a   :  { %11840 = vst [vmem:[#allocation163_spill] sm:$0xff] %v10541_v40  ;;  %11841 = vst [vmem:[#allocation164_spill] sm:$0xff] %v10543_v45  ;;  %v10549_v21 = vpop.f32.mrb[93].mxu1  ;;  %v10551_v11 = vpop.f32.mrb[94].mxu0 }
 0x19b   :  { %11844 = vst [vmem:[#allocation165_spill] sm:$0xff] %v10549_v21  ;;  %11845 = vst [vmem:[#allocation166_spill] sm:$0xff] %v10551_v11  ;;  %v10557_v19 = vpop.f32.mrb[94].mxu1  ;;  %v10559_v20 = vpop.f32.mrb[95].mxu0 }
 0x19c   :  { %11848 = vst [vmem:[#allocation167_spill] sm:$0xff] %v10557_v19  ;;  %11849 = vst [vmem:[#allocation168_spill] sm:$0xff] %v10559_v20  ;;  %v10565_v45 = vpop.f32.mrb[95].mxu1 }
 0x19d   :  { %11852 = vst [vmem:[#allocation169_spill] sm:$0xff] %v10565_v45 }
 0x1a0   :  { %v10569_v39 = vpop.f32.mrb[96].mxu0 }
 0x1a1   :  { %v10571_v25 = vpop.f32.mrb[96].mxu1  ;;  %v10573_v42 = vpop.f32.mrb[97].mxu0 }
 0x1a2   :  { %v10575_v11 = vpop.f32.mrb[97].mxu1  ;;  %v10577_v61 = vpop.f32.mrb[98].mxu0 }
 0x1a3   :  { %v10579_v21 = vpop.f32.mrb[98].mxu1  ;;  %v10581_v44 = vpop.f32.mrb[99].mxu0 }
 0x1a4   :  { %v10583_v10 = vpop.f32.mrb[99].mxu1 }
 0x1a8   :  { %v10585_v20 = vpop.f32.mrb[100].mxu0 }
 0x1a9   :  { %v10587_v40 = vpop.f32.mrb[100].mxu1  ;;  %v10589_v12 = vpop.f32.mrb[101].mxu0 }
 0x1aa   :  { %v10591_v45 = vpop.f32.mrb[101].mxu1  ;;  %v10593_v32 = vpop.f32.mrb[102].mxu0 }
 0x1ab   :  { %v10595_v19 = vpop.f32.mrb[102].mxu1  ;;  %v10597_v17 = vpop.f32.mrb[103].mxu0 }
 0x1ac   :  { %v10599_v53 = vpop.f32.mrb[103].mxu1 }
 0x1b0   :  { %v10601_v5 = vpop.f32.mrb[104].mxu0 }
 0x1b1   :  { %v10603_v48 = vpop.f32.mrb[104].mxu1  ;;  %v10605_v35 = vpop.f32.mrb[105].mxu0 }
 0x1b2   :  { %v10607_v7 = vpop.f32.mrb[105].mxu1  ;;  %v10609_v60 = vpop.f32.mrb[106].mxu0 }
 0x1b3   :  { %v10611_v13 = vpop.f32.mrb[106].mxu1  ;;  %v10613_v51 = vpop.f32.mrb[107].mxu0 }
 0x1b4   :  { %v10615_v15 = vpop.f32.mrb[107].mxu1 }
 0x1b5   :  { %11854 = vst [vmem:[#allocation170_spill] sm:$0xff] %v10615_v15 }
 0x1b8   :  { %v10617_v52 = vpop.f32.mrb[108].mxu0 }
 0x1b9   :  { %11855 = vst [vmem:[#allocation171_spill] sm:$0xff] %v10617_v52  ;;  %v10619_v1 = vpop.f32.mrb[108].mxu1  ;;  %v10621_v55 = vpop.f32.mrb[109].mxu0 }
 0x1ba   :  { %11856 = vst [vmem:[#allocation172_spill] sm:$0xff] %v10619_v1  ;;  %11857 = vst [vmem:[#allocation173_spill] sm:$0xff] %v10621_v55  ;;  %v10623_v62 = vpop.f32.mrb[109].mxu1  ;;  %v10625_v18 = vpop.f32.mrb[110].mxu0 }
 0x1bb   :  { %11858 = vst [vmem:[#allocation174_spill] sm:$0xff] %v10623_v62  ;;  %11859 = vst [vmem:[#allocation175_spill] sm:$0xff] %v10625_v18  ;;  %v10627_v50 = vpop.f32.mrb[110].mxu1  ;;  %v10629_v33 = vpop.f32.mrb[111].mxu0 }
 0x1bc   :  { %11860 = vst [vmem:[#allocation176_spill] sm:$0xff] %v10627_v50  ;;  %11861 = vst [vmem:[#allocation177_spill] sm:$0xff] %v10629_v33  ;;  %v10631_v54 = vpop.f32.mrb[111].mxu1 }
 0x1bd   :  { %11862 = vst [vmem:[#allocation178_spill] sm:$0xff] %v10631_v54 }
 0x1c0   :  { %v10633_v37 = vpop.f32.mrb[112].mxu0 }
 0x1c1   :  { %11863 = vst [vmem:[#allocation179_spill] sm:$0xff] %v10633_v37  ;;  %v10635_v8 = vpop.f32.mrb[112].mxu1  ;;  %v10637_v16 = vpop.f32.mrb[113].mxu0 }
 0x1c2   :  { %11864 = vst [vmem:[#allocation180_spill] sm:$0xff] %v10635_v8  ;;  %11865 = vst [vmem:[#allocation181_spill] sm:$0xff] %v10637_v16  ;;  %v10639_v6 = vpop.f32.mrb[113].mxu1  ;;  %v10641_v14 = vpop.f32.mrb[114].mxu0 }
 0x1c3   :  { %11866 = vst [vmem:[#allocation182_spill] sm:$0xff] %v10639_v6  ;;  %11867 = vst [vmem:[#allocation183_spill] sm:$0xff] %v10641_v14  ;;  %v10643_v4 = vpop.f32.mrb[114].mxu1  ;;  %v10645_v62 = vpop.f32.mrb[115].mxu0 }
 0x1c4   :  { %11868 = vst [vmem:[#allocation184_spill] sm:$0xff] %v10643_v4  ;;  %11869 = vst [vmem:[#allocation185_spill] sm:$0xff] %v10645_v62  ;;  %v10647_v18 = vpop.f32.mrb[115].mxu1 }
 0x1c5   :  { %11870 = vst [vmem:[#allocation186_spill] sm:$0xff] %v10647_v18 }
 0x1c8   :  { %v10649_v50 = vpop.f32.mrb[116].mxu0 }
 0x1c9   :  { %11871 = vst [vmem:[#allocation187_spill] sm:$0xff] %v10649_v50  ;;  %v10651_v33 = vpop.f32.mrb[116].mxu1  ;;  %v10653_v54 = vpop.f32.mrb[117].mxu0 }
 0x1ca   :  { %11872 = vst [vmem:[#allocation188_spill] sm:$0xff] %v10651_v33  ;;  %11873 = vst [vmem:[#allocation189_spill] sm:$0xff] %v10653_v54  ;;  %v10655_v37 = vpop.f32.mrb[117].mxu1  ;;  %v10657_v8 = vpop.f32.mrb[118].mxu0 }
 0x1cb   :  { %11874 = vst [vmem:[#allocation190_spill] sm:$0xff] %v10655_v37  ;;  %11875 = vst [vmem:[#allocation191_spill] sm:$0xff] %v10657_v8  ;;  %v10659_v16 = vpop.f32.mrb[118].mxu1  ;;  %v10661_v6 = vpop.f32.mrb[119].mxu0 }
 0x1cc   :  { %11876 = vst [vmem:[#allocation192_spill] sm:$0xff] %v10659_v16  ;;  %11877 = vst [vmem:[#allocation193_spill] sm:$0xff] %v10661_v6  ;;  %v10663_v14 = vpop.f32.mrb[119].mxu1 }
 0x1cd   :  { %11878 = vst [vmem:[#allocation194_spill] sm:$0xff] %v10663_v14 }
 0x1d0   :  { %v10665_v4 = vpop.f32.mrb[120].mxu0 }
 0x1d1   :  { %11879 = vst [vmem:[#allocation195_spill] sm:$0xff] %v10665_v4  ;;  %v10667_v62 = vpop.f32.mrb[120].mxu1  ;;  %v10669_v18 = vpop.f32.mrb[121].mxu0 }
 0x1d2   :  { %11880 = vst [vmem:[#allocation196_spill] sm:$0xff] %v10667_v62  ;;  %11881 = vst [vmem:[#allocation197_spill] sm:$0xff] %v10669_v18  ;;  %v10671_v50 = vpop.f32.mrb[121].mxu1  ;;  %v10673_v33 = vpop.f32.mrb[122].mxu0 }
 0x1d3   :  { %11882 = vst [vmem:[#allocation198_spill] sm:$0xff] %v10671_v50  ;;  %11883 = vst [vmem:[#allocation199_spill] sm:$0xff] %v10673_v33  ;;  %v10675_v54 = vpop.f32.mrb[122].mxu1  ;;  %v10677_v37 = vpop.f32.mrb[123].mxu0 }
 0x1d4   :  { %11884 = vst [vmem:[#allocation200_spill] sm:$0xff] %v10675_v54  ;;  %11885 = vst [vmem:[#allocation201_spill] sm:$0xff] %v10677_v37  ;;  %v10679_v8 = vpop.f32.mrb[123].mxu1 }
 0x1d5   :  { %11886 = vst [vmem:[#allocation202_spill] sm:$0xff] %v10679_v8 }
 0x1d8   :  { %v10681_v16 = vpop.f32.mrb[124].mxu0 }
 0x1d9   :  { %11887 = vst [vmem:[#allocation203_spill] sm:$0xff] %v10681_v16  ;;  %v10683_v6 = vpop.f32.mrb[124].mxu1  ;;  %v10685_v14 = vpop.f32.mrb[125].mxu0 }
 0x1da   :  { %11888 = vst [vmem:[#allocation204_spill] sm:$0xff] %v10683_v6  ;;  %11889 = vst [vmem:[#allocation205_spill] sm:$0xff] %v10685_v14  ;;  %v10687_v4 = vpop.f32.mrb[125].mxu1  ;;  %v10689_v62 = vpop.f32.mrb[126].mxu0 }
 0x1db   :  { %11890 = vst [vmem:[#allocation206_spill] sm:$0xff] %v10687_v4  ;;  %11891 = vst [vmem:[#allocation207_spill] sm:$0xff] %v10689_v62  ;;  %v10691_v18 = vpop.f32.mrb[126].mxu1  ;;  %v10693_v50 = vpop.f32.mrb[127].mxu0 }
 0x1dc   :  { %11892 = vst [vmem:[#allocation208_spill] sm:$0xff] %v10691_v18  ;;  %11893 = vst [vmem:[#allocation209_spill] sm:$0xff] %v10693_v50  ;;  %v10695_v33 = vpop.f32.mrb[127].mxu1 }
 0x1dd   :  { %11894 = vst [vmem:[#allocation210_spill] sm:$0xff] %v10695_v33 }
 0x1e0   :  { %v10697_v54 = vpop.f32.mrb[128].mxu0 }
 0x1e1   :  { %11895 = vst [vmem:[#allocation211_spill] sm:$0xff] %v10697_v54  ;;  %v10699_v37 = vpop.f32.mrb[128].mxu1  ;;  %v10701_v8 = vpop.f32.mrb[129].mxu0 }
 0x1e2   :  { %11896 = vst [vmem:[#allocation212_spill] sm:$0xff] %v10699_v37  ;;  %11897 = vst [vmem:[#allocation213_spill] sm:$0xff] %v10701_v8  ;;  %v10703_v16 = vpop.f32.mrb[129].mxu1  ;;  %v10705_v6 = vpop.f32.mrb[130].mxu0 }
 0x1e3   :  { %11898 = vst [vmem:[#allocation214_spill] sm:$0xff] %v10703_v16  ;;  %11899 = vst [vmem:[#allocation215_spill] sm:$0xff] %v10705_v6  ;;  %v10707_v14 = vpop.f32.mrb[130].mxu1  ;;  %v10709_v4 = vpop.f32.mrb[131].mxu0 }
 0x1e4   :  { %11900 = vst [vmem:[#allocation216_spill] sm:$0xff] %v10707_v14  ;;  %11901 = vst [vmem:[#allocation217_spill] sm:$0xff] %v10709_v4  ;;  %v10711_v62 = vpop.f32.mrb[131].mxu1 }
 0x1e5   :  { %11902 = vst [vmem:[#allocation218_spill] sm:$0xff] %v10711_v62 }
 0x1e8   :  { %v10713_v18 = vpop.f32.mrb[132].mxu0 }
 0x1e9   :  { %11903 = vst [vmem:[#allocation219_spill] sm:$0xff] %v10713_v18  ;;  %v10715_v50 = vpop.f32.mrb[132].mxu1  ;;  %v10717_v33 = vpop.f32.mrb[133].mxu0 }
 0x1ea   :  { %11904 = vst [vmem:[#allocation220_spill] sm:$0xff] %v10715_v50  ;;  %11905 = vst [vmem:[#allocation221_spill] sm:$0xff] %v10717_v33  ;;  %v10719_v54 = vpop.f32.mrb[133].mxu1  ;;  %v10721_v37 = vpop.f32.mrb[134].mxu0 }
 0x1eb   :  { %11906 = vst [vmem:[#allocation222_spill] sm:$0xff] %v10719_v54  ;;  %11907 = vst [vmem:[#allocation223_spill] sm:$0xff] %v10721_v37  ;;  %v10723_v8 = vpop.f32.mrb[134].mxu1  ;;  %v10725_v16 = vpop.f32.mrb[135].mxu0 }
 0x1ec   :  { %11908 = vst [vmem:[#allocation224_spill] sm:$0xff] %v10723_v8  ;;  %11909 = vst [vmem:[#allocation225_spill] sm:$0xff] %v10725_v16  ;;  %v10727_v6 = vpop.f32.mrb[135].mxu1 }
 0x1ed   :  { %11910 = vst [vmem:[#allocation226_spill] sm:$0xff] %v10727_v6 }
 0x1f0   :  { %v10729_v14 = vpop.f32.mrb[136].mxu0 }
 0x1f1   :  { %11911 = vst [vmem:[#allocation227_spill] sm:$0xff] %v10729_v14  ;;  %v10731_v4 = vpop.f32.mrb[136].mxu1  ;;  %v10733_v62 = vpop.f32.mrb[137].mxu0 }
 0x1f2   :  { %11912 = vst [vmem:[#allocation228_spill] sm:$0xff] %v10731_v4  ;;  %11913 = vst [vmem:[#allocation229_spill] sm:$0xff] %v10733_v62  ;;  %v10735_v18 = vpop.f32.mrb[137].mxu1  ;;  %v10737_v50 = vpop.f32.mrb[138].mxu0 }
 0x1f3   :  { %11914 = vst [vmem:[#allocation230_spill] sm:$0xff] %v10735_v18  ;;  %11915 = vst [vmem:[#allocation231_spill] sm:$0xff] %v10737_v50  ;;  %v10739_v33 = vpop.f32.mrb[138].mxu1  ;;  %v10741_v54 = vpop.f32.mrb[139].mxu0 }
 0x1f4   :  { %11916 = vst [vmem:[#allocation232_spill] sm:$0xff] %v10739_v33  ;;  %11917 = vst [vmem:[#allocation233_spill] sm:$0xff] %v10741_v54  ;;  %v10743_v37 = vpop.f32.mrb[139].mxu1  ;;  %v10761_v33 = vpop.permute.xlu0 %7138 }
 0x1f5   :  { %11918 = vst [vmem:[#allocation234_spill] sm:$0xff] %v10743_v37 }
 0x1f8   :  { %v10745_v8 = vpop.f32.mrb[140].mxu0 }
 0x1f9   :  { %11919 = vst [vmem:[#allocation235_spill] sm:$0xff] %v10745_v8  ;;  %v10747_v16 = vpop.f32.mrb[140].mxu1  ;;  %v10749_v6 = vpop.f32.mrb[141].mxu0 }
 0x1fa   :  { %11920 = vst [vmem:[#allocation236_spill] sm:$0xff] %v10747_v16  ;;  %11921 = vst [vmem:[#allocation237_spill] sm:$0xff] %v10749_v6  ;;  %v10751_v14 = vpop.f32.mrb[141].mxu1  ;;  %v10753_v4 = vpop.f32.mrb[142].mxu0 }
 0x1fb   :  { %11922 = vst [vmem:[#allocation238_spill] sm:$0xff] %v10751_v14  ;;  %11923 = vst [vmem:[#allocation239_spill] sm:$0xff] %v10753_v4  ;;  %v10755_v62 = vpop.f32.mrb[142].mxu1  ;;  %v10757_v18 = vpop.f32.mrb[143].mxu0  ;;  %v11927_v4 = vld [vmem:[#allocation2_spill] sm:$0xff] }
 0x1fc   :  { %11924 = vst [vmem:[#allocation240_spill] sm:$0xff] %v10755_v62  ;;  %11925 = vst [vmem:[#allocation241_spill] sm:$0xff] %v10757_v18  ;;  %v10759_v50 = vpop.f32.mrb[143].mxu1  ;;  %v11929_v62 = vmax.f32 %v11927_v4, %v11928_v3 }
 0x1fd   :  { %11926 = vst [vmem:[#allocation242_spill] sm:$0xff] %v10759_v50 }
 0x200   :  { %v5848_v54 = vpop.f32.mrb[144].mxu0 }
 0x201   :  { %v6942_v37 = vmax.f32 %v10569_v39, %v5848_v54  ;;  %v5891_v8 = vpop.f32.mrb[144].mxu1  ;;  %v5850_v55 = vpop.f32.mrb[145].mxu0  ;;  %v11930_v54 = vmax.f32 %v9270_v28, %v9883_v49  ;;  %v11933_v28 = vmax.f32 %v9277_v31, %v9894_v2  ;;  %v11941_v31 = vld [vmem:[#allocation89_spill] sm:$0xff] }
 0x202   :  { %v6944_v16 = vmax.f32 %v10571_v25, %v5891_v8  ;;  %v6943_v6 = vmax.f32 %v10573_v42, %v5850_v55  ;;  %v5893_v14 = vpop.f32.mrb[145].mxu1  ;;  %v5852_v38 = vpop.f32.mrb[146].mxu0  ;;  %v11931_v8 = vmax.f32 %v9272_v29, %v9885_v9  ;;  %v11934_v9 = vld [vmem:[#allocation3_spill] sm:$0xff] }
 0x203   :  { %v7038_v1 = vmax.f32 %v11929_v62, %v6942_v37  ;;  %v6945_v18 = vmax.f32 %v10575_v11, %v5893_v14  ;;  %v6990_v50 = vmax.f32 %v10577_v61, %v5852_v38  ;;  %v5895_v52 = vpop.f32.mrb[146].mxu1  ;;  %v5854_v15 = vpop.f32.mrb[147].mxu0  ;;  %v11932_v38 = vmax.f32 %v9275_v30, %v9892_v43  ;;  %v11938_v11 = vld [vmem:[#allocation88_spill] sm:$0xff] }
 0x204   :  { %v7040_v39 = vmax.f32 %v11930_v54, %v6944_v16  ;;  %v7039_v55 = vmax.f32 %v11931_v8, %v6943_v6  ;;  %v6992_v42 = vmax.f32 %v10579_v21, %v5895_v52  ;;  %v6991_v25 = vmax.f32 %v10581_v44, %v5854_v15  ;;  %v5897_v3 = vpop.f32.mrb[147].mxu1  ;;  %v10779_v37 = vpop.permute.xlu0 %7143  ;;  %v11935_v16 = vld [vmem:[#allocation87_spill] sm:$0xff]  ;;  %v11937_v21 = vld [vmem:[#allocation4_spill] sm:$0xff]  ;;  %v11940_v44 = vld [vmem:[#allocation5_spill] sm:$0xff] }
 0x205   :  { %v7041_v4 = vmax.f32 %v11932_v38, %v6945_v18  ;;  %v7146_v62 = vadd.f32 %v10761_v33, %v7038_v1  ;;  %v7086_v49 = vmax.f32 %v11933_v28, %v6990_v50  ;;  %v6993_v29 = vmax.f32 %v10583_v10, %v5897_v3 }
 0x206   :  { %v7147_v6 = vadd.f32 %v10761_v33, %v7039_v55  ;;  %v7148_v52 = vadd.f32 %v10761_v33, %v7040_v39  ;;  %v11936_v14 = vmax.f32 %v11934_v9, %v11935_v16  ;;  %v11939_v30 = vmax.f32 %v11937_v21, %v11938_v11  ;;  %v11943_v21 = vld [vmem:[#allocation6_spill] sm:$0xff] }
 0x207   :  { %v7149_v1 = vadd.f32 %v10761_v33, %v7041_v4  ;;  %v7242_v18 = vmax.f32 %v7146_v62, 0.0  ;;  %v11942_v2 = vmax.f32 %v11940_v44, %v11941_v31  ;;  %v7194_v10 = vadd.f32 %v10779_v37, %v7086_v49 }
 0x208   :  { %v7088_v15 = vmax.f32 %v11936_v14, %v6992_v42  ;;  %v7087_v43 = vmax.f32 %v11939_v30, %v6991_v25  ;;  %v7243_v61 = vmax.f32 %v7147_v6, 0.0  ;;  %v7244_v54 = vmax.f32 %v7148_v52, 0.0  ;;  %v5934_v55 = vpop.f32.mrb[148].mxu0 }
 0x209   :  { %v7089_v50 = vmax.f32 %v11942_v2, %v6993_v29  ;;  %v7245_v42 = vmax.f32 %v7149_v1, 0.0  ;;  %v7290_v25 = vmax.f32 %v7194_v10, 0.0  ;;  %v6946_v38 = vmax.f32 %v10585_v20, %v5934_v55  ;;  %v5977_v4 = vpop.f32.mrb[148].mxu1  ;;  %v5936_v62 = vpop.f32.mrb[149].mxu0 }
 0x20a   :  { %v7195_v39 = vadd.f32 %v10779_v37, %v7087_v43  ;;  %v7196_v8 = vadd.f32 %v10779_v37, %v7088_v15  ;;  %v8207_v28 = vpack.c.bf16 %v7243_v61, %v7242_v18  ;;  %v6948_v49 = vmax.f32 %v10587_v40, %v5977_v4  ;;  %v5979_v6 = vpop.f32.mrb[149].mxu1  ;;  %v5938_v52 = vpop.f32.mrb[150].mxu0  ;;  %v11944_v15 = vld [vmem:[#allocation90_spill] sm:$0xff] }
 0x20b   :  { %v7197_v3 = vadd.f32 %v10779_v37, %v7089_v50  ;;  %v8208_v16 = vpack.c.bf16 %v7245_v42, %v7244_v54  ;;  %v11945_v11 = vmax.f32 %v11943_v21, %v11944_v15  ;;  %v6947_v43 = vmax.f32 %v10589_v12, %v5936_v62  ;;  %v5981_v1 = vpop.f32.mrb[150].mxu1  ;;  %v5940_v44 = vpop.f32.mrb[151].mxu0  ;;  %v11951_v42 = vld [vmem:[#allocation91_spill] sm:$0xff] }
 0x20c   :  { %v7291_v9 = vmax.f32 %v7195_v39, 0.0  ;;  %v7292_v29 = vmax.f32 %v7196_v8, 0.0  ;;  %7626 = vst [vmem:[%s11455_s3] sm:$0xff] %v8207_v28  ;;  %v11946_v40 = vmax.f32 %v9320_v56, %v9955_v36  ;;  %v6949_v31 = vmax.f32 %v10591_v45, %v5979_v6  ;;  %v5983_v50 = vpop.f32.mrb[151].mxu1  ;;  %v11957_v6 = vld [vmem:[#allocation93_spill] sm:$0xff] }
 0x20d   :  { %v7293_v14 = vmax.f32 %v7197_v3, 0.0  ;;  %v7042_v30 = vmax.f32 %v11945_v11, %v6946_v38  ;;  %v6994_v2 = vmax.f32 %v10593_v32, %v5938_v52  ;;  %7627 = vst [vmem:[%s11455_s3 + $0x8] sm:$0xff] %v8208_v16  ;;  %v11947_v61 = vmax.f32 %v9322_v57, %v9957_v46 }
 0x20e   :  { %v8231_v20 = vpack.c.bf16 %v7291_v9, %v7290_v25  ;;  %v7044_v18 = vmax.f32 %v11946_v40, %v6948_v49  ;;  %v6996_v39 = vmax.f32 %v10595_v19, %v5981_v1  ;;  %v11948_v56 = vmax.f32 %v9325_v58, %v9966_v41  ;;  %v11950_v19 = vld [vmem:[#allocation7_spill] sm:$0xff]  ;;  %v11956_v49 = vld [vmem:[#allocation9_spill] sm:$0xff] }
 0x20f   :  { %v8232_v12 = vpack.c.bf16 %v7293_v14, %v7292_v29  ;;  %v7150_v10 = vadd.f32 %v10761_v33, %v7042_v30  ;;  %v7043_v54 = vmax.f32 %v11947_v61, %v6947_v43  ;;  %v11949_v32 = vmax.f32 %v9327_v59, %v9968_v34  ;;  %v11953_v59 = vld [vmem:[#allocation8_spill] sm:$0xff] }
 0x210   :  { %7650 = vst [vmem:[%s11455_s3 + $0xc0] sm:$0xff] %v8231_v20  ;;  %v7152_v36 = vadd.f32 %v10761_v33, %v7044_v18  ;;  %v7045_v45 = vmax.f32 %v11948_v56, %v6949_v31  ;;  %v6995_v55 = vmax.f32 %v10597_v17, %v5940_v44  ;;  %v11952_v3 = vmax.f32 %v11950_v19, %v11951_v42  ;;  %v11954_v17 = vld [vmem:[#allocation92_spill] sm:$0xff]  ;;  %v6020_v28 = vpop.f32.mrb[152].mxu0  ;;  %v11959_v31 = vld [vmem:[#allocation10_spill] sm:$0xff] }
 0x211   :  { %v7090_v8 = vmax.f32 %v11949_v32, %v6994_v2  ;;  %7651 = vst [vmem:[%s11455_s3 + $0xc8] sm:$0xff] %v8232_v12  ;;  %v7246_v57 = vmax.f32 %v7150_v10, 0.0  ;;  %v7151_v46 = vadd.f32 %v10761_v33, %v7043_v54  ;;  %v6997_v58 = vmax.f32 %v10599_v53, %v5983_v50  ;;  %v6063_v53 = vpop.f32.mrb[152].mxu1  ;;  %v6022_v21 = vpop.f32.mrb[153].mxu0  ;;  %v11960_v2 = vld [vmem:[#allocation94_spill] sm:$0xff] }
 0x212   :  { %v7092_v25 = vmax.f32 %v11952_v3, %v6996_v39  ;;  %v7248_v41 = vmax.f32 %v7152_v36, 0.0  ;;  %v7153_v38 = vadd.f32 %v10761_v33, %v7045_v45  ;;  %v11955_v4 = vmax.f32 %v11953_v59, %v11954_v17  ;;  %v6065_v1 = vpop.f32.mrb[153].mxu1  ;;  %v6024_v44 = vpop.f32.mrb[154].mxu0  ;;  %v11970_v17 = vld [vmem:[#allocation171_spill] sm:$0xff] }
 0x213   :  { %v7198_v34 = vadd.f32 %v10779_v37, %v7090_v8  ;;  %v7247_v9 = vmax.f32 %v7151_v46, 0.0  ;;  %v11958_v52 = vmax.f32 %v11956_v49, %v11957_v6  ;;  %v6950_v14 = vmax.f32 %v10601_v5, %v6020_v28  ;;  %v6067_v10 = vpop.f32.mrb[154].mxu1  ;;  %v6026_v5 = vpop.f32.mrb[155].mxu0  ;;  %v11971_v49 = vld [vmem:[#allocation12_spill] sm:$0xff] }
 0x214   :  { %v7091_v62 = vmax.f32 %v11955_v4, %v6995_v55  ;;  %v7200_v29 = vadd.f32 %v10779_v37, %v7092_v25  ;;  %v7249_v15 = vmax.f32 %v7153_v38, 0.0  ;;  %v6952_v43 = vmax.f32 %v10603_v48, %v6063_v53  ;;  %v6069_v56 = vpop.f32.mrb[155].mxu1 }
 0x215   :  { %v7093_v16 = vmax.f32 %v11958_v52, %v6997_v58  ;;  %v7294_v11 = vmax.f32 %v7198_v34, 0.0  ;;  %v8209_v20 = vpack.c.bf16 %v7247_v9, %v7246_v57  ;;  %v11961_v50 = vmax.f32 %v11959_v31, %v11960_v2 }
 0x216   :  { %v7199_v30 = vadd.f32 %v10779_v37, %v7091_v62  ;;  %v7296_v40 = vmax.f32 %v7200_v29, 0.0  ;;  %v8210_v61 = vpack.c.bf16 %v7249_v15, %v7248_v41  ;;  %v11962_v39 = vmax.f32 %v9370_v23, %v10029_v0  ;;  %v11967_v41 = vld [vmem:[#allocation95_spill] sm:$0xff] }
 0x217   :  { %v7201_v18 = vadd.f32 %v10779_v37, %v7093_v16  ;;  %v7046_v12 = vmax.f32 %v11961_v50, %v6950_v14  ;;  %v6951_v48 = vmax.f32 %v10605_v35, %v6022_v21  ;;  %7628 = vst [vmem:[%s11455_s3 + $0x10] sm:$0xff] %v8209_v20  ;;  %v6953_v8 = vmax.f32 %v10607_v7, %v6065_v1  ;;  %v11974_v16 = vld [vmem:[#allocation172_spill] sm:$0xff]  ;;  %v11978_v20 = vld [vmem:[#allocation14_spill] sm:$0xff] }
 0x218   :  { %v7295_v54 = vmax.f32 %v7199_v30, 0.0  ;;  %v7048_v36 = vmax.f32 %v11962_v39, %v6952_v43  ;;  %v6998_v55 = vmax.f32 %v10609_v60, %v6024_v44  ;;  %7629 = vst [vmem:[%s11455_s3 + $0x18] sm:$0xff] %v8210_v61  ;;  %v11963_v35 = vmax.f32 %v9372_v24, %v10031_v47  ;;  %v11966_v47 = vld [vmem:[#allocation11_spill] sm:$0xff]  ;;  %v6106_v59 = vpop.f32.mrb[156].mxu0  ;;  %v11975_v30 = vld [vmem:[#allocation13_spill] sm:$0xff] }
 0x219   :  { %v7297_v45 = vmax.f32 %v7201_v18, 0.0  ;;  %v7154_v32 = vadd.f32 %v10761_v33, %v7046_v12  ;;  %v7000_v46 = vmax.f32 %v10611_v13, %v6067_v10  ;;  %v11964_v7 = vmax.f32 %v9375_v26, %v10040_v22  ;;  %v6149_v62 = vpop.f32.mrb[156].mxu1  ;;  %v6108_v28 = vpop.f32.mrb[157].mxu0  ;;  %v11976_v43 = vld [vmem:[#allocation97_spill] sm:$0xff]  ;;  %v11981_v61 = vld [vmem:[#allocation15_spill] sm:$0xff] }
 0x21a   :  { %v8233_v0 = vpack.c.bf16 %v7295_v54, %v7294_v11  ;;  %v7156_v23 = vadd.f32 %v10761_v33, %v7048_v36  ;;  %v7047_v57 = vmax.f32 %v11963_v35, %v6951_v48  ;;  %v11965_v60 = vmax.f32 %v9377_v27, %v10042_v63  ;;  %v11969_v27 = vld [vmem:[#allocation170_spill] sm:$0xff]  ;;  %v6151_v53 = vpop.f32.mrb[157].mxu1  ;;  %v6110_v21 = vpop.f32.mrb[158].mxu0  ;;  %v11982_v54 = vld [vmem:[#allocation99_spill] sm:$0xff] }
 0x21b   :  { %v8234_v19 = vpack.c.bf16 %v7297_v45, %v7296_v40  ;;  %v7250_v42 = vmax.f32 %v7154_v32, 0.0  ;;  %v7049_v3 = vmax.f32 %v11964_v7, %v6953_v8  ;;  %v11968_v13 = vmax.f32 %v11966_v47, %v11967_v41  ;;  %v11979_v40 = vld [vmem:[#allocation98_spill] sm:$0xff]  ;;  %v6153_v2 = vpop.f32.mrb[158].mxu1  ;;  %v6112_v50 = vpop.f32.mrb[159].mxu0  ;;  %v11984_v8 = vld [vmem:[#allocation173_spill] sm:$0xff] }
 0x21c   :  { %v7094_v25 = vmax.f32 %v11965_v60, %v6998_v55  ;;  %7652 = vst [vmem:[%s11455_s3 + $0xd0] sm:$0xff] %v8233_v0  ;;  %v7252_v58 = vmax.f32 %v7156_v23, 0.0  ;;  %v7155_v24 = vadd.f32 %v10761_v33, %v7047_v57  ;;  %v6999_v34 = vmax.f32 %v10613_v51, %v6026_v5  ;;  %v11972_v51 = vld [vmem:[#allocation96_spill] sm:$0xff]  ;;  %v6155_v48 = vpop.f32.mrb[159].mxu1  ;;  %v11985_v35 = vld [vmem:[#allocation174_spill] sm:$0xff] }
 0x21d   :  { %v7096_v38 = vmax.f32 %v11968_v13, %v7000_v46  ;;  %7653 = vst [vmem:[%s11455_s3 + $0xd8] sm:$0xff] %v8234_v19  ;;  %v7157_v63 = vadd.f32 %v10761_v33, %v7049_v3  ;;  %v7001_v22 = vmax.f32 %v11969_v27, %v6069_v56  ;;  %v6954_v4 = vmax.f32 %v11970_v17, %v6106_v59  ;;  %v11986_v46 = vld [vmem:[#allocation175_spill] sm:$0xff]  ;;  %v11987_v3 = vld [vmem:[#allocation16_spill] sm:$0xff]  ;;  %v11995_v27 = vld [vmem:[#allocation102_spill] sm:$0xff] }
 0x21e   :  { %v7202_v26 = vadd.f32 %v10779_v37, %v7094_v25  ;;  %v7251_v9 = vmax.f32 %v7155_v24, 0.0  ;;  %v11973_v6 = vmax.f32 %v11971_v49, %v11972_v51  ;;  %v6956_v14 = vmax.f32 %v11974_v16, %v6149_v62  ;;  %v11988_v60 = vld [vmem:[#allocation100_spill] sm:$0xff] }
 0x21f   :  { %v7204_v29 = vadd.f32 %v10779_v37, %v7096_v38  ;;  %v7253_v15 = vmax.f32 %v7157_v63, 0.0  ;;  %v11977_v1 = vmax.f32 %v11975_v30, %v11976_v43  ;;  %v11980_v18 = vmax.f32 %v11978_v20, %v11979_v40  ;;  %v11990_v24 = vld [vmem:[#allocation176_spill] sm:$0xff]  ;;  %v11991_v38 = vld [vmem:[#allocation17_spill] sm:$0xff]  ;;  %v12002_v30 = vld [vmem:[#allocation179_spill] sm:$0xff] }
 0x220   :  { %v7095_v52 = vmax.f32 %v11973_v6, %v6999_v34  ;;  %v7298_v11 = vmax.f32 %v7202_v26, 0.0  ;;  %v8211_v12 = vpack.c.bf16 %v7251_v9, %v7250_v42  ;;  %v11983_v39 = vmax.f32 %v11981_v61, %v11982_v54  ;;  %v11992_v34 = vld [vmem:[#allocation101_spill] sm:$0xff]  ;;  %v11994_v26 = vld [vmem:[#allocation18_spill] sm:$0xff]  ;;  %v11997_v9 = vld [vmem:[#allocation19_spill] sm:$0xff] }
 0x221   :  { %v7097_v44 = vmax.f32 %v11977_v1, %v7001_v22  ;;  %v7050_v31 = vmax.f32 %v11980_v18, %v6954_v4  ;;  %v7300_v10 = vmax.f32 %v7204_v29, 0.0  ;;  %v8212_v56 = vpack.c.bf16 %v7253_v15, %v7252_v58  ;;  %v6192_v4 = vpop.f32.mrb[160].mxu0  ;;  %v11998_v29 = vld [vmem:[#allocation103_spill] sm:$0xff]  ;;  %v12000_v6 = vld [vmem:[#allocation177_spill] sm:$0xff]  ;;  %v6235_v16 = vpop.f32.mrb[160].mxu1  ;;  %v12001_v15 = vld [vmem:[#allocation178_spill] sm:$0xff] }
 0x222   :  { %v7203_v5 = vadd.f32 %v10779_v37, %v7095_v52  ;;  %v7052_v36 = vmax.f32 %v11983_v39, %v6956_v14  ;;  %v6955_v55 = vmax.f32 %v11984_v8, %v6108_v28  ;;  %7630 = vst [vmem:[%s11455_s3 + $0x20] sm:$0xff] %v8211_v12  ;;  %v6957_v57 = vmax.f32 %v11985_v35, %v6151_v53  ;;  %v6194_v14 = vpop.f32.mrb[161].mxu0  ;;  %v6237_v1 = vpop.f32.mrb[161].mxu1  ;;  %v12003_v18 = vld [vmem:[#allocation20_spill] sm:$0xff]  ;;  %v12011_v8 = vld [vmem:[#allocation106_spill] sm:$0xff] }
 0x223   :  { %v7205_v45 = vadd.f32 %v10779_v37, %v7097_v44  ;;  %v7158_v32 = vadd.f32 %v10761_v33, %v7050_v31  ;;  %v7002_v19 = vmax.f32 %v11986_v46, %v6110_v21  ;;  %7631 = vst [vmem:[%s11455_s3 + $0x28] sm:$0xff] %v8212_v56  ;;  %v11989_v25 = vmax.f32 %v11987_v3, %v11988_v60  ;;  %v6196_v44 = vpop.f32.mrb[162].mxu0  ;;  %v12004_v31 = vld [vmem:[#allocation104_spill] sm:$0xff] }
 0x224   :  { %v7299_v0 = vmax.f32 %v7203_v5, 0.0  ;;  %v7160_v23 = vadd.f32 %v10761_v33, %v7052_v36  ;;  %v7004_v47 = vmax.f32 %v11990_v24, %v6153_v2  ;;  %v11993_v59 = vmax.f32 %v11991_v38, %v11992_v34  ;;  %v12006_v12 = vld [vmem:[#allocation180_spill] sm:$0xff]  ;;  %v6239_v5 = vpop.f32.mrb[162].mxu1  ;;  %v6198_v61 = vpop.f32.mrb[163].mxu0  ;;  %v12007_v36 = vld [vmem:[#allocation21_spill] sm:$0xff]  ;;  %v12017_v34 = vld [vmem:[#allocation182_spill] sm:$0xff] }
 0x225   :  { %v7301_v42 = vmax.f32 %v7205_v45, 0.0  ;;  %v7254_v7 = vmax.f32 %v7158_v32, 0.0  ;;  %v7051_v58 = vmax.f32 %v11989_v25, %v6955_v55  ;;  %v11996_v22 = vmax.f32 %v11994_v26, %v11995_v27  ;;  %v12010_v32 = vld [vmem:[#allocation22_spill] sm:$0xff] }
 0x226   :  { %v8235_v41 = vpack.c.bf16 %v7299_v0, %v7298_v11  ;;  %v7256_v13 = vmax.f32 %v7160_v23, 0.0  ;;  %v7053_v63 = vmax.f32 %v11993_v59, %v6957_v57  ;;  %v11999_v49 = vmax.f32 %v11997_v9, %v11998_v29  ;;  %v6241_v23 = vpop.f32.mrb[163].mxu1 }
 0x227   :  { %v7098_v17 = vmax.f32 %v11996_v22, %v7002_v19  ;;  %v8236_v62 = vpack.c.bf16 %v7301_v42, %v7300_v10  ;;  %v7159_v28 = vadd.f32 %v10761_v33, %v7051_v58  ;;  %v7003_v52 = vmax.f32 %v12000_v6, %v6112_v50  ;;  %v12013_v19 = vld [vmem:[#allocation23_spill] sm:$0xff]  ;;  %v12019_v22 = vld [vmem:[#allocation24_spill] sm:$0xff]  ;;  %v12023_v6 = vld [vmem:[#allocation25_spill] sm:$0xff] }
 0x228   :  { %v7100_v51 = vmax.f32 %v11999_v49, %v7004_v47  ;;  %7654 = vst [vmem:[%s11455_s3 + $0xe0] sm:$0xff] %v8235_v41  ;;  %v7161_v53 = vadd.f32 %v10761_v33, %v7053_v63  ;;  %v7005_v11 = vmax.f32 %v12001_v15, %v6155_v48  ;;  %v6958_v43 = vmax.f32 %v12002_v30, %v6192_v4  ;;  %v12008_v48 = vld [vmem:[#allocation105_spill] sm:$0xff]  ;;  %v12014_v42 = vld [vmem:[#allocation107_spill] sm:$0xff]  ;;  %v6278_v29 = vpop.f32.mrb[164].mxu0 }
 0x229   :  { %v7206_v21 = vadd.f32 %v10779_v37, %v7098_v17  ;;  %7655 = vst [vmem:[%s11455_s3 + $0xe8] sm:$0xff] %v8236_v62  ;;  %v7255_v20 = vmax.f32 %v7159_v28, 0.0  ;;  %v12005_v2 = vmax.f32 %v12003_v18, %v12004_v31  ;;  %v6960_v10 = vmax.f32 %v12006_v12, %v6235_v16  ;;  %v12016_v47 = vld [vmem:[#allocation181_spill] sm:$0xff]  ;;  %v12018_v63 = vld [vmem:[#allocation183_spill] sm:$0xff]  ;;  %v12020_v17 = vld [vmem:[#allocation108_spill] sm:$0xff]  ;;  %v6321_v30 = vpop.f32.mrb[164].mxu1 }
 0x22a   :  { %v7208_v40 = vadd.f32 %v10779_v37, %v7100_v51  ;;  %v7257_v54 = vmax.f32 %v7161_v53, 0.0  ;;  %v12009_v56 = vmax.f32 %v12007_v36, %v12008_v48  ;;  %v12012_v55 = vmax.f32 %v12010_v32, %v12011_v8  ;;  %v12022_v28 = vld [vmem:[#allocation184_spill] sm:$0xff]  ;;  %v12026_v53 = vld [vmem:[#allocation26_spill] sm:$0xff]  ;;  %v6323_v12 = vpop.f32.mrb[165].mxu1  ;;  %v12034_v48 = vld [vmem:[#allocation187_spill] sm:$0xff] }
 0x22b   :  { %v7099_v50 = vmax.f32 %v12005_v2, %v7003_v52  ;;  %v7302_v39 = vmax.f32 %v7206_v21, 0.0  ;;  %v8213_v35 = vpack.c.bf16 %v7255_v20, %v7254_v7  ;;  %v12015_v3 = vmax.f32 %v12013_v19, %v12014_v42  ;;  %v12024_v52 = vld [vmem:[#allocation109_spill] sm:$0xff]  ;;  %v12027_v21 = vld [vmem:[#allocation110_spill] sm:$0xff]  ;;  %v12029_v20 = vld [vmem:[#allocation27_spill] sm:$0xff] }
 0x22c   :  { %v7101_v45 = vmax.f32 %v12009_v56, %v7005_v11  ;;  %v7054_v0 = vmax.f32 %v12012_v55, %v6958_v43  ;;  %v7304_v57 = vmax.f32 %v7208_v40, 0.0  ;;  %v8214_v25 = vpack.c.bf16 %v7257_v54, %v7256_v13  ;;  %v6280_v43 = vpop.f32.mrb[165].mxu0  ;;  %v12030_v40 = vld [vmem:[#allocation111_spill] sm:$0xff]  ;;  %v12032_v2 = vld [vmem:[#allocation185_spill] sm:$0xff]  ;;  %v12035_v55 = vld [vmem:[#allocation28_spill] sm:$0xff] }
 0x22d   :  { %v7207_v46 = vadd.f32 %v10779_v37, %v7099_v50  ;;  %v7056_v60 = vmax.f32 %v12015_v3, %v6960_v10  ;;  %v6959_v41 = vmax.f32 %v12016_v47, %v6194_v14  ;;  %7632 = vst [vmem:[%s11455_s3 + $0x30] sm:$0xff] %v8213_v35  ;;  %v6961_v59 = vmax.f32 %v12017_v34, %v6237_v1  ;;  %v6282_v10 = vpop.f32.mrb[166].mxu0  ;;  %v12042_v47 = vld [vmem:[#allocation30_spill] sm:$0xff] }
 0x22e   :  { %v7209_v58 = vadd.f32 %v10779_v37, %v7101_v45  ;;  %v7162_v24 = vadd.f32 %v10761_v33, %v7054_v0  ;;  %v7006_v26 = vmax.f32 %v12018_v63, %v6196_v44  ;;  %7633 = vst [vmem:[%s11455_s3 + $0x38] sm:$0xff] %v8214_v25  ;;  %v12021_v4 = vmax.f32 %v12019_v22, %v12020_v17  ;;  %v6325_v45 = vpop.f32.mrb[166].mxu1  ;;  %v6284_v32 = vpop.f32.mrb[167].mxu0  ;;  %v12036_v0 = vld [vmem:[#allocation112_spill] sm:$0xff]  ;;  %v12040_v25 = vld [vmem:[#allocation113_spill] sm:$0xff] }
 0x22f   :  { %v7303_v38 = vmax.f32 %v7207_v46, 0.0  ;;  %v7164_v7 = vadd.f32 %v10761_v33, %v7056_v60  ;;  %v7008_v9 = vmax.f32 %v12022_v28, %v6239_v5  ;;  %v12025_v16 = vmax.f32 %v12023_v6, %v12024_v52  ;;  %v12038_v46 = vld [vmem:[#allocation188_spill] sm:$0xff]  ;;  %v6327_v42 = vpop.f32.mrb[167].mxu1  ;;  %v12039_v60 = vld [vmem:[#allocation29_spill] sm:$0xff]  ;;  %v12049_v6 = vld [vmem:[#allocation190_spill] sm:$0xff] }
 0x230   :  { %v7305_v13 = vmax.f32 %v7209_v58, 0.0  ;;  %v7258_v27 = vmax.f32 %v7162_v24, 0.0  ;;  %v7055_v62 = vmax.f32 %v12021_v4, %v6959_v41  ;;  %v12028_v15 = vmax.f32 %v12026_v53, %v12027_v21  ;;  %v12043_v41 = vld [vmem:[#allocation114_spill] sm:$0xff]  ;;  %v6364_v53 = vpop.f32.mrb[168].mxu0 }
 0x231   :  { %v8237_v49 = vpack.c.bf16 %v7303_v38, %v7302_v39  ;;  %v7260_v51 = vmax.f32 %v7164_v7, 0.0  ;;  %v7057_v14 = vmax.f32 %v12025_v16, %v6961_v59  ;;  %v12031_v18 = vmax.f32 %v12029_v20, %v12030_v40  ;;  %v12033_v39 = vld [vmem:[#allocation186_spill] sm:$0xff]  ;;  %v12050_v16 = vld [vmem:[#allocation191_spill] sm:$0xff]  ;;  %v6407_v20 = vpop.f32.mrb[168].mxu1  ;;  %v6366_v40 = vpop.f32.mrb[169].mxu0 }
 0x232   :  { %v7102_v11 = vmax.f32 %v12028_v15, %v7006_v26  ;;  %v8238_v1 = vpack.c.bf16 %v7305_v13, %v7304_v57  ;;  %v7163_v44 = vadd.f32 %v10761_v33, %v7055_v62  ;;  %v7007_v50 = vmax.f32 %v12032_v2, %v6198_v61  ;;  %v12045_v26 = vld [vmem:[#allocation31_spill] sm:$0xff]  ;;  %v12051_v15 = vld [vmem:[#allocation32_spill] sm:$0xff]  ;;  %v12055_v2 = vld [vmem:[#allocation33_spill] sm:$0xff] }
 0x233   :  { %v7104_v31 = vmax.f32 %v12031_v18, %v7008_v9  ;;  %7656 = vst [vmem:[%s11455_s3 + $0xf0] sm:$0xff] %v8237_v49  ;;  %v7165_v5 = vadd.f32 %v10761_v33, %v7057_v14  ;;  %v7009_v36 = vmax.f32 %v12033_v39, %v6241_v23  ;;  %v6962_v56 = vmax.f32 %v12034_v48, %v6278_v29  ;;  %v12046_v13 = vld [vmem:[#allocation115_spill] sm:$0xff]  ;;  %v12048_v9 = vld [vmem:[#allocation189_spill] sm:$0xff]  ;;  %v6409_v48 = vpop.f32.mrb[169].mxu1 }
 0x234   :  { %v7210_v54 = vadd.f32 %v10779_v37, %v7102_v11  ;;  %7657 = vst [vmem:[%s11455_s3 + $0xf8] sm:$0xff] %v8238_v1  ;;  %v7259_v61 = vmax.f32 %v7163_v44, 0.0  ;;  %v12037_v35 = vmax.f32 %v12035_v55, %v12036_v0  ;;  %v6964_v19 = vmax.f32 %v12038_v46, %v6321_v30  ;;  %v12052_v11 = vld [vmem:[#allocation116_spill] sm:$0xff]  ;;  %v12061_v55 = vld [vmem:[#allocation35_spill] sm:$0xff] }
 0x235   :  { %v7212_v8 = vadd.f32 %v10779_v37, %v7104_v31  ;;  %v7261_v3 = vmax.f32 %v7165_v5, 0.0  ;;  %v12041_v58 = vmax.f32 %v12039_v60, %v12040_v25  ;;  %v12044_v38 = vmax.f32 %v12042_v47, %v12043_v41  ;;  %v12054_v1 = vld [vmem:[#allocation192_spill] sm:$0xff]  ;;  %v12058_v5 = vld [vmem:[#allocation34_spill] sm:$0xff]  ;;  %v12062_v0 = vld [vmem:[#allocation119_spill] sm:$0xff] }
 0x236   :  { %v7103_v57 = vmax.f32 %v12037_v35, %v7007_v50  ;;  %v7306_v23 = vmax.f32 %v7210_v54, 0.0  ;;  %v8215_v34 = vpack.c.bf16 %v7259_v61, %v7258_v27  ;;  %v12047_v22 = vmax.f32 %v12045_v26, %v12046_v13  ;;  %v12056_v50 = vld [vmem:[#allocation117_spill] sm:$0xff]  ;;  %v12059_v54 = vld [vmem:[#allocation118_spill] sm:$0xff]  ;;  %v12070_v26 = vld [vmem:[#allocation196_spill] sm:$0xff] }
 0x237   :  { %v7105_v24 = vmax.f32 %v12041_v58, %v7009_v36  ;;  %v7058_v7 = vmax.f32 %v12044_v38, %v6962_v56  ;;  %v7308_v59 = vmax.f32 %v7212_v8, 0.0  ;;  %v8216_v4 = vpack.c.bf16 %v7261_v3, %v7260_v51  ;;  %v6368_v56 = vpop.f32.mrb[170].mxu0  ;;  %v12065_v25 = vld [vmem:[#allocation194_spill] sm:$0xff] }
 0x238   :  { %v7211_v63 = vadd.f32 %v10779_v37, %v7103_v57  ;;  %v7060_v17 = vmax.f32 %v12047_v22, %v6964_v19  ;;  %v6963_v29 = vmax.f32 %v12048_v9, %v6280_v43  ;;  %7634 = vst [vmem:[%s11455_s3 + $0x40] sm:$0xff] %v8215_v34  ;;  %v6965_v52 = vmax.f32 %v12049_v6, %v6323_v12  ;;  %v12064_v57 = vld [vmem:[#allocation193_spill] sm:$0xff]  ;;  %v6411_v19 = vpop.f32.mrb[170].mxu1  ;;  %v6370_v3 = vpop.f32.mrb[171].mxu0  ;;  %v12068_v34 = vld [vmem:[#allocation120_spill] sm:$0xff]  ;;  %v12074_v9 = vld [vmem:[#allocation38_spill] sm:$0xff] }
 0x239   :  { %v7213_v62 = vadd.f32 %v10779_v37, %v7105_v24  ;;  %v7166_v28 = vadd.f32 %v10761_v33, %v7058_v7  ;;  %v7010_v14 = vmax.f32 %v12050_v16, %v6282_v10  ;;  %7635 = vst [vmem:[%s11455_s3 + $0x48] sm:$0xff] %v8216_v4  ;;  %v12053_v30 = vmax.f32 %v12051_v15, %v12052_v11  ;;  %v12066_v24 = vld [vmem:[#allocation195_spill] sm:$0xff]  ;;  %v6413_v41 = vpop.f32.mrb[171].mxu1  ;;  %v12067_v7 = vld [vmem:[#allocation36_spill] sm:$0xff]  ;;  %v12071_v4 = vld [vmem:[#allocation37_spill] sm:$0xff] }
 0x23a   :  { %v7307_v49 = vmax.f32 %v7211_v63, 0.0  ;;  %v7168_v27 = vadd.f32 %v10761_v33, %v7060_v17  ;;  %v7012_v44 = vmax.f32 %v12054_v1, %v6325_v45  ;;  %v12057_v12 = vmax.f32 %v12055_v2, %v12056_v50  ;;  %v12080_v1 = vld [vmem:[#allocation197_spill] sm:$0xff]  ;;  %v12081_v2 = vld [vmem:[#allocation198_spill] sm:$0xff] }
 0x23b   :  { %v7309_v51 = vmax.f32 %v7213_v62, 0.0  ;;  %v7262_v21 = vmax.f32 %v7166_v28, 0.0  ;;  %v7059_v43 = vmax.f32 %v12053_v30, %v6963_v29  ;;  %v12060_v39 = vmax.f32 %v12058_v5, %v12059_v54  ;;  %v12075_v29 = vld [vmem:[#allocation122_spill] sm:$0xff]  ;;  %v6493_v5 = vpop.f32.mrb[172].mxu1 }
 0x23c   :  { %v8239_v18 = vpack.c.bf16 %v7307_v49, %v7306_v23  ;;  %v7264_v31 = vmax.f32 %v7168_v27, 0.0  ;;  %v7061_v10 = vmax.f32 %v12057_v12, %v6965_v52  ;;  %v12063_v45 = vmax.f32 %v12061_v55, %v12062_v0  ;;  %v12082_v12 = vld [vmem:[#allocation199_spill] sm:$0xff]  ;;  %v12086_v55 = vld [vmem:[#allocation200_spill] sm:$0xff] }
 0x23d   :  { %v7106_v36 = vmax.f32 %v12060_v39, %v7010_v14  ;;  %v8240_v61 = vpack.c.bf16 %v7309_v51, %v7308_v59  ;;  %v7167_v8 = vadd.f32 %v10761_v33, %v7059_v43  ;;  %v7011_v46 = vmax.f32 %v12064_v57, %v6284_v32  ;;  %v12077_v14 = vld [vmem:[#allocation39_spill] sm:$0xff]  ;;  %v12083_v39 = vld [vmem:[#allocation40_spill] sm:$0xff] }
 0x23e   :  { %v7108_v35 = vmax.f32 %v12063_v45, %v7012_v44  ;;  %7658 = vst [vmem:[%s11455_s3 + $0x100] sm:$0xff] %v8239_v18  ;;  %v7169_v23 = vadd.f32 %v10761_v33, %v7061_v10  ;;  %v7013_v58 = vmax.f32 %v12065_v25, %v6327_v42  ;;  %v6966_v47 = vmax.f32 %v12066_v24, %v6364_v53  ;;  %v12072_v42 = vld [vmem:[#allocation121_spill] sm:$0xff]  ;;  %v12078_v53 = vld [vmem:[#allocation123_spill] sm:$0xff]  ;;  %v6495_v45 = vpop.f32.mrb[173].mxu1  ;;  %v12090_v25 = vld [vmem:[#allocation42_spill] sm:$0xff] }
 0x23f   :  { %v7214_v60 = vadd.f32 %v10779_v37, %v7106_v36  ;;  %7659 = vst [vmem:[%s11455_s3 + $0x108] sm:$0xff] %v8240_v61  ;;  %v7263_v32 = vmax.f32 %v7167_v8, 0.0  ;;  %v12069_v59 = vmax.f32 %v12067_v7, %v12068_v34  ;;  %v6968_v13 = vmax.f32 %v12070_v26, %v6407_v20  ;;  %v6450_v20 = vpop.f32.mrb[172].mxu0  ;;  %v12084_v36 = vld [vmem:[#allocation124_spill] sm:$0xff] }
 0x240   :  { %v7216_v38 = vadd.f32 %v10779_v37, %v7108_v35  ;;  %v7265_v22 = vmax.f32 %v7169_v23, 0.0  ;;  %v12073_v62 = vmax.f32 %v12071_v4, %v12072_v42  ;;  %v12076_v49 = vmax.f32 %v12074_v9, %v12075_v29  ;;  %v12098_v9 = vld [vmem:[#allocation203_spill] sm:$0xff] }
 0x241   :  { %v7107_v63 = vmax.f32 %v12069_v59, %v7011_v46  ;;  %v7310_v17 = vmax.f32 %v7214_v60, 0.0  ;;  %v8217_v6 = vpack.c.bf16 %v7263_v32, %v7262_v21  ;;  %v12079_v51 = vmax.f32 %v12077_v14, %v12078_v53  ;;  %v12087_v46 = vld [vmem:[#allocation41_spill] sm:$0xff]  ;;  %v6497_v32 = vpop.f32.mrb[174].mxu1  ;;  %v12093_v59 = vld [vmem:[#allocation43_spill] sm:$0xff]  ;;  %v12102_v14 = vld [vmem:[#allocation204_spill] sm:$0xff] }
 0x242   :  { %v7109_v28 = vmax.f32 %v12073_v62, %v7013_v58  ;;  %v7062_v27 = vmax.f32 %v12076_v49, %v6966_v47  ;;  %v7312_v52 = vmax.f32 %v7216_v38, 0.0  ;;  %v8218_v11 = vpack.c.bf16 %v7265_v22, %v7264_v31  ;;  %v6452_v31 = vpop.f32.mrb[173].mxu0  ;;  %v12091_v58 = vld [vmem:[#allocation126_spill] sm:$0xff] }
 0x243   :  { %v7215_v16 = vadd.f32 %v10779_v37, %v7107_v63  ;;  %v7064_v15 = vmax.f32 %v12079_v51, %v6968_v13  ;;  %v6967_v44 = vmax.f32 %v12080_v1, %v6366_v40  ;;  %7636 = vst [vmem:[%s11455_s3 + $0x50] sm:$0xff] %v8217_v6  ;;  %v6969_v50 = vmax.f32 %v12081_v2, %v6409_v48  ;;  %v6454_v35 = vpop.f32.mrb[174].mxu0  ;;  %v12096_v13 = vld [vmem:[#allocation201_spill] sm:$0xff]  ;;  %v12097_v62 = vld [vmem:[#allocation202_spill] sm:$0xff]  ;;  %v12100_v6 = vld [vmem:[#allocation128_spill] sm:$0xff] }
 0x244   :  { %v7217_v30 = vadd.f32 %v10779_v37, %v7109_v28  ;;  %v7170_v43 = vadd.f32 %v10761_v33, %v7062_v27  ;;  %v7014_v10 = vmax.f32 %v12082_v12, %v6368_v56  ;;  %7637 = vst [vmem:[%s11455_s3 + $0x58] sm:$0xff] %v8218_v11  ;;  %v12085_v61 = vmax.f32 %v12083_v39, %v12084_v36  ;;  %v12088_v56 = vld [vmem:[#allocation125_spill] sm:$0xff]  ;;  %v11094_v38 = vpop.f32.mrb[175].mxu0  ;;  %v12099_v27 = vld [vmem:[#allocation44_spill] sm:$0xff]  ;;  %v12106_v1 = vld [vmem:[#allocation46_spill] sm:$0xff] }
 0x245   :  { %v7311_v21 = vmax.f32 %v7215_v16, 0.0  ;;  %v7172_v18 = vadd.f32 %v10761_v33, %v7064_v15  ;;  %v7016_v0 = vmax.f32 %v12086_v55, %v6411_v19  ;;  %v12089_v23 = vmax.f32 %v12087_v46, %v12088_v56  ;;  %v12094_v19 = vld [vmem:[#allocation127_spill] sm:$0xff]  ;;  %v12103_v11 = vld [vmem:[#allocation45_spill] sm:$0xff]  ;;  %v6536_v36 = vpop.f32.mrb[176].mxu0 }
 0x246   :  { %v7313_v54 = vmax.f32 %v7217_v30, 0.0  ;;  %v7266_v40 = vmax.f32 %v7170_v43, 0.0  ;;  %v7063_v8 = vmax.f32 %v12085_v61, %v6967_v44  ;;  %v12092_v24 = vmax.f32 %v12090_v25, %v12091_v58  ;;  %v12104_v30 = vld [vmem:[#allocation129_spill] sm:$0xff]  ;;  %v12107_v44 = vld [vmem:[#allocation130_spill] sm:$0xff]  ;;  %v12109_v12 = vld [vmem:[#allocation47_spill] sm:$0xff]  ;;  %v6538_v46 = vpop.f32.mrb[177].mxu0 }
 0x247   :  { %v8241_v57 = vpack.c.bf16 %v7311_v21, %v7310_v17  ;;  %v7268_v48 = vmax.f32 %v7172_v18, 0.0  ;;  %v7065_v60 = vmax.f32 %v12089_v23, %v6969_v50  ;;  %v12095_v63 = vmax.f32 %v12093_v59, %v12094_v19  ;;  %v6499_v17 = vpop.f32.mrb[175].mxu1  ;;  %v12112_v55 = vld [vmem:[#allocation205_spill] sm:$0xff]  ;;  %v12113_v23 = vld [vmem:[#allocation206_spill] sm:$0xff]  ;;  %v12114_v25 = vld [vmem:[#allocation207_spill] sm:$0xff] }
 0x248   :  { %v7110_v47 = vmax.f32 %v12092_v24, %v7014_v10  ;;  %v8242_v7 = vpack.c.bf16 %v7313_v54, %v7312_v52  ;;  %v7171_v34 = vadd.f32 %v10761_v33, %v7063_v8  ;;  %v7015_v22 = vmax.f32 %v12096_v13, %v6370_v3  ;;  %v12110_v10 = vld [vmem:[#allocation131_spill] sm:$0xff]  ;;  %v6540_v24 = vpop.f32.mrb[178].mxu0 }
 0x249   :  { %v7112_v26 = vmax.f32 %v12095_v63, %v7016_v0  ;;  %7660 = vst [vmem:[%s11455_s3 + $0x110] sm:$0xff] %v8241_v57  ;;  %v7173_v4 = vadd.f32 %v10761_v33, %v7065_v60  ;;  %v7017_v28 = vmax.f32 %v12097_v62, %v6413_v41  ;;  %v6970_v29 = vmax.f32 %v12098_v9, %v6450_v20  ;;  %v6579_v57 = vpop.f32.mrb[176].mxu1  ;;  %v12118_v63 = vld [vmem:[#allocation208_spill] sm:$0xff]  ;;  %v12122_v9 = vld [vmem:[#allocation50_spill] sm:$0xff] }
 0x24a   :  { %v7218_v42 = vadd.f32 %v10779_v37, %v7110_v47  ;;  %7661 = vst [vmem:[%s11455_s3 + $0x118] sm:$0xff] %v8242_v7  ;;  %v7267_v49 = vmax.f32 %v7171_v34, 0.0  ;;  %v12101_v52 = vmax.f32 %v12099_v27, %v12100_v6  ;;  %v6972_v53 = vmax.f32 %v12102_v14, %v6493_v5  ;;  %v12115_v7 = vld [vmem:[#allocation48_spill] sm:$0xff] }
 0x24b   :  { %v7220_v3 = vadd.f32 %v10779_v37, %v7112_v26  ;;  %v7269_v51 = vmax.f32 %v7173_v4, 0.0  ;;  %v12105_v41 = vmax.f32 %v12103_v11, %v12104_v30  ;;  %v12108_v20 = vmax.f32 %v12106_v1, %v12107_v44  ;;  %v12116_v34 = vld [vmem:[#allocation132_spill] sm:$0xff]  ;;  %v12130_v1 = vld [vmem:[#allocation211_spill] sm:$0xff] }
 0x24c   :  { %v7111_v16 = vmax.f32 %v12101_v52, %v7015_v22  ;;  %v7314_v15 = vmax.f32 %v7218_v42, 0.0  ;;  %v8219_v18 = vpack.c.bf16 %v7267_v49, %v7266_v40  ;;  %v12111_v54 = vmax.f32 %v12109_v12, %v12110_v10  ;;  %v11142_v22 = vpop.f32.mrb[179].mxu0  ;;  %v12120_v42 = vld [vmem:[#allocation133_spill] sm:$0xff]  ;;  %v12134_v12 = vld [vmem:[#allocation212_spill] sm:$0xff] }
 0x24d   :  { %v7113_v43 = vmax.f32 %v12105_v41, %v7017_v28  ;;  %v7066_v21 = vmax.f32 %v12108_v20, %v6970_v29  ;;  %v7316_v2 = vmax.f32 %v7220_v3, 0.0  ;;  %v8220_v5 = vpack.c.bf16 %v7269_v51, %v7268_v48  ;;  %v6581_v48 = vpop.f32.mrb[177].mxu1  ;;  %v12123_v29 = vld [vmem:[#allocation134_spill] sm:$0xff]  ;;  %v12128_v51 = vld [vmem:[#allocation209_spill] sm:$0xff] }
 0x24e   :  { %v7219_v50 = vadd.f32 %v10779_v37, %v7111_v16  ;;  %v7068_v39 = vmax.f32 %v12111_v54, %v6972_v53  ;;  %v6971_v0 = vmax.f32 %v12112_v55, %v6452_v31  ;;  %7638 = vst [vmem:[%s11455_s3 + $0x60] sm:$0xff] %v8219_v18  ;;  %v6973_v60 = vmax.f32 %v12113_v23, %v6495_v45  ;;  %v6583_v13 = vpop.f32.mrb[178].mxu1  ;;  %v12125_v16 = vld [vmem:[#allocation51_spill] sm:$0xff]  ;;  %v12129_v41 = vld [vmem:[#allocation210_spill] sm:$0xff]  ;;  %v12132_v18 = vld [vmem:[#allocation136_spill] sm:$0xff] }
 0x24f   :  { %v7221_v61 = vadd.f32 %v10779_v37, %v7113_v43  ;;  %v7174_v8 = vadd.f32 %v10761_v33, %v7066_v21  ;;  %v7018_v58 = vmax.f32 %v12114_v25, %v6454_v35  ;;  %7639 = vst [vmem:[%s11455_s3 + $0x68] sm:$0xff] %v8220_v5  ;;  %v12117_v59 = vmax.f32 %v12115_v7, %v12116_v34  ;;  %v12119_v35 = vld [vmem:[#allocation49_spill] sm:$0xff]  ;;  %v11150_v27 = vpop.f32.mrb[179].mxu1  ;;  %v12139_v55 = vld [vmem:[#allocation138_spill] sm:$0xff] }
 0x250   :  { %v7315_v40 = vmax.f32 %v7219_v50, 0.0  ;;  %v7176_v56 = vadd.f32 %v10761_v33, %v7068_v39  ;;  %v7020_v26 = vmax.f32 %v12118_v63, %v6497_v32  ;;  %v12121_v62 = vmax.f32 %v12119_v35, %v12120_v42  ;;  %v12126_v32 = vld [vmem:[#allocation135_spill] sm:$0xff]  ;;  %v12135_v5 = vld [vmem:[#allocation53_spill] sm:$0xff] }
 0x251   :  { %v7317_v31 = vmax.f32 %v7221_v61, 0.0  ;;  %v7270_v47 = vmax.f32 %v7174_v8, 0.0  ;;  %v7067_v19 = vmax.f32 %v12117_v59, %v6971_v0  ;;  %v12124_v49 = vmax.f32 %v12122_v9, %v12123_v29  ;;  %v12136_v61 = vld [vmem:[#allocation137_spill] sm:$0xff]  ;;  %v12145_v9 = vld [vmem:[#allocation214_spill] sm:$0xff] }
 0x252   :  { %v8243_v45 = vpack.c.bf16 %v7315_v40, %v7314_v15  ;;  %v7272_v4 = vmax.f32 %v7176_v56, 0.0  ;;  %v7069_v28 = vmax.f32 %v12121_v62, %v6973_v60  ;;  %v12127_v14 = vmax.f32 %v12125_v16, %v12126_v32  ;;  %v6622_v56 = vpop.f32.mrb[180].mxu0  ;;  %v12147_v16 = vld [vmem:[#allocation56_spill] sm:$0xff] }
 0x253   :  { %v7114_v3 = vmax.f32 %v12124_v49, %v7018_v58  ;;  %v8244_v6 = vpack.c.bf16 %v7317_v31, %v7316_v2  ;;  %v7175_v52 = vadd.f32 %v10761_v33, %v7067_v19  ;;  %v7019_v15 = vmax.f32 %v12128_v51, %v11094_v38  ;;  %v12131_v38 = vld [vmem:[#allocation52_spill] sm:$0xff]  ;;  %v12141_v58 = vld [vmem:[#allocation55_spill] sm:$0xff]  ;;  %v11183_v59 = vpop.f32.mrb[181].mxu0 }
 0x254   :  { %v7116_v53 = vmax.f32 %v12127_v14, %v7020_v26  ;;  %7662 = vst [vmem:[%s11455_s3 + $0x120] sm:$0xff] %v8243_v45  ;;  %v7177_v11 = vadd.f32 %v10761_v33, %v7069_v28  ;;  %v7021_v43 = vmax.f32 %v12129_v41, %v6499_v17  ;;  %v6974_v44 = vmax.f32 %v12130_v1, %v6536_v36  ;;  %v12138_v36 = vld [vmem:[#allocation54_spill] sm:$0xff]  ;;  %v12142_v31 = vld [vmem:[#allocation139_spill] sm:$0xff]  ;;  %v12144_v45 = vld [vmem:[#allocation213_spill] sm:$0xff] }
 0x255   :  { %v7222_v30 = vadd.f32 %v10779_v37, %v7114_v3  ;;  %7663 = vst [vmem:[%s11455_s3 + $0x128] sm:$0xff] %v8244_v6  ;;  %v7271_v20 = vmax.f32 %v7175_v52, 0.0  ;;  %v12133_v2 = vmax.f32 %v12131_v38, %v12132_v18  ;;  %v6976_v10 = vmax.f32 %v12134_v12, %v6579_v57  ;;  %v6665_v57 = vpop.f32.mrb[180].mxu1  ;;  %v12148_v32 = vld [vmem:[#allocation140_spill] sm:$0xff]  ;;  %v12152_v41 = vld [vmem:[#allocation141_spill] sm:$0xff]  ;;  %v12158_v12 = vld [vmem:[#allocation143_spill] sm:$0xff] }
 0x256   :  { %v7224_v21 = vadd.f32 %v10779_v37, %v7116_v53  ;;  %v7273_v54 = vmax.f32 %v7177_v11, 0.0  ;;  %v12137_v17 = vmax.f32 %v12135_v5, %v12136_v61  ;;  %v12140_v0 = vmax.f32 %v12138_v36, %v12139_v55  ;;  %v11188_v42 = vpop.f32.mrb[181].mxu1  ;;  %v12150_v51 = vld [vmem:[#allocation216_spill] sm:$0xff]  ;;  %v12162_v36 = vld [vmem:[#allocation219_spill] sm:$0xff] }
 0x257   :  { %v7115_v50 = vmax.f32 %v12133_v2, %v7019_v15  ;;  %v7318_v39 = vmax.f32 %v7222_v30, 0.0  ;;  %v8221_v23 = vpack.c.bf16 %v7271_v20, %v7270_v47  ;;  %v12143_v7 = vmax.f32 %v12141_v58, %v12142_v31  ;;  %v11190_v47 = vpop.f32.mrb[182].mxu0  ;;  %v11198_v3 = vpop.f32.mrb[182].mxu1  ;;  %v12151_v30 = vld [vmem:[#allocation57_spill] sm:$0xff]  ;;  %v12155_v20 = vld [vmem:[#allocation142_spill] sm:$0xff]  ;;  %v12166_v58 = vld [vmem:[#allocation220_spill] sm:$0xff] }
 0x258   :  { %v7117_v8 = vmax.f32 %v12137_v17, %v7021_v43  ;;  %v7070_v40 = vmax.f32 %v12140_v0, %v6974_v44  ;;  %v7320_v60 = vmax.f32 %v7224_v21, 0.0  ;;  %v8222_v19 = vpack.c.bf16 %v7273_v54, %v7272_v4  ;;  %v12146_v4 = vld [vmem:[#allocation215_spill] sm:$0xff]  ;;  %v11200_v6 = vpop.f32.mrb[183].mxu0  ;;  %v11209_v11 = vpop.f32.mrb[183].mxu1  ;;  %v12154_v44 = vld [vmem:[#allocation58_spill] sm:$0xff] }
 0x259   :  { %v7223_v25 = vadd.f32 %v10779_v37, %v7115_v50  ;;  %v7072_v34 = vmax.f32 %v12143_v7, %v6976_v10  ;;  %v6975_v35 = vmax.f32 %v12144_v45, %v6538_v46  ;;  %7640 = vst [vmem:[%s11455_s3 + $0x70] sm:$0xff] %v8221_v23  ;;  %v6977_v29 = vmax.f32 %v12145_v9, %v6581_v48  ;;  %v12157_v50 = vld [vmem:[#allocation59_spill] sm:$0xff]  ;;  %v12161_v17 = vld [vmem:[#allocation218_spill] sm:$0xff]  ;;  %v12164_v23 = vld [vmem:[#allocation144_spill] sm:$0xff]  ;;  %v6708_v7 = vpop.f32.mrb[184].mxu0  ;;  %v6751_v9 = vpop.f32.mrb[184].mxu1 }
 0x25a   :  { %v7225_v63 = vadd.f32 %v10779_v37, %v7117_v8  ;;  %v7178_v26 = vadd.f32 %v10761_v33, %v7070_v40  ;;  %v7022_v49 = vmax.f32 %v12146_v4, %v6540_v24  ;;  %7641 = vst [vmem:[%s11455_s3 + $0x78] sm:$0xff] %v8222_v19  ;;  %v12149_v14 = vmax.f32 %v12147_v16, %v12148_v32  ;;  %v12163_v40 = vld [vmem:[#allocation60_spill] sm:$0xff]  ;;  %v12170_v45 = vld [vmem:[#allocation62_spill] sm:$0xff]  ;;  %v12173_v16 = vld [vmem:[#allocation63_spill] sm:$0xff] }
 0x25b   :  { %v7319_v62 = vmax.f32 %v7223_v25, 0.0  ;;  %v7180_v28 = vadd.f32 %v10761_v33, %v7072_v34  ;;  %v7024_v15 = vmax.f32 %v12150_v51, %v6583_v13  ;;  %v12153_v43 = vmax.f32 %v12151_v30, %v12152_v41  ;;  %v12160_v13 = vld [vmem:[#allocation217_spill] sm:$0xff] }
 0x25c   :  { %v7321_v46 = vmax.f32 %v7225_v63, 0.0  ;;  %v7274_v52 = vmax.f32 %v7178_v26, 0.0  ;;  %v7071_v53 = vmax.f32 %v12149_v14, %v6975_v35  ;;  %v12156_v21 = vmax.f32 %v12154_v44, %v12155_v20  ;;  %v12167_v63 = vld [vmem:[#allocation61_spill] sm:$0xff]  ;;  %v12171_v35 = vld [vmem:[#allocation146_spill] sm:$0xff] }
 0x25d   :  { %v8245_v48 = vpack.c.bf16 %v7319_v62, %v7318_v39  ;;  %v7276_v24 = vmax.f32 %v7180_v28, 0.0  ;;  %v7073_v1 = vmax.f32 %v12153_v43, %v6977_v29  ;;  %v12159_v10 = vmax.f32 %v12157_v50, %v12158_v12  ;;  %v11245_v29 = vpop.f32.mrb[185].mxu0  ;;  %v12176_v41 = vld [vmem:[#allocation221_spill] sm:$0xff]  ;;  %v12179_v12 = vld [vmem:[#allocation64_spill] sm:$0xff] }
 0x25e   :  { %v7118_v38 = vmax.f32 %v12156_v21, %v7022_v49  ;;  %v8246_v18 = vpack.c.bf16 %v7321_v46, %v7320_v60  ;;  %v7179_v2 = vadd.f32 %v10761_v33, %v7071_v53  ;;  %v7023_v5 = vmax.f32 %v12160_v13, %v11142_v22  ;;  %v11251_v53 = vpop.f32.mrb[185].mxu1  ;;  %v11253_v51 = vpop.f32.mrb[186].mxu0 }
 0x25f   :  { %v7120_v54 = vmax.f32 %v12159_v10, %v7024_v15  ;;  %7664 = vst [vmem:[%s11455_s3 + $0x130] sm:$0xff] %v8245_v48  ;;  %v7181_v39 = vadd.f32 %v10761_v33, %v7073_v1  ;;  %v7025_v8 = vmax.f32 %v12161_v17, %v11150_v27  ;;  %v6978_v55 = vmax.f32 %v12162_v36, %v6622_v56  ;;  %v12168_v27 = vld [vmem:[#allocation145_spill] sm:$0xff]  ;;  %v11261_v1 = vpop.f32.mrb[187].mxu0  ;;  %v12180_v10 = vld [vmem:[#allocation148_spill] sm:$0xff] }
 0x260   :  { %v7226_v61 = vadd.f32 %v10779_v37, %v7118_v38  ;;  %7665 = vst [vmem:[%s11455_s3 + $0x138] sm:$0xff] %v8246_v18  ;;  %v7275_v0 = vmax.f32 %v7179_v2, 0.0  ;;  %v12165_v60 = vmax.f32 %v12163_v40, %v12164_v23  ;;  %v6980_v31 = vmax.f32 %v12166_v58, %v6665_v57  ;;  %v12174_v57 = vld [vmem:[#allocation147_spill] sm:$0xff]  ;;  %v12183_v17 = vld [vmem:[#allocation65_spill] sm:$0xff] }
 0x261   :  { %v7228_v22 = vadd.f32 %v10779_v37, %v7120_v54  ;;  %v7277_v34 = vmax.f32 %v7181_v39, 0.0  ;;  %v12169_v26 = vmax.f32 %v12167_v63, %v12168_v27  ;;  %v12172_v62 = vmax.f32 %v12170_v45, %v12171_v35  ;;  %v12178_v38 = vld [vmem:[#allocation223_spill] sm:$0xff]  ;;  %v12192_v63 = vld [vmem:[#allocation225_spill] sm:$0xff] }
 0x262   :  { %v7119_v25 = vmax.f32 %v12165_v60, %v7023_v5  ;;  %v7322_v19 = vmax.f32 %v7226_v61, 0.0  ;;  %v8223_v4 = vpack.c.bf16 %v7275_v0, %v7274_v52  ;;  %v12175_v32 = vmax.f32 %v12173_v16, %v12174_v57  ;;  %v11259_v52 = vpop.f32.mrb[186].mxu1  ;;  %v12182_v5 = vld [vmem:[#allocation224_spill] sm:$0xff]  ;;  %v12187_v0 = vld [vmem:[#allocation150_spill] sm:$0xff]  ;;  %v12190_v58 = vld [vmem:[#allocation151_spill] sm:$0xff] }
 0x263   :  { %v7121_v56 = vmax.f32 %v12169_v26, %v7025_v8  ;;  %v7074_v28 = vmax.f32 %v12172_v62, %v6978_v55  ;;  %v7324_v49 = vmax.f32 %v7228_v22, 0.0  ;;  %v8224_v15 = vpack.c.bf16 %v7277_v34, %v7276_v24  ;;  %v12177_v24 = vld [vmem:[#allocation222_spill] sm:$0xff]  ;;  %v11271_v2 = vpop.f32.mrb[187].mxu1  ;;  %v12184_v8 = vld [vmem:[#allocation149_spill] sm:$0xff]  ;;  %v12194_v45 = vld [vmem:[#allocation227_spill] sm:$0xff]  ;;  %v6794_v62 = vpop.f32.mrb[188].mxu0 }
 0x264   :  { %v7227_v46 = vadd.f32 %v10779_v37, %v7119_v25  ;;  %v7076_v14 = vmax.f32 %v12175_v32, %v6980_v31  ;;  %v6979_v43 = vmax.f32 %v12176_v41, %v11183_v59  ;;  %7642 = vst [vmem:[%s11455_s3 + $0x80] sm:$0xff] %v8223_v4  ;;  %v6981_v21 = vmax.f32 %v12177_v24, %v11188_v42  ;;  %v12186_v55 = vld [vmem:[#allocation66_spill] sm:$0xff]  ;;  %v12189_v25 = vld [vmem:[#allocation67_spill] sm:$0xff]  ;;  %v12195_v4 = vld [vmem:[#allocation68_spill] sm:$0xff] }
 0x265   :  { %v7229_v48 = vadd.f32 %v10779_v37, %v7121_v56  ;;  %v7182_v30 = vadd.f32 %v10761_v33, %v7074_v28  ;;  %v7026_v18 = vmax.f32 %v12178_v38, %v11190_v47  ;;  %7643 = vst [vmem:[%s11455_s3 + $0x88] sm:$0xff] %v8224_v15  ;;  %v12181_v54 = vmax.f32 %v12179_v12, %v12180_v10  ;;  %v12193_v26 = vld [vmem:[#allocation226_spill] sm:$0xff]  ;;  %v12198_v57 = vld [vmem:[#allocation228_spill] sm:$0xff]  ;;  %v11309_v15 = vpop.f32.mrb[189].mxu0  ;;  %v12205_v10 = vld [vmem:[#allocation71_spill] sm:$0xff] }
 0x266   :  { %v7323_v44 = vmax.f32 %v7227_v46, 0.0  ;;  %v7184_v20 = vadd.f32 %v10761_v33, %v7076_v14  ;;  %v7028_v39 = vmax.f32 %v12182_v5, %v11198_v3  ;;  %v12185_v47 = vmax.f32 %v12183_v17, %v12184_v8  ;;  %v6837_v14 = vpop.f32.mrb[188].mxu1 }
 0x267   :  { %v7325_v59 = vmax.f32 %v7229_v48, 0.0  ;;  %v7278_v50 = vmax.f32 %v7182_v30, 0.0  ;;  %v7075_v13 = vmax.f32 %v12181_v54, %v6979_v43  ;;  %v12188_v22 = vmax.f32 %v12186_v55, %v12187_v0  ;;  %v12200_v30 = vld [vmem:[#allocation153_spill] sm:$0xff]  ;;  %v11317_v38 = vpop.f32.mrb[189].mxu1  ;;  %v12206_v54 = vld [vmem:[#allocation155_spill] sm:$0xff] }
 0x268   :  { %v8247_v61 = vpack.c.bf16 %v7323_v44, %v7322_v19  ;;  %v7280_v42 = vmax.f32 %v7184_v20, 0.0  ;;  %v7077_v36 = vmax.f32 %v12185_v47, %v6981_v21  ;;  %v12191_v31 = vmax.f32 %v12189_v25, %v12190_v58  ;;  %v12202_v44 = vld [vmem:[#allocation70_spill] sm:$0xff]  ;;  %v12211_v58 = vld [vmem:[#allocation72_spill] sm:$0xff] }
 0x269   :  { %v7122_v40 = vmax.f32 %v12188_v22, %v7026_v18  ;;  %v8248_v23 = vpack.c.bf16 %v7325_v59, %v7324_v49  ;;  %v7183_v60 = vadd.f32 %v10761_v33, %v7075_v13  ;;  %v7027_v3 = vmax.f32 %v12192_v63, %v11200_v6  ;;  %v12196_v49 = vld [vmem:[#allocation152_spill] sm:$0xff]  ;;  %v12203_v20 = vld [vmem:[#allocation154_spill] sm:$0xff]  ;;  %v11319_v18 = vpop.f32.mrb[190].mxu0 }
 0x26a   :  { %v7124_v34 = vmax.f32 %v12191_v31, %v7028_v39  ;;  %7666 = vst [vmem:[%s11455_s3 + $0x140] sm:$0xff] %v8247_v61  ;;  %v7185_v19 = vadd.f32 %v10761_v33, %v7077_v36  ;;  %v7029_v56 = vmax.f32 %v12193_v26, %v11209_v11  ;;  %v6982_v35 = vmax.f32 %v12194_v45, %v6708_v7  ;;  %v12199_v7 = vld [vmem:[#allocation69_spill] sm:$0xff]  ;;  %v11325_v39 = vpop.f32.mrb[190].mxu1  ;;  %v11327_v61 = vpop.f32.mrb[191].mxu0  ;;  %v12212_v31 = vld [vmem:[#allocation156_spill] sm:$0xff] }
 0x26b   :  { %v7230_v27 = vadd.f32 %v10779_v37, %v7122_v40  ;;  %7667 = vst [vmem:[%s11455_s3 + $0x148] sm:$0xff] %v8248_v23  ;;  %v7279_v28 = vmax.f32 %v7183_v60, 0.0  ;;  %v12197_v46 = vmax.f32 %v12195_v4, %v12196_v49  ;;  %v6984_v32 = vmax.f32 %v12198_v57, %v6751_v9  ;;  %v12208_v36 = vld [vmem:[#allocation229_spill] sm:$0xff]  ;;  %v12209_v40 = vld [vmem:[#allocation230_spill] sm:$0xff]  ;;  %v12222_v57 = vld [vmem:[#allocation159_spill] sm:$0xff] }
 0x26c   :  { %v7232_v6 = vadd.f32 %v10779_v37, %v7124_v34  ;;  %v7281_v11 = vmax.f32 %v7185_v19, 0.0  ;;  %v12201_v41 = vmax.f32 %v12199_v7, %v12200_v30  ;;  %v12204_v24 = vmax.f32 %v12202_v44, %v12203_v20  ;;  %v12224_v7 = vld [vmem:[#allocation233_spill] sm:$0xff]  ;;  %v12226_v44 = vld [vmem:[#allocation235_spill] sm:$0xff] }
 0x26d   :  { %v7123_v16 = vmax.f32 %v12197_v46, %v7027_v3  ;;  %v7326_v48 = vmax.f32 %v7230_v27, 0.0  ;;  %v8225_v59 = vpack.c.bf16 %v7279_v28, %v7278_v50  ;;  %v12207_v13 = vmax.f32 %v12205_v10, %v12206_v54  ;;  %v11333_v50 = vpop.f32.mrb[191].mxu1  ;;  %v12214_v3 = vld [vmem:[#allocation232_spill] sm:$0xff]  ;;  %v12219_v28 = vld [vmem:[#allocation158_spill] sm:$0xff] }
 0x26e   :  { %v7125_v43 = vmax.f32 %v12201_v41, %v7029_v56  ;;  %v7078_v21 = vmax.f32 %v12204_v24, %v6982_v35  ;;  %v7328_v12 = vmax.f32 %v7232_v6, 0.0  ;;  %v8226_v17 = vpack.c.bf16 %v7281_v11, %v7280_v42  ;;  %v12210_v42 = vld [vmem:[#allocation231_spill] sm:$0xff]  ;;  %v12215_v56 = vld [vmem:[#allocation73_spill] sm:$0xff]  ;;  %v12225_v41 = vld [vmem:[#allocation234_spill] sm:$0xff] }
 0x26f   :  { %v7231_v9 = vadd.f32 %v10779_v37, %v7123_v16  ;;  %v7080_v5 = vmax.f32 %v12207_v13, %v6984_v32  ;;  %v6983_v55 = vmax.f32 %v12208_v36, %v11245_v29  ;;  %7644 = vst [vmem:[%s11455_s3 + $0x90] sm:$0xff] %v8225_v59  ;;  %v6985_v23 = vmax.f32 %v12209_v40, %v11251_v53  ;;  %v12216_v53 = vld [vmem:[#allocation157_spill] sm:$0xff]  ;;  %v12221_v16 = vld [vmem:[#allocation75_spill] sm:$0xff]  ;;  %v12228_v59 = vld [vmem:[#allocation160_spill] sm:$0xff] }
 0x270   :  { %v7233_v8 = vadd.f32 %v10779_v37, %v7125_v43  ;;  %v7186_v47 = vadd.f32 %v10761_v33, %v7078_v21  ;;  %v7030_v60 = vmax.f32 %v12210_v42, %v11253_v51  ;;  %7645 = vst [vmem:[%s11455_s3 + $0x98] sm:$0xff] %v8226_v17  ;;  %v12213_v34 = vmax.f32 %v12211_v58, %v12212_v31  ;;  %v12218_v51 = vld [vmem:[#allocation74_spill] sm:$0xff]  ;;  %v12227_v21 = vld [vmem:[#allocation76_spill] sm:$0xff]  ;;  %v12231_v17 = vld [vmem:[#allocation77_spill] sm:$0xff] }
 0x271   :  { %v7327_v0 = vmax.f32 %v7231_v9, 0.0  ;;  %v7188_v22 = vadd.f32 %v10761_v33, %v7080_v5  ;;  %v7032_v19 = vmax.f32 %v12214_v3, %v11259_v52  ;;  %v12217_v45 = vmax.f32 %v12215_v56, %v12216_v53  ;;  %v12230_v10 = vld [vmem:[#allocation236_spill] sm:$0xff]  ;;  %v12235_v36 = vld [vmem:[#allocation162_spill] sm:$0xff]  ;;  %v12237_v42 = vld [vmem:[#allocation79_spill] sm:$0xff] }
 0x272   :  { %v7329_v29 = vmax.f32 %v7233_v8, 0.0  ;;  %v7282_v25 = vmax.f32 %v7186_v47, 0.0  ;;  %v7079_v63 = vmax.f32 %v12213_v34, %v6983_v55  ;;  %v12220_v6 = vmax.f32 %v12218_v51, %v12219_v28  ;;  %v12232_v8 = vld [vmem:[#allocation161_spill] sm:$0xff]  ;;  %v12242_v53 = vld [vmem:[#allocation239_spill] sm:$0xff] }
 0x273   :  { %v8249_v27 = vpack.c.bf16 %v7327_v0, %v7326_v48  ;;  %v7284_v26 = vmax.f32 %v7188_v22, 0.0  ;;  %v7081_v35 = vmax.f32 %v12217_v45, %v6985_v23  ;;  %v12223_v32 = vmax.f32 %v12221_v16, %v12222_v57  ;;  %v12247_v16 = vld [vmem:[#allocation81_spill] sm:$0xff] }
 0x274   :  { %v7126_v4 = vmax.f32 %v12220_v6, %v7030_v60  ;;  %v8250_v49 = vpack.c.bf16 %v7329_v29, %v7328_v12  ;;  %v7187_v46 = vadd.f32 %v10761_v33, %v7079_v63  ;;  %v7031_v52 = vmax.f32 %v12224_v7, %v11261_v1  ;;  %v12238_v60 = vld [vmem:[#allocation163_spill] sm:$0xff]  ;;  %v12240_v63 = vld [vmem:[#allocation237_spill] sm:$0xff]  ;;  %v12246_v6 = vld [vmem:[#allocation240_spill] sm:$0xff] }
 0x275   :  { %v7128_v11 = vmax.f32 %v12223_v32, %v7032_v19  ;;  %7668 = vst [vmem:[%s11455_s3 + $0x150] sm:$0xff] %v8249_v27  ;;  %v7189_v48 = vadd.f32 %v10761_v33, %v7081_v35  ;;  %v7033_v43 = vmax.f32 %v12225_v41, %v11271_v2  ;;  %v6986_v20 = vmax.f32 %v12226_v44, %v6794_v62  ;;  %v12234_v62 = vld [vmem:[#allocation78_spill] sm:$0xff]  ;;  %v12243_v35 = vld [vmem:[#allocation80_spill] sm:$0xff]  ;;  %v12248_v57 = vld [vmem:[#allocation165_spill] sm:$0xff] }
 0x276   :  { %v7234_v30 = vadd.f32 %v10779_v37, %v7126_v4  ;;  %7669 = vst [vmem:[%s11455_s3 + $0x158] sm:$0xff] %v8250_v49  ;;  %v7283_v24 = vmax.f32 %v7187_v46, 0.0  ;;  %v12229_v12 = vmax.f32 %v12227_v21, %v12228_v59  ;;  %v6988_v54 = vmax.f32 %v12230_v10, %v6837_v14  ;;  %v12241_v27 = vld [vmem:[#allocation238_spill] sm:$0xff]  ;;  %v12253_v41 = vld [vmem:[#allocation83_spill] sm:$0xff] }
 0x277   :  { %v7236_v1 = vadd.f32 %v10779_v37, %v7128_v11  ;;  %v7285_v13 = vmax.f32 %v7189_v48, 0.0  ;;  %v12233_v2 = vmax.f32 %v12231_v17, %v12232_v8  ;;  %v12236_v55 = vmax.f32 %v12234_v62, %v12235_v36  ;;  %v12250_v11 = vld [vmem:[#allocation82_spill] sm:$0xff] }
 0x278   :  { %v7127_v9 = vmax.f32 %v12229_v12, %v7031_v52  ;;  %v7330_v5 = vmax.f32 %v7234_v30, 0.0  ;;  %v8227_v22 = vpack.c.bf16 %v7283_v24, %v7282_v25  ;;  %v12239_v29 = vmax.f32 %v12237_v42, %v12238_v60  ;;  %v12256_v24 = vld [vmem:[#allocation241_spill] sm:$0xff]  ;;  %v12257_v12 = vld [vmem:[#allocation242_spill] sm:$0xff] }
 0x279   :  { %v7129_v47 = vmax.f32 %v12233_v2, %v7033_v43  ;;  %v7082_v0 = vmax.f32 %v12236_v55, %v6986_v20  ;;  %v7332_v40 = vmax.f32 %v7236_v1, 0.0  ;;  %v8228_v31 = vpack.c.bf16 %v7285_v13, %v7284_v26  ;;  %v12254_v43 = vld [vmem:[#allocation167_spill] sm:$0xff]  ;;  %v12259_v13 = vld [vmem:[#allocation168_spill] sm:$0xff]  ;;  %v12261_v2 = vld [vmem:[#allocation85_spill] sm:$0xff] }
 0x27a   :  { %v7235_v23 = vadd.f32 %v10779_v37, %v7127_v9  ;;  %v7084_v58 = vmax.f32 %v12239_v29, %v6988_v54  ;;  %v6987_v3 = vmax.f32 %v12240_v63, %v11309_v15  ;;  %7646 = vst [vmem:[%s11455_s3 + $0xa0] sm:$0xff] %v8227_v22  ;;  %v6989_v56 = vmax.f32 %v12241_v27, %v11317_v38  ;;  %v12244_v15 = vld [vmem:[#allocation164_spill] sm:$0xff] }
 0x27b   :  { %v7237_v14 = vadd.f32 %v10779_v37, %v7129_v47  ;;  %v7190_v34 = vadd.f32 %v10761_v33, %v7082_v0  ;;  %v7034_v26 = vmax.f32 %v12242_v53, %v11319_v18  ;;  %7647 = vst [vmem:[%s11455_s3 + $0xa8] sm:$0xff] %v8228_v31  ;;  %v12245_v51 = vmax.f32 %v12243_v35, %v12244_v15  ;;  %v12251_v18 = vld [vmem:[#allocation166_spill] sm:$0xff]  ;;  %v12262_v47 = vld [vmem:[#allocation169_spill] sm:$0xff] }
 0x27c   :  { %v7331_v25 = vmax.f32 %v7235_v23, 0.0  ;;  %v7192_v19 = vadd.f32 %v10761_v33, %v7084_v58  ;;  %v7036_v4 = vmax.f32 %v12246_v6, %v11325_v39  ;;  %v12249_v38 = vmax.f32 %v12247_v16, %v12248_v57 }
 0x27d   :  { %v7333_v45 = vmax.f32 %v7237_v14, 0.0  ;;  %v7083_v28 = vmax.f32 %v12245_v51, %v6987_v3  ;;  %v7286_v46 = vmax.f32 %v7190_v34, 0.0  ;;  %v12252_v7 = vmax.f32 %v12250_v11, %v12251_v18 }
 0x27e   :  { %v8251_v49 = vpack.c.bf16 %v7331_v25, %v7330_v5  ;;  %v7085_v32 = vmax.f32 %v12249_v38, %v6989_v56  ;;  %v12255_v44 = vmax.f32 %v12253_v41, %v12254_v43  ;;  %v7035_v39 = vmax.f32 %v12256_v24, %v11327_v61  ;;  %v12258_v61 = vld [vmem:[#allocation84_spill] sm:$0xff] }
 0x27f   :  { %v7130_v52 = vmax.f32 %v12252_v7, %v7034_v26  ;;  %v8252_v48 = vpack.c.bf16 %v7333_v45, %v7332_v40  ;;  %v7191_v30 = vadd.f32 %v10761_v33, %v7083_v28  ;;  %v7288_v1 = vmax.f32 %v7192_v19, 0.0 }
 0x280   :  { %v7132_v20 = vmax.f32 %v12255_v44, %v7036_v4  ;;  %7670 = vst [vmem:[%s11455_s3 + $0x160] sm:$0xff] %v8251_v49  ;;  %v7193_v21 = vadd.f32 %v10761_v33, %v7085_v32  ;;  %v7037_v9 = vmax.f32 %v12257_v12, %v11333_v50  ;;  %v12260_v5 = vmax.f32 %v12258_v61, %v12259_v13 }
 0x281   :  { %v7238_v59 = vadd.f32 %v10779_v37, %v7130_v52  ;;  %7671 = vst [vmem:[%s11455_s3 + $0x168] sm:$0xff] %v8252_v48  ;;  %v7287_v10 = vmax.f32 %v7191_v30, 0.0  ;;  %v12263_v33 = vmax.f32 %v12261_v2, %v12262_v47 }
 0x282   :  { %v7240_v54 = vadd.f32 %v10779_v37, %v7132_v20  ;;  %v7131_v17 = vmax.f32 %v12260_v5, %v7035_v39  ;;  %v7289_v8 = vmax.f32 %v7193_v21, 0.0 }
 0x283   :  { %v7133_v62 = vmax.f32 %v12263_v33, %v7037_v9  ;;  %v8229_v36 = vpack.c.bf16 %v7287_v10, %v7286_v46  ;;  %v7334_v55 = vmax.f32 %v7238_v59, 0.0 }
 0x284   :  { %v7239_v50 = vadd.f32 %v10779_v37, %v7131_v17  ;;  %v8230_v0 = vpack.c.bf16 %v7289_v8, %v7288_v1  ;;  %v7336_v22 = vmax.f32 %v7240_v54, 0.0 }
 0x285   :  { %v7241_v40 = vadd.f32 %v10779_v37, %v7133_v62  ;;  %7648 = vst [vmem:[%s11455_s3 + $0xb0] sm:$0xff] %v8229_v36 }
 0x286   :  { %v7335_v23 = vmax.f32 %v7239_v50, 0.0  ;;  %7649 = vst [vmem:[%s11455_s3 + $0xb8] sm:$0xff] %v8230_v0 }
 0x287   :  { %v7337_v42 = vmax.f32 %v7241_v40, 0.0 }
 0x288   :  { %v8253_v60 = vpack.c.bf16 %v7335_v23, %v7334_v55 }
 0x289   :  { %v8254_v29 = vpack.c.bf16 %v7337_v42, %v7336_v22 }
 0x28a   :  { %7672 = vst [vmem:[%s11455_s3 + $0x170] sm:$0xff] %v8253_v60 }
 0x28b   :  { %7673 = vst [vmem:[%s11455_s3 + $0x178] sm:$0xff] %v8254_v29 }

// kernel: cnn_forward.4
= control target key start
LH: loop header
LB: loop body
LE: loop exit
PB: predicated region body
PF: predicated region fallthrough
CT: control target
= control target key end

     0   :  { %v1457_v1 = vmov 0   ;;  %vm685_vm0 = vcmask 130048   ;;  %s1957_s0 = inlined_call_operand.vmem [shape: bf16[144,1536], index: 0, kind: input, shape index: {}]   ;;  %s1958_s1 = inlined_call_operand.vmem [shape: bf16[32,144], index: 1, kind: input, shape index: {}]   ;;  %s1959_s2 = inlined_call_operand.vmem [shape: f32[32,1], index: 2, kind: input, shape index: {}]   ;;  %s1960_s3 = inlined_call_operand.vmem [shape: bf16[32,384], index: 3, kind: output, shape index: {}]  }
   0x1   :  { %v1289_v0 = vld [vmem:[%s1957_s0 + $0x4] ss:$48 sps:$4 sm:$0xff]   ;;  %1287 = vset.pattern.permute.xlu0 %v1457_v1  ;;  %1288 = vset.pattern.permute.xlu1 %v1457_v1  ;;  %v1291_v2 = vld [vmem:[%s1957_s0 + $0xc] ss:$48 sps:$4 sm:$0xff]   ;;  %v1293_v3 = vld [vmem:[%s1957_s0] ss:$48 sps:$4 sm:$0xff]  }
   0x2   :  { %692 = vmatprep.subr.bf16.mxu0 %v1289_v0  ;;  %v1294_v4 = vld [vmem:[%s1957_s0 + $0x8] ss:$48 sps:$4 sm:$0xff]   ;;  %745 = vmatprep.subr.bf16.mxu1 %v1291_v2  ;;  %v1295_v5 = vld [vmem:[%s1957_s0 + $0x64] ss:$48 sps:$4 sm:$0xff]   ;;  %v1297_v6 = vld [vmem:[%s1957_s0 + $0x6c] ss:$48 sps:$4 sm:$0xff]  }
   0x3   :  { %693 = vmatpush1.bf16.msra.mxu0 %v1293_v3  ;;  %746 = vmatpush1.bf16.msra.mxu1 %v1294_v4  ;;  %v1299_v7 = vld [vmem:[%s1957_s0 + $0x60] ss:$48 sps:$4 sm:$0xff]   ;;  %v1300_v8 = vld [vmem:[%s1957_s0 + $0x68] ss:$48 sps:$4 sm:$0xff]   ;;  %v1301_v9 = vld [vmem:[%s1957_s0 + $0xc4] ss:$48 sps:$4 sm:$0xff]  }
   0x4   :  { %694 = vmatprep.subr.bf16.mxu0 %v1295_v5  ;;  %747 = vmatprep.subr.bf16.mxu1 %v1297_v6  ;;  %v1303_v10 = vld [vmem:[%s1957_s0 + $0xcc] ss:$48 sps:$4 sm:$0xff]   ;;  %v1305_v11 = vld [vmem:[%s1957_s0 + $0xc0] ss:$48 sps:$4 sm:$0xff]   ;;  %v1306_v12 = vld [vmem:[%s1957_s0 + $0xc8] ss:$48 sps:$4 sm:$0xff]  }
   0x5   :  { %v1307_v13 = vld [vmem:[%s1957_s0 + $0x124] ss:$48 sps:$4 sm:$0xff]   ;;  %v1309_v14 = vld [vmem:[%s1957_s0 + $0x12c] ss:$48 sps:$4 sm:$0xff]   ;;  %v1311_v15 = vld [vmem:[%s1957_s0 + $0x120] ss:$48 sps:$4 sm:$0xff]  }
   0x6   :  { %v1312_v16 = vld [vmem:[%s1957_s0 + $0x128] ss:$48 sps:$4 sm:$0xff]   ;;  %v1313_v17 = vld [vmem:[%s1957_s0 + $0x184] ss:$48 sps:$4 sm:$0xff]   ;;  %v1315_v18 = vld [vmem:[%s1957_s0 + $0x18c] ss:$48 sps:$4 sm:$0xff]  }
   0x7   :  { %695 = vmatpush1.bf16.msra.mxu0 %v1299_v7  ;;  %748 = vmatpush1.bf16.msra.mxu1 %v1300_v8  ;;  %v1317_v19 = vld [vmem:[%s1957_s0 + $0x180] ss:$48 sps:$4 sm:$0xff]   ;;  %v1318_v20 = vld [vmem:[%s1957_s0 + $0x188] ss:$48 sps:$4 sm:$0xff]   ;;  %v1319_v21 = vld [vmem:[%s1957_s0 + $0x1e4] ss:$48 sps:$4 sm:$0xff]  }
   0x8   :  { %696 = vmatprep.subr.bf16.mxu0 %v1301_v9  ;;  %749 = vmatprep.subr.bf16.mxu1 %v1303_v10  ;;  %v1321_v22 = vld [vmem:[%s1957_s0 + $0x1ec] ss:$48 sps:$4 sm:$0xff]   ;;  %v1323_v23 = vld [vmem:[%s1957_s0 + $0x1e0] ss:$48 sps:$4 sm:$0xff]   ;;  %v1324_v24 = vld [vmem:[%s1957_s0 + $0x1e8] ss:$48 sps:$4 sm:$0xff]  }
   0x9   :  { %v1325_v25 = vld [vmem:[%s1957_s0 + $0x244] ss:$48 sps:$4 sm:$0xff]   ;;  %v1327_v26 = vld [vmem:[%s1957_s0 + $0x24c] ss:$48 sps:$4 sm:$0xff]   ;;  %v1329_v27 = vld [vmem:[%s1957_s0 + $0x240] ss:$48 sps:$4 sm:$0xff]  }
   0xa   :  { %v1330_v28 = vld [vmem:[%s1957_s0 + $0x248] ss:$48 sps:$4 sm:$0xff]   ;;  %v1331_v29 = vld [vmem:[%s1957_s0 + $0x2a4] ss:$48 sps:$4 sm:$0xff]   ;;  %v1333_v31 = vld [vmem:[%s1957_s0 + $0x2ac] ss:$48 sps:$4 sm:$0xff]  }
   0xb   :  { %697 = vmatpush1.bf16.msra.mxu0 %v1305_v11  ;;  %750 = vmatpush1.bf16.msra.mxu1 %v1306_v12  ;;  %v1568_v30 = vld [vmem:[%s1958_s1 + $0x4] ss:$8 sps:$4 sm:$0xff]   ;;  %v1335_v32 = vld [vmem:[%s1957_s0 + $0x2a0] ss:$48 sps:$4 sm:$0xff]   ;;  %v1336_v33 = vld [vmem:[%s1957_s0 + $0x2a8] ss:$48 sps:$4 sm:$0xff]  }
   0xc   :  { %698 = vmatprep.subr.bf16.mxu0 %v1307_v13  ;;  %751 = vmatprep.subr.bf16.mxu1 %v1309_v14  ;;  %v1337_v34 = vld [vmem:[%s1957_s0 + $0x304] ss:$48 sps:$4 sm:$0xff]   ;;  %v1339_v35 = vld [vmem:[%s1957_s0 + $0x30c] ss:$48 sps:$4 sm:$0xff]   ;;  %v1341_v36 = vld [vmem:[%s1957_s0 + $0x300] ss:$48 sps:$4 sm:$0xff]  }
   0xd   :  { %1258 = vmatprep.mubr.msk.bf16.mxu0 %vm685_vm0, %v1568_v30  ;;  %1260 = vmatprep.mubr.msk.bf16.mxu1 %vm685_vm0, %v1568_v30  ;;  %v1342_v37 = vld [vmem:[%s1957_s0 + $0x308] ss:$48 sps:$4 sm:$0xff]   ;;  %v1348_v38 = vld [vmem:[%s1957_s0 + $0x14] ss:$48 sps:$4 sm:$0xff]   ;;  %v1351_v39 = vld [vmem:[%s1957_s0 + $0x1c] ss:$48 sps:$4 sm:$0xff]  }
   0xe   :  { %v1604_v40 = vld [vmem:[%s1958_s1] ss:$8 sps:$4 sm:$0xff]   ;;  %v1354_v43 = vld [vmem:[%s1957_s0 + $0x74] ss:$48 sps:$4 sm:$0xff]   ;;  %v1357_v44 = vld [vmem:[%s1957_s0 + $0x7c] ss:$48 sps:$4 sm:$0xff]  }
   0xf   :  { %699 = vmatpush1.bf16.msra.mxu0 %v1311_v15  ;;  %752 = vmatpush1.bf16.msra.mxu1 %v1312_v16  ;;  %v1346_v41 = vld [vmem:[%s1957_s0 + $0x10] ss:$48 sps:$4 sm:$0xff]   ;;  %v1349_v42 = vld [vmem:[%s1957_s0 + $0x18] ss:$48 sps:$4 sm:$0xff]   ;;  %v1360_v47 = vld [vmem:[%s1957_s0 + $0xd4] ss:$48 sps:$4 sm:$0xff]  }
  0x10   :  { %700 = vmatprep.subr.bf16.mxu0 %v1313_v17  ;;  %753 = vmatprep.subr.bf16.mxu1 %v1315_v18  ;;  %v1352_v45 = vld [vmem:[%s1957_s0 + $0x70] ss:$48 sps:$4 sm:$0xff]   ;;  %v1355_v46 = vld [vmem:[%s1957_s0 + $0x78] ss:$48 sps:$4 sm:$0xff]   ;;  %v1363_v48 = vld [vmem:[%s1957_s0 + $0xdc] ss:$48 sps:$4 sm:$0xff]  }
  0x11   :  { %v1358_v49 = vld [vmem:[%s1957_s0 + $0xd0] ss:$48 sps:$4 sm:$0xff]   ;;  %v1361_v50 = vld [vmem:[%s1957_s0 + $0xd8] ss:$48 sps:$4 sm:$0xff]   ;;  %v1366_v51 = vld [vmem:[%s1957_s0 + $0x134] ss:$48 sps:$4 sm:$0xff]  }
  0x12   :  { %v1369_v52 = vld [vmem:[%s1957_s0 + $0x13c] ss:$48 sps:$4 sm:$0xff]   ;;  %v1652_v54 = vld [vmem:[%s1958_s1 + $0x10] ss:$8 sps:$4 sm:$0xff]   ;;  %v1372_v57 = vld [vmem:[%s1957_s0 + $0x194] ss:$48 sps:$4 sm:$0xff]  }
  0x13   :  { %701 = vmatpush1.bf16.msra.mxu0 %v1317_v19  ;;  %754 = vmatpush1.bf16.msra.mxu1 %v1318_v20  ;;  %v1647_v53 = vld [vmem:[%s1958_s1 + $0x14] ss:$8 sps:$4 sm:$0xff]   ;;  %v1364_v55 = vld [vmem:[%s1957_s0 + $0x130] ss:$48 sps:$4 sm:$0xff]   ;;  %v1367_v56 = vld [vmem:[%s1957_s0 + $0x138] ss:$48 sps:$4 sm:$0xff]  }
  0x14   :  { %702 = vmatprep.subr.bf16.mxu0 %v1319_v21  ;;  %755 = vmatprep.subr.bf16.mxu1 %v1321_v22  ;;  %v1375_v58 = vld [vmem:[%s1957_s0 + $0x19c] ss:$48 sps:$4 sm:$0xff]   ;;  %v1370_v59 = vld [vmem:[%s1957_s0 + $0x190] ss:$48 sps:$4 sm:$0xff]   ;;  %v1373_v60 = vld [vmem:[%s1957_s0 + $0x198] ss:$48 sps:$4 sm:$0xff]  }
  0x15   :  { %v1378_v61 = vld [vmem:[%s1957_s0 + $0x1f4] ss:$48 sps:$4 sm:$0xff]   ;;  %v1381_v62 = vld [vmem:[%s1957_s0 + $0x1fc] ss:$48 sps:$4 sm:$0xff]   ;;  %v1376_v63 = vld [vmem:[%s1957_s0 + $0x1f0] ss:$48 sps:$4 sm:$0xff]  }
  0x16   :  { %v1379_v0 = vld [vmem:[%s1957_s0 + $0x1f8] ss:$48 sps:$4 sm:$0xff]   ;;  %v1384_v1 = vld [vmem:[%s1957_s0 + $0x254] ss:$48 sps:$4 sm:$0xff]   ;;  %v1387_v2 = vld [vmem:[%s1957_s0 + $0x25c] ss:$48 sps:$4 sm:$0xff]  }
  0x17   :  { %703 = vmatpush1.bf16.msra.mxu0 %v1323_v23  ;;  %756 = vmatpush1.bf16.msra.mxu1 %v1324_v24  ;;  %v1382_v3 = vld [vmem:[%s1957_s0 + $0x250] ss:$48 sps:$4 sm:$0xff]   ;;  %v1385_v4 = vld [vmem:[%s1957_s0 + $0x258] ss:$48 sps:$4 sm:$0xff]   ;;  %v1393_v5 = vld [vmem:[%s1957_s0 + $0x2b4] ss:$48 sps:$4 sm:$0xff]  }
  0x18   :  { %704 = vmatprep.subr.bf16.mxu0 %v1325_v25  ;;  %757 = vmatprep.subr.bf16.mxu1 %v1327_v26  ;;  %v1396_v6 = vld [vmem:[%s1957_s0 + $0x2bc] ss:$48 sps:$4 sm:$0xff]   ;;  %v1391_v7 = vld [vmem:[%s1957_s0 + $0x2b0] ss:$48 sps:$4 sm:$0xff]   ;;  %v1394_v8 = vld [vmem:[%s1957_s0 + $0x2b8] ss:$48 sps:$4 sm:$0xff]  }
  0x19   :  { %v1399_v9 = vld [vmem:[%s1957_s0 + $0x314] ss:$48 sps:$4 sm:$0xff]   ;;  %v1402_v10 = vld [vmem:[%s1957_s0 + $0x31c] ss:$48 sps:$4 sm:$0xff]   ;;  %v1397_v11 = vld [vmem:[%s1957_s0 + $0x310] ss:$48 sps:$4 sm:$0xff]  }
  0x1a   :  { %v1400_v12 = vld [vmem:[%s1957_s0 + $0x318] ss:$48 sps:$4 sm:$0xff]   ;;  %v1405_v13 = vld [vmem:[%s1957_s0 + $0x24] ss:$48 sps:$4 sm:$0xff]   ;;  %v1408_v14 = vld [vmem:[%s1957_s0 + $0x2c] ss:$48 sps:$4 sm:$0xff]  }
  0x1b   :  { %705 = vmatpush1.bf16.msra.mxu0 %v1329_v27  ;;  %758 = vmatpush1.bf16.msra.mxu1 %v1330_v28  ;;  %v1403_v15 = vld [vmem:[%s1957_s0 + $0x20] ss:$48 sps:$4 sm:$0xff]   ;;  %v1406_v16 = vld [vmem:[%s1957_s0 + $0x28] ss:$48 sps:$4 sm:$0xff]   ;;  %v1411_v17 = vld [vmem:[%s1957_s0 + $0x84] ss:$48 sps:$4 sm:$0xff]  }
  0x1c   :  { %706 = vmatprep.subr.bf16.mxu0 %v1331_v29  ;;  %759 = vmatprep.subr.bf16.mxu1 %v1333_v31  ;;  %v1414_v18 = vld [vmem:[%s1957_s0 + $0x8c] ss:$48 sps:$4 sm:$0xff]   ;;  %v1409_v19 = vld [vmem:[%s1957_s0 + $0x80] ss:$48 sps:$4 sm:$0xff]   ;;  %v1412_v20 = vld [vmem:[%s1957_s0 + $0x88] ss:$48 sps:$4 sm:$0xff]  }
  0x1d   :  { %v1046_v21 = vld [vmem:[%s1959_s2] sm:$0xff]  ;;  %v1048_v22 = vld [vmem:[%s1959_s2 + $0x10] sm:$0xff]  ;;  %v1420_v24 = vld [vmem:[%s1957_s0 + $0xec] ss:$48 sps:$4 sm:$0xff]  }
  0x1e   :  { %v1417_v23 = vld [vmem:[%s1957_s0 + $0xe4] ss:$48 sps:$4 sm:$0xff]   ;;  %1052 = vperm.xlu0 %1287, %v1046_v21   ;;  %1062 = vperm.xlu1 %1288, %v1048_v22   ;;  %v1415_v25 = vld [vmem:[%s1957_s0 + $0xe0] ss:$48 sps:$4 sm:$0xff]   ;;  %v1418_v26 = vld [vmem:[%s1957_s0 + $0xe8] ss:$48 sps:$4 sm:$0xff]  }
  0x1f   :  { %707 = vmatpush1.bf16.msra.mxu0 %v1335_v32  ;;  %760 = vmatpush1.bf16.msra.mxu1 %v1336_v33  ;;  %v1423_v27 = vld [vmem:[%s1957_s0 + $0x144] ss:$48 sps:$4 sm:$0xff]   ;;  %v1426_v28 = vld [vmem:[%s1957_s0 + $0x14c] ss:$48 sps:$4 sm:$0xff]   ;;  %v1421_v29 = vld [vmem:[%s1957_s0 + $0x140] ss:$48 sps:$4 sm:$0xff]  }
  0x20   :  { %708 = vmatprep.subr.bf16.mxu0 %v1337_v34  ;;  %761 = vmatprep.subr.bf16.mxu1 %v1339_v35  ;;  %v1424_v31 = vld [vmem:[%s1957_s0 + $0x148] ss:$48 sps:$4 sm:$0xff]   ;;  %v1429_v34 = vld [vmem:[%s1957_s0 + $0x1a4] ss:$48 sps:$4 sm:$0xff]   ;;  %v1432_v35 = vld [vmem:[%s1957_s0 + $0x1ac] ss:$48 sps:$4 sm:$0xff]  }
  0x21   :  { %v1047_v32 = vld [vmem:[%s1959_s2 + $0x8] sm:$0xff]  ;;  %v1049_v33 = vld [vmem:[%s1959_s2 + $0x18] sm:$0xff] }
  0x22   :  { %1057 = vperm.xlu0 %1287, %v1047_v32   ;;  %1067 = vperm.xlu1 %1288, %v1049_v33  }
  0x23   :  { %709 = vmatpush1.bf16.msra.mxu0 %v1341_v36  ;;  %762 = vmatpush1.bf16.msra.mxu1 %v1342_v37  ;;  %v1427_v36 = vld [vmem:[%s1957_s0 + $0x1a0] ss:$48 sps:$4 sm:$0xff]   ;;  %v1430_v37 = vld [vmem:[%s1957_s0 + $0x1a8] ss:$48 sps:$4 sm:$0xff]  }
  0x24   :  { %798 = vmatprep.subr.bf16.mxu0 %v1348_v38  ;;  %851 = vmatprep.subr.bf16.mxu1 %v1351_v39  ;;  %v1435_v38 = vld [vmem:[%s1957_s0 + $0x204] ss:$48 sps:$4 sm:$0xff]   ;;  %v1433_v39 = vld [vmem:[%s1957_s0 + $0x200] ss:$48 sps:$4 sm:$0xff]  }
  0x26   :  { %725 = vmatmul.mubr.bf16.vlgmr.msra.gmra.mrb[0].mxu0 %v1604_v40  ;;  %778 = vmatmul.mubr.bf16.vlgmr.msra.gmra.mrb[0].mxu1 %v1604_v40 }
  0x27   :  { %799 = vmatpush1.bf16.msra.mxu0 %v1346_v41  ;;  %852 = vmatpush1.bf16.msra.mxu1 %v1349_v42  ;;  %v1436_v41 = vld [vmem:[%s1957_s0 + $0x208] ss:$48 sps:$4 sm:$0xff]   ;;  %v1441_v42 = vld [vmem:[%s1957_s0 + $0x264] ss:$48 sps:$4 sm:$0xff]  }
  0x28   :  { %800 = vmatprep.subr.bf16.mxu0 %v1354_v43  ;;  %853 = vmatprep.subr.bf16.mxu1 %v1357_v44  ;;  %v1444_v43 = vld [vmem:[%s1957_s0 + $0x26c] ss:$48 sps:$4 sm:$0xff]   ;;  %v1439_v44 = vld [vmem:[%s1957_s0 + $0x260] ss:$48 sps:$4 sm:$0xff]  }
  0x29   :  { %1259 = vmatprep.mubr.msk.bf16.mxu0 %vm685_vm0, %v1647_v53  ;;  %1261 = vmatprep.mubr.msk.bf16.mxu1 %vm685_vm0, %v1647_v53 }
  0x2b   :  { %801 = vmatpush1.bf16.msra.mxu0 %v1352_v45  ;;  %854 = vmatpush1.bf16.msra.mxu1 %v1355_v46  ;;  %v1442_v45 = vld [vmem:[%s1957_s0 + $0x268] ss:$48 sps:$4 sm:$0xff]   ;;  %v1447_v46 = vld [vmem:[%s1957_s0 + $0x2c4] ss:$48 sps:$4 sm:$0xff]  }
  0x2c   :  { %802 = vmatprep.subr.bf16.mxu0 %v1360_v47  ;;  %855 = vmatprep.subr.bf16.mxu1 %v1363_v48  ;;  %v1450_v47 = vld [vmem:[%s1957_s0 + $0x2cc] ss:$48 sps:$4 sm:$0xff]   ;;  %v1445_v48 = vld [vmem:[%s1957_s0 + $0x2c0] ss:$48 sps:$4 sm:$0xff]  }
  0x2e   :  { %735 = vmatmul.mubr.bf16.gmra.mrb[4].mxu0 %v1652_v54  ;;  %788 = vmatmul.mubr.bf16.gmra.mrb[4].mxu1 %v1652_v54 }
  0x2f   :  { %803 = vmatpush1.bf16.msra.mxu0 %v1358_v49  ;;  %856 = vmatpush1.bf16.msra.mxu1 %v1361_v50  ;;  %v1448_v49 = vld [vmem:[%s1957_s0 + $0x2c8] ss:$48 sps:$4 sm:$0xff]   ;;  %v1453_v50 = vld [vmem:[%s1957_s0 + $0x324] ss:$48 sps:$4 sm:$0xff]  }
  0x30   :  { %804 = vmatprep.subr.bf16.mxu0 %v1366_v51  ;;  %857 = vmatprep.subr.bf16.mxu1 %v1369_v52  ;;  %v1456_v51 = vld [vmem:[%s1957_s0 + $0x32c] ss:$48 sps:$4 sm:$0xff]   ;;  %v1451_v52 = vld [vmem:[%s1957_s0 + $0x320] ss:$48 sps:$4 sm:$0xff]  }
  0x31   :  { %1262 = vmatprep.mubr.msk.bf16.mxu0 %vm685_vm0, %v1568_v30  ;;  %1264 = vmatprep.mubr.msk.bf16.mxu1 %vm685_vm0, %v1568_v30 }
  0x33   :  { %805 = vmatpush1.bf16.msra.mxu0 %v1364_v55  ;;  %858 = vmatpush1.bf16.msra.mxu1 %v1367_v56  ;;  %v1454_v55 = vld [vmem:[%s1957_s0 + $0x328] ss:$48 sps:$4 sm:$0xff]  }
  0x34   :  { %806 = vmatprep.subr.bf16.mxu0 %v1372_v57  ;;  %859 = vmatprep.subr.bf16.mxu1 %v1375_v58 }
  0x37   :  { %807 = vmatpush1.bf16.msra.mxu0 %v1370_v59  ;;  %860 = vmatpush1.bf16.msra.mxu1 %v1373_v60 }
  0x38   :  { %808 = vmatprep.subr.bf16.mxu0 %v1378_v61  ;;  %861 = vmatprep.subr.bf16.mxu1 %v1381_v62 }
  0x3b   :  { %809 = vmatpush1.bf16.msra.mxu0 %v1376_v63  ;;  %862 = vmatpush1.bf16.msra.mxu1 %v1379_v0 }
  0x3c   :  { %810 = vmatprep.subr.bf16.mxu0 %v1384_v1  ;;  %863 = vmatprep.subr.bf16.mxu1 %v1387_v2 }
  0x3f   :  { %811 = vmatpush1.bf16.msra.mxu0 %v1382_v3  ;;  %864 = vmatpush1.bf16.msra.mxu1 %v1385_v4 }
  0x40   :  { %812 = vmatprep.subr.bf16.mxu0 %v1393_v5  ;;  %865 = vmatprep.subr.bf16.mxu1 %v1396_v6 }
  0x43   :  { %813 = vmatpush1.bf16.msra.mxu0 %v1391_v7  ;;  %866 = vmatpush1.bf16.msra.mxu1 %v1394_v8 }
  0x44   :  { %814 = vmatprep.subr.bf16.mxu0 %v1399_v9  ;;  %867 = vmatprep.subr.bf16.mxu1 %v1402_v10 }
  0x47   :  { %815 = vmatpush1.bf16.msra.mxu0 %v1397_v11  ;;  %868 = vmatpush1.bf16.msra.mxu1 %v1400_v12 }
  0x48   :  { %904 = vmatprep.subr.bf16.mxu0 %v1405_v13  ;;  %957 = vmatprep.subr.bf16.mxu1 %v1408_v14 }
  0x4a   :  { %831 = vmatmul.mubr.bf16.vlgmr.msra.gmra.mrb[8].mxu0 %v1604_v40  ;;  %884 = vmatmul.mubr.bf16.vlgmr.msra.gmra.mrb[8].mxu1 %v1604_v40 }
  0x4b   :  { %905 = vmatpush1.bf16.msra.mxu0 %v1403_v15  ;;  %958 = vmatpush1.bf16.msra.mxu1 %v1406_v16 }
  0x4c   :  { %906 = vmatprep.subr.bf16.mxu0 %v1411_v17  ;;  %959 = vmatprep.subr.bf16.mxu1 %v1414_v18 }
  0x4d   :  { %1263 = vmatprep.mubr.msk.bf16.mxu0 %vm685_vm0, %v1647_v53  ;;  %1265 = vmatprep.mubr.msk.bf16.mxu1 %vm685_vm0, %v1647_v53 }
  0x4f   :  { %907 = vmatpush1.bf16.msra.mxu0 %v1409_v19  ;;  %960 = vmatpush1.bf16.msra.mxu1 %v1412_v20 }
  0x50   :  { %908 = vmatprep.subr.bf16.mxu0 %v1417_v23  ;;  %961 = vmatprep.subr.bf16.mxu1 %v1420_v24 }
  0x52   :  { %841 = vmatmul.mubr.bf16.gmra.mrb[12].mxu0 %v1652_v54  ;;  %894 = vmatmul.mubr.bf16.gmra.mrb[12].mxu1 %v1652_v54 }
  0x53   :  { %909 = vmatpush1.bf16.msra.mxu0 %v1415_v25  ;;  %962 = vmatpush1.bf16.msra.mxu1 %v1418_v26 }
  0x54   :  { %910 = vmatprep.subr.bf16.mxu0 %v1423_v27  ;;  %963 = vmatprep.subr.bf16.mxu1 %v1426_v28 }
  0x55   :  { %1266 = vmatprep.mubr.msk.bf16.mxu0 %vm685_vm0, %v1568_v30  ;;  %1268 = vmatprep.mubr.msk.bf16.mxu1 %vm685_vm0, %v1568_v30  ;;  %v1438_v30 = vld [vmem:[%s1957_s0 + $0x20c] ss:$48 sps:$4 sm:$0xff]  }
  0x57   :  { %911 = vmatpush1.bf16.msra.mxu0 %v1421_v29  ;;  %964 = vmatpush1.bf16.msra.mxu1 %v1424_v31 }
  0x58   :  { %912 = vmatprep.subr.bf16.mxu0 %v1429_v34  ;;  %965 = vmatprep.subr.bf16.mxu1 %v1432_v35 }
  0x5b   :  { %913 = vmatpush1.bf16.msra.mxu0 %v1427_v36  ;;  %966 = vmatpush1.bf16.msra.mxu1 %v1430_v37 }
  0x5c   :  { %914 = vmatprep.subr.bf16.mxu0 %v1435_v38  ;;  %967 = vmatprep.subr.bf16.mxu1 %v1438_v30 }
  0x5f   :  { %915 = vmatpush1.bf16.msra.mxu0 %v1433_v39  ;;  %968 = vmatpush1.bf16.msra.mxu1 %v1436_v41 }
  0x60   :  { %916 = vmatprep.subr.bf16.mxu0 %v1441_v42  ;;  %969 = vmatprep.subr.bf16.mxu1 %v1444_v43 }
  0x63   :  { %917 = vmatpush1.bf16.msra.mxu0 %v1439_v44  ;;  %970 = vmatpush1.bf16.msra.mxu1 %v1442_v45 }
  0x64   :  { %918 = vmatprep.subr.bf16.mxu0 %v1447_v46  ;;  %971 = vmatprep.subr.bf16.mxu1 %v1450_v47 }
  0x67   :  { %919 = vmatpush1.bf16.msra.mxu0 %v1445_v48  ;;  %972 = vmatpush1.bf16.msra.mxu1 %v1448_v49 }
  0x68   :  { %920 = vmatprep.subr.bf16.mxu0 %v1453_v50  ;;  %973 = vmatprep.subr.bf16.mxu1 %v1456_v51 }
  0x6b   :  { %921 = vmatpush1.bf16.msra.mxu0 %v1451_v52  ;;  %974 = vmatpush1.bf16.msra.mxu1 %v1454_v55 }
  0x6e   :  { %937 = vmatmul.mubr.bf16.vlgmr.msra.gmra.mrb[16].mxu0 %v1604_v40  ;;  %990 = vmatmul.mubr.bf16.vlgmr.msra.gmra.mrb[16].mxu1 %v1604_v40 }
  0x6f   :  { %1267 = vmatprep.mubr.msk.bf16.mxu0 %vm685_vm0, %v1647_v53  ;;  %1269 = vmatprep.mubr.msk.bf16.mxu1 %vm685_vm0, %v1647_v53 }
  0x76   :  { %947 = vmatmul.mubr.bf16.gmra.mrb[20].mxu0 %v1652_v54  ;;  %1000 = vmatmul.mubr.bf16.gmra.mrb[20].mxu1 %v1652_v54 }
  0x9d   :  { %v1053_v34 = vpop.permute.xlu0 %1052 }
  0xa1   :  { %v1058_v52 = vpop.permute.xlu0 %1057 }
  0xf9   :  { %v726_v56 = vpop.f32.mrb[0].mxu0  ;;  %v779_v57 = vpop.f32.mrb[0].mxu1 }
  0xfa   :  { %v728_v58 = vpop.f32.mrb[1].mxu0  ;;  %v781_v59 = vpop.f32.mrb[1].mxu1 }
  0xfb   :  { %v1010_v60 = vmax.f32 %v726_v56, %v781_v59  ;;  %v1870_v61 = vpop.f32.mrb[2].mxu0  ;;  %v1872_v62 = vpop.f32.mrb[2].mxu1 }
  0xfc   :  { %v732_v40 = vpop.f32.mrb[3].mxu0  ;;  %v785_v63 = vpop.f32.mrb[3].mxu1 }
  0xfd   :  { %v1013_v0 = vmax.f32 %v1870_v61, %v785_v63  ;;  %v1063_v63 = vpop.permute.xlu1 %1062 }
 0x101   :  { %v1875_v1 = vpop.f32.mrb[4].mxu0  ;;  %v1877_v53 = vpop.f32.mrb[4].mxu1 }
 0x102   :  { %v1879_v2 = vpop.f32.mrb[5].mxu0  ;;  %v1881_v54 = vpop.f32.mrb[5].mxu1 }
 0x103   :  { %v1016_v3 = vmax.f32 %v1875_v1, %v1881_v54  ;;  %v1885_v4 = vpop.f32.mrb[6].mxu0  ;;  %v1887_v5 = vpop.f32.mrb[6].mxu1 }
 0x104   :  { %v1889_v6 = vpop.f32.mrb[7].mxu0  ;;  %v1891_v7 = vpop.f32.mrb[7].mxu1 }
 0x105   :  { %v1019_v8 = vmax.f32 %v1885_v4, %v1891_v7 }
 0x11d   :  { %v832_v9 = vpop.f32.mrb[8].mxu0  ;;  %v885_v10 = vpop.f32.mrb[8].mxu1 }
 0x11e   :  { %v1011_v11 = vmax.f32 %v728_v58, %v832_v9  ;;  %v834_v12 = vpop.f32.mrb[9].mxu0  ;;  %v887_v13 = vpop.f32.mrb[9].mxu1 }
 0x11f   :  { %v1012_v14 = vmax.f32 %v779_v57, %v834_v12  ;;  %v836_v15 = vpop.f32.mrb[10].mxu0  ;;  %v889_v16 = vpop.f32.mrb[10].mxu1 }
 0x120   :  { %v1014_v17 = vmax.f32 %v732_v40, %v836_v15  ;;  %v838_v18 = vpop.f32.mrb[11].mxu0  ;;  %v891_v19 = vpop.f32.mrb[11].mxu1 }
 0x121   :  { %v1015_v20 = vmax.f32 %v1872_v62, %v838_v18 }
 0x125   :  { %v842_v21 = vpop.f32.mrb[12].mxu0  ;;  %v1896_v22 = vpop.f32.mrb[12].mxu1 }
 0x126   :  { %v1017_v23 = vmax.f32 %v1879_v2, %v842_v21  ;;  %v1899_v24 = vpop.f32.mrb[13].mxu0  ;;  %v897_v25 = vpop.f32.mrb[13].mxu1 }
 0x127   :  { %v1018_v26 = vmax.f32 %v1877_v53, %v1899_v24  ;;  %v1903_v27 = vpop.f32.mrb[14].mxu0  ;;  %v1905_v28 = vpop.f32.mrb[14].mxu1 }
 0x128   :  { %v1020_v29 = vmax.f32 %v1889_v6, %v1903_v27  ;;  %v1909_v31 = vpop.f32.mrb[15].mxu0  ;;  %v1911_v32 = vpop.f32.mrb[15].mxu1 }
 0x129   :  { %v1021_v33 = vmax.f32 %v1887_v5, %v1909_v31 }
 0x141   :  { %v938_v35 = vpop.f32.mrb[16].mxu0  ;;  %v991_v36 = vpop.f32.mrb[16].mxu1 }
 0x142   :  { %v1023_v37 = vmax.f32 %v887_v13, %v991_v36  ;;  %v940_v38 = vpop.f32.mrb[17].mxu0  ;;  %v993_v30 = vpop.f32.mrb[17].mxu1 }
 0x143   :  { %v1022_v39 = vmax.f32 %v885_v10, %v940_v38  ;;  %v1024_v41 = vmax.f32 %v938_v35, %v993_v30  ;;  %v942_v42 = vpop.f32.mrb[18].mxu0  ;;  %v995_v43 = vpop.f32.mrb[18].mxu1 }
 0x144   :  { %v1035_v44 = vmax.f32 %v1011_v11, %v1023_v37  ;;  %v1026_v45 = vmax.f32 %v891_v19, %v995_v43  ;;  %v944_v46 = vpop.f32.mrb[19].mxu0  ;;  %v997_v47 = vpop.f32.mrb[19].mxu1 }
 0x145   :  { %v1034_v48 = vmax.f32 %v1010_v60, %v1022_v39  ;;  %v1036_v49 = vmax.f32 %v1012_v14, %v1024_v41  ;;  %v1025_v50 = vmax.f32 %v889_v16, %v944_v46  ;;  %v1027_v51 = vmax.f32 %v942_v42, %v997_v47 }
 0x146   :  { %v1071_v55 = vadd.f32 %v1053_v34, %v1035_v44  ;;  %v1038_v56 = vmax.f32 %v1014_v17, %v1026_v45 }
 0x147   :  { %v1070_v57 = vadd.f32 %v1053_v34, %v1034_v48  ;;  %v1072_v58 = vadd.f32 %v1053_v34, %v1036_v49  ;;  %v1037_v59 = vmax.f32 %v1013_v0, %v1025_v50  ;;  %v1039_v61 = vmax.f32 %v1015_v20, %v1027_v51 }
 0x148   :  { %v1083_v62 = vmax.f32 %v1071_v55, 0.0  ;;  %v1074_v40 = vadd.f32 %v1058_v52, %v1038_v56 }
 0x149   :  { %v1082_v2 = vmax.f32 %v1070_v57, 0.0  ;;  %v1084_v9 = vmax.f32 %v1072_v58, 0.0  ;;  %v1073_v10 = vadd.f32 %v1058_v52, %v1037_v59  ;;  %v1075_v11 = vadd.f32 %v1058_v52, %v1039_v61  ;;  %v948_v12 = vpop.f32.mrb[20].mxu0  ;;  %v1001_v13 = vpop.f32.mrb[20].mxu1 }
 0x14a   :  { %v1086_v60 = vmax.f32 %v1074_v40, 0.0  ;;  %v1029_v14 = vmax.f32 %v897_v25, %v1001_v13  ;;  %v950_v15 = vpop.f32.mrb[21].mxu0  ;;  %v1003_v16 = vpop.f32.mrb[21].mxu1 }
 0x14b   :  { %v1278_v18 = vpack.c.bf16 %v1083_v62, %v1082_v2  ;;  %v1279_v19 = vpack.c.bf16 %v1084_v9, %v1084_v9  ;;  %v1085_v17 = vmax.f32 %v1073_v10, 0.0  ;;  %v1087_v21 = vmax.f32 %v1075_v11, 0.0  ;;  %v952_v34 = vpop.f32.mrb[22].mxu0  ;;  %v1005_v0 = vpop.f32.mrb[22].mxu1 }
 0x14c   :  { %v1041_v20 = vmax.f32 %v1017_v23, %v1029_v14  ;;  %v1028_v35 = vmax.f32 %v1896_v22, %v950_v15  ;;  %v1030_v36 = vmax.f32 %v948_v12, %v1003_v16  ;;  %v1032_v37 = vmax.f32 %v1911_v32, %v1005_v0  ;;  %v954_v38 = vpop.f32.mrb[23].mxu0  ;;  %v1007_v30 = vpop.f32.mrb[23].mxu1 }
 0x14d   :  { %1134 = vst [vmem:[%s1960_s3] sm:$0xff] %v1278_v18  ;;  %1135 = vst [vmem:[%s1960_s3 + $0x8] sm:$0xf] %v1279_v19  ;;  %v1280_v25 = vpack.c.bf16 %v1086_v60, %v1085_v17  ;;  %v1281_v39 = vpack.c.bf16 %v1087_v21, %v1087_v21  ;;  %v1031_v41 = vmax.f32 %v1905_v28, %v954_v38  ;;  %v1068_v28 = vpop.permute.xlu1 %1067 }
 0x14e   :  { %v1033_v23 = vmax.f32 %v952_v34, %v1007_v30  ;;  %v1077_v42 = vadd.f32 %v1063_v63, %v1041_v20  ;;  %v1040_v22 = vmax.f32 %v1016_v3, %v1028_v35  ;;  %v1042_v32 = vmax.f32 %v1018_v26, %v1030_v36 }
 0x14f   :  { %v1044_v43 = vmax.f32 %v1020_v29, %v1032_v37  ;;  %1136 = vst [vmem:[%s1960_s3 + $0xc] sm:$0xff] %v1280_v25  ;;  %1137 = vst [vmem:[%s1960_s3 + $0x14] sm:$0xf] %v1281_v39  ;;  %v1043_v1 = vmax.f32 %v1019_v8, %v1031_v41 }
 0x150   :  { %v1045_v53 = vmax.f32 %v1021_v33, %v1033_v23  ;;  %v1089_v54 = vmax.f32 %v1077_v42, 0.0  ;;  %v1076_v3 = vadd.f32 %v1063_v63, %v1040_v22  ;;  %v1078_v6 = vadd.f32 %v1063_v63, %v1042_v32 }
 0x151   :  { %v1080_v24 = vadd.f32 %v1068_v28, %v1044_v43  ;;  %v1079_v26 = vadd.f32 %v1068_v28, %v1043_v1 }
 0x152   :  { %v1081_v27 = vadd.f32 %v1068_v28, %v1045_v53  ;;  %v1088_v29 = vmax.f32 %v1076_v3, 0.0  ;;  %v1090_v44 = vmax.f32 %v1078_v6, 0.0 }
 0x153   :  { %v1092_v45 = vmax.f32 %v1080_v24, 0.0  ;;  %v1091_v46 = vmax.f32 %v1079_v26, 0.0 }
 0x154   :  { %v1093_v47 = vmax.f32 %v1081_v27, 0.0  ;;  %v1282_v48 = vpack.c.bf16 %v1089_v54, %v1088_v29  ;;  %v1283_v49 = vpack.c.bf16 %v1090_v44, %v1090_v44 }
 0x155   :  { %v1284_v50 = vpack.c.bf16 %v1092_v45, %v1091_v46 }
 0x156   :  { %v1285_v4 = vpack.c.bf16 %v1093_v47, %v1093_v47  ;;  %1138 = vst [vmem:[%s1960_s3 + $0x18] sm:$0xff] %v1282_v48  ;;  %1139 = vst [vmem:[%s1960_s3 + $0x20] sm:$0xf] %v1283_v49 }
 0x157   :  { %1140 = vst [vmem:[%s1960_s3 + $0x24] sm:$0xff] %v1284_v50 }
 0x158   :  { %1141 = vst [vmem:[%s1960_s3 + $0x2c] sm:$0xf] %v1285_v4 }

// kernel: cnn_forward.5
= control target key start
LH: loop header
LB: loop body
LE: loop exit
PB: predicated region body
PF: predicated region fallthrough
CT: control target
= control target key end

     0   :  { %vm203_vm0 = vcmask 261120   ;;  %s2957_s0 = inlined_call_operand.vmem [shape: bf16[4,18,288], index: 0, kind: input, shape index: {}]   ;;  %s2958_s1 = inlined_call_operand.vmem [shape: bf16[288,64], index: 1, kind: input, shape index: {}]   ;;  %s2959_s2 = inlined_call_operand.vmem [shape: f32[1,64], index: 2, kind: input, shape index: {}]   ;;  %s2960_s3 = inlined_call_operand.vmem [shape: f32[9,64,10], index: 3, kind: input, shape index: {}]   ;;  %s2961_s4 = inlined_call_operand.vmem [shape: f32[1,10], index: 4, kind: input, shape index: {}]   ;;  %s2962_s5 = inlined_call_operand.vmem [shape: f32[10,6], index: 5, kind: input, shape index: {}]   ;;  %s2963_s6 = inlined_call_operand.vmem [shape: f32[1,6], index: 6, kind: input, shape index: {}]   ;;  %s2964_s7 = inlined_call_operand.hbm [shape: f32[2,6], index: 7, kind: output, shape index: {}]  }
   0x1   :  { %v2390_v0 = vld [vmem:[%s2958_s1 + $0x40] sm:$0xff]   ;;  %v2407_v3 = vld [vmem:[%s2958_s1 + $0x48] sm:$0xff]   ;;  %v2429_v7 = vld [vmem:[%s2958_s1 + $0x50] sm:$0xff]  }
   0x2   :  { %v2395_v1 = vld [vmem:[%s2958_s1 + $0x80] sm:$0xff]   ;;  %1733 = vmatprep.subr.bf16.mxu0 %v2390_v0  ;;  %v2414_v4 = vld [vmem:[%s2958_s1 + $0x88] sm:$0xff]   ;;  %v2439_v9 = vld [vmem:[%s2958_s1 + $0x10] sm:$0xff]  }
   0x3   :  { %v2401_v2 = vld [vmem:[%s2958_s1] sm:$0xff]   ;;  %1945 = vmatprep.subr.bf16.mxu1 %v2395_v1  ;;  %v2420_v5 = vld [vmem:[%s2958_s1 + $0x8] sm:$0xff]   ;;  %v2447_v10 = vld [vmem:[%s2958_s1 + $0x58] sm:$0xff]  }
   0x4   :  { %1734 = vmatpush3.bf16.msra.mxu0 %v2401_v2  ;;  %1946 = vmatpush3.bf16.msra.mxu1 %v2395_v1  ;;  %v2278_v6 = vld [vmem:[%s2957_s0 + $0x8] ss:$12 sps:$4 sm:$0xff]   ;;  %v2280_v8 = vld [vmem:[%s2957_s0 + $0x20] ss:$0 sps:$4 sm:$0x11]   ;;  %v2455_v11 = vld [vmem:[%s2958_s1 + $0x18] sm:$0xff]  }
   0x5   :  { %1735 = vmatprep.subr.bf16.mxu0 %v2407_v3  ;;  %1947 = vmatprep.subr.bf16.mxu1 %v2414_v4  ;;  %v2462_v12 = vld [vmem:[%s2958_s1 + $0x60] sm:$0xff]   ;;  %v2476_v14 = vld [vmem:[%s2958_s1 + $0x68] sm:$0xff]   ;;  %v2493_v17 = vld [vmem:[%s2958_s1 + $0x70] sm:$0xff]  }
   0x6   :  { %1949 = vmatprep.mubr.msk.bf16.mxu1 %vm203_vm0, %v2278_v6  ;;  %v2469_v13 = vld [vmem:[%s2958_s1 + $0x20] sm:$0xff]   ;;  %v2483_v15 = vld [vmem:[%s2958_s1 + $0x28] sm:$0xff]   ;;  %v2503_v19 = vld [vmem:[%s2958_s1 + $0x30] sm:$0xff]  }
   0x7   :  { %v2294_v16 = vld [vmem:[%s2957_s0 + $0x4] ss:$12 sps:$4 sm:$0xff]   ;;  %v2298_v18 = vld [vmem:[%s2957_s0 + $0x28] ss:$12 sps:$4 sm:$0xff]   ;;  %v2510_v20 = vld [vmem:[%s2958_s1 + $0x78] sm:$0xff]  }
   0x8   :  { %1736 = vmatpush3.bf16.msra.mxu0 %v2420_v5  ;;  %1948 = vmatpush3.bf16.msra.mxu1 %v2414_v4  ;;  %v2517_v21 = vld [vmem:[%s2958_s1 + $0x38] sm:$0xff]   ;;  %v2292_v23 = vld [vmem:[%s2957_s0] ss:$12 sps:$4 sm:$0xff]  }
   0x9   :  { %1737 = vmatprep.subr.bf16.mxu0 %v2429_v7  ;;  %1765 = vmatprep.subr.bf16.mxu1 %v2390_v0  ;;  %v68_v22 = vld [vmem:[%s2957_s0 + $0x18] sm:$0x11] }
   0xa   :  { %242 = vmatprep.mubr.bf16.mxu0 %v2294_v16  ;;  %v1591_v24 = vcombine.high %v68_v22, %v68_v22 }
   0xb   :  { %1950 = vmatmul.mubr.msk.bf16.vlgmr.msra.gmra.mrb[0].mxu1 %vm203_vm0, %v2280_v8 }
   0xc   :  { %1738 = vmatpush3.bf16.msra.mxu0 %v2439_v9  ;;  %1766 = vmatpush3.bf16.msra.mxu1 %v2401_v2 }
   0xd   :  { %1739 = vmatprep.subr.bf16.mxu0 %v2447_v10  ;;  %1767 = vmatprep.subr.bf16.mxu1 %v2407_v3 }
   0xe   :  { %376 = vmatprep.mubr.bf16.mxu1 %v2298_v18 }
  0x10   :  { %1740 = vmatpush3.bf16.msra.mxu0 %v2455_v11  ;;  %1768 = vmatpush3.bf16.msra.mxu1 %v2420_v5 }
  0x11   :  { %1741 = vmatprep.subr.bf16.mxu0 %v2462_v12  ;;  %1769 = vmatprep.subr.bf16.mxu1 %v2429_v7 }
  0x14   :  { %1742 = vmatpush3.bf16.msra.mxu0 %v2469_v13  ;;  %1770 = vmatpush3.bf16.msra.mxu1 %v2439_v9 }
  0x15   :  { %1743 = vmatprep.subr.bf16.mxu0 %v2476_v14  ;;  %1771 = vmatprep.subr.bf16.mxu1 %v2447_v10 }
  0x18   :  { %1744 = vmatpush3.bf16.msra.mxu0 %v2483_v15  ;;  %1772 = vmatpush3.bf16.msra.mxu1 %v2455_v11 }
  0x19   :  { %1745 = vmatprep.subr.bf16.mxu0 %v2493_v17  ;;  %1773 = vmatprep.subr.bf16.mxu1 %v2462_v12 }
  0x1c   :  { %1746 = vmatpush3.bf16.msra.mxu0 %v2503_v19  ;;  %1774 = vmatpush3.bf16.msra.mxu1 %v2469_v13 }
  0x1d   :  { %1747 = vmatprep.subr.bf16.mxu0 %v2510_v20  ;;  %1775 = vmatprep.subr.bf16.mxu1 %v2476_v14 }
  0x20   :  { %1748 = vmatpush3.bf16.msra.mxu0 %v2517_v21  ;;  %1776 = vmatpush3.bf16.msra.mxu1 %v2483_v15 }
  0x21   :  { %12 = vsyncpa [#allocation3], 0  ;;  %1777 = vmatprep.subr.bf16.mxu1 %v2493_v17  ;;  %1953 = vmatprep.subr.bf16.mxu0 %v2395_v1  ;;  %v1617_v25 = vld [vmem:[%s2957_s0 + $0x3c] sm:$0x11]  ;;  %v2296_v26 = vld [vmem:[%s2957_s0 + $0x24] ss:$12 sps:$4 sm:$0xff]   ;;  %v1590_v27 = vcombine.low %v68_v22, %v68_v22 }
  0x22   :  { %v1623_v28 = vcombine.high %v1617_v25, %v1617_v25  ;;  %v2301_v29 = vld [vmem:[%s2957_s0 + $0x2c] ss:$12 sps:$4 sm:$0xff]   ;;  %v1622_v30 = vcombine.low %v1617_v25, %v1617_v25  ;;  %v2303_v31 = vld [vmem:[%s2957_s0 + $0x44] ss:$0 sps:$4 sm:$0x11]   ;;  %v2342_v49 = vmov 0.0|0.0  }
  0x23   :  { %243 = vmatmul.mubr.bf16.vlgmr.msra.gmra.mrb[0].mxu0 %v2292_v23  ;;  %v2306_v32 = vld [vmem:[%s2957_s0 + $0x4c] ss:$12 sps:$4 sm:$0xff]   ;;  %v2311_v33 = vld [vmem:[%s2957_s0 + $0x70] ss:$12 sps:$4 sm:$0xff]   ;;  %v1631_v34 = vld [vmem:[%s2957_s0 + $0x60] sm:$0x11] }
  0x24   :  { %1778 = vmatpush3.bf16.msra.mxu1 %v2503_v19  ;;  %250 = vmatprep.mubr.bf16.mxu0 %v1591_v24  ;;  %v2304_v35 = vld [vmem:[%s2957_s0 + $0x48] ss:$12 sps:$4 sm:$0xff]   ;;  %v1637_v36 = vcombine.high %v1631_v34, %v1631_v34  ;;  %v1636_v38 = vcombine.low %v1631_v34, %v1631_v34  ;;  %v2309_v39 = vld [vmem:[%s2957_s0 + $0x6c] ss:$12 sps:$4 sm:$0xff]   ;;  %v2312_v40 = vld [vmem:[%s2957_s0 + $0x50] ss:$12 sps:$4 sm:$0xff]  }
  0x25   :  { %1779 = vmatprep.subr.bf16.mxu1 %v2510_v20  ;;  %1954 = vmatpush3.bf16.msra.mxu0 %v2395_v1  ;;  %v1645_v37 = vld [vmem:[%s2957_s0 + $0x84] sm:$0x11]  ;;  %v2316_v44 = vld [vmem:[%s2957_s0 + $0x74] ss:$12 sps:$4 sm:$0xff]   ;;  %v733_v54 = vld [vmem:[%s2960_s3 + $0x18] sm:$0xff]  ;;  %vm2343_vm1 = vmmov 0  }
  0x26   :  { %1955 = vmatprep.subr.bf16.mxu0 %v2414_v4  ;;  %v1651_v41 = vcombine.high %v1645_v37, %v1645_v37  ;;  %v2313_v42 = vld [vmem:[%s2957_s0 + $0x68] ss:$0 sps:$4 sm:$0x11]   ;;  %v1650_v43 = vcombine.low %v1645_v37, %v1645_v37  ;;  %v2317_v45 = vld [vmem:[%s2957_s0 + $0x8c] ss:$0 sps:$4 sm:$0x11]  }
  0x27   :  { %v730_v46 = vld [vmem:[%s2960_s3] sm:$0xff]  ;;  %v731_v47 = vld [vmem:[%s2960_s3 + $0x8] sm:$0xff]  ;;  %v732_v53 = vld [vmem:[%s2960_s3 + $0x10] sm:$0xff]  ;;  %vm749_vm2 = vcmask 523264   ;;  %vm1497_vm3 = vcmask 1041408   ;;  %vm2345_vm4 = vmmov 1  }
  0x28   :  { %1780 = vmatpush3.bf16.msra.mxu1 %v2517_v21  ;;  %v2168_v48 = vpack.c.bf16 %v731_v47, %v730_v46  ;;  %v1656_v50 = vld [vmem:[%s2960_s3 + $0x40] sm:$0xff]  ;;  %v1657_v51 = vld [vmem:[%s2960_s3 + $0x48] sm:$0xff]  ;;  %v2171_v55 = vpack.c.bf16 %v733_v54, %v732_v53  ;;  %v1658_v56 = vld [vmem:[%s2960_s3 + $0x50] sm:$0xff]  ;;  %vm1493_vm6 = vcmask 80896   ;;  %s2346_s26 = smov [#allocation2]   ;;  %vm1571_vm7 = vcmask 41984  }
  0x29   :  { %1797 = vmatprep.subr.bf16.mxu1 %v2390_v0  ;;  %1956 = vmatpush3.bf16.msra.mxu0 %v2414_v4  ;;  %v2156_v52 = vpack.c.bf16 %v1657_v51, %v1656_v50  ;;  %v1659_v57 = vld [vmem:[%s2960_s3 + $0x58] sm:$0xff]  ;;  %v734_v59 = vld [vmem:[%s2960_s3 + $0x20] sm:$0xff]  ;;  %v735_v60 = vld [vmem:[%s2960_s3 + $0x28] sm:$0xff]  ;;  %s1579_s27 = sshll.u32 %s2346_s26, 4  ;;  %s1580_s27 = int_to_ptr.vmem [resolvable:$true] %s1579_s27 }
  0x2a   :  { %1829 = vmatprep.subr.bf16.mxu0 %v2390_v0  ;;  %v2159_v58 = vpack.c.bf16 %v1659_v57, %v1658_v56  ;;  %v2174_v61 = vpack.c.bf16 %v735_v60, %v734_v59  ;;  %v1660_v62 = vld [vmem:[%s2960_s3 + $0x60] sm:$0xff]  ;;  %v1661_v63 = vld [vmem:[%s2960_s3 + $0x68] sm:$0xff]  ;;  %vm2265_vm5 = vmpackc.low %vm1497_vm3, %vm2345_vm4  ;;  %s2318_s28 = scalar_lea.vmem %s1580_s27, 32  ;;  %p2323_p1 = scmp.lt.s32.totalorder %s1580_s27, %s1580_s27 }
  0x2b   :  { %251 = vmatmul.mubr.bf16.gmra.mrb[4].mxu0 %v1590_v27  ;;  %377 = vmatmul.mubr.bf16.vlgmr.msra.gmra.mrb[4].mxu1 %v2296_v26  ;;  %v2162_v0 = vpack.c.bf16 %v1661_v63, %v1660_v62  ;;  %p2319_p0 = scmp.ne.s32.totalorder %s1580_s27, %s2318_s28  ;;  %p2324_p2 = scmp.lt.s32.totalorder %s2318_s28, %s2318_s28 }
  0x2c   :  { %1798 = vmatpush3.bf16.msra.mxu1 %v2401_v2  ;;  %384 = vmatprep.mubr.bf16.mxu1 %v1623_v28 }
  0x2d   :  { %1799 = vmatprep.subr.bf16.mxu1 %v2407_v3  ;;  %1957 = vmatprep.mubr.msk.bf16.mxu0 %vm203_vm0, %v2301_v29  ;;  %p2325_p3 = por %p2324_p2, %p2323_p1 }
  0x2f   :  { %p2326_p4 = pnand %p2325_p3, %p2319_p0 }
  0x30   :  { %1800 = vmatpush3.bf16.msra.mxu1 %v2420_v5 }
  0x31   :  { %1801 = vmatprep.subr.bf16.mxu1 %v2429_v7 }
  0x33   :  { %385 = vmatmul.mubr.bf16.gmra.mrb[8].mxu1 %v1622_v30  ;;  %1958 = vmatmul.mubr.msk.bf16.vlgmr.msra.gmra.mrb[8].mxu0 %vm203_vm0, %v2303_v31 }
  0x34   :  { %1802 = vmatpush3.bf16.msra.mxu1 %v2439_v9  ;;  %1830 = vmatpush3.bf16.msra.mxu0 %v2401_v2  ;;  %v737_v2 = vld [vmem:[%s2960_s3 + $0x38] sm:$0xff] }
  0x35   :  { %1803 = vmatprep.subr.bf16.mxu1 %v2447_v10  ;;  %1831 = vmatprep.subr.bf16.mxu0 %v2407_v3 }
  0x36   :  { %513 = vmatprep.mubr.bf16.mxu1 %v2306_v32  ;;  %650 = vmatprep.mubr.bf16.mxu0 %v2311_v33 }
  0x38   :  { %1804 = vmatpush3.bf16.msra.mxu1 %v2455_v11  ;;  %1832 = vmatpush3.bf16.msra.mxu0 %v2420_v5  ;;  %v1663_v5 = vld [vmem:[%s2960_s3 + $0x78] sm:$0xff] }
  0x39   :  { %1805 = vmatprep.subr.bf16.mxu1 %v2462_v12  ;;  %1833 = vmatprep.subr.bf16.mxu0 %v2429_v7  ;;  %v2344_v7 = vmov 0.0  }
  0x3c   :  { %1806 = vmatpush3.bf16.msra.mxu1 %v2469_v13  ;;  %1834 = vmatpush3.bf16.msra.mxu0 %v2439_v9 }
  0x3d   :  { %1807 = vmatprep.subr.bf16.mxu1 %v2476_v14  ;;  %1835 = vmatprep.subr.bf16.mxu0 %v2447_v10 }
  0x40   :  { %1808 = vmatpush3.bf16.msra.mxu1 %v2483_v15  ;;  %1836 = vmatpush3.bf16.msra.mxu0 %v2455_v11 }
  0x41   :  { %1809 = vmatprep.subr.bf16.mxu1 %v2493_v17  ;;  %1837 = vmatprep.subr.bf16.mxu0 %v2462_v12 }
  0x44   :  { %1810 = vmatpush3.bf16.msra.mxu1 %v2503_v19  ;;  %1838 = vmatpush3.bf16.msra.mxu0 %v2469_v13 }
  0x45   :  { %1811 = vmatprep.subr.bf16.mxu1 %v2510_v20  ;;  %1839 = vmatprep.subr.bf16.mxu0 %v2476_v14 }
  0x48   :  { %1812 = vmatpush3.bf16.msra.mxu1 %v2517_v21  ;;  %1840 = vmatpush3.bf16.msra.mxu0 %v2483_v15 }
  0x49   :  { %1961 = vmatprep.subr.bf16.mxu1 %v2395_v1  ;;  %1841 = vmatprep.subr.bf16.mxu0 %v2493_v17 }
  0x4b   :  { %514 = vmatmul.mubr.bf16.vlgmr.msra.gmra.mrb[12].mxu1 %v2304_v35 }
  0x4c   :  { %1962 = vmatpush3.bf16.msra.mxu1 %v2395_v1  ;;  %1842 = vmatpush3.bf16.msra.mxu0 %v2503_v19 }
  0x4d   :  { %521 = vmatprep.mubr.bf16.mxu1 %v1637_v36  ;;  %1963 = vmatprep.subr.bf16.mxu1 %v2414_v4 }
  0x4e   :  { %1843 = vmatprep.subr.bf16.mxu0 %v2510_v20 }
  0x50   :  { %1964 = vmatpush3.bf16.msra.mxu1 %v2414_v4  ;;  %1844 = vmatpush3.bf16.msra.mxu0 %v2517_v21 }
  0x51   :  { %1969 = vmatprep.subr.bf16.mxu1 %v2395_v1  ;;  %2155 = vmatprep.subr.bf16.mxu0 %v2342_v49 }
  0x53   :  { %522 = vmatmul.mubr.bf16.gmra.mrb[16].mxu1 %v1636_v38  ;;  %651 = vmatmul.mubr.bf16.vlgmr.msra.gmra.mrb[12].mxu0 %v2309_v39 }
  0x54   :  { %1965 = vmatprep.mubr.msk.bf16.mxu1 %vm203_vm0, %v2312_v40  ;;  %658 = vmatprep.mubr.bf16.mxu0 %v1651_v41 }
  0x55   :  { %2157 = vmatpush3.bf16.msra.mxu0 %v2156_v52 }
  0x56   :  { %2158 = vmatprep.subr.bf16.mxu0 %v2342_v49 }
  0x59   :  { %2160 = vmatpush3.bf16.msra.mxu0 %v2159_v58 }
  0x5a   :  { %2161 = vmatprep.subr.bf16.mxu0 %v2342_v49 }
  0x5b   :  { %1966 = vmatmul.mubr.msk.bf16.vlgmr.msra.gmra.mrb[20].mxu1 %vm203_vm0, %v2313_v42  ;;  %659 = vmatmul.mubr.bf16.gmra.mrb[16].mxu0 %v1650_v43 }
  0x5c   :  { %1970 = vmatpush3.bf16.msra.mxu1 %v2395_v1  ;;  %1973 = vmatprep.mubr.msk.bf16.mxu1 %vm203_vm0, %v2316_v44  ;;  %v736_v1 = vld [vmem:[%s2960_s3 + $0x30] sm:$0xff] }
  0x5d   :  { %1971 = vmatprep.subr.bf16.mxu1 %v2414_v4  ;;  %2163 = vmatpush3.bf16.msra.mxu0 %v2162_v0  ;;  %v2177_v3 = vpack.c.bf16 %v737_v2, %v736_v1 }
  0x5e   :  { %2164 = vmatprep.subr.bf16.mxu0 %v2342_v49  ;;  %1993 = vmatprep.mubr.msk.f32.mxu0 %vm2343_vm1, %v2344_v7 }
  0x60   :  { %1972 = vmatpush3.bf16.msra.mxu1 %v2414_v4  ;;  %v1662_v4 = vld [vmem:[%s2960_s3 + $0x70] sm:$0xff] }
  0x61   :  { %2167 = vmatprep.subr.bf16.mxu1 %v2342_v49  ;;  %v2165_v6 = vpack.c.bf16 %v1663_v5, %v1662_v4 }
  0x63   :  { %1974 = vmatmul.mubr.msk.bf16.vlgmr.msra.gmra.mrb[24].mxu1 %vm203_vm0, %v2317_v45  ;;  %2166 = vmatpush3.bf16.msra.mxu0 %v2165_v6 }
  0x64   :  { %2169 = vmatpush3.bf16.msra.mxu1 %v2168_v48  ;;  %2012 = vmatprep.mubr.msk.f32.mxu1 %vm2343_vm1, %v2344_v7 }
  0x65   :  { %2170 = vmatprep.subr.bf16.mxu1 %v2342_v49  ;;  %2179 = vmatprep.subr.bf16.mxu0 %v2342_v49 }
  0x68   :  { %2172 = vmatpush3.bf16.msra.mxu1 %v2171_v55 }
  0x69   :  { %2173 = vmatprep.subr.bf16.mxu1 %v2342_v49 }
  0x6c   :  { %2175 = vmatpush3.bf16.msra.mxu1 %v2174_v61 }
  0x6d   :  { %2176 = vmatprep.subr.bf16.mxu1 %v2342_v49 }
  0x70   :  { %2178 = vmatpush3.bf16.msra.mxu1 %v2177_v3 }
  0x71   :  { %2191 = vmatprep.subr.bf16.mxu1 %v2342_v49 }
  0xde   :  { %v1951_v8 = vpop.f32.mrb[0].mxu1 }
  0xdf   :  { %v292_v9 = vpop.f32.mrb[1].mxu1 }
  0xe0   :  { %v1952_v10 = vpop.f32.mrb[2].mxu1 }
  0xe1   :  { %v295_v11 = vpop.f32.mrb[3].mxu1 }
  0xf6   :  { %v1749_v12 = vpop.f32.mrb[0].mxu0 }
  0xf7   :  { %v1750_v13 = vpop.f32.mrb[1].mxu0 }
  0xf8   :  { %v1751_v14 = vadd.f32 %v1750_v13, %v1749_v12  ;;  %v1752_v15 = vpop.f32.mrb[2].mxu0 }
  0xf9   :  { %v1753_v16 = vpop.f32.mrb[3].mxu0 }
  0xfa   :  { %v293_v17 = vadd.f32 %v1751_v14, %v292_v9  ;;  %v1754_v18 = vadd.f32 %v1753_v16, %v1752_v15 }
  0xfc   :  { %v296_v19 = vadd.f32 %v1754_v18, %v295_v11 }
  0xfe   :  { %v1755_v20 = vpop.f32.mrb[4].mxu0  ;;  %v1781_v21 = vpop.f32.mrb[4].mxu1 }
  0xff   :  { %v1756_v22 = vpop.f32.mrb[5].mxu0  ;;  %v1782_v23 = vpop.f32.mrb[5].mxu1 }
 0x100   :  { %v1757_v24 = vadd.f32 %v1756_v22, %v1755_v20  ;;  %v1783_v25 = vadd.f32 %v1782_v23, %v1781_v21  ;;  %v1784_v26 = vpop.f32.mrb[6].mxu1  ;;  %v1758_v27 = vpop.f32.mrb[6].mxu0  ;;  %v2692_v20 = vld [vmem:[%s2959_s2] ss:$0 sm:$0xff] }
 0x101   :  { %v1785_v28 = vpop.f32.mrb[7].mxu1  ;;  %v1759_v29 = vpop.f32.mrb[7].mxu0  ;;  %v1675_v27 = vld [vmem:[%s2960_s3 + $0xc0] sm:$0xff] }
 0x102   :  { %v301_v30 = vadd.f32 %v1951_v8, %v1757_v24  ;;  %v1786_v31 = vadd.f32 %v1785_v28, %v1784_v26  ;;  %v1676_v28 = vld [vmem:[%s2960_s3 + $0xc8] sm:$0xff] }
 0x106   :  { %v1787_v32 = vpop.f32.mrb[8].mxu1  ;;  %v1959_v33 = vpop.f32.mrb[8].mxu0 }
 0x107   :  { %v1788_v34 = vpop.f32.mrb[9].mxu1  ;;  %v426_v35 = vpop.f32.mrb[9].mxu0 }
 0x108   :  { %v1789_v36 = vadd.f32 %v1788_v34, %v1787_v32  ;;  %v427_v37 = vadd.f32 %v1783_v25, %v426_v35  ;;  %v1960_v38 = vpop.f32.mrb[10].mxu0  ;;  %v1790_v39 = vpop.f32.mrb[10].mxu1  ;;  %v1666_v32 = vld [vmem:[%s2960_s3 + $0x80] sm:$0xff]  ;;  %v2192_v34 = vpack.c.bf16 %v1676_v28, %v1675_v27  ;;  %v1713_v28 = vld [vmem:[%s2960_s3 + $0x1d0] sm:$0xff] }
 0x109   :  { %v429_v40 = vpop.f32.mrb[11].mxu0  ;;  %v1791_v41 = vpop.f32.mrb[11].mxu1 }
 0x10a   :  { %v435_v42 = vadd.f32 %v1959_v33, %v1789_v36  ;;  %v440_v43 = vmax.f32 %v293_v17, %v427_v37  ;;  %v430_v44 = vadd.f32 %v1786_v31, %v429_v40  ;;  %v1667_v33 = vld [vmem:[%s2960_s3 + $0x88] sm:$0xff]  ;;  %v1677_v36 = vld [vmem:[%s2960_s3 + $0xd0] sm:$0xff]  ;;  %v1678_v37 = vld [vmem:[%s2960_s3 + $0xd8] sm:$0xff] }
 0x10b   :  { %v2180_v38 = vpack.c.bf16 %v1667_v33, %v1666_v32  ;;  %v1668_v40 = vld [vmem:[%s2960_s3 + $0x90] sm:$0xff]  ;;  %v1669_v41 = vld [vmem:[%s2960_s3 + $0x98] sm:$0xff] }
 0x10c   :  { %v441_v45 = vmax.f32 %v296_v19, %v430_v44  ;;  %v442_v46 = vmax.f32 %v301_v30, %v435_v42  ;;  %v2195_v42 = vpack.c.bf16 %v1678_v37, %v1677_v36  ;;  %v1680_v44 = vld [vmem:[%s2960_s3 + $0xe8] sm:$0xff]  ;;  %v1704_v32 = vld [vmem:[%s2960_s3 + $0x190] sm:$0xff]  ;;  %v1705_v33 = vld [vmem:[%s2960_s3 + $0x198] sm:$0xff] }
 0x10d   :  { %v1716_v36 = vld [vmem:[%s2960_s3 + $0x1e8] sm:$0xff]  ;;  %v2231_v37 = vpack.c.bf16 %v1705_v33, %v1704_v32 }
 0x11e   :  { %v1813_v47 = vpop.f32.mrb[12].mxu1 }
 0x11f   :  { %v1814_v48 = vpop.f32.mrb[13].mxu1 }
 0x120   :  { %v1815_v50 = vadd.f32 %v1814_v48, %v1813_v47  ;;  %v1816_v51 = vpop.f32.mrb[14].mxu1  ;;  %v1671_v47 = vld [vmem:[%s2960_s3 + $0xa8] sm:$0xff] }
 0x121   :  { %v1817_v52 = vpop.f32.mrb[15].mxu1 }
 0x122   :  { %v1818_v53 = vadd.f32 %v1817_v52, %v1816_v51  ;;  %v1682_v51 = vld [vmem:[%s2960_s3 + $0xf8] sm:$0xff] }
 0x126   :  { %v1819_v54 = vpop.f32.mrb[16].mxu1  ;;  %v1845_v55 = vpop.f32.mrb[12].mxu0 }
 0x127   :  { %v1820_v56 = vpop.f32.mrb[17].mxu1  ;;  %v1846_v57 = vpop.f32.mrb[13].mxu0 }
 0x128   :  { %v1821_v58 = vadd.f32 %v1820_v56, %v1819_v54  ;;  %v1822_v59 = vpop.f32.mrb[18].mxu1  ;;  %v1847_v60 = vadd.f32 %v1846_v57, %v1845_v55  ;;  %v1848_v61 = vpop.f32.mrb[14].mxu0  ;;  %v1673_v54 = vld [vmem:[%s2960_s3 + $0xb8] sm:$0xff]  ;;  %v1693_v56 = vld [vmem:[%s2960_s3 + $0x140] sm:$0xff]  ;;  %v1694_v57 = vld [vmem:[%s2960_s3 + $0x148] sm:$0xff] }
 0x129   :  { %v1823_v62 = vpop.f32.mrb[19].mxu1  ;;  %v1849_v63 = vpop.f32.mrb[15].mxu0  ;;  %v1684_v59 = vld [vmem:[%s2960_s3 + $0x100] sm:$0xff] }
 0x12a   :  { %v1850_v0 = vadd.f32 %v1849_v63, %v1848_v61  ;;  %v2216_v61 = vpack.c.bf16 %v1694_v57, %v1693_v56  ;;  %v1695_v63 = vld [vmem:[%s2960_s3 + $0x150] sm:$0xff]  ;;  %v1724_v57 = vld [vmem:[%s2960_s3 + $0x220] sm:$0xff] }
 0x12e   :  { %v1967_v1 = vpop.f32.mrb[20].mxu1  ;;  %v1851_v2 = vpop.f32.mrb[16].mxu0 }
 0x12f   :  { %v572_v3 = vadd.f32 %v1967_v1, %v1821_v58  ;;  %v563_v4 = vpop.f32.mrb[21].mxu1  ;;  %v1852_v5 = vpop.f32.mrb[17].mxu0 }
 0x130   :  { %v564_v6 = vadd.f32 %v1815_v50, %v563_v4  ;;  %v1968_v8 = vpop.f32.mrb[22].mxu1  ;;  %v1853_v9 = vadd.f32 %v1852_v5, %v1851_v2  ;;  %v1854_v10 = vpop.f32.mrb[18].mxu0  ;;  %v1681_v50 = vld [vmem:[%s2960_s3 + $0xf0] sm:$0xff]  ;;  %v1687_v4 = vld [vmem:[%s2960_s3 + $0x118] sm:$0xff] }
 0x131   :  { %v579_v11 = vmax.f32 %v442_v46, %v572_v3  ;;  %v566_v12 = vpop.f32.mrb[23].mxu1  ;;  %v1855_v13 = vpop.f32.mrb[19].mxu0  ;;  %v1670_v46 = vld [vmem:[%s2960_s3 + $0xa0] sm:$0xff]  ;;  %v2201_v55 = vpack.c.bf16 %v1682_v51, %v1681_v50  ;;  %v1686_v3 = vld [vmem:[%s2960_s3 + $0x110] sm:$0xff]  ;;  %v1698_v8 = vld [vmem:[%s2960_s3 + $0x168] sm:$0xff] }
 0x132   :  { %v577_v14 = vmax.f32 %v440_v43, %v564_v6  ;;  %v567_v15 = vadd.f32 %v1818_v53, %v566_v12  ;;  %v1679_v43 = vld [vmem:[%s2960_s3 + $0xe0] sm:$0xff]  ;;  %v2186_v52 = vpack.c.bf16 %v1671_v47, %v1670_v46  ;;  %v1672_v53 = vld [vmem:[%s2960_s3 + $0xb0] sm:$0xff]  ;;  %v1721_v50 = vld [vmem:[%s2960_s3 + $0x208] sm:$0xff] }
 0x133   :  { %v2198_v48 = vpack.c.bf16 %v1680_v44, %v1679_v43  ;;  %v2189_v58 = vpack.c.bf16 %v1673_v54, %v1672_v53  ;;  %v1697_v6 = vld [vmem:[%s2960_s3 + $0x160] sm:$0xff]  ;;  %v1708_v44 = vld [vmem:[%s2960_s3 + $0x1b0] sm:$0xff] }
 0x134   :  { %v2687_v16 = vmax.f32 %v441_v45, %v567_v15  ;;  %v2183_v45 = vpack.c.bf16 %v1669_v41, %v1668_v40  ;;  %v1688_v10 = vld [vmem:[%s2960_s3 + $0x120] sm:$0xff]  ;;  %v2222_v12 = vpack.c.bf16 %v1698_v8, %v1697_v6  ;;  %v1700_v15 = vld [vmem:[%s2960_s3 + $0x178] sm:$0xff]  ;;  %v1717_v41 = vld [vmem:[%s2960_s3 + $0x1f0] sm:$0xff] }
 0x135   :  { %v1722_v54 = vld [vmem:[%s2960_s3 + $0x210] sm:$0xff] }
 0x136   :  { %v1975_v17 = vpop.f32.mrb[24].mxu1 }
 0x137   :  { %v709_v18 = vadd.f32 %v1975_v17, %v1853_v9  ;;  %v700_v19 = vpop.f32.mrb[25].mxu1  ;;  %v2207_v9 = vpack.c.bf16 %v1687_v4, %v1686_v3 }
 0x138   :  { %v701_v21 = vadd.f32 %v1847_v60, %v700_v19  ;;  %v1976_v22 = vpop.f32.mrb[26].mxu1  ;;  %v1685_v60 = vld [vmem:[%s2960_s3 + $0x108] sm:$0xff] }
 0x139   :  { %v716_v23 = vmax.f32 %v579_v11, %v709_v18  ;;  %v703_v24 = vpop.f32.mrb[27].mxu1  ;;  %v2204_v1 = vpack.c.bf16 %v1685_v60, %v1684_v59  ;;  %v1689_v11 = vld [vmem:[%s2960_s3 + $0x128] sm:$0xff]  ;;  %v1691_v18 = vld [vmem:[%s2960_s3 + $0x138] sm:$0xff]  ;;  %v1726_v60 = vld [vmem:[%s2960_s3 + $0x230] sm:$0xff] }
 0x13a   :  { %v714_v25 = vmax.f32 %v577_v14, %v701_v21  ;;  %v2694_v26 = vadd.f32 %v1850_v0, %v703_v24  ;;  %v1696_v0 = vld [vmem:[%s2960_s3 + $0x158] sm:$0xff]  ;;  %v1699_v14 = vld [vmem:[%s2960_s3 + $0x170] sm:$0xff]  ;;  %v2210_v17 = vpack.c.bf16 %v1689_v11, %v1688_v10  ;;  %v1711_v21 = vld [vmem:[%s2960_s3 + $0x1c0] sm:$0xff] }
 0x13b   :  { %v2703_v29 = vadd.f32 %v2692_v20, %v716_v23  ;;  %v2219_v5 = vpack.c.bf16 %v1696_v0, %v1695_v63  ;;  %v2225_v19 = vpack.c.bf16 %v1700_v15, %v1699_v14  ;;  %v1712_v22 = vld [vmem:[%s2960_s3 + $0x1c8] sm:$0xff]  ;;  %v1702_v24 = vld [vmem:[%s2960_s3 + $0x180] sm:$0xff] }
 0x13c   :  { %v724_v30 = vadd.f32 %v2692_v20, %v714_v25  ;;  %v715_v31 = vmax.f32 %v2687_v16, %v2694_v26  ;;  %v1690_v16 = vld [vmem:[%s2960_s3 + $0x130] sm:$0xff]  ;;  %v1703_v25 = vld [vmem:[%s2960_s3 + $0x188] sm:$0xff]  ;;  %v2240_v26 = vpack.c.bf16 %v1712_v22, %v1711_v21  ;;  %v1484_v63 = vld [vmem:[%s2962_s5] sm:$0xff] }
 0x13d   :  { %v2213_v23 = vpack.c.bf16 %v1691_v18, %v1690_v16  ;;  %v1485_v0 = vld [vmem:[%s2962_s5 + $0x8] sm:$0x3] }
 0x13e   :  { %v727_v35 = vmax.f32 %v724_v30, 0.0  ;;  %v725_v13 = vadd.f32 %v2692_v20, %v715_v31  ;;  %v1714_v30 = vld [vmem:[%s2960_s3 + $0x1d8] sm:$0xff]  ;;  %v2228_v31 = vpack.c.bf16 %v1703_v25, %v1702_v24  ;;  %v1729_v25 = vld [vmem:[%s2961_s4] ss:$0 sm:$0xff] }
 0x140   :  { %v748_v39 = vrot.slane %v727_v35, 2  ;;  %2013 = vmatmul.mubr.msk.f32.vlgmr.msra.gmra.mrb[28].mxu1 %vm749_vm2, %v727_v35  ;;  %v986_v62 = vrot.slane %v727_v35, 6  ;;  %v903_v2 = vrot.slane %v727_v35, 4  ;;  %v2826_v20 = vmax.f32 %v725_v13, 0.0  ;;  %v1715_v35 = vld [vmem:[%s2960_s3 + $0x1e0] sm:$0xff] }
 0x141   :  { %2193 = vmatpush3.bf16.msra.mxu1 %v2192_v34  ;;  %2050 = vmatprep.mubr.msk.f32.mxu1 %vm2343_vm1, %v2344_v7  ;;  %v2243_v34 = vpack.c.bf16 %v1714_v30, %v1713_v28  ;;  %v2246_v40 = vpack.c.bf16 %v1716_v36, %v1715_v35 }
 0x142   :  { %1994 = vmatmul.mubr.msk.f32.vlgmr.msra.gmra.mrb[20].mxu0 %vm749_vm2, %v748_v39  ;;  %2194 = vmatprep.subr.bf16.mxu1 %v2342_v49  ;;  %v1152_v27 = vrot.slane %v2826_v20, 2  ;;  %v1707_v39 = vld [vmem:[%s2960_s3 + $0x1a8] sm:$0xff]  ;;  %v1318_v51 = vrot.slane %v2826_v20, 6  ;;  %v1235_v53 = vrot.slane %v2826_v20, 4 }
 0x143   :  { %2181 = vmatpush3.bf16.msra.mxu0 %v2180_v38  ;;  %2031 = vmatprep.mubr.msk.f32.mxu0 %vm2343_vm1, %v2344_v7  ;;  %v1706_v38 = vld [vmem:[%s2960_s3 + $0x1a0] sm:$0xff] }
 0x144   :  { %2182 = vmatprep.subr.bf16.mxu0 %v2342_v49  ;;  %v2234_v43 = vpack.c.bf16 %v1707_v39, %v1706_v38 }
 0x145   :  { %2196 = vmatpush3.bf16.msra.mxu1 %v2195_v42  ;;  %v1718_v42 = vld [vmem:[%s2960_s3 + $0x1f8] sm:$0xff] }
 0x146   :  { %2197 = vmatprep.subr.bf16.mxu1 %v2342_v49  ;;  %v2249_v46 = vpack.c.bf16 %v1718_v42, %v1717_v41 }
 0x147   :  { %2184 = vmatpush3.bf16.msra.mxu0 %v2183_v45  ;;  %v1709_v45 = vld [vmem:[%s2960_s3 + $0x1b8] sm:$0xff] }
 0x148   :  { %2185 = vmatprep.subr.bf16.mxu0 %v2342_v49  ;;  %v2237_v47 = vpack.c.bf16 %v1709_v45, %v1708_v44 }
 0x149   :  { %2199 = vmatpush3.bf16.msra.mxu1 %v2198_v48  ;;  %v1720_v48 = vld [vmem:[%s2960_s3 + $0x200] sm:$0xff] }
 0x14a   :  { %2200 = vmatprep.subr.bf16.mxu1 %v2342_v49 }
 0x14b   :  { %2187 = vmatpush3.bf16.msra.mxu0 %v2186_v52  ;;  %v2252_v52 = vpack.c.bf16 %v1721_v50, %v1720_v48 }
 0x14c   :  { %2188 = vmatprep.subr.bf16.mxu0 %v2342_v49 }
 0x14d   :  { %2202 = vmatpush3.bf16.msra.mxu1 %v2201_v55  ;;  %v1723_v55 = vld [vmem:[%s2960_s3 + $0x218] sm:$0xff] }
 0x14e   :  { %2215 = vmatprep.subr.bf16.mxu1 %v2342_v49  ;;  %v2255_v56 = vpack.c.bf16 %v1723_v55, %v1722_v54 }
 0x14f   :  { %2190 = vmatpush3.bf16.msra.mxu0 %v2189_v58  ;;  %v1725_v58 = vld [vmem:[%s2960_s3 + $0x228] sm:$0xff] }
 0x150   :  { %2051 = vmatmul.mubr.msk.f32.vlgmr.msra.gmra.mrb[30].mxu1 %vm749_vm2, %v986_v62  ;;  %2203 = vmatprep.subr.bf16.mxu0 %v2342_v49  ;;  %v2258_v59 = vpack.c.bf16 %v1725_v58, %v1724_v57  ;;  %v729_v62 = vmax.f32 %v2703_v29, 0.0 }
 0x151   :  { %2217 = vmatpush3.bf16.msra.mxu1 %v2216_v61  ;;  %2088 = vmatprep.mubr.msk.f32.mxu1 %vm2343_vm1, %v2344_v7 }
 0x152   :  { %2032 = vmatmul.mubr.msk.f32.vlgmr.msra.gmra.mrb[22].mxu0 %vm749_vm2, %v903_v2  ;;  %2218 = vmatprep.subr.bf16.mxu1 %v2342_v49 }
 0x153   :  { %2205 = vmatpush3.bf16.msra.mxu0 %v2204_v1  ;;  %2069 = vmatprep.mubr.msk.f32.mxu0 %vm2343_vm1, %v2344_v7  ;;  %v2264_v1 = vpack.c.bf16 %v1485_v0, %v1484_v63 }
 0x154   :  { %2206 = vmatprep.subr.bf16.mxu0 %v2342_v49 }
 0x155   :  { %2220 = vmatpush3.bf16.msra.mxu1 %v2219_v5 }
 0x156   :  { %2221 = vmatprep.subr.bf16.mxu1 %v2342_v49 }
 0x157   :  { %2208 = vmatpush3.bf16.msra.mxu0 %v2207_v9 }
 0x158   :  { %2209 = vmatprep.subr.bf16.mxu0 %v2342_v49 }
 0x159   :  { %2223 = vmatpush3.bf16.msra.mxu1 %v2222_v12 }
 0x15a   :  { %2224 = vmatprep.subr.bf16.mxu1 %v2342_v49 }
 0x15b   :  { %2211 = vmatpush3.bf16.msra.mxu0 %v2210_v17 }
 0x15c   :  { %2212 = vmatprep.subr.bf16.mxu0 %v2342_v49 }
 0x15d   :  { %2226 = vmatpush3.bf16.msra.mxu1 %v2225_v19 }
 0x15e   :  { %2239 = vmatprep.subr.bf16.mxu1 %v2342_v49 }
 0x15f   :  { %2214 = vmatpush3.bf16.msra.mxu0 %v2213_v23 }
 0x160   :  { %2089 = vmatmul.mubr.msk.f32.vlgmr.msra.gmra.mrb[32].mxu1 %vm749_vm2, %v1152_v27  ;;  %2227 = vmatprep.subr.bf16.mxu0 %v2342_v49 }
 0x161   :  { %2241 = vmatpush3.bf16.msra.mxu1 %v2240_v26  ;;  %2126 = vmatprep.mubr.msk.f32.mxu1 %vm2343_vm1, %v2344_v7 }
 0x162   :  { %2070 = vmatmul.mubr.msk.f32.vlgmr.msra.gmra.mrb[24].mxu0 %vm749_vm2, %v2826_v20  ;;  %2242 = vmatprep.subr.bf16.mxu1 %v2342_v49 }
 0x163   :  { %2229 = vmatpush3.bf16.msra.mxu0 %v2228_v31  ;;  %2107 = vmatprep.mubr.msk.f32.mxu0 %vm2343_vm1, %v2344_v7  ;;  %v1730_v31 = vld [vmem:[%s2963_s6] ss:$0 sm:$0xff] }
 0x164   :  { %2230 = vmatprep.subr.bf16.mxu0 %v2342_v49 }
 0x165   :  { %2244 = vmatpush3.bf16.msra.mxu1 %v2243_v34 }
 0x166   :  { %2245 = vmatprep.subr.bf16.mxu1 %v2342_v49 }
 0x167   :  { %2232 = vmatpush3.bf16.msra.mxu0 %v2231_v37 }
 0x168   :  { %2233 = vmatprep.subr.bf16.mxu0 %v2342_v49 }
 0x169   :  { %2247 = vmatpush3.bf16.msra.mxu1 %v2246_v40 }
 0x16a   :  { %2248 = vmatprep.subr.bf16.mxu1 %v2342_v49 }
 0x16b   :  { %2235 = vmatpush3.bf16.msra.mxu0 %v2234_v43 }
 0x16c   :  { %2236 = vmatprep.subr.bf16.mxu0 %v2342_v49 }
 0x16d   :  { %2250 = vmatpush3.bf16.msra.mxu1 %v2249_v46 }
 0x16e   :  { %2263 = vmatprep.subr.bf16.mxu1 %v2342_v49 }
 0x16f   :  { %2238 = vmatpush3.bf16.msra.mxu0 %v2237_v47 }
 0x170   :  { %2127 = vmatmul.mubr.msk.f32.vlgmr.msra.gmra.mrb[34].mxu1 %vm749_vm2, %v1318_v51  ;;  %2251 = vmatprep.subr.bf16.mxu0 %v2342_v49 }
 0x171   :  { %2152 = vmatprep.mubr.msk.f32.mxu1 %vm2343_vm1, %v2344_v7  ;;  %2266 = vmatpush3.bf16.msk.msra.mxu1 %vm2265_vm5, %v2264_v1 }
 0x172   :  { %2108 = vmatmul.mubr.msk.f32.vlgmr.msra.gmra.mrb[26].mxu0 %vm749_vm2, %v1235_v53 }
 0x173   :  { %2253 = vmatpush3.bf16.msra.mxu0 %v2252_v52  ;;  %2145 = vmatprep.mubr.msk.f32.mxu0 %vm2343_vm1, %v2344_v7  ;;  %v1727_v7 = vld [vmem:[%s2960_s3 + $0x238] sm:$0xff] }
 0x174   :  { %2254 = vmatprep.subr.bf16.mxu0 %v2342_v49  ;;  %v2261_v61 = vpack.c.bf16 %v1727_v7, %v1726_v60 }
 0x177   :  { %2256 = vmatpush3.bf16.msra.mxu0 %v2255_v56 }
 0x178   :  { %2257 = vmatprep.subr.bf16.mxu0 %v2342_v49 }
 0x17b   :  { %2259 = vmatpush3.bf16.msra.mxu0 %v2258_v59 }
 0x17c   :  { %2260 = vmatprep.subr.bf16.mxu0 %v2342_v49 }
 0x17f   :  { %2262 = vmatpush3.bf16.msra.mxu0 %v2261_v61 }
 0x182   :  { %2146 = vmatmul.mubr.msk.f32.vlgmr.msra.gmra.mrb[28].mxu0 %vm749_vm2, %v729_v62 }
 0x213   :  { %v890_v2 = vpop.f32.mrb[28].mxu1 }
 0x214   :  { %v2014_v49 = vpop.f32.mrb[29].mxu1 }
 0x215   :  { %v818_v3 = vpop.f32.mrb[20].mxu0 }
 0x216   :  { %v891_v4 = vadd.f32 %v890_v2, %v818_v3  ;;  %v1995_v29 = vpop.f32.mrb[21].mxu0 }
 0x223   :  { %v1055_v5 = vpop.f32.mrb[30].mxu1 }
 0x224   :  { %v2052_v6 = vpop.f32.mrb[31].mxu1 }
 0x225   :  { %v972_v8 = vpop.f32.mrb[22].mxu0 }
 0x226   :  { %v976_v9 = vadd.f32 %v972_v8, %v891_v4  ;;  %v2033_v10 = vpop.f32.mrb[23].mxu0 }
 0x228   :  { %v1059_v11 = vadd.f32 %v1055_v5, %v976_v9 }
 0x233   :  { %v1221_v12 = vpop.f32.mrb[32].mxu1 }
 0x234   :  { %v2090_v13 = vpop.f32.mrb[33].mxu1 }
 0x235   :  { %v1138_v14 = vpop.f32.mrb[24].mxu0 }
 0x236   :  { %v1142_v15 = vadd.f32 %v1138_v14, %v1059_v11  ;;  %v2071_v17 = vpop.f32.mrb[25].mxu0 }
 0x238   :  { %v1225_v16 = vadd.f32 %v1221_v12, %v1142_v15 }
 0x243   :  { %v1387_v18 = vpop.f32.mrb[34].mxu1 }
 0x244   :  { %v2128_v19 = vpop.f32.mrb[35].mxu1 }
 0x245   :  { %v1304_v20 = vpop.f32.mrb[26].mxu0 }
 0x246   :  { %v1308_v21 = vadd.f32 %v1304_v20, %v1225_v16  ;;  %v2109_v22 = vpop.f32.mrb[27].mxu0 }
 0x248   :  { %v1391_v23 = vadd.f32 %v1387_v18, %v1308_v21 }
 0x255   :  { %v1470_v24 = vpop.f32.mrb[28].mxu0 }
 0x256   :  { %v1474_v26 = vadd.f32 %v1470_v24, %v1391_v23  ;;  %v2147_v27 = vpop.f32.mrb[29].mxu0 }
 0x258   :  { %v1482_v28 = vadd.f32 %v1729_v25, %v1474_v26 }
 0x25a   :  { %v1483_v30 = vmax.f32 %v1482_v28, 0.0 }
 0x25c   :  { %2153 = vmatmul.mubr.msk.f32.vlgmr.msra.gmra.mrb[36].mxu1 %vm1493_vm6, %v1483_v30 }
 0x32f   :  { %v1567_v32 = vpop.f32.mrb[36].mxu1 }
 0x330   :  { %v1568_v33 = vadd.f32 %v1730_v31, %v1567_v32  ;;  %v2154_v34 = vpop.f32.mrb[37].mxu1 }
 0x332   :  { %1572 = vst.msk [vmem:[#allocation2] sm:$0x3] %vm1571_vm7, %v1568_v33 }
 0x333   :  { %2329 = shalt.err (!%p2326_p4)
}
 0x334   :  { %s2330_s30 = scalar_lea.hbm %s2964_s7, 32 }
 0x335   :  { %p2331_p5 = scmp.ne.s32.totalorder %s2964_s7, %s2330_s30  ;;  %p2334_p6 = scmp.lt.u32.totalorder %s2330_s30, %s2964_s7 }
 0x337   :  { %p2336_p7 = pnand %p2334_p6, %p2331_p5 }
 0x339   :  { %2339 = shalt.err (!%p2336_p7)
}
 0x33a   :  { %1582 = dma.vmem_to_hbm [thread:$0]  %s1580_s27, 32, %s2964_s7, [#allocation3]  }
 0x33b   :  { %2340 = dma.done.wait [#allocation3], 32  }
 0x33c   :  { %2341 = vsyncadd [#allocation3], 4294967264 }
 0x33d   :  { %1586 = vsyncpa [#allocation3], 1 }

</bundles_post_ra>
